<compile_context>
chip_gen: v7x
topology: tpu7x:2x2x1
jax: 0.10.0
libtpu: 0.0.40
codegen_flags: <defaults>
</compile_context>

<pallas_src>
import functools

import jax
import jax.numpy as jnp
from jax.experimental import pallas as pl
from jax.experimental.pallas import tpu as pltpu

EPS = 1e-5   # nn.BatchNorm2d default eps


# ----------------------------- Pallas kernels ------------------------------ #

def _bn_train(y, m, g, b):
    """Training-mode BatchNorm over the row axis (rows = N*H*W), per channel.

    One pass: var = E[y^2] - mean^2 (biased, matching torch train mode).
    Rows >= m are zero padding and contribute nothing to the sums; we divide
    by the true row count m (static)."""
    inv_m = 1.0 / m
    s1 = jnp.sum(y, axis=0, keepdims=True) * inv_m
    s2 = jnp.sum(y * y, axis=0, keepdims=True) * inv_m
    var = jnp.maximum(s2 - s1 * s1, 0.0)
    return (y - s1) * jax.lax.rsqrt(var + EPS) * g + b


def _conv_bn_kernel(p_ref, w_ref, g_ref, b_ref, o_ref, *, m, relu):
    # Fused: (Mp,K)bf16 @ (K,C)bf16 -> f32 on the MXU, then BN (+ReLU).
    y = jnp.dot(p_ref[...], w_ref[...], preferred_element_type=jnp.float32)
    out = _bn_train(y, m, g_ref[...], b_ref[...])
    if relu:
        out = jnp.maximum(out, 0.0)
    o_ref[...] = out


def _conv_bn_add_relu_kernel(p_ref, w_ref, g_ref, b_ref, r_ref, o_ref, *, m):
    # Block tail, identity shortcut: relu(BN(p @ w) + r).
    y = jnp.dot(p_ref[...], w_ref[...], preferred_element_type=jnp.float32)
    out = _bn_train(y, m, g_ref[...], b_ref[...])
    o_ref[...] = jnp.maximum(out + r_ref[...], 0.0)


def _conv_bn_proj_add_relu_kernel(p_ref, w_ref, g_ref, b_ref,
                                  dp_ref, dw_ref, dg_ref, db_ref, o_ref, *, m):
    # Block tail, projection shortcut:
    #   relu(BN(p @ w) + BN(dp @ dw))   (1x1 stride-2 conv + its BN fused in).
    y = jnp.dot(p_ref[...], w_ref[...], preferred_element_type=jnp.float32)
    out = _bn_train(y, m, g_ref[...], b_ref[...])
    r = jnp.dot(dp_ref[...], dw_ref[...], preferred_element_type=jnp.float32)
    r = _bn_train(r, m, dg_ref[...], db_ref[...])
    o_ref[...] = jnp.maximum(out + r, 0.0)


def _avgpool_kernel(x_ref, o_ref):
    # Global average pool: (N, H*W, C) -> (N, C).
    o_ref[...] = jnp.mean(x_ref[...], axis=1)


# ------------------------------- wrappers ---------------------------------- #

def _full(shape):
    """Full-array block at grid=(1,) (no (8,128) constraint for full blocks)."""
    nd = len(shape)
    return pl.BlockSpec(shape, lambda i, _nd=nd: (0,) * _nd)


_GRID1 = pltpu.CompilerParams(dimension_semantics=("arbitrary",))


def _im2col(x, kh, kw, stride, pad):
    """x: (N,H,W,C) -> patches (N*Ho*Wo, kh*kw*C), flattened in (kh,kw,C) order."""
    if pad:
        x = jnp.pad(x, ((0, 0), (pad, pad), (pad, pad), (0, 0)))
    n, h, w, c = x.shape
    ho = (h - kh) // stride + 1
    wo = (w - kw) // stride + 1
    cols = []
    for i in range(kh):
        for j in range(kw):
            cols.append(x[:, i:i + stride * ho:stride, j:j + stride * wo:stride, :])
    patches = jnp.stack(cols, axis=3)            # (N, Ho, Wo, kh*kw, C)
    return patches.reshape(n * ho * wo, kh * kw * c), (n, ho, wo)


def _pad_rows(a, mp):
    m = a.shape[0]
    if mp == m:
        return a
    return jnp.pad(a, ((0, mp - m), (0, 0)))


def conv_bn(x, w2, gamma, beta, *, kh, kw, stride, pad, relu):
    """Fused conv (im2col matmul) + train-mode BN (+ ReLU).

    x: (N,H,W,Cin) f32; w2: (kh*kw*Cin, Cout) bf16. Returns ((M,Cout) f32, dims)."""
    patches, (n, ho, wo) = _im2col(x, kh, kw, stride, pad)
    m, k = patches.shape
    cout = w2.shape[1]
    mp = ((m + 7) // 8) * 8                       # sublane-align only (no 128 pad)
    patches = _pad_rows(patches, mp).astype(jnp.bfloat16)
    out = pl.pallas_call(
        functools.partial(_conv_bn_kernel, m=m, relu=relu),
        out_shape=jax.ShapeDtypeStruct((mp, cout), jnp.float32),
        grid=(1,),
        in_specs=[_full((mp, k)), _full((k, cout)),
                  _full((1, cout)), _full((1, cout))],
        out_specs=_full((mp, cout)),
        compiler_params=_GRID1,
    )(patches, w2, gamma.reshape(1, cout), beta.reshape(1, cout))
    return out[:m], (n, ho, wo)


def block_tail_identity(y_nhwc, w2, gamma, beta, residual_nhwc):
    """conv2 + bn2 + identity residual add + relu, one pallas_call."""
    patches, (n, ho, wo) = _im2col(y_nhwc, 3, 3, 1, 1)
    m, k = patches.shape
    cout = w2.shape[1]
    mp = ((m + 7) // 8) * 8
    patches = _pad_rows(patches, mp).astype(jnp.bfloat16)
    res = _pad_rows(residual_nhwc.reshape(m, cout), mp)
    out = pl.pallas_call(
        functools.partial(_conv_bn_add_relu_kernel, m=m),
        out_shape=jax.ShapeDtypeStruct((mp, cout), jnp.float32),
        grid=(1,),
        in_specs=[_full((mp, k)), _full((k, cout)),
                  _full((1, cout)), _full((1, cout)), _full((mp, cout))],
        out_specs=_full((mp, cout)),
        compiler_params=_GRID1,
    )(patches, w2, gamma.reshape(1, cout), beta.reshape(1, cout), res)
    return out[:m].reshape(n, ho, wo, cout)


def block_tail_projection(y_nhwc, w2, gamma, beta, x_in, ds_w, ds_gamma, ds_beta):
    """conv2 + bn2 + (1x1 stride-2 projection conv + its BN) + add + relu, fused."""
    patches, (n, ho, wo) = _im2col(y_nhwc, 3, 3, 1, 1)
    m, k = patches.shape
    cout = w2.shape[1]
    cin = ds_w.shape[0]
    mp = ((m + 7) // 8) * 8
    patches = _pad_rows(patches, mp).astype(jnp.bfloat16)
    ds_patches = x_in[:, ::2, ::2, :].reshape(m, cin)    # 1x1 stride-2 sampling
    ds_patches = _pad_rows(ds_patches, mp).astype(jnp.bfloat16)
    out = pl.pallas_call(
        functools.partial(_conv_bn_proj_add_relu_kernel, m=m),
        out_shape=jax.ShapeDtypeStruct((mp, cout), jnp.float32),
        grid=(1,),
        in_specs=[_full((mp, k)), _full((k, cout)),
                  _full((1, cout)), _full((1, cout)),
                  _full((mp, cin)), _full((cin, cout)),
                  _full((1, cout)), _full((1, cout))],
        out_specs=_full((mp, cout)),
        compiler_params=_GRID1,
    )(patches, w2, gamma.reshape(1, cout), beta.reshape(1, cout),
      ds_patches, ds_w, ds_gamma.reshape(1, cout), ds_beta.reshape(1, cout))
    return out[:m].reshape(n, ho, wo, cout)


def global_avgpool(x):
    n, ho, wo, c = x.shape
    xr = x.reshape(n, ho * wo, c)
    return pl.pallas_call(
        _avgpool_kernel,
        out_shape=jax.ShapeDtypeStruct((n, c), jnp.float32),
        grid=(1,),
        in_specs=[_full((n, ho * wo, c))],
        out_specs=_full((n, c)),
        compiler_params=_GRID1,
    )(xr)


# --------------------------- parameters / model ----------------------------- #

def init_params(key, in_channel):
    keys = iter(jax.random.split(key, 64))

    def conv_mat(kh, kw, cin, cout):
        # kaiming_normal_, mode='fan_out', relu -> std = sqrt(2 / (cout*kh*kw)).
        fan_out = cout * kh * kw
        std = (2.0 / fan_out) ** 0.5
        w = jax.random.normal(next(keys), (kh, kw, cin, cout), jnp.float32) * std
        # stored pre-reshaped for the matmul path, bf16 for the MXU.
        return w.reshape(kh * kw * cin, cout).astype(jnp.bfloat16)

    def bn(c):
        return (jnp.ones(c, jnp.float32), jnp.zeros(c, jnp.float32))

    params = {"conv1_w": conv_mat(3, 3, in_channel, 16), "bn1": bn(16)}

    def make_block(cin, cout, downsample):
        blk = {"conv1_w": conv_mat(3, 3, cin, cout), "bn1": bn(cout),
               "conv2_w": conv_mat(3, 3, cout, cout), "bn2": bn(cout)}
        if downsample:
            blk["ds_w"] = conv_mat(1, 1, cin, cout)
            blk["ds_bn"] = bn(cout)
        return blk

    def make_layer(cin, cout, num_block):
        layer = [make_block(cin, cout, True)]
        for _ in range(1, num_block):
            layer.append(make_block(cout, cout, False))
        return layer

    params["block1"] = make_layer(16, 32, 3)
    params["block2"] = make_layer(32, 64, 3)
    params["block3"] = make_layer(64, 128, 3)
    return params


def resnet_block_fwd(x, blk):
    """x: (N,H,W,Cin) -> (N,Ho,Wo,Cout)."""
    downsample = "ds_w" in blk
    stride = 2 if downsample else 1
    cout = blk["bn1"][0].shape[0]

    y, (n, ho, wo) = conv_bn(x, blk["conv1_w"], *blk["bn1"],
                             kh=3, kw=3, stride=stride, pad=1, relu=True)
    y = y.reshape(n, ho, wo, cout)

    if downsample:
        return block_tail_projection(y, blk["conv2_w"], *blk["bn2"],
                                     x, blk["ds_w"], *blk["ds_bn"])
    return block_tail_identity(y, blk["conv2_w"], *blk["bn2"], x)


def resnet20_forward(x_nchw, params):
    x = jnp.transpose(x_nchw, (0, 2, 3, 1)).astype(jnp.float32)   # NCHW -> NHWC
    # stem: conv1 is kernel 3, stride 1, padding 0 (PyTorch default), bias=False
    y, (n, ho, wo) = conv_bn(x, params["conv1_w"], *params["bn1"],
                             kh=3, kw=3, stride=1, pad=0, relu=True)
    x = y.reshape(n, ho, wo, 16)
    for layer in ("block1", "block2", "block3"):
        for blk in params[layer]:
            x = resnet_block_fwd(x, blk)
    # AdaptiveAvgPool2d((1,1)) + view(N, -1)  ->  (N, 128)
    return global_avgpool(x)


# ---------------------------------- main ------------------------------------ #

if __name__ == "__main__":
    key = jax.random.PRNGKey(0)
    pkey, xkey = jax.random.split(key)
    in_channel = 3
    params = init_params(pkey, in_channel)

    # PyTorch-convention NCHW input: batch=2, channels=3, spatial=16x16.
    x = jax.random.normal(xkey, (2, in_channel, 16, 16), jnp.float32)

    fwd = jax.jit(lambda inp: resnet20_forward(inp, params))
    out = fwd(x)
    jax.block_until_ready(out)
    assert out.shape == (2, 128) and out.dtype == jnp.float32, out.shape
    print("KERNEL_OK")
</pallas_src>

<mosaic_0001>
module attributes {stable_mosaic.version = 11 : i64} {
  func.func @_conv_bn_kernel(%arg0: i32, %arg1: memref<392x27xbf16, #tpu.memory_space<vmem>>, %arg2: memref<27x16xbf16, #tpu.memory_space<vmem>>, %arg3: memref<1x16xf32, #tpu.memory_space<vmem>>, %arg4: memref<1x16xf32, #tpu.memory_space<vmem>>, %arg5: memref<392x16xf32, #tpu.memory_space<vmem>>) attributes {dimension_semantics = [#tpu.dimension_semantics<arbitrary>], iteration_bounds = array<i64: 1>, scalar_prefetch = 0 : i64, scratch_operands = 0 : i64, tpu.core_type = #tpu.core_type<tc>, window_params = [{pipeline_mode = #tpu.pipeline_mode<synchronous>, transform_indices = @transform_0, window_bounds = array<i64: 392, 27>}, {pipeline_mode = #tpu.pipeline_mode<synchronous>, transform_indices = @transform_1, window_bounds = array<i64: 27, 16>}, {pipeline_mode = #tpu.pipeline_mode<synchronous>, transform_indices = @transform_2, window_bounds = array<i64: 1, 16>}, {pipeline_mode = #tpu.pipeline_mode<synchronous>, transform_indices = @transform_3, window_bounds = array<i64: 1, 16>}, {pipeline_mode = #tpu.pipeline_mode<synchronous>, transform_indices = @transform_4, window_bounds = array<i64: 392, 16>}]} {
    %c0 = arith.constant 0 : index
    %c0_0 = arith.constant 0 : index
    %0 = vector.load %arg1[%c0, %c0_0] : memref<392x27xbf16, #tpu.memory_space<vmem>>, vector<392x27xbf16>
    %c0_1 = arith.constant 0 : index
    %c0_2 = arith.constant 0 : index
    %1 = vector.load %arg2[%c0_1, %c0_2] : memref<27x16xbf16, #tpu.memory_space<vmem>>, vector<27x16xbf16>
    %cst = arith.constant dense<0.000000e+00> : vector<392x16xf32>
    %2 = tpu.matmul %0, %1, %cst {dimension_numbers = #tpu.dot_dimension_numbers<[1], [0], [0], [1], [0, 0, 1, 1], [], []>} : vector<392x27xbf16>, vector<27x16xbf16>, vector<392x16xf32> -> vector<392x16xf32>
    %c0_3 = arith.constant 0 : index
    %c0_4 = arith.constant 0 : index
    %3 = vector.load %arg3[%c0_3, %c0_4] : memref<1x16xf32, #tpu.memory_space<vmem>>, vector<1x16xf32>
    %c0_5 = arith.constant 0 : index
    %c0_6 = arith.constant 0 : index
    %4 = vector.load %arg4[%c0_5, %c0_6] : memref<1x16xf32, #tpu.memory_space<vmem>>, vector<1x16xf32>
    %cst_7 = arith.constant dense<0.000000e+00> : vector<16xf32>
    %5 = vector.multi_reduction <add>, %2, %cst_7 [0] : vector<392x16xf32> to vector<16xf32>
    %6 = vector.shape_cast %5 : vector<16xf32> to vector<1x16xf32>
    %cst_8 = arith.constant 0.00255102036 : f32
    %7 = vector.broadcast %cst_8 : f32 to vector<1x16xf32>
    %8 = arith.mulf %6, %7 : vector<1x16xf32>
    %9 = arith.mulf %2, %2 : vector<392x16xf32>
    %cst_9 = arith.constant dense<0.000000e+00> : vector<16xf32>
    %10 = vector.multi_reduction <add>, %9, %cst_9 [0] : vector<392x16xf32> to vector<16xf32>
    %11 = vector.shape_cast %10 : vector<16xf32> to vector<1x16xf32>
    %cst_10 = arith.constant 0.00255102036 : f32
    %12 = vector.broadcast %cst_10 : f32 to vector<1x16xf32>
    %13 = arith.mulf %11, %12 : vector<1x16xf32>
    %14 = arith.mulf %8, %8 : vector<1x16xf32>
    %15 = arith.subf %13, %14 : vector<1x16xf32>
    %cst_11 = arith.constant 0.000000e+00 : f32
    %16 = vector.broadcast %cst_11 : f32 to vector<1x16xf32>
    %17 = arith.maximumf %15, %16 : vector<1x16xf32>
    %18 = vector.broadcast %8 : vector<1x16xf32> to vector<392x16xf32>
    %19 = arith.subf %2, %18 : vector<392x16xf32>
    %cst_12 = arith.constant 9.99999974E-6 : f32
    %20 = vector.broadcast %cst_12 : f32 to vector<1x16xf32>
    %21 = arith.addf %17, %20 : vector<1x16xf32>
    %22 = math.rsqrt %21 : vector<1x16xf32>
    %23 = vector.broadcast %22 : vector<1x16xf32> to vector<392x16xf32>
    %24 = arith.mulf %19, %23 : vector<392x16xf32>
    %25 = vector.broadcast %3 : vector<1x16xf32> to vector<392x16xf32>
    %26 = arith.mulf %24, %25 : vector<392x16xf32>
    %27 = vector.broadcast %4 : vector<1x16xf32> to vector<392x16xf32>
    %28 = arith.addf %26, %27 : vector<392x16xf32>
    %cst_13 = arith.constant 0.000000e+00 : f32
    %29 = vector.broadcast %cst_13 : f32 to vector<392x16xf32>
    %30 = arith.maximumf %28, %29 : vector<392x16xf32>
    %c0_14 = arith.constant 0 : index
    %c0_15 = arith.constant 0 : index
    %31 = vector.load %arg5[%c0_14, %c0_15] : memref<392x16xf32, #tpu.memory_space<vmem>>, vector<392x16xf32>
    tpu.vector_store %arg5[%c0_14, %c0_15], %30 {strides = array<i32>} : memref<392x16xf32, #tpu.memory_space<vmem>>, vector<392x16xf32>,
    return
  }
  func.func @transform_0(%arg0: i32) -> (i32, i32) {
    %c0_i32 = arith.constant 0 : i32
    %c0_i32_0 = arith.constant 0 : i32
    %c0_i32_1 = arith.constant 0 : i32
    return %c0_i32, %c0_i32_0 : i32, i32
  }
  func.func @transform_1(%arg0: i32) -> (i32, i32) {
    %c0_i32 = arith.constant 0 : i32
    %c0_i32_0 = arith.constant 0 : i32
    %c0_i32_1 = arith.constant 0 : i32
    return %c0_i32, %c0_i32_0 : i32, i32
  }
  func.func @transform_2(%arg0: i32) -> (i32, i32) {
    %c0_i32 = arith.constant 0 : i32
    %c0_i32_0 = arith.constant 0 : i32
    %c0_i32_1 = arith.constant 0 : i32
    return %c0_i32, %c0_i32_0 : i32, i32
  }
  func.func @transform_3(%arg0: i32) -> (i32, i32) {
    %c0_i32 = arith.constant 0 : i32
    %c0_i32_0 = arith.constant 0 : i32
    %c0_i32_1 = arith.constant 0 : i32
    return %c0_i32, %c0_i32_0 : i32, i32
  }
  func.func @transform_4(%arg0: i32) -> (i32, i32) {
    %c0_i32 = arith.constant 0 : i32
    %c0_i32_0 = arith.constant 0 : i32
    %c0_i32_1 = arith.constant 0 : i32
    return %c0_i32, %c0_i32_0 : i32, i32
  }
}

module attributes {stable_mosaic.version = 11 : i64} {
  func.func @_conv_bn_kernel(%arg0: i32, %arg1: memref<104x144xbf16, #tpu.memory_space<vmem>>, %arg2: memref<144x32xbf16, #tpu.memory_space<vmem>>, %arg3: memref<1x32xf32, #tpu.memory_space<vmem>>, %arg4: memref<1x32xf32, #tpu.memory_space<vmem>>, %arg5: memref<104x32xf32, #tpu.memory_space<vmem>>) attributes {dimension_semantics = [#tpu.dimension_semantics<arbitrary>], iteration_bounds = array<i64: 1>, scalar_prefetch = 0 : i64, scratch_operands = 0 : i64, tpu.core_type = #tpu.core_type<tc>, window_params = [{pipeline_mode = #tpu.pipeline_mode<synchronous>, transform_indices = @transform_0, window_bounds = array<i64: 104, 144>}, {pipeline_mode = #tpu.pipeline_mode<synchronous>, transform_indices = @transform_1, window_bounds = array<i64: 144, 32>}, {pipeline_mode = #tpu.pipeline_mode<synchronous>, transform_indices = @transform_2, window_bounds = array<i64: 1, 32>}, {pipeline_mode = #tpu.pipeline_mode<synchronous>, transform_indices = @transform_3, window_bounds = array<i64: 1, 32>}, {pipeline_mode = #tpu.pipeline_mode<synchronous>, transform_indices = @transform_4, window_bounds = array<i64: 104, 32>}]} {
    %c0 = arith.constant 0 : index
    %c0_0 = arith.constant 0 : index
    %0 = vector.load %arg1[%c0, %c0_0] : memref<104x144xbf16, #tpu.memory_space<vmem>>, vector<104x144xbf16>
    %c0_1 = arith.constant 0 : index
    %c0_2 = arith.constant 0 : index
    %1 = vector.load %arg2[%c0_1, %c0_2] : memref<144x32xbf16, #tpu.memory_space<vmem>>, vector<144x32xbf16>
    %cst = arith.constant dense<0.000000e+00> : vector<104x32xf32>
    %2 = tpu.matmul %0, %1, %cst {dimension_numbers = #tpu.dot_dimension_numbers<[1], [0], [0], [1], [0, 0, 1, 1], [], []>} : vector<104x144xbf16>, vector<144x32xbf16>, vector<104x32xf32> -> vector<104x32xf32>
    %c0_3 = arith.constant 0 : index
    %c0_4 = arith.constant 0 : index
    %3 = vector.load %arg3[%c0_3, %c0_4] : memref<1x32xf32, #tpu.memory_space<vmem>>, vector<1x32xf32>
    %c0_5 = arith.constant 0 : index
    %c0_6 = arith.constant 0 : index
    %4 = vector.load %arg4[%c0_5, %c0_6] : memref<1x32xf32, #tpu.memory_space<vmem>>, vector<1x32xf32>
    %cst_7 = arith.constant dense<0.000000e+00> : vector<32xf32>
    %5 = vector.multi_reduction <add>, %2, %cst_7 [0] : vector<104x32xf32> to vector<32xf32>
    %6 = vector.shape_cast %5 : vector<32xf32> to vector<1x32xf32>
    %cst_8 = arith.constant 0.0102040814 : f32
    %7 = vector.broadcast %cst_8 : f32 to vector<1x32xf32>
    %8 = arith.mulf %6, %7 : vector<1x32xf32>
    %9 = arith.mulf %2, %2 : vector<104x32xf32>
    %cst_9 = arith.constant dense<0.000000e+00> : vector<32xf32>
    %10 = vector.multi_reduction <add>, %9, %cst_9 [0] : vector<104x32xf32> to vector<32xf32>
    %11 = vector.shape_cast %10 : vector<32xf32> to vector<1x32xf32>
    %cst_10 = arith.constant 0.0102040814 : f32
    %12 = vector.broadcast %cst_10 : f32 to vector<1x32xf32>
    %13 = arith.mulf %11, %12 : vector<1x32xf32>
    %14 = arith.mulf %8, %8 : vector<1x32xf32>
    %15 = arith.subf %13, %14 : vector<1x32xf32>
    %cst_11 = arith.constant 0.000000e+00 : f32
    %16 = vector.broadcast %cst_11 : f32 to vector<1x32xf32>
    %17 = arith.maximumf %15, %16 : vector<1x32xf32>
    %18 = vector.broadcast %8 : vector<1x32xf32> to vector<104x32xf32>
    %19 = arith.subf %2, %18 : vector<104x32xf32>
    %cst_12 = arith.constant 9.99999974E-6 : f32
    %20 = vector.broadcast %cst_12 : f32 to vector<1x32xf32>
    %21 = arith.addf %17, %20 : vector<1x32xf32>
    %22 = math.rsqrt %21 : vector<1x32xf32>
    %23 = vector.broadcast %22 : vector<1x32xf32> to vector<104x32xf32>
    %24 = arith.mulf %19, %23 : vector<104x32xf32>
    %25 = vector.broadcast %3 : vector<1x32xf32> to vector<104x32xf32>
    %26 = arith.mulf %24, %25 : vector<104x32xf32>
    %27 = vector.broadcast %4 : vector<1x32xf32> to vector<104x32xf32>
    %28 = arith.addf %26, %27 : vector<104x32xf32>
    %cst_13 = arith.constant 0.000000e+00 : f32
    %29 = vector.broadcast %cst_13 : f32 to vector<104x32xf32>
    %30 = arith.maximumf %28, %29 : vector<104x32xf32>
    %c0_14 = arith.constant 0 : index
    %c0_15 = arith.constant 0 : index
    %31 = vector.load %arg5[%c0_14, %c0_15] : memref<104x32xf32, #tpu.memory_space<vmem>>, vector<104x32xf32>
    tpu.vector_store %arg5[%c0_14, %c0_15], %30 {strides = array<i32>} : memref<104x32xf32, #tpu.memory_space<vmem>>, vector<104x32xf32>,
    return
  }
  func.func @transform_0(%arg0: i32) -> (i32, i32) {
    %c0_i32 = arith.constant 0 : i32
    %c0_i32_0 = arith.constant 0 : i32
    %c0_i32_1 = arith.constant 0 : i32
    return %c0_i32, %c0_i32_0 : i32, i32
  }
  func.func @transform_1(%arg0: i32) -> (i32, i32) {
    %c0_i32 = arith.constant 0 : i32
    %c0_i32_0 = arith.constant 0 : i32
    %c0_i32_1 = arith.constant 0 : i32
    return %c0_i32, %c0_i32_0 : i32, i32
  }
  func.func @transform_2(%arg0: i32) -> (i32, i32) {
    %c0_i32 = arith.constant 0 : i32
    %c0_i32_0 = arith.constant 0 : i32
    %c0_i32_1 = arith.constant 0 : i32
    return %c0_i32, %c0_i32_0 : i32, i32
  }
  func.func @transform_3(%arg0: i32) -> (i32, i32) {
    %c0_i32 = arith.constant 0 : i32
    %c0_i32_0 = arith.constant 0 : i32
    %c0_i32_1 = arith.constant 0 : i32
    return %c0_i32, %c0_i32_0 : i32, i32
  }
  func.func @transform_4(%arg0: i32) -> (i32, i32) {
    %c0_i32 = arith.constant 0 : i32
    %c0_i32_0 = arith.constant 0 : i32
    %c0_i32_1 = arith.constant 0 : i32
    return %c0_i32, %c0_i32_0 : i32, i32
  }
}

module attributes {stable_mosaic.version = 11 : i64} {
  func.func @_conv_bn_proj_add_relu_kernel(%arg0: i32, %arg1: memref<104x288xbf16, #tpu.memory_space<vmem>>, %arg2: memref<288x32xbf16, #tpu.memory_space<vmem>>, %arg3: memref<1x32xf32, #tpu.memory_space<vmem>>, %arg4: memref<1x32xf32, #tpu.memory_space<vmem>>, %arg5: memref<104x16xbf16, #tpu.memory_space<vmem>>, %arg6: memref<16x32xbf16, #tpu.memory_space<vmem>>, %arg7: memref<1x32xf32, #tpu.memory_space<vmem>>, %arg8: memref<1x32xf32, #tpu.memory_space<vmem>>, %arg9: memref<104x32xf32, #tpu.memory_space<vmem>>) attributes {dimension_semantics = [#tpu.dimension_semantics<arbitrary>], iteration_bounds = array<i64: 1>, scalar_prefetch = 0 : i64, scratch_operands = 0 : i64, tpu.core_type = #tpu.core_type<tc>, window_params = [{pipeline_mode = #tpu.pipeline_mode<synchronous>, transform_indices = @transform_0, window_bounds = array<i64: 104, 288>}, {pipeline_mode = #tpu.pipeline_mode<synchronous>, transform_indices = @transform_1, window_bounds = array<i64: 288, 32>}, {pipeline_mode = #tpu.pipeline_mode<synchronous>, transform_indices = @transform_2, window_bounds = array<i64: 1, 32>}, {pipeline_mode = #tpu.pipeline_mode<synchronous>, transform_indices = @transform_3, window_bounds = array<i64: 1, 32>}, {pipeline_mode = #tpu.pipeline_mode<synchronous>, transform_indices = @transform_4, window_bounds = array<i64: 104, 16>}, {pipeline_mode = #tpu.pipeline_mode<synchronous>, transform_indices = @transform_5, window_bounds = array<i64: 16, 32>}, {pipeline_mode = #tpu.pipeline_mode<synchronous>, transform_indices = @transform_6, window_bounds = array<i64: 1, 32>}, {pipeline_mode = #tpu.pipeline_mode<synchronous>, transform_indices = @transform_7, window_bounds = array<i64: 1, 32>}, {pipeline_mode = #tpu.pipeline_mode<synchronous>, transform_indices = @transform_8, window_bounds = array<i64: 104, 32>}]} {
    %c0 = arith.constant 0 : index
    %c0_0 = arith.constant 0 : index
    %0 = vector.load %arg1[%c0, %c0_0] : memref<104x288xbf16, #tpu.memory_space<vmem>>, vector<104x288xbf16>
    %c0_1 = arith.constant 0 : index
    %c0_2 = arith.constant 0 : index
    %1 = vector.load %arg2[%c0_1, %c0_2] : memref<288x32xbf16, #tpu.memory_space<vmem>>, vector<288x32xbf16>
    %cst = arith.constant dense<0.000000e+00> : vector<104x32xf32>
    %2 = tpu.matmul %0, %1, %cst {dimension_numbers = #tpu.dot_dimension_numbers<[1], [0], [0], [1], [0, 0, 1, 1], [], []>} : vector<104x288xbf16>, vector<288x32xbf16>, vector<104x32xf32> -> vector<104x32xf32>
    %c0_3 = arith.constant 0 : index
    %c0_4 = arith.constant 0 : index
    %3 = vector.load %arg3[%c0_3, %c0_4] : memref<1x32xf32, #tpu.memory_space<vmem>>, vector<1x32xf32>
    %c0_5 = arith.constant 0 : index
    %c0_6 = arith.constant 0 : index
    %4 = vector.load %arg4[%c0_5, %c0_6] : memref<1x32xf32, #tpu.memory_space<vmem>>, vector<1x32xf32>
    %cst_7 = arith.constant dense<0.000000e+00> : vector<32xf32>
    %5 = vector.multi_reduction <add>, %2, %cst_7 [0] : vector<104x32xf32> to vector<32xf32>
    %6 = vector.shape_cast %5 : vector<32xf32> to vector<1x32xf32>
    %cst_8 = arith.constant 0.0102040814 : f32
    %7 = vector.broadcast %cst_8 : f32 to vector<1x32xf32>
    %8 = arith.mulf %6, %7 : vector<1x32xf32>
    %9 = arith.mulf %2, %2 : vector<104x32xf32>
    %cst_9 = arith.constant dense<0.000000e+00> : vector<32xf32>
    %10 = vector.multi_reduction <add>, %9, %cst_9 [0] : vector<104x32xf32> to vector<32xf32>
    %11 = vector.shape_cast %10 : vector<32xf32> to vector<1x32xf32>
    %cst_10 = arith.constant 0.0102040814 : f32
    %12 = vector.broadcast %cst_10 : f32 to vector<1x32xf32>
    %13 = arith.mulf %11, %12 : vector<1x32xf32>
    %14 = arith.mulf %8, %8 : vector<1x32xf32>
    %15 = arith.subf %13, %14 : vector<1x32xf32>
    %cst_11 = arith.constant 0.000000e+00 : f32
    %16 = vector.broadcast %cst_11 : f32 to vector<1x32xf32>
    %17 = arith.maximumf %15, %16 : vector<1x32xf32>
    %18 = vector.broadcast %8 : vector<1x32xf32> to vector<104x32xf32>
    %19 = arith.subf %2, %18 : vector<104x32xf32>
    %cst_12 = arith.constant 9.99999974E-6 : f32
    %20 = vector.broadcast %cst_12 : f32 to vector<1x32xf32>
    %21 = arith.addf %17, %20 : vector<1x32xf32>
    %22 = math.rsqrt %21 : vector<1x32xf32>
    %23 = vector.broadcast %22 : vector<1x32xf32> to vector<104x32xf32>
    %24 = arith.mulf %19, %23 : vector<104x32xf32>
    %25 = vector.broadcast %3 : vector<1x32xf32> to vector<104x32xf32>
    %26 = arith.mulf %24, %25 : vector<104x32xf32>
    %27 = vector.broadcast %4 : vector<1x32xf32> to vector<104x32xf32>
    %28 = arith.addf %26, %27 : vector<104x32xf32>
    %c0_13 = arith.constant 0 : index
    %c0_14 = arith.constant 0 : index
    %29 = vector.load %arg5[%c0_13, %c0_14] : memref<104x16xbf16, #tpu.memory_space<vmem>>, vector<104x16xbf16>
    %c0_15 = arith.constant 0 : index
    %c0_16 = arith.constant 0 : index
    %30 = vector.load %arg6[%c0_15, %c0_16] : memref<16x32xbf16, #tpu.memory_space<vmem>>, vector<16x32xbf16>
    %cst_17 = arith.constant dense<0.000000e+00> : vector<104x32xf32>
    %31 = tpu.matmul %29, %30, %cst_17 {dimension_numbers = #tpu.dot_dimension_numbers<[1], [0], [0], [1], [0, 0, 1, 1], [], []>} : vector<104x16xbf16>, vector<16x32xbf16>, vector<104x32xf32> -> vector<104x32xf32>
    %c0_18 = arith.constant 0 : index
    %c0_19 = arith.constant 0 : index
    %32 = vector.load %arg7[%c0_18, %c0_19] : memref<1x32xf32, #tpu.memory_space<vmem>>, vector<1x32xf32>
    %c0_20 = arith.constant 0 : index
    %c0_21 = arith.constant 0 : index
    %33 = vector.load %arg8[%c0_20, %c0_21] : memref<1x32xf32, #tpu.memory_space<vmem>>, vector<1x32xf32>
    %cst_22 = arith.constant dense<0.000000e+00> : vector<32xf32>
    %34 = vector.multi_reduction <add>, %31, %cst_22 [0] : vector<104x32xf32> to vector<32xf32>
    %35 = vector.shape_cast %34 : vector<32xf32> to vector<1x32xf32>
    %cst_23 = arith.constant 0.0102040814 : f32
    %36 = vector.broadcast %cst_23 : f32 to vector<1x32xf32>
    %37 = arith.mulf %35, %36 : vector<1x32xf32>
    %38 = arith.mulf %31, %31 : vector<104x32xf32>
    %cst_24 = arith.constant dense<0.000000e+00> : vector<32xf32>
    %39 = vector.multi_reduction <add>, %38, %cst_24 [0] : vector<104x32xf32> to vector<32xf32>
    %40 = vector.shape_cast %39 : vector<32xf32> to vector<1x32xf32>
    %cst_25 = arith.constant 0.0102040814 : f32
    %41 = vector.broadcast %cst_25 : f32 to vector<1x32xf32>
    %42 = arith.mulf %40, %41 : vector<1x32xf32>
    %43 = arith.mulf %37, %37 : vector<1x32xf32>
    %44 = arith.subf %42, %43 : vector<1x32xf32>
    %cst_26 = arith.constant 0.000000e+00 : f32
    %45 = vector.broadcast %cst_26 : f32 to vector<1x32xf32>
    %46 = arith.maximumf %44, %45 : vector<1x32xf32>
    %47 = vector.broadcast %37 : vector<1x32xf32> to vector<104x32xf32>
    %48 = arith.subf %31, %47 : vector<104x32xf32>
    %cst_27 = arith.constant 9.99999974E-6 : f32
    %49 = vector.broadcast %cst_27 : f32 to vector<1x32xf32>
    %50 = arith.addf %46, %49 : vector<1x32xf32>
    %51 = math.rsqrt %50 : vector<1x32xf32>
    %52 = vector.broadcast %51 : vector<1x32xf32> to vector<104x32xf32>
    %53 = arith.mulf %48, %52 : vector<104x32xf32>
    %54 = vector.broadcast %32 : vector<1x32xf32> to vector<104x32xf32>
    %55 = arith.mulf %53, %54 : vector<104x32xf32>
    %56 = vector.broadcast %33 : vector<1x32xf32> to vector<104x32xf32>
    %57 = arith.addf %55, %56 : vector<104x32xf32>
    %58 = arith.addf %28, %57 : vector<104x32xf32>
    %cst_28 = arith.constant 0.000000e+00 : f32
    %59 = vector.broadcast %cst_28 : f32 to vector<104x32xf32>
    %60 = arith.maximumf %58, %59 : vector<104x32xf32>
    %c0_29 = arith.constant 0 : index
    %c0_30 = arith.constant 0 : index
    %61 = vector.load %arg9[%c0_29, %c0_30] : memref<104x32xf32, #tpu.memory_space<vmem>>, vector<104x32xf32>
    tpu.vector_store %arg9[%c0_29, %c0_30], %60 {strides = array<i32>} : memref<104x32xf32, #tpu.memory_space<vmem>>, vector<104x32xf32>,
    return
  }
  func.func @transform_0(%arg0: i32) -> (i32, i32) {
    %c0_i32 = arith.constant 0 : i32
    %c0_i32_0 = arith.constant 0 : i32
    %c0_i32_1 = arith.constant 0 : i32
    return %c0_i32, %c0_i32_0 : i32, i32
  }
  func.func @transform_1(%arg0: i32) -> (i32, i32) {
    %c0_i32 = arith.constant 0 : i32
    %c0_i32_0 = arith.constant 0 : i32
    %c0_i32_1 = arith.constant 0 : i32
    return %c0_i32, %c0_i32_0 : i32, i32
  }
  func.func @transform_2(%arg0: i32) -> (i32, i32) {
    %c0_i32 = arith.constant 0 : i32
    %c0_i32_0 = arith.constant 0 : i32
    %c0_i32_1 = arith.constant 0 : i32
    return %c0_i32, %c0_i32_0 : i32, i32
  }
  func.func @transform_3(%arg0: i32) -> (i32, i32) {
    %c0_i32 = arith.constant 0 : i32
    %c0_i32_0 = arith.constant 0 : i32
    %c0_i32_1 = arith.constant 0 : i32
    return %c0_i32, %c0_i32_0 : i32, i32
  }
  func.func @transform_4(%arg0: i32) -> (i32, i32) {
    %c0_i32 = arith.constant 0 : i32
    %c0_i32_0 = arith.constant 0 : i32
    %c0_i32_1 = arith.constant 0 : i32
    return %c0_i32, %c0_i32_0 : i32, i32
  }
  func.func @transform_5(%arg0: i32) -> (i32, i32) {
    %c0_i32 = arith.constant 0 : i32
    %c0_i32_0 = arith.constant 0 : i32
    %c0_i32_1 = arith.constant 0 : i32
    return %c0_i32, %c0_i32_0 : i32, i32
  }
  func.func @transform_6(%arg0: i32) -> (i32, i32) {
    %c0_i32 = arith.constant 0 : i32
    %c0_i32_0 = arith.constant 0 : i32
    %c0_i32_1 = arith.constant 0 : i32
    return %c0_i32, %c0_i32_0 : i32, i32
  }
  func.func @transform_7(%arg0: i32) -> (i32, i32) {
    %c0_i32 = arith.constant 0 : i32
    %c0_i32_0 = arith.constant 0 : i32
    %c0_i32_1 = arith.constant 0 : i32
    return %c0_i32, %c0_i32_0 : i32, i32
  }
  func.func @transform_8(%arg0: i32) -> (i32, i32) {
    %c0_i32 = arith.constant 0 : i32
    %c0_i32_0 = arith.constant 0 : i32
    %c0_i32_1 = arith.constant 0 : i32
    return %c0_i32, %c0_i32_0 : i32, i32
  }
}

module attributes {stable_mosaic.version = 11 : i64} {
  func.func @_conv_bn_kernel(%arg0: i32, %arg1: memref<104x288xbf16, #tpu.memory_space<vmem>>, %arg2: memref<288x32xbf16, #tpu.memory_space<vmem>>, %arg3: memref<1x32xf32, #tpu.memory_space<vmem>>, %arg4: memref<1x32xf32, #tpu.memory_space<vmem>>, %arg5: memref<104x32xf32, #tpu.memory_space<vmem>>) attributes {dimension_semantics = [#tpu.dimension_semantics<arbitrary>], iteration_bounds = array<i64: 1>, scalar_prefetch = 0 : i64, scratch_operands = 0 : i64, tpu.core_type = #tpu.core_type<tc>, window_params = [{pipeline_mode = #tpu.pipeline_mode<synchronous>, transform_indices = @transform_0, window_bounds = array<i64: 104, 288>}, {pipeline_mode = #tpu.pipeline_mode<synchronous>, transform_indices = @transform_1, window_bounds = array<i64: 288, 32>}, {pipeline_mode = #tpu.pipeline_mode<synchronous>, transform_indices = @transform_2, window_bounds = array<i64: 1, 32>}, {pipeline_mode = #tpu.pipeline_mode<synchronous>, transform_indices = @transform_3, window_bounds = array<i64: 1, 32>}, {pipeline_mode = #tpu.pipeline_mode<synchronous>, transform_indices = @transform_4, window_bounds = array<i64: 104, 32>}]} {
    %c0 = arith.constant 0 : index
    %c0_0 = arith.constant 0 : index
    %0 = vector.load %arg1[%c0, %c0_0] : memref<104x288xbf16, #tpu.memory_space<vmem>>, vector<104x288xbf16>
    %c0_1 = arith.constant 0 : index
    %c0_2 = arith.constant 0 : index
    %1 = vector.load %arg2[%c0_1, %c0_2] : memref<288x32xbf16, #tpu.memory_space<vmem>>, vector<288x32xbf16>
    %cst = arith.constant dense<0.000000e+00> : vector<104x32xf32>
    %2 = tpu.matmul %0, %1, %cst {dimension_numbers = #tpu.dot_dimension_numbers<[1], [0], [0], [1], [0, 0, 1, 1], [], []>} : vector<104x288xbf16>, vector<288x32xbf16>, vector<104x32xf32> -> vector<104x32xf32>
    %c0_3 = arith.constant 0 : index
    %c0_4 = arith.constant 0 : index
    %3 = vector.load %arg3[%c0_3, %c0_4] : memref<1x32xf32, #tpu.memory_space<vmem>>, vector<1x32xf32>
    %c0_5 = arith.constant 0 : index
    %c0_6 = arith.constant 0 : index
    %4 = vector.load %arg4[%c0_5, %c0_6] : memref<1x32xf32, #tpu.memory_space<vmem>>, vector<1x32xf32>
    %cst_7 = arith.constant dense<0.000000e+00> : vector<32xf32>
    %5 = vector.multi_reduction <add>, %2, %cst_7 [0] : vector<104x32xf32> to vector<32xf32>
    %6 = vector.shape_cast %5 : vector<32xf32> to vector<1x32xf32>
    %cst_8 = arith.constant 0.0102040814 : f32
    %7 = vector.broadcast %cst_8 : f32 to vector<1x32xf32>
    %8 = arith.mulf %6, %7 : vector<1x32xf32>
    %9 = arith.mulf %2, %2 : vector<104x32xf32>
    %cst_9 = arith.constant dense<0.000000e+00> : vector<32xf32>
    %10 = vector.multi_reduction <add>, %9, %cst_9 [0] : vector<104x32xf32> to vector<32xf32>
    %11 = vector.shape_cast %10 : vector<32xf32> to vector<1x32xf32>
    %cst_10 = arith.constant 0.0102040814 : f32
    %12 = vector.broadcast %cst_10 : f32 to vector<1x32xf32>
    %13 = arith.mulf %11, %12 : vector<1x32xf32>
    %14 = arith.mulf %8, %8 : vector<1x32xf32>
    %15 = arith.subf %13, %14 : vector<1x32xf32>
    %cst_11 = arith.constant 0.000000e+00 : f32
    %16 = vector.broadcast %cst_11 : f32 to vector<1x32xf32>
    %17 = arith.maximumf %15, %16 : vector<1x32xf32>
    %18 = vector.broadcast %8 : vector<1x32xf32> to vector<104x32xf32>
    %19 = arith.subf %2, %18 : vector<104x32xf32>
    %cst_12 = arith.constant 9.99999974E-6 : f32
    %20 = vector.broadcast %cst_12 : f32 to vector<1x32xf32>
    %21 = arith.addf %17, %20 : vector<1x32xf32>
    %22 = math.rsqrt %21 : vector<1x32xf32>
    %23 = vector.broadcast %22 : vector<1x32xf32> to vector<104x32xf32>
    %24 = arith.mulf %19, %23 : vector<104x32xf32>
    %25 = vector.broadcast %3 : vector<1x32xf32> to vector<104x32xf32>
    %26 = arith.mulf %24, %25 : vector<104x32xf32>
    %27 = vector.broadcast %4 : vector<1x32xf32> to vector<104x32xf32>
    %28 = arith.addf %26, %27 : vector<104x32xf32>
    %cst_13 = arith.constant 0.000000e+00 : f32
    %29 = vector.broadcast %cst_13 : f32 to vector<104x32xf32>
    %30 = arith.maximumf %28, %29 : vector<104x32xf32>
    %c0_14 = arith.constant 0 : index
    %c0_15 = arith.constant 0 : index
    %31 = vector.load %arg5[%c0_14, %c0_15] : memref<104x32xf32, #tpu.memory_space<vmem>>, vector<104x32xf32>
    tpu.vector_store %arg5[%c0_14, %c0_15], %30 {strides = array<i32>} : memref<104x32xf32, #tpu.memory_space<vmem>>, vector<104x32xf32>,
    return
  }
  func.func @transform_0(%arg0: i32) -> (i32, i32) {
    %c0_i32 = arith.constant 0 : i32
    %c0_i32_0 = arith.constant 0 : i32
    %c0_i32_1 = arith.constant 0 : i32
    return %c0_i32, %c0_i32_0 : i32, i32
  }
  func.func @transform_1(%arg0: i32) -> (i32, i32) {
    %c0_i32 = arith.constant 0 : i32
    %c0_i32_0 = arith.constant 0 : i32
    %c0_i32_1 = arith.constant 0 : i32
    return %c0_i32, %c0_i32_0 : i32, i32
  }
  func.func @transform_2(%arg0: i32) -> (i32, i32) {
    %c0_i32 = arith.constant 0 : i32
    %c0_i32_0 = arith.constant 0 : i32
    %c0_i32_1 = arith.constant 0 : i32
    return %c0_i32, %c0_i32_0 : i32, i32
  }
  func.func @transform_3(%arg0: i32) -> (i32, i32) {
    %c0_i32 = arith.constant 0 : i32
    %c0_i32_0 = arith.constant 0 : i32
    %c0_i32_1 = arith.constant 0 : i32
    return %c0_i32, %c0_i32_0 : i32, i32
  }
  func.func @transform_4(%arg0: i32) -> (i32, i32) {
    %c0_i32 = arith.constant 0 : i32
    %c0_i32_0 = arith.constant 0 : i32
    %c0_i32_1 = arith.constant 0 : i32
    return %c0_i32, %c0_i32_0 : i32, i32
  }
}

module attributes {stable_mosaic.version = 11 : i64} {
  func.func @_conv_bn_add_relu_kernel(%arg0: i32, %arg1: memref<104x288xbf16, #tpu.memory_space<vmem>>, %arg2: memref<288x32xbf16, #tpu.memory_space<vmem>>, %arg3: memref<1x32xf32, #tpu.memory_space<vmem>>, %arg4: memref<1x32xf32, #tpu.memory_space<vmem>>, %arg5: memref<104x32xf32, #tpu.memory_space<vmem>>, %arg6: memref<104x32xf32, #tpu.memory_space<vmem>>) attributes {dimension_semantics = [#tpu.dimension_semantics<arbitrary>], iteration_bounds = array<i64: 1>, scalar_prefetch = 0 : i64, scratch_operands = 0 : i64, tpu.core_type = #tpu.core_type<tc>, window_params = [{pipeline_mode = #tpu.pipeline_mode<synchronous>, transform_indices = @transform_0, window_bounds = array<i64: 104, 288>}, {pipeline_mode = #tpu.pipeline_mode<synchronous>, transform_indices = @transform_1, window_bounds = array<i64: 288, 32>}, {pipeline_mode = #tpu.pipeline_mode<synchronous>, transform_indices = @transform_2, window_bounds = array<i64: 1, 32>}, {pipeline_mode = #tpu.pipeline_mode<synchronous>, transform_indices = @transform_3, window_bounds = array<i64: 1, 32>}, {pipeline_mode = #tpu.pipeline_mode<synchronous>, transform_indices = @transform_4, window_bounds = array<i64: 104, 32>}, {pipeline_mode = #tpu.pipeline_mode<synchronous>, transform_indices = @transform_5, window_bounds = array<i64: 104, 32>}]} {
    %c0 = arith.constant 0 : index
    %c0_0 = arith.constant 0 : index
    %0 = vector.load %arg1[%c0, %c0_0] : memref<104x288xbf16, #tpu.memory_space<vmem>>, vector<104x288xbf16>
    %c0_1 = arith.constant 0 : index
    %c0_2 = arith.constant 0 : index
    %1 = vector.load %arg2[%c0_1, %c0_2] : memref<288x32xbf16, #tpu.memory_space<vmem>>, vector<288x32xbf16>
    %cst = arith.constant dense<0.000000e+00> : vector<104x32xf32>
    %2 = tpu.matmul %0, %1, %cst {dimension_numbers = #tpu.dot_dimension_numbers<[1], [0], [0], [1], [0, 0, 1, 1], [], []>} : vector<104x288xbf16>, vector<288x32xbf16>, vector<104x32xf32> -> vector<104x32xf32>
    %c0_3 = arith.constant 0 : index
    %c0_4 = arith.constant 0 : index
    %3 = vector.load %arg3[%c0_3, %c0_4] : memref<1x32xf32, #tpu.memory_space<vmem>>, vector<1x32xf32>
    %c0_5 = arith.constant 0 : index
    %c0_6 = arith.constant 0 : index
    %4 = vector.load %arg4[%c0_5, %c0_6] : memref<1x32xf32, #tpu.memory_space<vmem>>, vector<1x32xf32>
    %cst_7 = arith.constant dense<0.000000e+00> : vector<32xf32>
    %5 = vector.multi_reduction <add>, %2, %cst_7 [0] : vector<104x32xf32> to vector<32xf32>
    %6 = vector.shape_cast %5 : vector<32xf32> to vector<1x32xf32>
    %cst_8 = arith.constant 0.0102040814 : f32
    %7 = vector.broadcast %cst_8 : f32 to vector<1x32xf32>
    %8 = arith.mulf %6, %7 : vector<1x32xf32>
    %9 = arith.mulf %2, %2 : vector<104x32xf32>
    %cst_9 = arith.constant dense<0.000000e+00> : vector<32xf32>
    %10 = vector.multi_reduction <add>, %9, %cst_9 [0] : vector<104x32xf32> to vector<32xf32>
    %11 = vector.shape_cast %10 : vector<32xf32> to vector<1x32xf32>
    %cst_10 = arith.constant 0.0102040814 : f32
    %12 = vector.broadcast %cst_10 : f32 to vector<1x32xf32>
    %13 = arith.mulf %11, %12 : vector<1x32xf32>
    %14 = arith.mulf %8, %8 : vector<1x32xf32>
    %15 = arith.subf %13, %14 : vector<1x32xf32>
    %cst_11 = arith.constant 0.000000e+00 : f32
    %16 = vector.broadcast %cst_11 : f32 to vector<1x32xf32>
    %17 = arith.maximumf %15, %16 : vector<1x32xf32>
    %18 = vector.broadcast %8 : vector<1x32xf32> to vector<104x32xf32>
    %19 = arith.subf %2, %18 : vector<104x32xf32>
    %cst_12 = arith.constant 9.99999974E-6 : f32
    %20 = vector.broadcast %cst_12 : f32 to vector<1x32xf32>
    %21 = arith.addf %17, %20 : vector<1x32xf32>
    %22 = math.rsqrt %21 : vector<1x32xf32>
    %23 = vector.broadcast %22 : vector<1x32xf32> to vector<104x32xf32>
    %24 = arith.mulf %19, %23 : vector<104x32xf32>
    %25 = vector.broadcast %3 : vector<1x32xf32> to vector<104x32xf32>
    %26 = arith.mulf %24, %25 : vector<104x32xf32>
    %27 = vector.broadcast %4 : vector<1x32xf32> to vector<104x32xf32>
    %28 = arith.addf %26, %27 : vector<104x32xf32>
    %c0_13 = arith.constant 0 : index
    %c0_14 = arith.constant 0 : index
    %29 = vector.load %arg5[%c0_13, %c0_14] : memref<104x32xf32, #tpu.memory_space<vmem>>, vector<104x32xf32>
    %30 = arith.addf %28, %29 : vector<104x32xf32>
    %cst_15 = arith.constant 0.000000e+00 : f32
    %31 = vector.broadcast %cst_15 : f32 to vector<104x32xf32>
    %32 = arith.maximumf %30, %31 : vector<104x32xf32>
    %c0_16 = arith.constant 0 : index
    %c0_17 = arith.constant 0 : index
    %33 = vector.load %arg6[%c0_16, %c0_17] : memref<104x32xf32, #tpu.memory_space<vmem>>, vector<104x32xf32>
    tpu.vector_store %arg6[%c0_16, %c0_17], %32 {strides = array<i32>} : memref<104x32xf32, #tpu.memory_space<vmem>>, vector<104x32xf32>,
    return
  }
  func.func @transform_0(%arg0: i32) -> (i32, i32) {
    %c0_i32 = arith.constant 0 : i32
    %c0_i32_0 = arith.constant 0 : i32
    %c0_i32_1 = arith.constant 0 : i32
    return %c0_i32, %c0_i32_0 : i32, i32
  }
  func.func @transform_1(%arg0: i32) -> (i32, i32) {
    %c0_i32 = arith.constant 0 : i32
    %c0_i32_0 = arith.constant 0 : i32
    %c0_i32_1 = arith.constant 0 : i32
    return %c0_i32, %c0_i32_0 : i32, i32
  }
  func.func @transform_2(%arg0: i32) -> (i32, i32) {
    %c0_i32 = arith.constant 0 : i32
    %c0_i32_0 = arith.constant 0 : i32
    %c0_i32_1 = arith.constant 0 : i32
    return %c0_i32, %c0_i32_0 : i32, i32
  }
  func.func @transform_3(%arg0: i32) -> (i32, i32) {
    %c0_i32 = arith.constant 0 : i32
    %c0_i32_0 = arith.constant 0 : i32
    %c0_i32_1 = arith.constant 0 : i32
    return %c0_i32, %c0_i32_0 : i32, i32
  }
  func.func @transform_4(%arg0: i32) -> (i32, i32) {
    %c0_i32 = arith.constant 0 : i32
    %c0_i32_0 = arith.constant 0 : i32
    %c0_i32_1 = arith.constant 0 : i32
    return %c0_i32, %c0_i32_0 : i32, i32
  }
  func.func @transform_5(%arg0: i32) -> (i32, i32) {
    %c0_i32 = arith.constant 0 : i32
    %c0_i32_0 = arith.constant 0 : i32
    %c0_i32_1 = arith.constant 0 : i32
    return %c0_i32, %c0_i32_0 : i32, i32
  }
}

module attributes {stable_mosaic.version = 11 : i64} {
  func.func @_conv_bn_kernel(%arg0: i32, %arg1: memref<32x288xbf16, #tpu.memory_space<vmem>>, %arg2: memref<288x64xbf16, #tpu.memory_space<vmem>>, %arg3: memref<1x64xf32, #tpu.memory_space<vmem>>, %arg4: memref<1x64xf32, #tpu.memory_space<vmem>>, %arg5: memref<32x64xf32, #tpu.memory_space<vmem>>) attributes {dimension_semantics = [#tpu.dimension_semantics<arbitrary>], iteration_bounds = array<i64: 1>, scalar_prefetch = 0 : i64, scratch_operands = 0 : i64, tpu.core_type = #tpu.core_type<tc>, window_params = [{pipeline_mode = #tpu.pipeline_mode<synchronous>, transform_indices = @transform_0, window_bounds = array<i64: 32, 288>}, {pipeline_mode = #tpu.pipeline_mode<synchronous>, transform_indices = @transform_1, window_bounds = array<i64: 288, 64>}, {pipeline_mode = #tpu.pipeline_mode<synchronous>, transform_indices = @transform_2, window_bounds = array<i64: 1, 64>}, {pipeline_mode = #tpu.pipeline_mode<synchronous>, transform_indices = @transform_3, window_bounds = array<i64: 1, 64>}, {pipeline_mode = #tpu.pipeline_mode<synchronous>, transform_indices = @transform_4, window_bounds = array<i64: 32, 64>}]} {
    %c0 = arith.constant 0 : index
    %c0_0 = arith.constant 0 : index
    %0 = vector.load %arg1[%c0, %c0_0] : memref<32x288xbf16, #tpu.memory_space<vmem>>, vector<32x288xbf16>
    %c0_1 = arith.constant 0 : index
    %c0_2 = arith.constant 0 : index
    %1 = vector.load %arg2[%c0_1, %c0_2] : memref<288x64xbf16, #tpu.memory_space<vmem>>, vector<288x64xbf16>
    %cst = arith.constant dense<0.000000e+00> : vector<32x64xf32>
    %2 = tpu.matmul %0, %1, %cst {dimension_numbers = #tpu.dot_dimension_numbers<[1], [0], [0], [1], [0, 0, 1, 1], [], []>} : vector<32x288xbf16>, vector<288x64xbf16>, vector<32x64xf32> -> vector<32x64xf32>
    %c0_3 = arith.constant 0 : index
    %c0_4 = arith.constant 0 : index
    %3 = vector.load %arg3[%c0_3, %c0_4] : memref<1x64xf32, #tpu.memory_space<vmem>>, vector<1x64xf32>
    %c0_5 = arith.constant 0 : index
    %c0_6 = arith.constant 0 : index
    %4 = vector.load %arg4[%c0_5, %c0_6] : memref<1x64xf32, #tpu.memory_space<vmem>>, vector<1x64xf32>
    %cst_7 = arith.constant dense<0.000000e+00> : vector<64xf32>
    %5 = vector.multi_reduction <add>, %2, %cst_7 [0] : vector<32x64xf32> to vector<64xf32>
    %6 = vector.shape_cast %5 : vector<64xf32> to vector<1x64xf32>
    %cst_8 = arith.constant 3.125000e-02 : f32
    %7 = vector.broadcast %cst_8 : f32 to vector<1x64xf32>
    %8 = arith.mulf %6, %7 : vector<1x64xf32>
    %9 = arith.mulf %2, %2 : vector<32x64xf32>
    %cst_9 = arith.constant dense<0.000000e+00> : vector<64xf32>
    %10 = vector.multi_reduction <add>, %9, %cst_9 [0] : vector<32x64xf32> to vector<64xf32>
    %11 = vector.shape_cast %10 : vector<64xf32> to vector<1x64xf32>
    %cst_10 = arith.constant 3.125000e-02 : f32
    %12 = vector.broadcast %cst_10 : f32 to vector<1x64xf32>
    %13 = arith.mulf %11, %12 : vector<1x64xf32>
    %14 = arith.mulf %8, %8 : vector<1x64xf32>
    %15 = arith.subf %13, %14 : vector<1x64xf32>
    %cst_11 = arith.constant 0.000000e+00 : f32
    %16 = vector.broadcast %cst_11 : f32 to vector<1x64xf32>
    %17 = arith.maximumf %15, %16 : vector<1x64xf32>
    %18 = vector.broadcast %8 : vector<1x64xf32> to vector<32x64xf32>
    %19 = arith.subf %2, %18 : vector<32x64xf32>
    %cst_12 = arith.constant 9.99999974E-6 : f32
    %20 = vector.broadcast %cst_12 : f32 to vector<1x64xf32>
    %21 = arith.addf %17, %20 : vector<1x64xf32>
    %22 = math.rsqrt %21 : vector<1x64xf32>
    %23 = vector.broadcast %22 : vector<1x64xf32> to vector<32x64xf32>
    %24 = arith.mulf %19, %23 : vector<32x64xf32>
    %25 = vector.broadcast %3 : vector<1x64xf32> to vector<32x64xf32>
    %26 = arith.mulf %24, %25 : vector<32x64xf32>
    %27 = vector.broadcast %4 : vector<1x64xf32> to vector<32x64xf32>
    %28 = arith.addf %26, %27 : vector<32x64xf32>
    %cst_13 = arith.constant 0.000000e+00 : f32
    %29 = vector.broadcast %cst_13 : f32 to vector<32x64xf32>
    %30 = arith.maximumf %28, %29 : vector<32x64xf32>
    %c0_14 = arith.constant 0 : index
    %c0_15 = arith.constant 0 : index
    %31 = vector.load %arg5[%c0_14, %c0_15] : memref<32x64xf32, #tpu.memory_space<vmem>>, vector<32x64xf32>
    tpu.vector_store %arg5[%c0_14, %c0_15], %30 {strides = array<i32>} : memref<32x64xf32, #tpu.memory_space<vmem>>, vector<32x64xf32>,
    return
  }
  func.func @transform_0(%arg0: i32) -> (i32, i32) {
    %c0_i32 = arith.constant 0 : i32
    %c0_i32_0 = arith.constant 0 : i32
    %c0_i32_1 = arith.constant 0 : i32
    return %c0_i32, %c0_i32_0 : i32, i32
  }
  func.func @transform_1(%arg0: i32) -> (i32, i32) {
    %c0_i32 = arith.constant 0 : i32
    %c0_i32_0 = arith.constant 0 : i32
    %c0_i32_1 = arith.constant 0 : i32
    return %c0_i32, %c0_i32_0 : i32, i32
  }
  func.func @transform_2(%arg0: i32) -> (i32, i32) {
    %c0_i32 = arith.constant 0 : i32
    %c0_i32_0 = arith.constant 0 : i32
    %c0_i32_1 = arith.constant 0 : i32
    return %c0_i32, %c0_i32_0 : i32, i32
  }
  func.func @transform_3(%arg0: i32) -> (i32, i32) {
    %c0_i32 = arith.constant 0 : i32
    %c0_i32_0 = arith.constant 0 : i32
    %c0_i32_1 = arith.constant 0 : i32
    return %c0_i32, %c0_i32_0 : i32, i32
  }
  func.func @transform_4(%arg0: i32) -> (i32, i32) {
    %c0_i32 = arith.constant 0 : i32
    %c0_i32_0 = arith.constant 0 : i32
    %c0_i32_1 = arith.constant 0 : i32
    return %c0_i32, %c0_i32_0 : i32, i32
  }
}

module attributes {stable_mosaic.version = 11 : i64} {
  func.func @_conv_bn_proj_add_relu_kernel(%arg0: i32, %arg1: memref<32x576xbf16, #tpu.memory_space<vmem>>, %arg2: memref<576x64xbf16, #tpu.memory_space<vmem>>, %arg3: memref<1x64xf32, #tpu.memory_space<vmem>>, %arg4: memref<1x64xf32, #tpu.memory_space<vmem>>, %arg5: memref<32x32xbf16, #tpu.memory_space<vmem>>, %arg6: memref<32x64xbf16, #tpu.memory_space<vmem>>, %arg7: memref<1x64xf32, #tpu.memory_space<vmem>>, %arg8: memref<1x64xf32, #tpu.memory_space<vmem>>, %arg9: memref<32x64xf32, #tpu.memory_space<vmem>>) attributes {dimension_semantics = [#tpu.dimension_semantics<arbitrary>], iteration_bounds = array<i64: 1>, scalar_prefetch = 0 : i64, scratch_operands = 0 : i64, tpu.core_type = #tpu.core_type<tc>, window_params = [{pipeline_mode = #tpu.pipeline_mode<synchronous>, transform_indices = @transform_0, window_bounds = array<i64: 32, 576>}, {pipeline_mode = #tpu.pipeline_mode<synchronous>, transform_indices = @transform_1, window_bounds = array<i64: 576, 64>}, {pipeline_mode = #tpu.pipeline_mode<synchronous>, transform_indices = @transform_2, window_bounds = array<i64: 1, 64>}, {pipeline_mode = #tpu.pipeline_mode<synchronous>, transform_indices = @transform_3, window_bounds = array<i64: 1, 64>}, {pipeline_mode = #tpu.pipeline_mode<synchronous>, transform_indices = @transform_4, window_bounds = array<i64: 32, 32>}, {pipeline_mode = #tpu.pipeline_mode<synchronous>, transform_indices = @transform_5, window_bounds = array<i64: 32, 64>}, {pipeline_mode = #tpu.pipeline_mode<synchronous>, transform_indices = @transform_6, window_bounds = array<i64: 1, 64>}, {pipeline_mode = #tpu.pipeline_mode<synchronous>, transform_indices = @transform_7, window_bounds = array<i64: 1, 64>}, {pipeline_mode = #tpu.pipeline_mode<synchronous>, transform_indices = @transform_8, window_bounds = array<i64: 32, 64>}]} {
    %c0 = arith.constant 0 : index
    %c0_0 = arith.constant 0 : index
    %0 = vector.load %arg1[%c0, %c0_0] : memref<32x576xbf16, #tpu.memory_space<vmem>>, vector<32x576xbf16>
    %c0_1 = arith.constant 0 : index
    %c0_2 = arith.constant 0 : index
    %1 = vector.load %arg2[%c0_1, %c0_2] : memref<576x64xbf16, #tpu.memory_space<vmem>>, vector<576x64xbf16>
    %cst = arith.constant dense<0.000000e+00> : vector<32x64xf32>
    %2 = tpu.matmul %0, %1, %cst {dimension_numbers = #tpu.dot_dimension_numbers<[1], [0], [0], [1], [0, 0, 1, 1], [], []>} : vector<32x576xbf16>, vector<576x64xbf16>, vector<32x64xf32> -> vector<32x64xf32>
    %c0_3 = arith.constant 0 : index
    %c0_4 = arith.constant 0 : index
    %3 = vector.load %arg3[%c0_3, %c0_4] : memref<1x64xf32, #tpu.memory_space<vmem>>, vector<1x64xf32>
    %c0_5 = arith.constant 0 : index
    %c0_6 = arith.constant 0 : index
    %4 = vector.load %arg4[%c0_5, %c0_6] : memref<1x64xf32, #tpu.memory_space<vmem>>, vector<1x64xf32>
    %cst_7 = arith.constant dense<0.000000e+00> : vector<64xf32>
    %5 = vector.multi_reduction <add>, %2, %cst_7 [0] : vector<32x64xf32> to vector<64xf32>
    %6 = vector.shape_cast %5 : vector<64xf32> to vector<1x64xf32>
    %cst_8 = arith.constant 3.125000e-02 : f32
    %7 = vector.broadcast %cst_8 : f32 to vector<1x64xf32>
    %8 = arith.mulf %6, %7 : vector<1x64xf32>
    %9 = arith.mulf %2, %2 : vector<32x64xf32>
    %cst_9 = arith.constant dense<0.000000e+00> : vector<64xf32>
    %10 = vector.multi_reduction <add>, %9, %cst_9 [0] : vector<32x64xf32> to vector<64xf32>
    %11 = vector.shape_cast %10 : vector<64xf32> to vector<1x64xf32>
    %cst_10 = arith.constant 3.125000e-02 : f32
    %12 = vector.broadcast %cst_10 : f32 to vector<1x64xf32>
    %13 = arith.mulf %11, %12 : vector<1x64xf32>
    %14 = arith.mulf %8, %8 : vector<1x64xf32>
    %15 = arith.subf %13, %14 : vector<1x64xf32>
    %cst_11 = arith.constant 0.000000e+00 : f32
    %16 = vector.broadcast %cst_11 : f32 to vector<1x64xf32>
    %17 = arith.maximumf %15, %16 : vector<1x64xf32>
    %18 = vector.broadcast %8 : vector<1x64xf32> to vector<32x64xf32>
    %19 = arith.subf %2, %18 : vector<32x64xf32>
    %cst_12 = arith.constant 9.99999974E-6 : f32
    %20 = vector.broadcast %cst_12 : f32 to vector<1x64xf32>
    %21 = arith.addf %17, %20 : vector<1x64xf32>
    %22 = math.rsqrt %21 : vector<1x64xf32>
    %23 = vector.broadcast %22 : vector<1x64xf32> to vector<32x64xf32>
    %24 = arith.mulf %19, %23 : vector<32x64xf32>
    %25 = vector.broadcast %3 : vector<1x64xf32> to vector<32x64xf32>
    %26 = arith.mulf %24, %25 : vector<32x64xf32>
    %27 = vector.broadcast %4 : vector<1x64xf32> to vector<32x64xf32>
    %28 = arith.addf %26, %27 : vector<32x64xf32>
    %c0_13 = arith.constant 0 : index
    %c0_14 = arith.constant 0 : index
    %29 = vector.load %arg5[%c0_13, %c0_14] : memref<32x32xbf16, #tpu.memory_space<vmem>>, vector<32x32xbf16>
    %c0_15 = arith.constant 0 : index
    %c0_16 = arith.constant 0 : index
    %30 = vector.load %arg6[%c0_15, %c0_16] : memref<32x64xbf16, #tpu.memory_space<vmem>>, vector<32x64xbf16>
    %cst_17 = arith.constant dense<0.000000e+00> : vector<32x64xf32>
    %31 = tpu.matmul %29, %30, %cst_17 {dimension_numbers = #tpu.dot_dimension_numbers<[1], [0], [0], [1], [0, 0, 1, 1], [], []>} : vector<32x32xbf16>, vector<32x64xbf16>, vector<32x64xf32> -> vector<32x64xf32>
    %c0_18 = arith.constant 0 : index
    %c0_19 = arith.constant 0 : index
    %32 = vector.load %arg7[%c0_18, %c0_19] : memref<1x64xf32, #tpu.memory_space<vmem>>, vector<1x64xf32>
    %c0_20 = arith.constant 0 : index
    %c0_21 = arith.constant 0 : index
    %33 = vector.load %arg8[%c0_20, %c0_21] : memref<1x64xf32, #tpu.memory_space<vmem>>, vector<1x64xf32>
    %cst_22 = arith.constant dense<0.000000e+00> : vector<64xf32>
    %34 = vector.multi_reduction <add>, %31, %cst_22 [0] : vector<32x64xf32> to vector<64xf32>
    %35 = vector.shape_cast %34 : vector<64xf32> to vector<1x64xf32>
    %cst_23 = arith.constant 3.125000e-02 : f32
    %36 = vector.broadcast %cst_23 : f32 to vector<1x64xf32>
    %37 = arith.mulf %35, %36 : vector<1x64xf32>
    %38 = arith.mulf %31, %31 : vector<32x64xf32>
    %cst_24 = arith.constant dense<0.000000e+00> : vector<64xf32>
    %39 = vector.multi_reduction <add>, %38, %cst_24 [0] : vector<32x64xf32> to vector<64xf32>
    %40 = vector.shape_cast %39 : vector<64xf32> to vector<1x64xf32>
    %cst_25 = arith.constant 3.125000e-02 : f32
    %41 = vector.broadcast %cst_25 : f32 to vector<1x64xf32>
    %42 = arith.mulf %40, %41 : vector<1x64xf32>
    %43 = arith.mulf %37, %37 : vector<1x64xf32>
    %44 = arith.subf %42, %43 : vector<1x64xf32>
    %cst_26 = arith.constant 0.000000e+00 : f32
    %45 = vector.broadcast %cst_26 : f32 to vector<1x64xf32>
    %46 = arith.maximumf %44, %45 : vector<1x64xf32>
    %47 = vector.broadcast %37 : vector<1x64xf32> to vector<32x64xf32>
    %48 = arith.subf %31, %47 : vector<32x64xf32>
    %cst_27 = arith.constant 9.99999974E-6 : f32
    %49 = vector.broadcast %cst_27 : f32 to vector<1x64xf32>
    %50 = arith.addf %46, %49 : vector<1x64xf32>
    %51 = math.rsqrt %50 : vector<1x64xf32>
    %52 = vector.broadcast %51 : vector<1x64xf32> to vector<32x64xf32>
    %53 = arith.mulf %48, %52 : vector<32x64xf32>
    %54 = vector.broadcast %32 : vector<1x64xf32> to vector<32x64xf32>
    %55 = arith.mulf %53, %54 : vector<32x64xf32>
    %56 = vector.broadcast %33 : vector<1x64xf32> to vector<32x64xf32>
    %57 = arith.addf %55, %56 : vector<32x64xf32>
    %58 = arith.addf %28, %57 : vector<32x64xf32>
    %cst_28 = arith.constant 0.000000e+00 : f32
    %59 = vector.broadcast %cst_28 : f32 to vector<32x64xf32>
    %60 = arith.maximumf %58, %59 : vector<32x64xf32>
    %c0_29 = arith.constant 0 : index
    %c0_30 = arith.constant 0 : index
    %61 = vector.load %arg9[%c0_29, %c0_30] : memref<32x64xf32, #tpu.memory_space<vmem>>, vector<32x64xf32>
    tpu.vector_store %arg9[%c0_29, %c0_30], %60 {strides = array<i32>} : memref<32x64xf32, #tpu.memory_space<vmem>>, vector<32x64xf32>,
    return
  }
  func.func @transform_0(%arg0: i32) -> (i32, i32) {
    %c0_i32 = arith.constant 0 : i32
    %c0_i32_0 = arith.constant 0 : i32
    %c0_i32_1 = arith.constant 0 : i32
    return %c0_i32, %c0_i32_0 : i32, i32
  }
  func.func @transform_1(%arg0: i32) -> (i32, i32) {
    %c0_i32 = arith.constant 0 : i32
    %c0_i32_0 = arith.constant 0 : i32
    %c0_i32_1 = arith.constant 0 : i32
    return %c0_i32, %c0_i32_0 : i32, i32
  }
  func.func @transform_2(%arg0: i32) -> (i32, i32) {
    %c0_i32 = arith.constant 0 : i32
    %c0_i32_0 = arith.constant 0 : i32
    %c0_i32_1 = arith.constant 0 : i32
    return %c0_i32, %c0_i32_0 : i32, i32
  }
  func.func @transform_3(%arg0: i32) -> (i32, i32) {
    %c0_i32 = arith.constant 0 : i32
    %c0_i32_0 = arith.constant 0 : i32
    %c0_i32_1 = arith.constant 0 : i32
    return %c0_i32, %c0_i32_0 : i32, i32
  }
  func.func @transform_4(%arg0: i32) -> (i32, i32) {
    %c0_i32 = arith.constant 0 : i32
    %c0_i32_0 = arith.constant 0 : i32
    %c0_i32_1 = arith.constant 0 : i32
    return %c0_i32, %c0_i32_0 : i32, i32
  }
  func.func @transform_5(%arg0: i32) -> (i32, i32) {
    %c0_i32 = arith.constant 0 : i32
    %c0_i32_0 = arith.constant 0 : i32
    %c0_i32_1 = arith.constant 0 : i32
    return %c0_i32, %c0_i32_0 : i32, i32
  }
  func.func @transform_6(%arg0: i32) -> (i32, i32) {
    %c0_i32 = arith.constant 0 : i32
    %c0_i32_0 = arith.constant 0 : i32
    %c0_i32_1 = arith.constant 0 : i32
    return %c0_i32, %c0_i32_0 : i32, i32
  }
  func.func @transform_7(%arg0: i32) -> (i32, i32) {
    %c0_i32 = arith.constant 0 : i32
    %c0_i32_0 = arith.constant 0 : i32
    %c0_i32_1 = arith.constant 0 : i32
    return %c0_i32, %c0_i32_0 : i32, i32
  }
  func.func @transform_8(%arg0: i32) -> (i32, i32) {
    %c0_i32 = arith.constant 0 : i32
    %c0_i32_0 = arith.constant 0 : i32
    %c0_i32_1 = arith.constant 0 : i32
    return %c0_i32, %c0_i32_0 : i32, i32
  }
}

module attributes {stable_mosaic.version = 11 : i64} {
  func.func @_conv_bn_kernel(%arg0: i32, %arg1: memref<32x576xbf16, #tpu.memory_space<vmem>>, %arg2: memref<576x64xbf16, #tpu.memory_space<vmem>>, %arg3: memref<1x64xf32, #tpu.memory_space<vmem>>, %arg4: memref<1x64xf32, #tpu.memory_space<vmem>>, %arg5: memref<32x64xf32, #tpu.memory_space<vmem>>) attributes {dimension_semantics = [#tpu.dimension_semantics<arbitrary>], iteration_bounds = array<i64: 1>, scalar_prefetch = 0 : i64, scratch_operands = 0 : i64, tpu.core_type = #tpu.core_type<tc>, window_params = [{pipeline_mode = #tpu.pipeline_mode<synchronous>, transform_indices = @transform_0, window_bounds = array<i64: 32, 576>}, {pipeline_mode = #tpu.pipeline_mode<synchronous>, transform_indices = @transform_1, window_bounds = array<i64: 576, 64>}, {pipeline_mode = #tpu.pipeline_mode<synchronous>, transform_indices = @transform_2, window_bounds = array<i64: 1, 64>}, {pipeline_mode = #tpu.pipeline_mode<synchronous>, transform_indices = @transform_3, window_bounds = array<i64: 1, 64>}, {pipeline_mode = #tpu.pipeline_mode<synchronous>, transform_indices = @transform_4, window_bounds = array<i64: 32, 64>}]} {
    %c0 = arith.constant 0 : index
    %c0_0 = arith.constant 0 : index
    %0 = vector.load %arg1[%c0, %c0_0] : memref<32x576xbf16, #tpu.memory_space<vmem>>, vector<32x576xbf16>
    %c0_1 = arith.constant 0 : index
    %c0_2 = arith.constant 0 : index
    %1 = vector.load %arg2[%c0_1, %c0_2] : memref<576x64xbf16, #tpu.memory_space<vmem>>, vector<576x64xbf16>
    %cst = arith.constant dense<0.000000e+00> : vector<32x64xf32>
    %2 = tpu.matmul %0, %1, %cst {dimension_numbers = #tpu.dot_dimension_numbers<[1], [0], [0], [1], [0, 0, 1, 1], [], []>} : vector<32x576xbf16>, vector<576x64xbf16>, vector<32x64xf32> -> vector<32x64xf32>
    %c0_3 = arith.constant 0 : index
    %c0_4 = arith.constant 0 : index
    %3 = vector.load %arg3[%c0_3, %c0_4] : memref<1x64xf32, #tpu.memory_space<vmem>>, vector<1x64xf32>
    %c0_5 = arith.constant 0 : index
    %c0_6 = arith.constant 0 : index
    %4 = vector.load %arg4[%c0_5, %c0_6] : memref<1x64xf32, #tpu.memory_space<vmem>>, vector<1x64xf32>
    %cst_7 = arith.constant dense<0.000000e+00> : vector<64xf32>
    %5 = vector.multi_reduction <add>, %2, %cst_7 [0] : vector<32x64xf32> to vector<64xf32>
    %6 = vector.shape_cast %5 : vector<64xf32> to vector<1x64xf32>
    %cst_8 = arith.constant 3.125000e-02 : f32
    %7 = vector.broadcast %cst_8 : f32 to vector<1x64xf32>
    %8 = arith.mulf %6, %7 : vector<1x64xf32>
    %9 = arith.mulf %2, %2 : vector<32x64xf32>
    %cst_9 = arith.constant dense<0.000000e+00> : vector<64xf32>
    %10 = vector.multi_reduction <add>, %9, %cst_9 [0] : vector<32x64xf32> to vector<64xf32>
    %11 = vector.shape_cast %10 : vector<64xf32> to vector<1x64xf32>
    %cst_10 = arith.constant 3.125000e-02 : f32
    %12 = vector.broadcast %cst_10 : f32 to vector<1x64xf32>
    %13 = arith.mulf %11, %12 : vector<1x64xf32>
    %14 = arith.mulf %8, %8 : vector<1x64xf32>
    %15 = arith.subf %13, %14 : vector<1x64xf32>
    %cst_11 = arith.constant 0.000000e+00 : f32
    %16 = vector.broadcast %cst_11 : f32 to vector<1x64xf32>
    %17 = arith.maximumf %15, %16 : vector<1x64xf32>
    %18 = vector.broadcast %8 : vector<1x64xf32> to vector<32x64xf32>
    %19 = arith.subf %2, %18 : vector<32x64xf32>
    %cst_12 = arith.constant 9.99999974E-6 : f32
    %20 = vector.broadcast %cst_12 : f32 to vector<1x64xf32>
    %21 = arith.addf %17, %20 : vector<1x64xf32>
    %22 = math.rsqrt %21 : vector<1x64xf32>
    %23 = vector.broadcast %22 : vector<1x64xf32> to vector<32x64xf32>
    %24 = arith.mulf %19, %23 : vector<32x64xf32>
    %25 = vector.broadcast %3 : vector<1x64xf32> to vector<32x64xf32>
    %26 = arith.mulf %24, %25 : vector<32x64xf32>
    %27 = vector.broadcast %4 : vector<1x64xf32> to vector<32x64xf32>
    %28 = arith.addf %26, %27 : vector<32x64xf32>
    %cst_13 = arith.constant 0.000000e+00 : f32
    %29 = vector.broadcast %cst_13 : f32 to vector<32x64xf32>
    %30 = arith.maximumf %28, %29 : vector<32x64xf32>
    %c0_14 = arith.constant 0 : index
    %c0_15 = arith.constant 0 : index
    %31 = vector.load %arg5[%c0_14, %c0_15] : memref<32x64xf32, #tpu.memory_space<vmem>>, vector<32x64xf32>
    tpu.vector_store %arg5[%c0_14, %c0_15], %30 {strides = array<i32>} : memref<32x64xf32, #tpu.memory_space<vmem>>, vector<32x64xf32>,
    return
  }
  func.func @transform_0(%arg0: i32) -> (i32, i32) {
    %c0_i32 = arith.constant 0 : i32
    %c0_i32_0 = arith.constant 0 : i32
    %c0_i32_1 = arith.constant 0 : i32
    return %c0_i32, %c0_i32_0 : i32, i32
  }
  func.func @transform_1(%arg0: i32) -> (i32, i32) {
    %c0_i32 = arith.constant 0 : i32
    %c0_i32_0 = arith.constant 0 : i32
    %c0_i32_1 = arith.constant 0 : i32
    return %c0_i32, %c0_i32_0 : i32, i32
  }
  func.func @transform_2(%arg0: i32) -> (i32, i32) {
    %c0_i32 = arith.constant 0 : i32
    %c0_i32_0 = arith.constant 0 : i32
    %c0_i32_1 = arith.constant 0 : i32
    return %c0_i32, %c0_i32_0 : i32, i32
  }
  func.func @transform_3(%arg0: i32) -> (i32, i32) {
    %c0_i32 = arith.constant 0 : i32
    %c0_i32_0 = arith.constant 0 : i32
    %c0_i32_1 = arith.constant 0 : i32
    return %c0_i32, %c0_i32_0 : i32, i32
  }
  func.func @transform_4(%arg0: i32) -> (i32, i32) {
    %c0_i32 = arith.constant 0 : i32
    %c0_i32_0 = arith.constant 0 : i32
    %c0_i32_1 = arith.constant 0 : i32
    return %c0_i32, %c0_i32_0 : i32, i32
  }
}

module attributes {stable_mosaic.version = 11 : i64} {
  func.func @_conv_bn_add_relu_kernel(%arg0: i32, %arg1: memref<32x576xbf16, #tpu.memory_space<vmem>>, %arg2: memref<576x64xbf16, #tpu.memory_space<vmem>>, %arg3: memref<1x64xf32, #tpu.memory_space<vmem>>, %arg4: memref<1x64xf32, #tpu.memory_space<vmem>>, %arg5: memref<32x64xf32, #tpu.memory_space<vmem>>, %arg6: memref<32x64xf32, #tpu.memory_space<vmem>>) attributes {dimension_semantics = [#tpu.dimension_semantics<arbitrary>], iteration_bounds = array<i64: 1>, scalar_prefetch = 0 : i64, scratch_operands = 0 : i64, tpu.core_type = #tpu.core_type<tc>, window_params = [{pipeline_mode = #tpu.pipeline_mode<synchronous>, transform_indices = @transform_0, window_bounds = array<i64: 32, 576>}, {pipeline_mode = #tpu.pipeline_mode<synchronous>, transform_indices = @transform_1, window_bounds = array<i64: 576, 64>}, {pipeline_mode = #tpu.pipeline_mode<synchronous>, transform_indices = @transform_2, window_bounds = array<i64: 1, 64>}, {pipeline_mode = #tpu.pipeline_mode<synchronous>, transform_indices = @transform_3, window_bounds = array<i64: 1, 64>}, {pipeline_mode = #tpu.pipeline_mode<synchronous>, transform_indices = @transform_4, window_bounds = array<i64: 32, 64>}, {pipeline_mode = #tpu.pipeline_mode<synchronous>, transform_indices = @transform_5, window_bounds = array<i64: 32, 64>}]} {
    %c0 = arith.constant 0 : index
    %c0_0 = arith.constant 0 : index
    %0 = vector.load %arg1[%c0, %c0_0] : memref<32x576xbf16, #tpu.memory_space<vmem>>, vector<32x576xbf16>
    %c0_1 = arith.constant 0 : index
    %c0_2 = arith.constant 0 : index
    %1 = vector.load %arg2[%c0_1, %c0_2] : memref<576x64xbf16, #tpu.memory_space<vmem>>, vector<576x64xbf16>
    %cst = arith.constant dense<0.000000e+00> : vector<32x64xf32>
    %2 = tpu.matmul %0, %1, %cst {dimension_numbers = #tpu.dot_dimension_numbers<[1], [0], [0], [1], [0, 0, 1, 1], [], []>} : vector<32x576xbf16>, vector<576x64xbf16>, vector<32x64xf32> -> vector<32x64xf32>
    %c0_3 = arith.constant 0 : index
    %c0_4 = arith.constant 0 : index
    %3 = vector.load %arg3[%c0_3, %c0_4] : memref<1x64xf32, #tpu.memory_space<vmem>>, vector<1x64xf32>
    %c0_5 = arith.constant 0 : index
    %c0_6 = arith.constant 0 : index
    %4 = vector.load %arg4[%c0_5, %c0_6] : memref<1x64xf32, #tpu.memory_space<vmem>>, vector<1x64xf32>
    %cst_7 = arith.constant dense<0.000000e+00> : vector<64xf32>
    %5 = vector.multi_reduction <add>, %2, %cst_7 [0] : vector<32x64xf32> to vector<64xf32>
    %6 = vector.shape_cast %5 : vector<64xf32> to vector<1x64xf32>
    %cst_8 = arith.constant 3.125000e-02 : f32
    %7 = vector.broadcast %cst_8 : f32 to vector<1x64xf32>
    %8 = arith.mulf %6, %7 : vector<1x64xf32>
    %9 = arith.mulf %2, %2 : vector<32x64xf32>
    %cst_9 = arith.constant dense<0.000000e+00> : vector<64xf32>
    %10 = vector.multi_reduction <add>, %9, %cst_9 [0] : vector<32x64xf32> to vector<64xf32>
    %11 = vector.shape_cast %10 : vector<64xf32> to vector<1x64xf32>
    %cst_10 = arith.constant 3.125000e-02 : f32
    %12 = vector.broadcast %cst_10 : f32 to vector<1x64xf32>
    %13 = arith.mulf %11, %12 : vector<1x64xf32>
    %14 = arith.mulf %8, %8 : vector<1x64xf32>
    %15 = arith.subf %13, %14 : vector<1x64xf32>
    %cst_11 = arith.constant 0.000000e+00 : f32
    %16 = vector.broadcast %cst_11 : f32 to vector<1x64xf32>
    %17 = arith.maximumf %15, %16 : vector<1x64xf32>
    %18 = vector.broadcast %8 : vector<1x64xf32> to vector<32x64xf32>
    %19 = arith.subf %2, %18 : vector<32x64xf32>
    %cst_12 = arith.constant 9.99999974E-6 : f32
    %20 = vector.broadcast %cst_12 : f32 to vector<1x64xf32>
    %21 = arith.addf %17, %20 : vector<1x64xf32>
    %22 = math.rsqrt %21 : vector<1x64xf32>
    %23 = vector.broadcast %22 : vector<1x64xf32> to vector<32x64xf32>
    %24 = arith.mulf %19, %23 : vector<32x64xf32>
    %25 = vector.broadcast %3 : vector<1x64xf32> to vector<32x64xf32>
    %26 = arith.mulf %24, %25 : vector<32x64xf32>
    %27 = vector.broadcast %4 : vector<1x64xf32> to vector<32x64xf32>
    %28 = arith.addf %26, %27 : vector<32x64xf32>
    %c0_13 = arith.constant 0 : index
    %c0_14 = arith.constant 0 : index
    %29 = vector.load %arg5[%c0_13, %c0_14] : memref<32x64xf32, #tpu.memory_space<vmem>>, vector<32x64xf32>
    %30 = arith.addf %28, %29 : vector<32x64xf32>
    %cst_15 = arith.constant 0.000000e+00 : f32
    %31 = vector.broadcast %cst_15 : f32 to vector<32x64xf32>
    %32 = arith.maximumf %30, %31 : vector<32x64xf32>
    %c0_16 = arith.constant 0 : index
    %c0_17 = arith.constant 0 : index
    %33 = vector.load %arg6[%c0_16, %c0_17] : memref<32x64xf32, #tpu.memory_space<vmem>>, vector<32x64xf32>
    tpu.vector_store %arg6[%c0_16, %c0_17], %32 {strides = array<i32>} : memref<32x64xf32, #tpu.memory_space<vmem>>, vector<32x64xf32>,
    return
  }
  func.func @transform_0(%arg0: i32) -> (i32, i32) {
    %c0_i32 = arith.constant 0 : i32
    %c0_i32_0 = arith.constant 0 : i32
    %c0_i32_1 = arith.constant 0 : i32
    return %c0_i32, %c0_i32_0 : i32, i32
  }
  func.func @transform_1(%arg0: i32) -> (i32, i32) {
    %c0_i32 = arith.constant 0 : i32
    %c0_i32_0 = arith.constant 0 : i32
    %c0_i32_1 = arith.constant 0 : i32
    return %c0_i32, %c0_i32_0 : i32, i32
  }
  func.func @transform_2(%arg0: i32) -> (i32, i32) {
    %c0_i32 = arith.constant 0 : i32
    %c0_i32_0 = arith.constant 0 : i32
    %c0_i32_1 = arith.constant 0 : i32
    return %c0_i32, %c0_i32_0 : i32, i32
  }
  func.func @transform_3(%arg0: i32) -> (i32, i32) {
    %c0_i32 = arith.constant 0 : i32
    %c0_i32_0 = arith.constant 0 : i32
    %c0_i32_1 = arith.constant 0 : i32
    return %c0_i32, %c0_i32_0 : i32, i32
  }
  func.func @transform_4(%arg0: i32) -> (i32, i32) {
    %c0_i32 = arith.constant 0 : i32
    %c0_i32_0 = arith.constant 0 : i32
    %c0_i32_1 = arith.constant 0 : i32
    return %c0_i32, %c0_i32_0 : i32, i32
  }
  func.func @transform_5(%arg0: i32) -> (i32, i32) {
    %c0_i32 = arith.constant 0 : i32
    %c0_i32_0 = arith.constant 0 : i32
    %c0_i32_1 = arith.constant 0 : i32
    return %c0_i32, %c0_i32_0 : i32, i32
  }
}

module attributes {stable_mosaic.version = 11 : i64} {
  func.func @_conv_bn_kernel(%arg0: i32, %arg1: memref<8x576xbf16, #tpu.memory_space<vmem>>, %arg2: memref<576x128xbf16, #tpu.memory_space<vmem>>, %arg3: memref<1x128xf32, #tpu.memory_space<vmem>>, %arg4: memref<1x128xf32, #tpu.memory_space<vmem>>, %arg5: memref<8x128xf32, #tpu.memory_space<vmem>>) attributes {dimension_semantics = [#tpu.dimension_semantics<arbitrary>], iteration_bounds = array<i64: 1>, scalar_prefetch = 0 : i64, scratch_operands = 0 : i64, tpu.core_type = #tpu.core_type<tc>, window_params = [{pipeline_mode = #tpu.pipeline_mode<synchronous>, transform_indices = @transform_0, window_bounds = array<i64: 8, 576>}, {pipeline_mode = #tpu.pipeline_mode<synchronous>, transform_indices = @transform_1, window_bounds = array<i64: 576, 128>}, {pipeline_mode = #tpu.pipeline_mode<synchronous>, transform_indices = @transform_2, window_bounds = array<i64: 1, 128>}, {pipeline_mode = #tpu.pipeline_mode<synchronous>, transform_indices = @transform_3, window_bounds = array<i64: 1, 128>}, {pipeline_mode = #tpu.pipeline_mode<synchronous>, transform_indices = @transform_4, window_bounds = array<i64: 8, 128>}]} {
    %c0 = arith.constant 0 : index
    %c0_0 = arith.constant 0 : index
    %0 = vector.load %arg1[%c0, %c0_0] : memref<8x576xbf16, #tpu.memory_space<vmem>>, vector<8x576xbf16>
    %c0_1 = arith.constant 0 : index
    %c0_2 = arith.constant 0 : index
    %1 = vector.load %arg2[%c0_1, %c0_2] : memref<576x128xbf16, #tpu.memory_space<vmem>>, vector<576x128xbf16>
    %cst = arith.constant dense<0.000000e+00> : vector<8x128xf32>
    %2 = tpu.matmul %0, %1, %cst {dimension_numbers = #tpu.dot_dimension_numbers<[1], [0], [0], [1], [0, 0, 1, 1], [], []>} : vector<8x576xbf16>, vector<576x128xbf16>, vector<8x128xf32> -> vector<8x128xf32>
    %c0_3 = arith.constant 0 : index
    %c0_4 = arith.constant 0 : index
    %3 = vector.load %arg3[%c0_3, %c0_4] : memref<1x128xf32, #tpu.memory_space<vmem>>, vector<1x128xf32>
    %c0_5 = arith.constant 0 : index
    %c0_6 = arith.constant 0 : index
    %4 = vector.load %arg4[%c0_5, %c0_6] : memref<1x128xf32, #tpu.memory_space<vmem>>, vector<1x128xf32>
    %cst_7 = arith.constant dense<0.000000e+00> : vector<128xf32>
    %5 = vector.multi_reduction <add>, %2, %cst_7 [0] : vector<8x128xf32> to vector<128xf32>
    %6 = vector.shape_cast %5 : vector<128xf32> to vector<1x128xf32>
    %cst_8 = arith.constant 1.250000e-01 : f32
    %7 = vector.broadcast %cst_8 : f32 to vector<1x128xf32>
    %8 = arith.mulf %6, %7 : vector<1x128xf32>
    %9 = arith.mulf %2, %2 : vector<8x128xf32>
    %cst_9 = arith.constant dense<0.000000e+00> : vector<128xf32>
    %10 = vector.multi_reduction <add>, %9, %cst_9 [0] : vector<8x128xf32> to vector<128xf32>
    %11 = vector.shape_cast %10 : vector<128xf32> to vector<1x128xf32>
    %cst_10 = arith.constant 1.250000e-01 : f32
    %12 = vector.broadcast %cst_10 : f32 to vector<1x128xf32>
    %13 = arith.mulf %11, %12 : vector<1x128xf32>
    %14 = arith.mulf %8, %8 : vector<1x128xf32>
    %15 = arith.subf %13, %14 : vector<1x128xf32>
    %cst_11 = arith.constant 0.000000e+00 : f32
    %16 = vector.broadcast %cst_11 : f32 to vector<1x128xf32>
    %17 = arith.maximumf %15, %16 : vector<1x128xf32>
    %18 = vector.broadcast %8 : vector<1x128xf32> to vector<8x128xf32>
    %19 = arith.subf %2, %18 : vector<8x128xf32>
    %cst_12 = arith.constant 9.99999974E-6 : f32
    %20 = vector.broadcast %cst_12 : f32 to vector<1x128xf32>
    %21 = arith.addf %17, %20 : vector<1x128xf32>
    %22 = math.rsqrt %21 : vector<1x128xf32>
    %23 = vector.broadcast %22 : vector<1x128xf32> to vector<8x128xf32>
    %24 = arith.mulf %19, %23 : vector<8x128xf32>
    %25 = vector.broadcast %3 : vector<1x128xf32> to vector<8x128xf32>
    %26 = arith.mulf %24, %25 : vector<8x128xf32>
    %27 = vector.broadcast %4 : vector<1x128xf32> to vector<8x128xf32>
    %28 = arith.addf %26, %27 : vector<8x128xf32>
    %cst_13 = arith.constant 0.000000e+00 : f32
    %29 = vector.broadcast %cst_13 : f32 to vector<8x128xf32>
    %30 = arith.maximumf %28, %29 : vector<8x128xf32>
    %c0_14 = arith.constant 0 : index
    %c0_15 = arith.constant 0 : index
    %31 = vector.load %arg5[%c0_14, %c0_15] : memref<8x128xf32, #tpu.memory_space<vmem>>, vector<8x128xf32>
    tpu.vector_store %arg5[%c0_14, %c0_15], %30 {strides = array<i32>} : memref<8x128xf32, #tpu.memory_space<vmem>>, vector<8x128xf32>,
    return
  }
  func.func @transform_0(%arg0: i32) -> (i32, i32) {
    %c0_i32 = arith.constant 0 : i32
    %c0_i32_0 = arith.constant 0 : i32
    %c0_i32_1 = arith.constant 0 : i32
    return %c0_i32, %c0_i32_0 : i32, i32
  }
  func.func @transform_1(%arg0: i32) -> (i32, i32) {
    %c0_i32 = arith.constant 0 : i32
    %c0_i32_0 = arith.constant 0 : i32
    %c0_i32_1 = arith.constant 0 : i32
    return %c0_i32, %c0_i32_0 : i32, i32
  }
  func.func @transform_2(%arg0: i32) -> (i32, i32) {
    %c0_i32 = arith.constant 0 : i32
    %c0_i32_0 = arith.constant 0 : i32
    %c0_i32_1 = arith.constant 0 : i32
    return %c0_i32, %c0_i32_0 : i32, i32
  }
  func.func @transform_3(%arg0: i32) -> (i32, i32) {
    %c0_i32 = arith.constant 0 : i32
    %c0_i32_0 = arith.constant 0 : i32
    %c0_i32_1 = arith.constant 0 : i32
    return %c0_i32, %c0_i32_0 : i32, i32
  }
  func.func @transform_4(%arg0: i32) -> (i32, i32) {
    %c0_i32 = arith.constant 0 : i32
    %c0_i32_0 = arith.constant 0 : i32
    %c0_i32_1 = arith.constant 0 : i32
    return %c0_i32, %c0_i32_0 : i32, i32
  }
}

module attributes {stable_mosaic.version = 11 : i64} {
  func.func @_conv_bn_proj_add_relu_kernel(%arg0: i32, %arg1: memref<8x1152xbf16, #tpu.memory_space<vmem>>, %arg2: memref<1152x128xbf16, #tpu.memory_space<vmem>>, %arg3: memref<1x128xf32, #tpu.memory_space<vmem>>, %arg4: memref<1x128xf32, #tpu.memory_space<vmem>>, %arg5: memref<8x64xbf16, #tpu.memory_space<vmem>>, %arg6: memref<64x128xbf16, #tpu.memory_space<vmem>>, %arg7: memref<1x128xf32, #tpu.memory_space<vmem>>, %arg8: memref<1x128xf32, #tpu.memory_space<vmem>>, %arg9: memref<8x128xf32, #tpu.memory_space<vmem>>) attributes {dimension_semantics = [#tpu.dimension_semantics<arbitrary>], iteration_bounds = array<i64: 1>, scalar_prefetch = 0 : i64, scratch_operands = 0 : i64, tpu.core_type = #tpu.core_type<tc>, window_params = [{pipeline_mode = #tpu.pipeline_mode<synchronous>, transform_indices = @transform_0, window_bounds = array<i64: 8, 1152>}, {pipeline_mode = #tpu.pipeline_mode<synchronous>, transform_indices = @transform_1, window_bounds = array<i64: 1152, 128>}, {pipeline_mode = #tpu.pipeline_mode<synchronous>, transform_indices = @transform_2, window_bounds = array<i64: 1, 128>}, {pipeline_mode = #tpu.pipeline_mode<synchronous>, transform_indices = @transform_3, window_bounds = array<i64: 1, 128>}, {pipeline_mode = #tpu.pipeline_mode<synchronous>, transform_indices = @transform_4, window_bounds = array<i64: 8, 64>}, {pipeline_mode = #tpu.pipeline_mode<synchronous>, transform_indices = @transform_5, window_bounds = array<i64: 64, 128>}, {pipeline_mode = #tpu.pipeline_mode<synchronous>, transform_indices = @transform_6, window_bounds = array<i64: 1, 128>}, {pipeline_mode = #tpu.pipeline_mode<synchronous>, transform_indices = @transform_7, window_bounds = array<i64: 1, 128>}, {pipeline_mode = #tpu.pipeline_mode<synchronous>, transform_indices = @transform_8, window_bounds = array<i64: 8, 128>}]} {
    %c0 = arith.constant 0 : index
    %c0_0 = arith.constant 0 : index
    %0 = vector.load %arg1[%c0, %c0_0] : memref<8x1152xbf16, #tpu.memory_space<vmem>>, vector<8x1152xbf16>
    %c0_1 = arith.constant 0 : index
    %c0_2 = arith.constant 0 : index
    %1 = vector.load %arg2[%c0_1, %c0_2] : memref<1152x128xbf16, #tpu.memory_space<vmem>>, vector<1152x128xbf16>
    %cst = arith.constant dense<0.000000e+00> : vector<8x128xf32>
    %2 = tpu.matmul %0, %1, %cst {dimension_numbers = #tpu.dot_dimension_numbers<[1], [0], [0], [1], [0, 0, 1, 1], [], []>} : vector<8x1152xbf16>, vector<1152x128xbf16>, vector<8x128xf32> -> vector<8x128xf32>
    %c0_3 = arith.constant 0 : index
    %c0_4 = arith.constant 0 : index
    %3 = vector.load %arg3[%c0_3, %c0_4] : memref<1x128xf32, #tpu.memory_space<vmem>>, vector<1x128xf32>
    %c0_5 = arith.constant 0 : index
    %c0_6 = arith.constant 0 : index
    %4 = vector.load %arg4[%c0_5, %c0_6] : memref<1x128xf32, #tpu.memory_space<vmem>>, vector<1x128xf32>
    %cst_7 = arith.constant dense<0.000000e+00> : vector<128xf32>
    %5 = vector.multi_reduction <add>, %2, %cst_7 [0] : vector<8x128xf32> to vector<128xf32>
    %6 = vector.shape_cast %5 : vector<128xf32> to vector<1x128xf32>
    %cst_8 = arith.constant 1.250000e-01 : f32
    %7 = vector.broadcast %cst_8 : f32 to vector<1x128xf32>
    %8 = arith.mulf %6, %7 : vector<1x128xf32>
    %9 = arith.mulf %2, %2 : vector<8x128xf32>
    %cst_9 = arith.constant dense<0.000000e+00> : vector<128xf32>
    %10 = vector.multi_reduction <add>, %9, %cst_9 [0] : vector<8x128xf32> to vector<128xf32>
    %11 = vector.shape_cast %10 : vector<128xf32> to vector<1x128xf32>
    %cst_10 = arith.constant 1.250000e-01 : f32
    %12 = vector.broadcast %cst_10 : f32 to vector<1x128xf32>
    %13 = arith.mulf %11, %12 : vector<1x128xf32>
    %14 = arith.mulf %8, %8 : vector<1x128xf32>
    %15 = arith.subf %13, %14 : vector<1x128xf32>
    %cst_11 = arith.constant 0.000000e+00 : f32
    %16 = vector.broadcast %cst_11 : f32 to vector<1x128xf32>
    %17 = arith.maximumf %15, %16 : vector<1x128xf32>
    %18 = vector.broadcast %8 : vector<1x128xf32> to vector<8x128xf32>
    %19 = arith.subf %2, %18 : vector<8x128xf32>
    %cst_12 = arith.constant 9.99999974E-6 : f32
    %20 = vector.broadcast %cst_12 : f32 to vector<1x128xf32>
    %21 = arith.addf %17, %20 : vector<1x128xf32>
    %22 = math.rsqrt %21 : vector<1x128xf32>
    %23 = vector.broadcast %22 : vector<1x128xf32> to vector<8x128xf32>
    %24 = arith.mulf %19, %23 : vector<8x128xf32>
    %25 = vector.broadcast %3 : vector<1x128xf32> to vector<8x128xf32>
    %26 = arith.mulf %24, %25 : vector<8x128xf32>
    %27 = vector.broadcast %4 : vector<1x128xf32> to vector<8x128xf32>
    %28 = arith.addf %26, %27 : vector<8x128xf32>
    %c0_13 = arith.constant 0 : index
    %c0_14 = arith.constant 0 : index
    %29 = vector.load %arg5[%c0_13, %c0_14] : memref<8x64xbf16, #tpu.memory_space<vmem>>, vector<8x64xbf16>
    %c0_15 = arith.constant 0 : index
    %c0_16 = arith.constant 0 : index
    %30 = vector.load %arg6[%c0_15, %c0_16] : memref<64x128xbf16, #tpu.memory_space<vmem>>, vector<64x128xbf16>
    %cst_17 = arith.constant dense<0.000000e+00> : vector<8x128xf32>
    %31 = tpu.matmul %29, %30, %cst_17 {dimension_numbers = #tpu.dot_dimension_numbers<[1], [0], [0], [1], [0, 0, 1, 1], [], []>} : vector<8x64xbf16>, vector<64x128xbf16>, vector<8x128xf32> -> vector<8x128xf32>
    %c0_18 = arith.constant 0 : index
    %c0_19 = arith.constant 0 : index
    %32 = vector.load %arg7[%c0_18, %c0_19] : memref<1x128xf32, #tpu.memory_space<vmem>>, vector<1x128xf32>
    %c0_20 = arith.constant 0 : index
    %c0_21 = arith.constant 0 : index
    %33 = vector.load %arg8[%c0_20, %c0_21] : memref<1x128xf32, #tpu.memory_space<vmem>>, vector<1x128xf32>
    %cst_22 = arith.constant dense<0.000000e+00> : vector<128xf32>
    %34 = vector.multi_reduction <add>, %31, %cst_22 [0] : vector<8x128xf32> to vector<128xf32>
    %35 = vector.shape_cast %34 : vector<128xf32> to vector<1x128xf32>
    %cst_23 = arith.constant 1.250000e-01 : f32
    %36 = vector.broadcast %cst_23 : f32 to vector<1x128xf32>
    %37 = arith.mulf %35, %36 : vector<1x128xf32>
    %38 = arith.mulf %31, %31 : vector<8x128xf32>
    %cst_24 = arith.constant dense<0.000000e+00> : vector<128xf32>
    %39 = vector.multi_reduction <add>, %38, %cst_24 [0] : vector<8x128xf32> to vector<128xf32>
    %40 = vector.shape_cast %39 : vector<128xf32> to vector<1x128xf32>
    %cst_25 = arith.constant 1.250000e-01 : f32
    %41 = vector.broadcast %cst_25 : f32 to vector<1x128xf32>
    %42 = arith.mulf %40, %41 : vector<1x128xf32>
    %43 = arith.mulf %37, %37 : vector<1x128xf32>
    %44 = arith.subf %42, %43 : vector<1x128xf32>
    %cst_26 = arith.constant 0.000000e+00 : f32
    %45 = vector.broadcast %cst_26 : f32 to vector<1x128xf32>
    %46 = arith.maximumf %44, %45 : vector<1x128xf32>
    %47 = vector.broadcast %37 : vector<1x128xf32> to vector<8x128xf32>
    %48 = arith.subf %31, %47 : vector<8x128xf32>
    %cst_27 = arith.constant 9.99999974E-6 : f32
    %49 = vector.broadcast %cst_27 : f32 to vector<1x128xf32>
    %50 = arith.addf %46, %49 : vector<1x128xf32>
    %51 = math.rsqrt %50 : vector<1x128xf32>
    %52 = vector.broadcast %51 : vector<1x128xf32> to vector<8x128xf32>
    %53 = arith.mulf %48, %52 : vector<8x128xf32>
    %54 = vector.broadcast %32 : vector<1x128xf32> to vector<8x128xf32>
    %55 = arith.mulf %53, %54 : vector<8x128xf32>
    %56 = vector.broadcast %33 : vector<1x128xf32> to vector<8x128xf32>
    %57 = arith.addf %55, %56 : vector<8x128xf32>
    %58 = arith.addf %28, %57 : vector<8x128xf32>
    %cst_28 = arith.constant 0.000000e+00 : f32
    %59 = vector.broadcast %cst_28 : f32 to vector<8x128xf32>
    %60 = arith.maximumf %58, %59 : vector<8x128xf32>
    %c0_29 = arith.constant 0 : index
    %c0_30 = arith.constant 0 : index
    %61 = vector.load %arg9[%c0_29, %c0_30] : memref<8x128xf32, #tpu.memory_space<vmem>>, vector<8x128xf32>
    tpu.vector_store %arg9[%c0_29, %c0_30], %60 {strides = array<i32>} : memref<8x128xf32, #tpu.memory_space<vmem>>, vector<8x128xf32>,
    return
  }
  func.func @transform_0(%arg0: i32) -> (i32, i32) {
    %c0_i32 = arith.constant 0 : i32
    %c0_i32_0 = arith.constant 0 : i32
    %c0_i32_1 = arith.constant 0 : i32
    return %c0_i32, %c0_i32_0 : i32, i32
  }
  func.func @transform_1(%arg0: i32) -> (i32, i32) {
    %c0_i32 = arith.constant 0 : i32
    %c0_i32_0 = arith.constant 0 : i32
    %c0_i32_1 = arith.constant 0 : i32
    return %c0_i32, %c0_i32_0 : i32, i32
  }
  func.func @transform_2(%arg0: i32) -> (i32, i32) {
    %c0_i32 = arith.constant 0 : i32
    %c0_i32_0 = arith.constant 0 : i32
    %c0_i32_1 = arith.constant 0 : i32
    return %c0_i32, %c0_i32_0 : i32, i32
  }
  func.func @transform_3(%arg0: i32) -> (i32, i32) {
    %c0_i32 = arith.constant 0 : i32
    %c0_i32_0 = arith.constant 0 : i32
    %c0_i32_1 = arith.constant 0 : i32
    return %c0_i32, %c0_i32_0 : i32, i32
  }
  func.func @transform_4(%arg0: i32) -> (i32, i32) {
    %c0_i32 = arith.constant 0 : i32
    %c0_i32_0 = arith.constant 0 : i32
    %c0_i32_1 = arith.constant 0 : i32
    return %c0_i32, %c0_i32_0 : i32, i32
  }
  func.func @transform_5(%arg0: i32) -> (i32, i32) {
    %c0_i32 = arith.constant 0 : i32
    %c0_i32_0 = arith.constant 0 : i32
    %c0_i32_1 = arith.constant 0 : i32
    return %c0_i32, %c0_i32_0 : i32, i32
  }
  func.func @transform_6(%arg0: i32) -> (i32, i32) {
    %c0_i32 = arith.constant 0 : i32
    %c0_i32_0 = arith.constant 0 : i32
    %c0_i32_1 = arith.constant 0 : i32
    return %c0_i32, %c0_i32_0 : i32, i32
  }
  func.func @transform_7(%arg0: i32) -> (i32, i32) {
    %c0_i32 = arith.constant 0 : i32
    %c0_i32_0 = arith.constant 0 : i32
    %c0_i32_1 = arith.constant 0 : i32
    return %c0_i32, %c0_i32_0 : i32, i32
  }
  func.func @transform_8(%arg0: i32) -> (i32, i32) {
    %c0_i32 = arith.constant 0 : i32
    %c0_i32_0 = arith.constant 0 : i32
    %c0_i32_1 = arith.constant 0 : i32
    return %c0_i32, %c0_i32_0 : i32, i32
  }
}

module attributes {stable_mosaic.version = 11 : i64} {
  func.func @_conv_bn_kernel(%arg0: i32, %arg1: memref<8x1152xbf16, #tpu.memory_space<vmem>>, %arg2: memref<1152x128xbf16, #tpu.memory_space<vmem>>, %arg3: memref<1x128xf32, #tpu.memory_space<vmem>>, %arg4: memref<1x128xf32, #tpu.memory_space<vmem>>, %arg5: memref<8x128xf32, #tpu.memory_space<vmem>>) attributes {dimension_semantics = [#tpu.dimension_semantics<arbitrary>], iteration_bounds = array<i64: 1>, scalar_prefetch = 0 : i64, scratch_operands = 0 : i64, tpu.core_type = #tpu.core_type<tc>, window_params = [{pipeline_mode = #tpu.pipeline_mode<synchronous>, transform_indices = @transform_0, window_bounds = array<i64: 8, 1152>}, {pipeline_mode = #tpu.pipeline_mode<synchronous>, transform_indices = @transform_1, window_bounds = array<i64: 1152, 128>}, {pipeline_mode = #tpu.pipeline_mode<synchronous>, transform_indices = @transform_2, window_bounds = array<i64: 1, 128>}, {pipeline_mode = #tpu.pipeline_mode<synchronous>, transform_indices = @transform_3, window_bounds = array<i64: 1, 128>}, {pipeline_mode = #tpu.pipeline_mode<synchronous>, transform_indices = @transform_4, window_bounds = array<i64: 8, 128>}]} {
    %c0 = arith.constant 0 : index
    %c0_0 = arith.constant 0 : index
    %0 = vector.load %arg1[%c0, %c0_0] : memref<8x1152xbf16, #tpu.memory_space<vmem>>, vector<8x1152xbf16>
    %c0_1 = arith.constant 0 : index
    %c0_2 = arith.constant 0 : index
    %1 = vector.load %arg2[%c0_1, %c0_2] : memref<1152x128xbf16, #tpu.memory_space<vmem>>, vector<1152x128xbf16>
    %cst = arith.constant dense<0.000000e+00> : vector<8x128xf32>
    %2 = tpu.matmul %0, %1, %cst {dimension_numbers = #tpu.dot_dimension_numbers<[1], [0], [0], [1], [0, 0, 1, 1], [], []>} : vector<8x1152xbf16>, vector<1152x128xbf16>, vector<8x128xf32> -> vector<8x128xf32>
    %c0_3 = arith.constant 0 : index
    %c0_4 = arith.constant 0 : index
    %3 = vector.load %arg3[%c0_3, %c0_4] : memref<1x128xf32, #tpu.memory_space<vmem>>, vector<1x128xf32>
    %c0_5 = arith.constant 0 : index
    %c0_6 = arith.constant 0 : index
    %4 = vector.load %arg4[%c0_5, %c0_6] : memref<1x128xf32, #tpu.memory_space<vmem>>, vector<1x128xf32>
    %cst_7 = arith.constant dense<0.000000e+00> : vector<128xf32>
    %5 = vector.multi_reduction <add>, %2, %cst_7 [0] : vector<8x128xf32> to vector<128xf32>
    %6 = vector.shape_cast %5 : vector<128xf32> to vector<1x128xf32>
    %cst_8 = arith.constant 1.250000e-01 : f32
    %7 = vector.broadcast %cst_8 : f32 to vector<1x128xf32>
    %8 = arith.mulf %6, %7 : vector<1x128xf32>
    %9 = arith.mulf %2, %2 : vector<8x128xf32>
    %cst_9 = arith.constant dense<0.000000e+00> : vector<128xf32>
    %10 = vector.multi_reduction <add>, %9, %cst_9 [0] : vector<8x128xf32> to vector<128xf32>
    %11 = vector.shape_cast %10 : vector<128xf32> to vector<1x128xf32>
    %cst_10 = arith.constant 1.250000e-01 : f32
    %12 = vector.broadcast %cst_10 : f32 to vector<1x128xf32>
    %13 = arith.mulf %11, %12 : vector<1x128xf32>
    %14 = arith.mulf %8, %8 : vector<1x128xf32>
    %15 = arith.subf %13, %14 : vector<1x128xf32>
    %cst_11 = arith.constant 0.000000e+00 : f32
    %16 = vector.broadcast %cst_11 : f32 to vector<1x128xf32>
    %17 = arith.maximumf %15, %16 : vector<1x128xf32>
    %18 = vector.broadcast %8 : vector<1x128xf32> to vector<8x128xf32>
    %19 = arith.subf %2, %18 : vector<8x128xf32>
    %cst_12 = arith.constant 9.99999974E-6 : f32
    %20 = vector.broadcast %cst_12 : f32 to vector<1x128xf32>
    %21 = arith.addf %17, %20 : vector<1x128xf32>
    %22 = math.rsqrt %21 : vector<1x128xf32>
    %23 = vector.broadcast %22 : vector<1x128xf32> to vector<8x128xf32>
    %24 = arith.mulf %19, %23 : vector<8x128xf32>
    %25 = vector.broadcast %3 : vector<1x128xf32> to vector<8x128xf32>
    %26 = arith.mulf %24, %25 : vector<8x128xf32>
    %27 = vector.broadcast %4 : vector<1x128xf32> to vector<8x128xf32>
    %28 = arith.addf %26, %27 : vector<8x128xf32>
    %cst_13 = arith.constant 0.000000e+00 : f32
    %29 = vector.broadcast %cst_13 : f32 to vector<8x128xf32>
    %30 = arith.maximumf %28, %29 : vector<8x128xf32>
    %c0_14 = arith.constant 0 : index
    %c0_15 = arith.constant 0 : index
    %31 = vector.load %arg5[%c0_14, %c0_15] : memref<8x128xf32, #tpu.memory_space<vmem>>, vector<8x128xf32>
    tpu.vector_store %arg5[%c0_14, %c0_15], %30 {strides = array<i32>} : memref<8x128xf32, #tpu.memory_space<vmem>>, vector<8x128xf32>,
    return
  }
  func.func @transform_0(%arg0: i32) -> (i32, i32) {
    %c0_i32 = arith.constant 0 : i32
    %c0_i32_0 = arith.constant 0 : i32
    %c0_i32_1 = arith.constant 0 : i32
    return %c0_i32, %c0_i32_0 : i32, i32
  }
  func.func @transform_1(%arg0: i32) -> (i32, i32) {
    %c0_i32 = arith.constant 0 : i32
    %c0_i32_0 = arith.constant 0 : i32
    %c0_i32_1 = arith.constant 0 : i32
    return %c0_i32, %c0_i32_0 : i32, i32
  }
  func.func @transform_2(%arg0: i32) -> (i32, i32) {
    %c0_i32 = arith.constant 0 : i32
    %c0_i32_0 = arith.constant 0 : i32
    %c0_i32_1 = arith.constant 0 : i32
    return %c0_i32, %c0_i32_0 : i32, i32
  }
  func.func @transform_3(%arg0: i32) -> (i32, i32) {
    %c0_i32 = arith.constant 0 : i32
    %c0_i32_0 = arith.constant 0 : i32
    %c0_i32_1 = arith.constant 0 : i32
    return %c0_i32, %c0_i32_0 : i32, i32
  }
  func.func @transform_4(%arg0: i32) -> (i32, i32) {
    %c0_i32 = arith.constant 0 : i32
    %c0_i32_0 = arith.constant 0 : i32
    %c0_i32_1 = arith.constant 0 : i32
    return %c0_i32, %c0_i32_0 : i32, i32
  }
}

module attributes {stable_mosaic.version = 11 : i64} {
  func.func @_conv_bn_add_relu_kernel(%arg0: i32, %arg1: memref<8x1152xbf16, #tpu.memory_space<vmem>>, %arg2: memref<1152x128xbf16, #tpu.memory_space<vmem>>, %arg3: memref<1x128xf32, #tpu.memory_space<vmem>>, %arg4: memref<1x128xf32, #tpu.memory_space<vmem>>, %arg5: memref<8x128xf32, #tpu.memory_space<vmem>>, %arg6: memref<8x128xf32, #tpu.memory_space<vmem>>) attributes {dimension_semantics = [#tpu.dimension_semantics<arbitrary>], iteration_bounds = array<i64: 1>, scalar_prefetch = 0 : i64, scratch_operands = 0 : i64, tpu.core_type = #tpu.core_type<tc>, window_params = [{pipeline_mode = #tpu.pipeline_mode<synchronous>, transform_indices = @transform_0, window_bounds = array<i64: 8, 1152>}, {pipeline_mode = #tpu.pipeline_mode<synchronous>, transform_indices = @transform_1, window_bounds = array<i64: 1152, 128>}, {pipeline_mode = #tpu.pipeline_mode<synchronous>, transform_indices = @transform_2, window_bounds = array<i64: 1, 128>}, {pipeline_mode = #tpu.pipeline_mode<synchronous>, transform_indices = @transform_3, window_bounds = array<i64: 1, 128>}, {pipeline_mode = #tpu.pipeline_mode<synchronous>, transform_indices = @transform_4, window_bounds = array<i64: 8, 128>}, {pipeline_mode = #tpu.pipeline_mode<synchronous>, transform_indices = @transform_5, window_bounds = array<i64: 8, 128>}]} {
    %c0 = arith.constant 0 : index
    %c0_0 = arith.constant 0 : index
    %0 = vector.load %arg1[%c0, %c0_0] : memref<8x1152xbf16, #tpu.memory_space<vmem>>, vector<8x1152xbf16>
    %c0_1 = arith.constant 0 : index
    %c0_2 = arith.constant 0 : index
    %1 = vector.load %arg2[%c0_1, %c0_2] : memref<1152x128xbf16, #tpu.memory_space<vmem>>, vector<1152x128xbf16>
    %cst = arith.constant dense<0.000000e+00> : vector<8x128xf32>
    %2 = tpu.matmul %0, %1, %cst {dimension_numbers = #tpu.dot_dimension_numbers<[1], [0], [0], [1], [0, 0, 1, 1], [], []>} : vector<8x1152xbf16>, vector<1152x128xbf16>, vector<8x128xf32> -> vector<8x128xf32>
    %c0_3 = arith.constant 0 : index
    %c0_4 = arith.constant 0 : index
    %3 = vector.load %arg3[%c0_3, %c0_4] : memref<1x128xf32, #tpu.memory_space<vmem>>, vector<1x128xf32>
    %c0_5 = arith.constant 0 : index
    %c0_6 = arith.constant 0 : index
    %4 = vector.load %arg4[%c0_5, %c0_6] : memref<1x128xf32, #tpu.memory_space<vmem>>, vector<1x128xf32>
    %cst_7 = arith.constant dense<0.000000e+00> : vector<128xf32>
    %5 = vector.multi_reduction <add>, %2, %cst_7 [0] : vector<8x128xf32> to vector<128xf32>
    %6 = vector.shape_cast %5 : vector<128xf32> to vector<1x128xf32>
    %cst_8 = arith.constant 1.250000e-01 : f32
    %7 = vector.broadcast %cst_8 : f32 to vector<1x128xf32>
    %8 = arith.mulf %6, %7 : vector<1x128xf32>
    %9 = arith.mulf %2, %2 : vector<8x128xf32>
    %cst_9 = arith.constant dense<0.000000e+00> : vector<128xf32>
    %10 = vector.multi_reduction <add>, %9, %cst_9 [0] : vector<8x128xf32> to vector<128xf32>
    %11 = vector.shape_cast %10 : vector<128xf32> to vector<1x128xf32>
    %cst_10 = arith.constant 1.250000e-01 : f32
    %12 = vector.broadcast %cst_10 : f32 to vector<1x128xf32>
    %13 = arith.mulf %11, %12 : vector<1x128xf32>
    %14 = arith.mulf %8, %8 : vector<1x128xf32>
    %15 = arith.subf %13, %14 : vector<1x128xf32>
    %cst_11 = arith.constant 0.000000e+00 : f32
    %16 = vector.broadcast %cst_11 : f32 to vector<1x128xf32>
    %17 = arith.maximumf %15, %16 : vector<1x128xf32>
    %18 = vector.broadcast %8 : vector<1x128xf32> to vector<8x128xf32>
    %19 = arith.subf %2, %18 : vector<8x128xf32>
    %cst_12 = arith.constant 9.99999974E-6 : f32
    %20 = vector.broadcast %cst_12 : f32 to vector<1x128xf32>
    %21 = arith.addf %17, %20 : vector<1x128xf32>
    %22 = math.rsqrt %21 : vector<1x128xf32>
    %23 = vector.broadcast %22 : vector<1x128xf32> to vector<8x128xf32>
    %24 = arith.mulf %19, %23 : vector<8x128xf32>
    %25 = vector.broadcast %3 : vector<1x128xf32> to vector<8x128xf32>
    %26 = arith.mulf %24, %25 : vector<8x128xf32>
    %27 = vector.broadcast %4 : vector<1x128xf32> to vector<8x128xf32>
    %28 = arith.addf %26, %27 : vector<8x128xf32>
    %c0_13 = arith.constant 0 : index
    %c0_14 = arith.constant 0 : index
    %29 = vector.load %arg5[%c0_13, %c0_14] : memref<8x128xf32, #tpu.memory_space<vmem>>, vector<8x128xf32>
    %30 = arith.addf %28, %29 : vector<8x128xf32>
    %cst_15 = arith.constant 0.000000e+00 : f32
    %31 = vector.broadcast %cst_15 : f32 to vector<8x128xf32>
    %32 = arith.maximumf %30, %31 : vector<8x128xf32>
    %c0_16 = arith.constant 0 : index
    %c0_17 = arith.constant 0 : index
    %33 = vector.load %arg6[%c0_16, %c0_17] : memref<8x128xf32, #tpu.memory_space<vmem>>, vector<8x128xf32>
    tpu.vector_store %arg6[%c0_16, %c0_17], %32 {strides = array<i32>} : memref<8x128xf32, #tpu.memory_space<vmem>>, vector<8x128xf32>,
    return
  }
  func.func @transform_0(%arg0: i32) -> (i32, i32) {
    %c0_i32 = arith.constant 0 : i32
    %c0_i32_0 = arith.constant 0 : i32
    %c0_i32_1 = arith.constant 0 : i32
    return %c0_i32, %c0_i32_0 : i32, i32
  }
  func.func @transform_1(%arg0: i32) -> (i32, i32) {
    %c0_i32 = arith.constant 0 : i32
    %c0_i32_0 = arith.constant 0 : i32
    %c0_i32_1 = arith.constant 0 : i32
    return %c0_i32, %c0_i32_0 : i32, i32
  }
  func.func @transform_2(%arg0: i32) -> (i32, i32) {
    %c0_i32 = arith.constant 0 : i32
    %c0_i32_0 = arith.constant 0 : i32
    %c0_i32_1 = arith.constant 0 : i32
    return %c0_i32, %c0_i32_0 : i32, i32
  }
  func.func @transform_3(%arg0: i32) -> (i32, i32) {
    %c0_i32 = arith.constant 0 : i32
    %c0_i32_0 = arith.constant 0 : i32
    %c0_i32_1 = arith.constant 0 : i32
    return %c0_i32, %c0_i32_0 : i32, i32
  }
  func.func @transform_4(%arg0: i32) -> (i32, i32) {
    %c0_i32 = arith.constant 0 : i32
    %c0_i32_0 = arith.constant 0 : i32
    %c0_i32_1 = arith.constant 0 : i32
    return %c0_i32, %c0_i32_0 : i32, i32
  }
  func.func @transform_5(%arg0: i32) -> (i32, i32) {
    %c0_i32 = arith.constant 0 : i32
    %c0_i32_0 = arith.constant 0 : i32
    %c0_i32_1 = arith.constant 0 : i32
    return %c0_i32, %c0_i32_0 : i32, i32
  }
}

module attributes {stable_mosaic.version = 11 : i64} {
  func.func @_avgpool_kernel(%arg0: i32, %arg1: memref<2x4x128xf32, #tpu.memory_space<vmem>>, %arg2: memref<2x128xf32, #tpu.memory_space<vmem>>) attributes {dimension_semantics = [#tpu.dimension_semantics<arbitrary>], iteration_bounds = array<i64: 1>, scalar_prefetch = 0 : i64, scratch_operands = 0 : i64, tpu.core_type = #tpu.core_type<tc>, window_params = [{pipeline_mode = #tpu.pipeline_mode<synchronous>, transform_indices = @transform_0, window_bounds = array<i64: 2, 4, 128>}, {pipeline_mode = #tpu.pipeline_mode<synchronous>, transform_indices = @transform_1, window_bounds = array<i64: 2, 128>}]} {
    %c0 = arith.constant 0 : index
    %c0_0 = arith.constant 0 : index
    %c0_1 = arith.constant 0 : index
    %0 = vector.load %arg1[%c0, %c0_0, %c0_1] : memref<2x4x128xf32, #tpu.memory_space<vmem>>, vector<2x4x128xf32>
    %cst = arith.constant dense<0.000000e+00> : vector<2x128xf32>
    %1 = vector.multi_reduction <add>, %0, %cst [1] : vector<2x4x128xf32> to vector<2x128xf32>
    %cst_2 = arith.constant 4.000000e+00 : f32
    %2 = vector.broadcast %cst_2 : f32 to vector<2x128xf32>
    %3 = arith.divf %1, %2 : vector<2x128xf32>
    %c0_3 = arith.constant 0 : index
    %c0_4 = arith.constant 0 : index
    %4 = vector.load %arg2[%c0_3, %c0_4] : memref<2x128xf32, #tpu.memory_space<vmem>>, vector<2x128xf32>
    tpu.vector_store %arg2[%c0_3, %c0_4], %3 {strides = array<i32>} : memref<2x128xf32, #tpu.memory_space<vmem>>, vector<2x128xf32>,
    return
  }
  func.func @transform_0(%arg0: i32) -> (i32, i32, i32) {
    %c0_i32 = arith.constant 0 : i32
    %c0_i32_0 = arith.constant 0 : i32
    %c0_i32_1 = arith.constant 0 : i32
    %c0_i32_2 = arith.constant 0 : i32
    return %c0_i32, %c0_i32_0, %c0_i32_1 : i32, i32, i32
  }
  func.func @transform_1(%arg0: i32) -> (i32, i32) {
    %c0_i32 = arith.constant 0 : i32
    %c0_i32_0 = arith.constant 0 : i32
    %c0_i32_1 = arith.constant 0 : i32
    return %c0_i32, %c0_i32_0 : i32, i32
  }
}

</mosaic_0001>

<bundles_post_ra>
// kernel: _lambda_.20
= control target key start
LH: loop header
LB: loop body
LE: loop exit
PB: predicated region body
PF: predicated region fallthrough
CT: control target
= control target key end

     0   :  { %vm281_vm0 = vcmask 1044480   ;;  %vm282_vm1 = vcmask 1045504   ;;  %v1316_v0 = vmov 0.0   ;;  %v1317_v2 = vmov 65535   ;;  %s2397_s1 = inlined_call_operand.vmem [shape: bf16[27,16], index: 1, kind: input, shape index: {}]   ;;  %s2398_s0 = inlined_call_operand.vmem [shape: bf16[392,27], index: 0, kind: input, shape index: {}]   ;;  %s2399_s2 = inlined_call_operand.vmem [shape: f32[1,16], index: 2, kind: input, shape index: {}]   ;;  %s2400_s3 = inlined_call_operand.vmem [shape: f32[1,16], index: 3, kind: input, shape index: {}]   ;;  %s2401_s4 = inlined_call_operand.vmem [shape: f32[392,16], index: 4, kind: output, shape index: {}]  }
   0x1   :  { %1176 = vmatprep.subr.bf16.mxu0 %v1316_v0  ;;  %v1287_v1 = vld [vmem:[%s2397_s1] sm:$0xff]   ;;  %v283_v3 = vsel %vm281_vm0, 4294967295, %v1317_v2  ;;  %1280 = vmatprep.subr.bf16.mxu1 %v1316_v0  ;;  %v1288_v4 = vld [vmem:[%s2397_s1 + $0x8] sm:$0x3f]   ;;  %vm1318_vm2 = vmmov 0   ;;  %vm205_vm3 = vcmask 220160  }
   0x2   :  { %1177 = vmatpush3.bf16.msra.mxu0 %v1287_v1  ;;  %v284_v5 = vsel %vm282_vm1, %v283_v3, 0  ;;  %1282 = vmatpush3.bf16.msra.mxu1 %v1287_v1  ;;  %v1289_v7 = vld [vmem:[%s2398_s0] sm:$0xff]   ;;  %v1296_v8 = vld [vmem:[%s2398_s0 + $0x68] sm:$0xff]   ;;  %v1298_v10 = vld [vmem:[%s2398_s0 + $0x70] sm:$0xff]   ;;  %vm522_vm4 = vcmask 130048  }
   0x3   :  { %1178 = vmatprep.subr.bf16.mxu0 %v1316_v0  ;;  %v286_v6 = vand.u32 %v1288_v4, %v284_v5  ;;  %1180 = vmatprep.mubr.msk.bf16.mxu0 %vm1318_vm2, %v1316_v0  ;;  %v1290_v9 = vld [vmem:[%s2398_s0 + $0x8] sm:$0xff]   ;;  %v1291_v11 = vld [vmem:[%s2398_s0 + $0x10] sm:$0xff]   ;;  %v1300_v12 = vld [vmem:[%s2398_s0 + $0x78] sm:$0xff]  }
   0x4   :  { %1281 = vmatprep.subr.bf16.mxu1 %v1316_v0  ;;  %1232 = vmatprep.mubr.msk.bf16.mxu1 %vm1318_vm2, %v1316_v0  ;;  %v1292_v13 = vld [vmem:[%s2398_s0 + $0x18] sm:$0xff]   ;;  %v1302_v14 = vld [vmem:[%s2398_s0 + $0x80] sm:$0xff]   ;;  %v1304_v16 = vld [vmem:[%s2398_s0 + $0x88] sm:$0xff]  }
   0x5   :  { %v1293_v15 = vld [vmem:[%s2398_s0 + $0x20] sm:$0xff]   ;;  %v1294_v17 = vld [vmem:[%s2398_s0 + $0x28] sm:$0xff]   ;;  %v1306_v18 = vld [vmem:[%s2398_s0 + $0x90] sm:$0xff]  }
   0x6   :  { %1179 = vmatpush3.bf16.msra.mxu0 %v286_v6  ;;  %1283 = vmatpush3.bf16.msra.mxu1 %v286_v6  ;;  %v1295_v19 = vld [vmem:[%s2398_s0 + $0x30] sm:$0xff]   ;;  %v1308_v20 = vld [vmem:[%s2398_s0 + $0x98] sm:$0xff]   ;;  %v1309_v22 = vld [vmem:[%s2398_s0 + $0xa0] sm:$0xff]  }
   0x7   :  { %v1297_v21 = vld [vmem:[%s2398_s0 + $0x38] sm:$0xff]   ;;  %v1299_v23 = vld [vmem:[%s2398_s0 + $0x40] sm:$0xff]   ;;  %v1310_v24 = vld [vmem:[%s2398_s0 + $0xa8] sm:$0xff]  }
   0x8   :  { %v1301_v25 = vld [vmem:[%s2398_s0 + $0x48] sm:$0xff]   ;;  %v1311_v26 = vld [vmem:[%s2398_s0 + $0xb0] sm:$0xff]   ;;  %v1312_v28 = vld [vmem:[%s2398_s0 + $0xb8] sm:$0xff]  }
   0x9   :  { %1181 = vmatmul.mubr.msk.bf16.vlgmr.msra.gmra.mrb[0].mxu0 %vm205_vm3, %v1289_v7  ;;  %1233 = vmatmul.mubr.msk.bf16.vlgmr.msra.gmra.mrb[0].mxu1 %vm205_vm3, %v1296_v8  ;;  %v1303_v27 = vld [vmem:[%s2398_s0 + $0x50] sm:$0xff]   ;;  %v1305_v29 = vld [vmem:[%s2398_s0 + $0x58] sm:$0xff]   ;;  %v1313_v30 = vld [vmem:[%s2398_s0 + $0xc0] ss:$0 sps:$4 sm:$0xff]  }
   0xa   :  { %1184 = vmatprep.mubr.msk.bf16.mxu0 %vm1318_vm2, %v1316_v0  ;;  %1236 = vmatprep.mubr.msk.bf16.mxu1 %vm1318_vm2, %v1316_v0  ;;  %v1307_v31 = vld [vmem:[%s2398_s0 + $0x60] sm:$0xff]  }
  0x11   :  { %1185 = vmatmul.mubr.msk.bf16.gmra.mrb[4].mxu0 %vm205_vm3, %v1290_v9  ;;  %1237 = vmatmul.mubr.msk.bf16.gmra.mrb[4].mxu1 %vm205_vm3, %v1298_v10 }
  0x12   :  { %1188 = vmatprep.mubr.msk.bf16.mxu0 %vm1318_vm2, %v1316_v0  ;;  %1240 = vmatprep.mubr.msk.bf16.mxu1 %vm1318_vm2, %v1316_v0 }
  0x19   :  { %1189 = vmatmul.mubr.msk.bf16.gmra.mrb[8].mxu0 %vm205_vm3, %v1291_v11  ;;  %1241 = vmatmul.mubr.msk.bf16.gmra.mrb[8].mxu1 %vm205_vm3, %v1300_v12 }
  0x1a   :  { %1192 = vmatprep.mubr.msk.bf16.mxu0 %vm1318_vm2, %v1316_v0  ;;  %1244 = vmatprep.mubr.msk.bf16.mxu1 %vm1318_vm2, %v1316_v0 }
  0x21   :  { %1193 = vmatmul.mubr.msk.bf16.gmra.mrb[12].mxu0 %vm205_vm3, %v1292_v13  ;;  %1245 = vmatmul.mubr.msk.bf16.gmra.mrb[12].mxu1 %vm205_vm3, %v1302_v14 }
  0x22   :  { %1196 = vmatprep.mubr.msk.bf16.mxu0 %vm1318_vm2, %v1316_v0  ;;  %1248 = vmatprep.mubr.msk.bf16.mxu1 %vm1318_vm2, %v1316_v0 }
  0x29   :  { %1197 = vmatmul.mubr.msk.bf16.gmra.mrb[16].mxu0 %vm205_vm3, %v1293_v15  ;;  %1249 = vmatmul.mubr.msk.bf16.gmra.mrb[16].mxu1 %vm205_vm3, %v1304_v16 }
  0x2a   :  { %1200 = vmatprep.mubr.msk.bf16.mxu0 %vm1318_vm2, %v1316_v0  ;;  %1252 = vmatprep.mubr.msk.bf16.mxu1 %vm1318_vm2, %v1316_v0 }
  0x31   :  { %1201 = vmatmul.mubr.msk.bf16.gmra.mrb[20].mxu0 %vm205_vm3, %v1294_v17  ;;  %1253 = vmatmul.mubr.msk.bf16.gmra.mrb[20].mxu1 %vm205_vm3, %v1306_v18 }
  0x32   :  { %1204 = vmatprep.mubr.msk.bf16.mxu0 %vm1318_vm2, %v1316_v0  ;;  %1256 = vmatprep.mubr.msk.bf16.mxu1 %vm1318_vm2, %v1316_v0 }
  0x39   :  { %1205 = vmatmul.mubr.msk.bf16.gmra.mrb[24].mxu0 %vm205_vm3, %v1295_v19  ;;  %1257 = vmatmul.mubr.msk.bf16.gmra.mrb[24].mxu1 %vm205_vm3, %v1308_v20 }
  0x3a   :  { %1208 = vmatprep.mubr.msk.bf16.mxu0 %vm1318_vm2, %v1316_v0  ;;  %1260 = vmatprep.mubr.msk.bf16.mxu1 %vm1318_vm2, %v1316_v0 }
  0x41   :  { %1209 = vmatmul.mubr.msk.bf16.gmra.mrb[28].mxu0 %vm205_vm3, %v1297_v21  ;;  %1261 = vmatmul.mubr.msk.bf16.gmra.mrb[28].mxu1 %vm205_vm3, %v1309_v22 }
  0x42   :  { %1212 = vmatprep.mubr.msk.bf16.mxu0 %vm1318_vm2, %v1316_v0  ;;  %1264 = vmatprep.mubr.msk.bf16.mxu1 %vm1318_vm2, %v1316_v0 }
  0x49   :  { %1213 = vmatmul.mubr.msk.bf16.gmra.mrb[32].mxu0 %vm205_vm3, %v1299_v23  ;;  %1265 = vmatmul.mubr.msk.bf16.gmra.mrb[32].mxu1 %vm205_vm3, %v1310_v24 }
  0x4a   :  { %1216 = vmatprep.mubr.msk.bf16.mxu0 %vm1318_vm2, %v1316_v0  ;;  %1268 = vmatprep.mubr.msk.bf16.mxu1 %vm1318_vm2, %v1316_v0 }
  0x51   :  { %1217 = vmatmul.mubr.msk.bf16.gmra.mrb[36].mxu0 %vm205_vm3, %v1301_v25  ;;  %1269 = vmatmul.mubr.msk.bf16.gmra.mrb[36].mxu1 %vm205_vm3, %v1311_v26 }
  0x52   :  { %1220 = vmatprep.mubr.msk.bf16.mxu0 %vm1318_vm2, %v1316_v0  ;;  %1272 = vmatprep.mubr.msk.bf16.mxu1 %vm1318_vm2, %v1316_v0 }
  0x59   :  { %1221 = vmatmul.mubr.msk.bf16.gmra.mrb[40].mxu0 %vm205_vm3, %v1303_v27  ;;  %1273 = vmatmul.mubr.msk.bf16.gmra.mrb[40].mxu1 %vm205_vm3, %v1312_v28 }
  0x5a   :  { %1224 = vmatprep.mubr.msk.bf16.mxu0 %vm1318_vm2, %v1316_v0  ;;  %1276 = vmatprep.mubr.msk.bf16.mxu1 %vm1318_vm2, %v1316_v0 }
  0x61   :  { %1225 = vmatmul.mubr.msk.bf16.gmra.mrb[44].mxu0 %vm205_vm3, %v1305_v29  ;;  %1277 = vmatmul.mubr.msk.bf16.gmra.mrb[44].mxu1 %vm205_vm3, %v1313_v30 }
  0x62   :  { %1228 = vmatprep.mubr.msk.bf16.mxu0 %vm1318_vm2, %v1316_v0 }
  0x69   :  { %1229 = vmatmul.mubr.msk.bf16.gmra.mrb[48].mxu0 %vm205_vm3, %v1307_v31 }
  0xdc   :  { %v1504_v32 = vpop.f32.mrb[0].mxu0  ;;  %v1516_v40 = vpop.f32.mrb[0].mxu1 }
  0xdd   :  { %v627_v33 = vmul.f32 %v1504_v32, %v1504_v32  ;;  %v1182_v34 = vpop.f32.mrb[1].mxu0  ;;  %v523_v36 = vsel %vm522_vm4, %v1504_v32, 0.0  ;;  %v1234_v42 = vpop.f32.mrb[1].mxu1 }
  0xde   :  { %v1508_v35 = vpop.f32.mrb[2].mxu0  ;;  %v1520_v45 = vpop.f32.mrb[2].mxu1 }
  0xdf   :  { %v524_v37 = vsel %vm522_vm4, %v1508_v35, 0.0  ;;  %v628_v38 = vmul.f32 %v1508_v35, %v1508_v35  ;;  %v1183_v39 = vpop.f32.mrb[3].mxu0  ;;  %v676_v43 = vsel %vm522_vm4, %v627_v33, 0.0  ;;  %v1235_v47 = vpop.f32.mrb[3].mxu1 }
  0xe0   :  { %v525_v41 = vadd.f32 %v524_v37, %v523_v36 }
  0xe1   :  { %v677_v44 = vsel %vm522_vm4, %v628_v38, 0.0 }
  0xe2   :  { %v678_v46 = vadd.f32 %v677_v44, %v676_v43 }
  0xe4   :  { %v1522_v48 = vpop.f32.mrb[4].mxu0  ;;  %v1535_v58 = vpop.f32.mrb[4].mxu1 }
  0xe5   :  { %v526_v49 = vsel %vm522_vm4, %v1522_v48, 0.0  ;;  %v629_v50 = vmul.f32 %v1522_v48, %v1522_v48  ;;  %v1186_v51 = vpop.f32.mrb[5].mxu0  ;;  %v1238_v61 = vpop.f32.mrb[5].mxu1 }
  0xe6   :  { %v527_v52 = vadd.f32 %v526_v49, %v525_v41  ;;  %v1528_v53 = vpop.f32.mrb[6].mxu0  ;;  %v1538_v63 = vpop.f32.mrb[6].mxu1 }
  0xe7   :  { %v679_v54 = vsel %vm522_vm4, %v629_v50, 0.0  ;;  %v528_v55 = vsel %vm522_vm4, %v1528_v53, 0.0  ;;  %v630_v56 = vmul.f32 %v1528_v53, %v1528_v53  ;;  %v1187_v57 = vpop.f32.mrb[7].mxu0  ;;  %v1239_v1 = vpop.f32.mrb[7].mxu1 }
  0xe8   :  { %v680_v59 = vadd.f32 %v679_v54, %v678_v46  ;;  %v529_v60 = vadd.f32 %v528_v55, %v527_v52 }
  0xe9   :  { %v681_v62 = vsel %vm522_vm4, %v630_v56, 0.0 }
  0xea   :  { %v682_v0 = vadd.f32 %v681_v62, %v680_v59 }
  0xec   :  { %v1540_v2 = vpop.f32.mrb[8].mxu0  ;;  %v1553_v12 = vpop.f32.mrb[8].mxu1 }
  0xed   :  { %v530_v3 = vsel %vm522_vm4, %v1540_v2, 0.0  ;;  %v631_v4 = vmul.f32 %v1540_v2, %v1540_v2  ;;  %v1190_v5 = vpop.f32.mrb[9].mxu0  ;;  %v1242_v15 = vpop.f32.mrb[9].mxu1 }
  0xee   :  { %v531_v6 = vadd.f32 %v530_v3, %v529_v60  ;;  %v1546_v7 = vpop.f32.mrb[10].mxu0  ;;  %v1556_v17 = vpop.f32.mrb[10].mxu1 }
  0xef   :  { %v683_v8 = vsel %vm522_vm4, %v631_v4, 0.0  ;;  %v532_v9 = vsel %vm522_vm4, %v1546_v7, 0.0  ;;  %v632_v10 = vmul.f32 %v1546_v7, %v1546_v7  ;;  %v1191_v11 = vpop.f32.mrb[11].mxu0  ;;  %v1243_v19 = vpop.f32.mrb[11].mxu1 }
  0xf0   :  { %v684_v13 = vadd.f32 %v683_v8, %v682_v0  ;;  %v533_v14 = vadd.f32 %v532_v9, %v531_v6 }
  0xf1   :  { %v685_v16 = vsel %vm522_vm4, %v632_v10, 0.0 }
  0xf2   :  { %v686_v18 = vadd.f32 %v685_v16, %v684_v13 }
  0xf4   :  { %v1558_v20 = vpop.f32.mrb[12].mxu0  ;;  %v1571_v30 = vpop.f32.mrb[12].mxu1 }
  0xf5   :  { %v534_v21 = vsel %vm522_vm4, %v1558_v20, 0.0  ;;  %v633_v22 = vmul.f32 %v1558_v20, %v1558_v20  ;;  %v1194_v23 = vpop.f32.mrb[13].mxu0  ;;  %v1246_v34 = vpop.f32.mrb[13].mxu1 }
  0xf6   :  { %v535_v24 = vadd.f32 %v534_v21, %v533_v14  ;;  %v1564_v25 = vpop.f32.mrb[14].mxu0  ;;  %v1574_v37 = vpop.f32.mrb[14].mxu1 }
  0xf7   :  { %v687_v26 = vsel %vm522_vm4, %v633_v22, 0.0  ;;  %v536_v27 = vsel %vm522_vm4, %v1564_v25, 0.0  ;;  %v634_v28 = vmul.f32 %v1564_v25, %v1564_v25  ;;  %v1195_v29 = vpop.f32.mrb[15].mxu0  ;;  %v1247_v39 = vpop.f32.mrb[15].mxu1 }
  0xf8   :  { %v688_v31 = vadd.f32 %v687_v26, %v686_v18  ;;  %v537_v33 = vadd.f32 %v536_v27, %v535_v24 }
  0xf9   :  { %v689_v36 = vsel %vm522_vm4, %v634_v28, 0.0 }
  0xfa   :  { %v690_v38 = vadd.f32 %v689_v36, %v688_v31 }
  0xfc   :  { %v1576_v41 = vpop.f32.mrb[16].mxu0  ;;  %v1589_v54 = vpop.f32.mrb[16].mxu1 }
  0xfd   :  { %v538_v42 = vsel %vm522_vm4, %v1576_v41, 0.0  ;;  %v635_v43 = vmul.f32 %v1576_v41, %v1576_v41  ;;  %v1198_v44 = vpop.f32.mrb[17].mxu0  ;;  %v1250_v57 = vpop.f32.mrb[17].mxu1 }
  0xfe   :  { %v539_v46 = vadd.f32 %v538_v42, %v537_v33  ;;  %v1582_v47 = vpop.f32.mrb[18].mxu0  ;;  %v1592_v60 = vpop.f32.mrb[18].mxu1 }
  0xff   :  { %v691_v49 = vsel %vm522_vm4, %v635_v43, 0.0  ;;  %v540_v50 = vsel %vm522_vm4, %v1582_v47, 0.0  ;;  %v636_v51 = vmul.f32 %v1582_v47, %v1582_v47  ;;  %v1199_v52 = vpop.f32.mrb[19].mxu0  ;;  %v1251_v62 = vpop.f32.mrb[19].mxu1 }
 0x100   :  { %v692_v55 = vadd.f32 %v691_v49, %v690_v38  ;;  %v541_v56 = vadd.f32 %v540_v50, %v539_v46 }
 0x101   :  { %v693_v59 = vsel %vm522_vm4, %v636_v51, 0.0 }
 0x102   :  { %v694_v61 = vadd.f32 %v693_v59, %v692_v55 }
 0x104   :  { %v1594_v0 = vpop.f32.mrb[20].mxu0  ;;  %v1607_v13 = vpop.f32.mrb[20].mxu1 }
 0x105   :  { %v542_v1 = vsel %vm522_vm4, %v1594_v0, 0.0  ;;  %v637_v3 = vmul.f32 %v1594_v0, %v1594_v0  ;;  %v1202_v4 = vpop.f32.mrb[21].mxu0  ;;  %v1254_v16 = vpop.f32.mrb[21].mxu1 }
 0x106   :  { %v543_v5 = vadd.f32 %v542_v1, %v541_v56  ;;  %v1600_v6 = vpop.f32.mrb[22].mxu0  ;;  %v1610_v19 = vpop.f32.mrb[22].mxu1 }
 0x107   :  { %v695_v8 = vsel %vm522_vm4, %v637_v3, 0.0  ;;  %v544_v9 = vsel %vm522_vm4, %v1600_v6, 0.0  ;;  %v638_v10 = vmul.f32 %v1600_v6, %v1600_v6  ;;  %v1203_v11 = vpop.f32.mrb[23].mxu0  ;;  %v1255_v22 = vpop.f32.mrb[23].mxu1 }
 0x108   :  { %v696_v14 = vadd.f32 %v695_v8, %v694_v61  ;;  %v545_v15 = vadd.f32 %v544_v9, %v543_v5 }
 0x109   :  { %v697_v18 = vsel %vm522_vm4, %v638_v10, 0.0 }
 0x10a   :  { %v698_v21 = vadd.f32 %v697_v18, %v696_v14 }
 0x10c   :  { %v1612_v23 = vpop.f32.mrb[24].mxu0  ;;  %v1625_v38 = vpop.f32.mrb[24].mxu1 }
 0x10d   :  { %v546_v24 = vsel %vm522_vm4, %v1612_v23, 0.0  ;;  %v639_v26 = vmul.f32 %v1612_v23, %v1612_v23  ;;  %v1206_v27 = vpop.f32.mrb[25].mxu0  ;;  %v1258_v43 = vpop.f32.mrb[25].mxu1 }
 0x10e   :  { %v547_v28 = vadd.f32 %v546_v24, %v545_v15  ;;  %v1618_v29 = vpop.f32.mrb[26].mxu0  ;;  %v1628_v46 = vpop.f32.mrb[26].mxu1 }
 0x10f   :  { %v699_v31 = vsel %vm522_vm4, %v639_v26, 0.0  ;;  %v548_v33 = vsel %vm522_vm4, %v1618_v29, 0.0  ;;  %v640_v34 = vmul.f32 %v1618_v29, %v1618_v29  ;;  %v1207_v36 = vpop.f32.mrb[27].mxu0  ;;  %v1259_v50 = vpop.f32.mrb[27].mxu1 }
 0x110   :  { %v700_v39 = vadd.f32 %v699_v31, %v698_v21  ;;  %v549_v42 = vadd.f32 %v548_v33, %v547_v28 }
 0x111   :  { %v701_v44 = vsel %vm522_vm4, %v640_v34, 0.0 }
 0x112   :  { %v702_v49 = vadd.f32 %v701_v44, %v700_v39 }
 0x114   :  { %v1630_v51 = vpop.f32.mrb[28].mxu0  ;;  %v1643_v4 = vpop.f32.mrb[28].mxu1 }
 0x115   :  { %v550_v52 = vsel %vm522_vm4, %v1630_v51, 0.0  ;;  %v641_v55 = vmul.f32 %v1630_v51, %v1630_v51  ;;  %v1210_v56 = vpop.f32.mrb[29].mxu0  ;;  %2412 = vst [vmem:[#allocation2_spill] sm:$0xff] %v1643_v4  ;;  %v1262_v9 = vpop.f32.mrb[29].mxu1 }
 0x116   :  { %v551_v57 = vadd.f32 %v550_v52, %v549_v42  ;;  %v1636_v59 = vpop.f32.mrb[30].mxu0  ;;  %v1646_v11 = vpop.f32.mrb[30].mxu1 }
 0x117   :  { %v703_v61 = vsel %vm522_vm4, %v641_v55, 0.0  ;;  %v552_v62 = vsel %vm522_vm4, %v1636_v59, 0.0  ;;  %v642_v1 = vmul.f32 %v1636_v59, %v1636_v59  ;;  %v1211_v3 = vpop.f32.mrb[31].mxu0  ;;  %2413 = vst [vmem:[#allocation3_spill] sm:$0xff] %v1646_v11  ;;  %v1263_v15 = vpop.f32.mrb[31].mxu1 }
 0x118   :  { %v704_v5 = vadd.f32 %v703_v61, %v702_v49  ;;  %v553_v8 = vadd.f32 %v552_v62, %v551_v57 }
 0x119   :  { %v705_v10 = vsel %vm522_vm4, %v642_v1, 0.0 }
 0x11a   :  { %v706_v14 = vadd.f32 %v705_v10, %v704_v5 }
 0x11c   :  { %v1648_v16 = vpop.f32.mrb[32].mxu0  ;;  %v1661_v34 = vpop.f32.mrb[32].mxu1 }
 0x11d   :  { %v554_v18 = vsel %vm522_vm4, %v1648_v16, 0.0  ;;  %v643_v21 = vmul.f32 %v1648_v16, %v1648_v16  ;;  %v1214_v22 = vpop.f32.mrb[33].mxu0  ;;  %2414 = vst [vmem:[#allocation4_spill] sm:$0xff] %v1661_v34  ;;  %v1266_v42 = vpop.f32.mrb[33].mxu1 }
 0x11e   :  { %v555_v24 = vadd.f32 %v554_v18, %v553_v8  ;;  %v1654_v26 = vpop.f32.mrb[34].mxu0  ;;  %v1664_v44 = vpop.f32.mrb[34].mxu1 }
 0x11f   :  { %v707_v27 = vsel %vm522_vm4, %v643_v21, 0.0  ;;  %v556_v28 = vsel %vm522_vm4, %v1654_v26, 0.0  ;;  %v644_v31 = vmul.f32 %v1654_v26, %v1654_v26  ;;  %v1215_v33 = vpop.f32.mrb[35].mxu0  ;;  %2415 = vst [vmem:[#allocation5_spill] sm:$0xff] %v1664_v44  ;;  %v1267_v50 = vpop.f32.mrb[35].mxu1 }
 0x120   :  { %v708_v36 = vadd.f32 %v707_v27, %v706_v14  ;;  %v557_v39 = vadd.f32 %v556_v28, %v555_v24 }
 0x121   :  { %v709_v43 = vsel %vm522_vm4, %v644_v31, 0.0 }
 0x122   :  { %v710_v49 = vadd.f32 %v709_v43, %v708_v36 }
 0x124   :  { %v1666_v52 = vpop.f32.mrb[36].mxu0  ;;  %v1679_v9 = vpop.f32.mrb[36].mxu1 }
 0x125   :  { %v558_v55 = vsel %vm522_vm4, %v1666_v52, 0.0  ;;  %v645_v56 = vmul.f32 %v1666_v52, %v1666_v52  ;;  %v1218_v57 = vpop.f32.mrb[37].mxu0  ;;  %2416 = vst [vmem:[#allocation6_spill] sm:$0xff] %v1679_v9  ;;  %v1270_v15 = vpop.f32.mrb[37].mxu1 }
 0x126   :  { %v559_v61 = vadd.f32 %v558_v55, %v557_v39  ;;  %v1672_v62 = vpop.f32.mrb[38].mxu0  ;;  %v1682_v21 = vpop.f32.mrb[38].mxu1 }
 0x127   :  { %v711_v1 = vsel %vm522_vm4, %v645_v56, 0.0  ;;  %v560_v3 = vsel %vm522_vm4, %v1672_v62, 0.0  ;;  %v646_v5 = vmul.f32 %v1672_v62, %v1672_v62  ;;  %v1219_v8 = vpop.f32.mrb[39].mxu0  ;;  %2417 = vst [vmem:[#allocation7_spill] sm:$0xff] %v1682_v21  ;;  %v1271_v24 = vpop.f32.mrb[39].mxu1 }
 0x128   :  { %v712_v10 = vadd.f32 %v711_v1, %v710_v49  ;;  %v561_v14 = vadd.f32 %v560_v3, %v559_v61 }
 0x129   :  { %v713_v18 = vsel %vm522_vm4, %v646_v5, 0.0 }
 0x12a   :  { %v714_v22 = vadd.f32 %v713_v18, %v712_v10 }
 0x12c   :  { %v1684_v27 = vpop.f32.mrb[40].mxu0  ;;  %v1697_v55 = vpop.f32.mrb[40].mxu1 }
 0x12d   :  { %v562_v28 = vsel %vm522_vm4, %v1684_v27, 0.0  ;;  %v647_v31 = vmul.f32 %v1684_v27, %v1684_v27  ;;  %v1222_v33 = vpop.f32.mrb[41].mxu0  ;;  %2418 = vst [vmem:[#allocation8_spill] sm:$0xff] %v1697_v55  ;;  %v1274_v61 = vpop.f32.mrb[41].mxu1 }
 0x12e   :  { %v563_v36 = vadd.f32 %v562_v28, %v561_v14  ;;  %v1690_v39 = vpop.f32.mrb[42].mxu0  ;;  %v1700_v3 = vpop.f32.mrb[42].mxu1 }
 0x12f   :  { %v715_v42 = vsel %vm522_vm4, %v647_v31, 0.0  ;;  %v564_v43 = vsel %vm522_vm4, %v1690_v39, 0.0  ;;  %v648_v49 = vmul.f32 %v1690_v39, %v1690_v39  ;;  %v1223_v50 = vpop.f32.mrb[43].mxu0  ;;  %2419 = vst [vmem:[#allocation9_spill] sm:$0xff] %v1700_v3  ;;  %v1275_v8 = vpop.f32.mrb[43].mxu1 }
 0x130   :  { %v716_v56 = vadd.f32 %v715_v42, %v714_v22  ;;  %v565_v57 = vadd.f32 %v564_v43, %v563_v36 }
 0x131   :  { %v717_v1 = vsel %vm522_vm4, %v648_v49, 0.0 }
 0x132   :  { %v718_v5 = vadd.f32 %v717_v1, %v716_v56 }
 0x134   :  { %v1702_v10 = vpop.f32.mrb[44].mxu0  ;;  %v1715_v42 = vpop.f32.mrb[44].mxu1 }
 0x135   :  { %v566_v14 = vsel %vm522_vm4, %v1702_v10, 0.0  ;;  %v649_v15 = vmul.f32 %v1702_v10, %v1702_v10  ;;  %v1226_v18 = vpop.f32.mrb[45].mxu0  ;;  %2421 = vst [vmem:[#allocation11_spill] sm:$0xff] %v1715_v42  ;;  %v1278_v50 = vpop.f32.mrb[45].mxu1 }
 0x136   :  { %v567_v24 = vadd.f32 %v566_v14, %v565_v57  ;;  %v1708_v28 = vpop.f32.mrb[46].mxu0  ;;  %v517_v61 = vpop.f32.mrb[46].mxu1 }
 0x137   :  { %2420 = vst [vmem:[#allocation10_spill] sm:$0xff] %v1708_v28  ;;  %v719_v22 = vsel %vm522_vm4, %v649_v15, 0.0  ;;  %v568_v31 = vsel %vm522_vm4, %v1708_v28, 0.0  ;;  %v650_v33 = vmul.f32 %v1708_v28, %v1708_v28  ;;  %v1227_v36 = vpop.f32.mrb[47].mxu0  ;;  %v1279_v1 = vpop.f32.mrb[47].mxu1 }
 0x138   :  { %v720_v43 = vadd.f32 %v719_v22, %v718_v5  ;;  %v569_v49 = vadd.f32 %v568_v31, %v567_v24  ;;  %v653_v5 = vmul.f32 %v1516_v40, %v1516_v40 }
 0x139   :  { %v721_v56 = vsel %vm522_vm4, %v650_v33, 0.0 }
 0x13a   :  { %v722_v57 = vadd.f32 %v721_v56, %v720_v43  ;;  %v574_v56 = vsel %vm522_vm4, %v1516_v40, 0.0 }
 0x13c   :  { %v1718_v8 = vpop.f32.mrb[48].mxu0 }
 0x13d   :  { %v570_v14 = vsel %vm522_vm4, %v1718_v8, 0.0  ;;  %v651_v15 = vmul.f32 %v1718_v8, %v1718_v8  ;;  %v1230_v18 = vpop.f32.mrb[49].mxu0 }
 0x13e   :  { %v571_v36 = vadd.f32 %v570_v14, %v569_v49  ;;  %v1724_v28 = vpop.f32.mrb[50].mxu0  ;;  %v654_v49 = vmul.f32 %v1520_v45, %v1520_v45  ;;  %v576_v18 = vsel %vm522_vm4, %v1520_v45, 0.0 }
 0x13f   :  { %v723_v24 = vsel %vm522_vm4, %v651_v15, 0.0  ;;  %v572_v22 = vsel %vm522_vm4, %v1724_v28, 0.0  ;;  %v652_v31 = vmul.f32 %v1724_v28, %v1724_v28  ;;  %v1231_v33 = vpop.f32.mrb[51].mxu0  ;;  %v727_v15 = vsel %vm522_vm4, %v653_v5, 0.0 }
 0x140   :  { %v724_v43 = vadd.f32 %v723_v24, %v722_v57  ;;  %v573_v50 = vadd.f32 %v572_v22, %v571_v36  ;;  %v655_v33 = vmul.f32 %v1535_v58, %v1535_v58  ;;  %v729_v24 = vsel %vm522_vm4, %v654_v49, 0.0 }
 0x141   :  { %v725_v61 = vsel %vm522_vm4, %v652_v31, 0.0  ;;  %v578_v22 = vsel %vm522_vm4, %v1535_v58, 0.0  ;;  %v656_v31 = vmul.f32 %v1538_v63, %v1538_v63 }
 0x142   :  { %v575_v1 = vadd.f32 %v574_v56, %v573_v50  ;;  %v726_v14 = vadd.f32 %v725_v61, %v724_v43  ;;  %v731_v5 = vsel %vm522_vm4, %v655_v33, 0.0  ;;  %v580_v56 = vsel %vm522_vm4, %v1538_v63, 0.0 }
 0x143   :  { %v657_v61 = vmul.f32 %v1553_v12, %v1553_v12  ;;  %v733_v49 = vsel %vm522_vm4, %v656_v31, 0.0 }
 0x144   :  { %v577_v57 = vadd.f32 %v576_v18, %v575_v1  ;;  %v728_v36 = vadd.f32 %v727_v15, %v726_v14  ;;  %v582_v15 = vsel %vm522_vm4, %v1553_v12, 0.0  ;;  %v658_v18 = vmul.f32 %v1556_v17, %v1556_v17 }
 0x145   :  { %v735_v33 = vsel %vm522_vm4, %v657_v61, 0.0 }
 0x146   :  { %v579_v50 = vadd.f32 %v578_v22, %v577_v57  ;;  %v730_v43 = vadd.f32 %v729_v24, %v728_v36  ;;  %v584_v24 = vsel %vm522_vm4, %v1556_v17, 0.0  ;;  %v659_v22 = vmul.f32 %v1571_v30, %v1571_v30 }
 0x147   :  { %v737_v31 = vsel %vm522_vm4, %v658_v18, 0.0 }
 0x148   :  { %v581_v1 = vadd.f32 %v580_v56, %v579_v50  ;;  %v732_v14 = vadd.f32 %v731_v5, %v730_v43  ;;  %v586_v5 = vsel %vm522_vm4, %v1571_v30, 0.0  ;;  %v660_v56 = vmul.f32 %v1574_v37, %v1574_v37 }
 0x149   :  { %v739_v61 = vsel %vm522_vm4, %v659_v22, 0.0 }
 0x14a   :  { %v583_v57 = vadd.f32 %v582_v15, %v581_v1  ;;  %v734_v36 = vadd.f32 %v733_v49, %v732_v14  ;;  %v588_v49 = vsel %vm522_vm4, %v1574_v37, 0.0  ;;  %v661_v15 = vmul.f32 %v1589_v54, %v1589_v54 }
 0x14b   :  { %v741_v18 = vsel %vm522_vm4, %v660_v56, 0.0 }
 0x14c   :  { %v585_v50 = vadd.f32 %v584_v24, %v583_v57  ;;  %v736_v43 = vadd.f32 %v735_v33, %v734_v36  ;;  %v590_v33 = vsel %vm522_vm4, %v1589_v54, 0.0  ;;  %v662_v24 = vmul.f32 %v1592_v60, %v1592_v60 }
 0x14d   :  { %v743_v22 = vsel %vm522_vm4, %v661_v15, 0.0 }
 0x14e   :  { %v738_v1 = vadd.f32 %v737_v31, %v736_v43  ;;  %v587_v14 = vadd.f32 %v586_v5, %v585_v50  ;;  %v592_v31 = vsel %vm522_vm4, %v1592_v60, 0.0  ;;  %v663_v5 = vmul.f32 %v1607_v13, %v1607_v13 }
 0x14f   :  { %v745_v56 = vsel %vm522_vm4, %v662_v24, 0.0 }
 0x150   :  { %v589_v57 = vadd.f32 %v588_v49, %v587_v14  ;;  %v740_v36 = vadd.f32 %v739_v61, %v738_v1  ;;  %v594_v61 = vsel %vm522_vm4, %v1607_v13, 0.0  ;;  %v664_v49 = vmul.f32 %v1610_v19, %v1610_v19 }
 0x151   :  { %v747_v15 = vsel %vm522_vm4, %v663_v5, 0.0 }
 0x152   :  { %v591_v43 = vadd.f32 %v590_v33, %v589_v57  ;;  %v742_v50 = vadd.f32 %v741_v18, %v740_v36  ;;  %v596_v18 = vsel %vm522_vm4, %v1610_v19, 0.0  ;;  %v665_v33 = vmul.f32 %v1625_v38, %v1625_v38 }
 0x153   :  { %v749_v24 = vsel %vm522_vm4, %v664_v49, 0.0 }
 0x154   :  { %v593_v14 = vadd.f32 %v592_v31, %v591_v43  ;;  %v744_v1 = vadd.f32 %v743_v22, %v742_v50  ;;  %v598_v22 = vsel %vm522_vm4, %v1625_v38, 0.0  ;;  %v666_v31 = vmul.f32 %v1628_v46, %v1628_v46 }
 0x155   :  { %v751_v5 = vsel %vm522_vm4, %v665_v33, 0.0 }
 0x156   :  { %v595_v57 = vadd.f32 %v594_v61, %v593_v14  ;;  %v746_v36 = vadd.f32 %v745_v56, %v744_v1  ;;  %v600_v56 = vsel %vm522_vm4, %v1628_v46, 0.0  ;;  %v667_v61 = vmul.f32 %v1643_v4, %v1643_v4 }
 0x157   :  { %v753_v49 = vsel %vm522_vm4, %v666_v31, 0.0 }
 0x158   :  { %v597_v43 = vadd.f32 %v596_v18, %v595_v57  ;;  %v748_v50 = vadd.f32 %v747_v15, %v746_v36  ;;  %v602_v15 = vsel %vm522_vm4, %v1643_v4, 0.0  ;;  %v668_v18 = vmul.f32 %v1646_v11, %v1646_v11 }
 0x159   :  { %v755_v33 = vsel %vm522_vm4, %v667_v61, 0.0 }
 0x15a   :  { %v599_v14 = vadd.f32 %v598_v22, %v597_v43  ;;  %v750_v1 = vadd.f32 %v749_v24, %v748_v50  ;;  %v604_v24 = vsel %vm522_vm4, %v1646_v11, 0.0  ;;  %v669_v22 = vmul.f32 %v1661_v34, %v1661_v34 }
 0x15b   :  { %v757_v31 = vsel %vm522_vm4, %v668_v18, 0.0 }
 0x15c   :  { %v752_v57 = vadd.f32 %v751_v5, %v750_v1  ;;  %v601_v36 = vadd.f32 %v600_v56, %v599_v14  ;;  %v606_v5 = vsel %vm522_vm4, %v1661_v34, 0.0  ;;  %v670_v56 = vmul.f32 %v1664_v44, %v1664_v44 }
 0x15d   :  { %v759_v61 = vsel %vm522_vm4, %v669_v22, 0.0 }
 0x15e   :  { %v754_v43 = vadd.f32 %v753_v49, %v752_v57  ;;  %v603_v50 = vadd.f32 %v602_v15, %v601_v36  ;;  %v608_v49 = vsel %vm522_vm4, %v1664_v44, 0.0  ;;  %v671_v15 = vmul.f32 %v1679_v9, %v1679_v9 }
 0x15f   :  { %v761_v18 = vsel %vm522_vm4, %v670_v56, 0.0 }
 0x160   :  { %v756_v1 = vadd.f32 %v755_v33, %v754_v43  ;;  %v605_v14 = vadd.f32 %v604_v24, %v603_v50  ;;  %v610_v33 = vsel %vm522_vm4, %v1679_v9, 0.0  ;;  %v672_v24 = vmul.f32 %v1682_v21, %v1682_v21 }
 0x161   :  { %v763_v22 = vsel %vm522_vm4, %v671_v15, 0.0 }
 0x162   :  { %v758_v57 = vadd.f32 %v757_v31, %v756_v1  ;;  %v607_v36 = vadd.f32 %v606_v5, %v605_v14  ;;  %v612_v31 = vsel %vm522_vm4, %v1682_v21, 0.0  ;;  %v673_v5 = vmul.f32 %v1697_v55, %v1697_v55 }
 0x163   :  { %v765_v56 = vsel %vm522_vm4, %v672_v24, 0.0 }
 0x164   :  { %v760_v43 = vadd.f32 %v759_v61, %v758_v57  ;;  %v609_v50 = vadd.f32 %v608_v49, %v607_v36  ;;  %v614_v61 = vsel %vm522_vm4, %v1697_v55, 0.0  ;;  %v674_v49 = vmul.f32 %v1700_v3, %v1700_v3 }
 0x166   :  { %v762_v1 = vadd.f32 %v761_v18, %v760_v43  ;;  %v611_v14 = vadd.f32 %v610_v33, %v609_v50  ;;  %v675_v43 = vmul.f32 %v1715_v42, %v1715_v42  ;;  %v767_v18 = vsel %vm522_vm4, %v673_v5, 0.0 }
 0x167   :  { %v616_v33 = vsel %vm522_vm4, %v1700_v3, 0.0 }
 0x168   :  { %v764_v57 = vadd.f32 %v763_v22, %v762_v1  ;;  %v613_v36 = vadd.f32 %v612_v31, %v611_v14  ;;  %v618_v1 = vsel %vm522_vm4, %v1715_v42, 0.0  ;;  %v769_v22 = vsel %vm522_vm4, %v674_v49, 0.0 }
 0x169   :  { %v771_v31 = vsel %vm522_vm4, %v675_v43, 0.0 }
 0x16a   :  { %v766_v15 = vadd.f32 %v765_v56, %v764_v57  ;;  %v615_v50 = vadd.f32 %v614_v61, %v613_v36 }
 0x16c   :  { %v768_v24 = vadd.f32 %v767_v18, %v766_v15  ;;  %v617_v14 = vadd.f32 %v616_v33, %v615_v50 }
 0x16e   :  { %v770_v55 = vadd.f32 %v769_v22, %v768_v24  ;;  %v619_v21 = vadd.f32 %v618_v1, %v617_v14 }
 0x170   :  { %v620_v9 = vrot.slane %v619_v21, 4  ;;  %v772_v44 = vadd.f32 %v771_v31, %v770_v55 }
 0x172   :  { %v621_v57 = vadd.f32 %v620_v9, %v619_v21  ;;  %v773_v36 = vrot.slane %v772_v44, 4 }
 0x174   :  { %v622_v56 = vrot.slane %v621_v57, 2  ;;  %v774_v5 = vadd.f32 %v773_v36, %v772_v44 }
 0x176   :  { %v623_v61 = vadd.f32 %v622_v56, %v621_v57  ;;  %v775_v34 = vrot.slane %v774_v5, 2  ;;  %v2430_v56 = vld [vmem:[#allocation9_spill] sm:$0xff] }
 0x178   :  { %v624_v3 = vrot.slane %v623_v61, 1  ;;  %v776_v11 = vadd.f32 %v775_v34, %v774_v5 }
 0x17a   :  { %v625_v4 = vadd.f32 %v624_v3, %v623_v61  ;;  %v777_v42 = vrot.slane %v776_v11, 1  ;;  %v2431_v61 = vld [vmem:[#allocation11_spill] sm:$0xff] }
 0x17c   :  { %v1847_v15 = vmul.f32 0.0025510204, %v625_v4  ;;  %v778_v50 = vadd.f32 %v777_v42, %v776_v11 }
 0x17e   :  { %v779_v49 = vmul.f32 0.0025510204, %v778_v50  ;;  %v780_v43 = vmul.f32 %v1847_v15, %v1847_v15  ;;  %v783_v55 = vsub.f32 %v1504_v32, %v1847_v15  ;;  %v784_v9 = vsub.f32 %v1508_v35, %v1847_v15 }
 0x17f   :  { %v785_v44 = vsub.f32 %v1522_v48, %v1847_v15  ;;  %v786_v34 = vsub.f32 %v1528_v53, %v1847_v15  ;;  %v787_v4 = vsub.f32 %v1540_v2, %v1847_v15  ;;  %v788_v11 = vsub.f32 %v1546_v7, %v1847_v15 }
 0x180   :  { %v781_v21 = vsub.f32 %v779_v49, %v780_v43  ;;  %v789_v3 = vsub.f32 %v1558_v20, %v1847_v15  ;;  %v790_v32 = vsub.f32 %v1564_v25, %v1847_v15  ;;  %v791_v35 = vsub.f32 %v1576_v41, %v1847_v15 }
 0x181   :  { %v792_v48 = vsub.f32 %v1582_v47, %v1847_v15  ;;  %v793_v53 = vsub.f32 %v1594_v0, %v1847_v15  ;;  %v794_v2 = vsub.f32 %v1600_v6, %v1847_v15  ;;  %v795_v7 = vsub.f32 %v1612_v23, %v1847_v15 }
 0x182   :  { %v782_v42 = vmax.f32 %v781_v21, 0.0  ;;  %v796_v20 = vsub.f32 %v1618_v29, %v1847_v15  ;;  %v797_v25 = vsub.f32 %v1630_v51, %v1847_v15  ;;  %v798_v41 = vsub.f32 %v1636_v59, %v1847_v15 }
 0x183   :  { %v799_v47 = vsub.f32 %v1648_v16, %v1847_v15  ;;  %v800_v0 = vsub.f32 %v1654_v26, %v1847_v15  ;;  %v801_v6 = vsub.f32 %v1666_v52, %v1847_v15  ;;  %v802_v23 = vsub.f32 %v1672_v62, %v1847_v15  ;;  %v2422_v16 = vld [vmem:[#allocation10_spill] sm:$0xff] }
 0x184   :  { %v803_v29 = vsub.f32 %v1684_v27, %v1847_v15  ;;  %v804_v51 = vsub.f32 %v1690_v39, %v1847_v15  ;;  %v805_v59 = vsub.f32 %v1702_v10, %v1847_v15  ;;  %v806_v18 = vsub.f32 %v2422_v16, %v1847_v15 }
 0x185   :  { %v807_v26 = vsub.f32 %v1718_v8, %v1847_v15  ;;  %v808_v52 = vsub.f32 %v1724_v28, %v1847_v15  ;;  %v809_v62 = vsub.f32 %v1516_v40, %v1847_v15  ;;  %v810_v27 = vsub.f32 %v1520_v45, %v1847_v15 }
 0x186   :  { %v811_v39 = vsub.f32 %v1535_v58, %v1847_v15  ;;  %v812_v10 = vsub.f32 %v1538_v63, %v1847_v15  ;;  %v813_v33 = vsub.f32 %v1553_v12, %v1847_v15  ;;  %v814_v8 = vsub.f32 %v1556_v17, %v1847_v15 }
 0x187   :  { %v815_v28 = vsub.f32 %v1571_v30, %v1847_v15  ;;  %v816_v40 = vsub.f32 %v1574_v37, %v1847_v15  ;;  %v817_v45 = vsub.f32 %v1589_v54, %v1847_v15  ;;  %v818_v58 = vsub.f32 %v1592_v60, %v1847_v15  ;;  %v2423_v37 = vld [vmem:[#allocation2_spill] sm:$0xff]  ;;  %v2424_v54 = vld [vmem:[#allocation3_spill] sm:$0xff]  ;;  %v2425_v60 = vld [vmem:[#allocation4_spill] sm:$0xff] }
 0x188   :  { %v819_v63 = vsub.f32 %v1607_v13, %v1847_v15  ;;  %v820_v12 = vsub.f32 %v1610_v19, %v1847_v15  ;;  %v821_v17 = vsub.f32 %v1625_v38, %v1847_v15  ;;  %v822_v30 = vsub.f32 %v1628_v46, %v1847_v15  ;;  %v2426_v13 = vld [vmem:[#allocation5_spill] sm:$0xff]  ;;  %v2427_v19 = vld [vmem:[#allocation6_spill] sm:$0xff]  ;;  %v2428_v38 = vld [vmem:[#allocation7_spill] sm:$0xff] }
 0x189   :  { %v823_v1 = vsub.f32 %v2423_v37, %v1847_v15  ;;  %v824_v24 = vsub.f32 %v2424_v54, %v1847_v15  ;;  %v825_v14 = vsub.f32 %v2425_v60, %v1847_v15  ;;  %v826_v22 = vsub.f32 %v2426_v13, %v1847_v15  ;;  %v2429_v46 = vld [vmem:[#allocation8_spill] sm:$0xff] }
 0x18a   :  { %v827_v31 = vsub.f32 %v2427_v19, %v1847_v15  ;;  %v828_v57 = vsub.f32 %v2428_v38, %v1847_v15  ;;  %v829_v36 = vsub.f32 %v2429_v46, %v1847_v15  ;;  %v830_v5 = vsub.f32 %v2430_v56, %v1847_v15 }
 0x18b   :  { %v831_v50 = vsub.f32 %v2431_v61, %v1847_v15  ;;  %v832_v49 = vadd.f32 1e-05, %v782_v42 }
 0x18d   :  { %1314 = vrsqrt.f32 %v832_v49 }
 0x197   :  { %v1315_v43 = vpop.eup %1314 }
 0x198   :  { %v834_v21 = vmul.f32 %v1315_v43, %v783_v55  ;;  %v835_v16 = vmul.f32 %v1315_v43, %v784_v9  ;;  %v836_v37 = vmul.f32 %v1315_v43, %v785_v44  ;;  %v837_v54 = vmul.f32 %v1315_v43, %v786_v34 }
 0x199   :  { %v838_v60 = vmul.f32 %v1315_v43, %v787_v4  ;;  %v839_v13 = vmul.f32 %v1315_v43, %v788_v11  ;;  %v840_v19 = vmul.f32 %v1315_v43, %v789_v3  ;;  %v841_v38 = vmul.f32 %v1315_v43, %v790_v32 }
 0x19a   :  { %v842_v46 = vmul.f32 %v1315_v43, %v791_v35  ;;  %v843_v56 = vmul.f32 %v1315_v43, %v792_v48  ;;  %v844_v15 = vmul.f32 %v1315_v43, %v793_v53  ;;  %v845_v61 = vmul.f32 %v1315_v43, %v794_v2 }
 0x19b   :  { %v846_v42 = vmul.f32 %v1315_v43, %v795_v7  ;;  %v847_v49 = vmul.f32 %v1315_v43, %v796_v20  ;;  %v848_v55 = vmul.f32 %v1315_v43, %v797_v25  ;;  %v849_v9 = vmul.f32 %v1315_v43, %v798_v41 }
 0x19c   :  { %v850_v44 = vmul.f32 %v1315_v43, %v799_v47  ;;  %v851_v34 = vmul.f32 %v1315_v43, %v800_v0  ;;  %v852_v4 = vmul.f32 %v1315_v43, %v801_v6  ;;  %v853_v11 = vmul.f32 %v1315_v43, %v802_v23 }
 0x19d   :  { %v854_v3 = vmul.f32 %v1315_v43, %v803_v29  ;;  %v855_v32 = vmul.f32 %v1315_v43, %v804_v51  ;;  %v856_v35 = vmul.f32 %v1315_v43, %v805_v59  ;;  %v857_v48 = vmul.f32 %v1315_v43, %v806_v18  ;;  %v1952_v59 = vld [vmem:[%s2399_s2] ss:$0 sm:$0xff] }
 0x19e   :  { %v858_v53 = vmul.f32 %v1315_v43, %v807_v26  ;;  %v859_v2 = vmul.f32 %v1315_v43, %v808_v52  ;;  %v860_v7 = vmul.f32 %v1315_v43, %v809_v62  ;;  %v861_v20 = vmul.f32 %v1315_v43, %v810_v27 }
 0x19f   :  { %v862_v25 = vmul.f32 %v1315_v43, %v811_v39  ;;  %v863_v41 = vmul.f32 %v1315_v43, %v812_v10  ;;  %v864_v47 = vmul.f32 %v1315_v43, %v813_v33  ;;  %v865_v0 = vmul.f32 %v1315_v43, %v814_v8 }
 0x1a0   :  { %v866_v6 = vmul.f32 %v1315_v43, %v815_v28  ;;  %v867_v23 = vmul.f32 %v1315_v43, %v816_v40  ;;  %v868_v29 = vmul.f32 %v1315_v43, %v817_v45  ;;  %v869_v51 = vmul.f32 %v1315_v43, %v818_v58 }
 0x1a1   :  { %v870_v18 = vmul.f32 %v1315_v43, %v819_v63  ;;  %v871_v26 = vmul.f32 %v1315_v43, %v820_v12  ;;  %v872_v52 = vmul.f32 %v1315_v43, %v821_v17  ;;  %v873_v62 = vmul.f32 %v1315_v43, %v822_v30 }
 0x1a2   :  { %v874_v27 = vmul.f32 %v1315_v43, %v823_v1  ;;  %v875_v39 = vmul.f32 %v1315_v43, %v824_v24  ;;  %v876_v10 = vmul.f32 %v1315_v43, %v825_v14  ;;  %v877_v33 = vmul.f32 %v1315_v43, %v826_v22 }
 0x1a3   :  { %v878_v8 = vmul.f32 %v1315_v43, %v827_v31  ;;  %v879_v28 = vmul.f32 %v1315_v43, %v828_v57  ;;  %v880_v40 = vmul.f32 %v1315_v43, %v829_v36  ;;  %v881_v45 = vmul.f32 %v1315_v43, %v830_v5 }
 0x1a4   :  { %v882_v58 = vmul.f32 %v1315_v43, %v831_v50  ;;  %v889_v63 = vmul.f32 %v1952_v59, %v834_v21  ;;  %v890_v12 = vmul.f32 %v1952_v59, %v835_v16  ;;  %v891_v17 = vmul.f32 %v1952_v59, %v836_v37 }
 0x1a5   :  { %v892_v30 = vmul.f32 %v1952_v59, %v837_v54  ;;  %v893_v1 = vmul.f32 %v1952_v59, %v838_v60  ;;  %v894_v24 = vmul.f32 %v1952_v59, %v839_v13  ;;  %v895_v14 = vmul.f32 %v1952_v59, %v840_v19 }
 0x1a6   :  { %v896_v22 = vmul.f32 %v1952_v59, %v841_v38  ;;  %v897_v31 = vmul.f32 %v1952_v59, %v842_v46  ;;  %v898_v57 = vmul.f32 %v1952_v59, %v843_v56  ;;  %v899_v36 = vmul.f32 %v1952_v59, %v844_v15 }
 0x1a7   :  { %v900_v5 = vmul.f32 %v1952_v59, %v845_v61  ;;  %v901_v50 = vmul.f32 %v1952_v59, %v846_v42  ;;  %v902_v43 = vmul.f32 %v1952_v59, %v847_v49  ;;  %v903_v21 = vmul.f32 %v1952_v59, %v848_v55 }
 0x1a8   :  { %v904_v16 = vmul.f32 %v1952_v59, %v849_v9  ;;  %v905_v37 = vmul.f32 %v1952_v59, %v850_v44  ;;  %v906_v54 = vmul.f32 %v1952_v59, %v851_v34  ;;  %v907_v60 = vmul.f32 %v1952_v59, %v852_v4 }
 0x1a9   :  { %v908_v13 = vmul.f32 %v1952_v59, %v853_v11  ;;  %v909_v19 = vmul.f32 %v1952_v59, %v854_v3  ;;  %v910_v38 = vmul.f32 %v1952_v59, %v855_v32  ;;  %v911_v46 = vmul.f32 %v1952_v59, %v856_v35  ;;  %v1992_v32 = vld [vmem:[%s2400_s3] ss:$0 sm:$0xff] }
 0x1aa   :  { %v912_v56 = vmul.f32 %v1952_v59, %v857_v48  ;;  %v913_v15 = vmul.f32 %v1952_v59, %v858_v53  ;;  %v914_v61 = vmul.f32 %v1952_v59, %v859_v2  ;;  %v915_v42 = vmul.f32 %v1952_v59, %v860_v7 }
 0x1ab   :  { %v916_v49 = vmul.f32 %v1952_v59, %v861_v20  ;;  %v917_v55 = vmul.f32 %v1952_v59, %v862_v25  ;;  %v918_v9 = vmul.f32 %v1952_v59, %v863_v41  ;;  %v919_v44 = vmul.f32 %v1952_v59, %v864_v47 }
 0x1ac   :  { %v920_v34 = vmul.f32 %v1952_v59, %v865_v0  ;;  %v921_v4 = vmul.f32 %v1952_v59, %v866_v6  ;;  %v922_v11 = vmul.f32 %v1952_v59, %v867_v23  ;;  %v923_v3 = vmul.f32 %v1952_v59, %v868_v29 }
 0x1ad   :  { %v924_v35 = vmul.f32 %v1952_v59, %v869_v51  ;;  %v925_v48 = vmul.f32 %v1952_v59, %v870_v18  ;;  %v926_v53 = vmul.f32 %v1952_v59, %v871_v26  ;;  %v927_v2 = vmul.f32 %v1952_v59, %v872_v52 }
 0x1ae   :  { %v928_v7 = vmul.f32 %v1952_v59, %v873_v62  ;;  %v929_v20 = vmul.f32 %v1952_v59, %v874_v27  ;;  %v930_v25 = vmul.f32 %v1952_v59, %v875_v39  ;;  %v931_v41 = vmul.f32 %v1952_v59, %v876_v10 }
 0x1af   :  { %v932_v47 = vmul.f32 %v1952_v59, %v877_v33  ;;  %v933_v0 = vmul.f32 %v1952_v59, %v878_v8  ;;  %v934_v6 = vmul.f32 %v1952_v59, %v879_v28  ;;  %v935_v23 = vmul.f32 %v1952_v59, %v880_v40 }
 0x1b0   :  { %v936_v29 = vmul.f32 %v1952_v59, %v881_v45  ;;  %v937_v51 = vmul.f32 %v1952_v59, %v882_v58  ;;  %v944_v18 = vadd.f32 %v1992_v32, %v889_v63  ;;  %v2010_v26 = vadd.f32 %v1992_v32, %v890_v12 }
 0x1b1   :  { %v2013_v52 = vadd.f32 %v1992_v32, %v891_v17  ;;  %v2016_v62 = vadd.f32 %v1992_v32, %v892_v30  ;;  %v2019_v27 = vadd.f32 %v1992_v32, %v893_v1  ;;  %v2022_v39 = vadd.f32 %v1992_v32, %v894_v24 }
 0x1b2   :  { %v2025_v10 = vadd.f32 %v1992_v32, %v895_v14  ;;  %v2028_v59 = vadd.f32 %v1992_v32, %v896_v22  ;;  %v2031_v33 = vadd.f32 %v1992_v32, %v897_v31  ;;  %v2034_v8 = vadd.f32 %v1992_v32, %v898_v57 }
 0x1b3   :  { %v2037_v28 = vadd.f32 %v1992_v32, %v899_v36  ;;  %v2040_v40 = vadd.f32 %v1992_v32, %v900_v5  ;;  %v2043_v45 = vadd.f32 %v1992_v32, %v901_v50  ;;  %v2046_v58 = vadd.f32 %v1992_v32, %v902_v43 }
 0x1b4   :  { %v2049_v63 = vadd.f32 %v1992_v32, %v903_v21  ;;  %v2052_v12 = vadd.f32 %v1992_v32, %v904_v16  ;;  %v2055_v17 = vadd.f32 %v1992_v32, %v905_v37  ;;  %v2058_v30 = vadd.f32 %v1992_v32, %v906_v54 }
 0x1b5   :  { %v2061_v1 = vadd.f32 %v1992_v32, %v907_v60  ;;  %v2064_v24 = vadd.f32 %v1992_v32, %v908_v13  ;;  %v2067_v14 = vadd.f32 %v1992_v32, %v909_v19  ;;  %v2070_v22 = vadd.f32 %v1992_v32, %v910_v38 }
 0x1b6   :  { %v2073_v31 = vadd.f32 %v1992_v32, %v911_v46  ;;  %v2076_v57 = vadd.f32 %v1992_v32, %v912_v56  ;;  %v2079_v36 = vadd.f32 %v1992_v32, %v913_v15  ;;  %v2082_v5 = vadd.f32 %v1992_v32, %v914_v61 }
 0x1b7   :  { %v2085_v50 = vadd.f32 %v1992_v32, %v915_v42  ;;  %v2088_v43 = vadd.f32 %v1992_v32, %v916_v49  ;;  %v2091_v21 = vadd.f32 %v1992_v32, %v917_v55  ;;  %v2094_v16 = vadd.f32 %v1992_v32, %v918_v9 }
 0x1b8   :  { %v2097_v37 = vadd.f32 %v1992_v32, %v919_v44  ;;  %v2100_v54 = vadd.f32 %v1992_v32, %v920_v34  ;;  %v2103_v60 = vadd.f32 %v1992_v32, %v921_v4  ;;  %v2106_v13 = vadd.f32 %v1992_v32, %v922_v11 }
 0x1b9   :  { %v2109_v19 = vadd.f32 %v1992_v32, %v923_v3  ;;  %v2112_v38 = vadd.f32 %v1992_v32, %v924_v35  ;;  %v2115_v46 = vadd.f32 %v1992_v32, %v925_v48  ;;  %v2118_v56 = vadd.f32 %v1992_v32, %v926_v53 }
 0x1ba   :  { %v2121_v15 = vadd.f32 %v1992_v32, %v927_v2  ;;  %v2124_v61 = vadd.f32 %v1992_v32, %v928_v7  ;;  %v2127_v42 = vadd.f32 %v1992_v32, %v929_v20  ;;  %v2130_v49 = vadd.f32 %v1992_v32, %v930_v25 }
 0x1bb   :  { %v2133_v55 = vadd.f32 %v1992_v32, %v931_v41  ;;  %v2136_v9 = vadd.f32 %v1992_v32, %v932_v47  ;;  %v2139_v44 = vadd.f32 %v1992_v32, %v933_v0  ;;  %v2142_v34 = vadd.f32 %v1992_v32, %v934_v6 }
 0x1bc   :  { %v2145_v4 = vadd.f32 %v1992_v32, %v935_v23  ;;  %v2148_v11 = vadd.f32 %v1992_v32, %v936_v29  ;;  %v2151_v3 = vadd.f32 %v1992_v32, %v937_v51  ;;  %v993_v35 = vmax.f32 %v944_v18, 0.0 }
 0x1bd   :  { %v994_v48 = vmax.f32 %v2010_v26, 0.0  ;;  %v995_v53 = vmax.f32 %v2013_v52, 0.0  ;;  %v996_v2 = vmax.f32 %v2016_v62, 0.0  ;;  %v997_v7 = vmax.f32 %v2019_v27, 0.0 }
 0x1be   :  { %v998_v20 = vmax.f32 %v2022_v39, 0.0  ;;  %v999_v25 = vmax.f32 %v2025_v10, 0.0  ;;  %v1000_v41 = vmax.f32 %v2028_v59, 0.0  ;;  %v1001_v47 = vmax.f32 %v2031_v33, 0.0  ;;  %1042 = vst.msk [vmem:[%s2401_s4] sm:$0xff] %vm522_vm4, %v993_v35 }
 0x1bf   :  { %v1002_v32 = vmax.f32 %v2034_v8, 0.0  ;;  %v1003_v0 = vmax.f32 %v2037_v28, 0.0  ;;  %v1004_v6 = vmax.f32 %v2040_v40, 0.0  ;;  %v1005_v23 = vmax.f32 %v2043_v45, 0.0  ;;  %1043 = vst.msk [vmem:[%s2401_s4 + $0x8] sm:$0xff] %vm522_vm4, %v994_v48  ;;  %1044 = vst.msk [vmem:[%s2401_s4 + $0x10] sm:$0xff] %vm522_vm4, %v995_v53 }
 0x1c0   :  { %1045 = vst.msk [vmem:[%s2401_s4 + $0x18] sm:$0xff] %vm522_vm4, %v996_v2  ;;  %1046 = vst.msk [vmem:[%s2401_s4 + $0x20] sm:$0xff] %vm522_vm4, %v997_v7  ;;  %v1006_v29 = vmax.f32 %v2046_v58, 0.0  ;;  %v1007_v51 = vmax.f32 %v2049_v63, 0.0  ;;  %v1008_v18 = vmax.f32 %v2052_v12, 0.0  ;;  %v1009_v26 = vmax.f32 %v2055_v17, 0.0 }
 0x1c1   :  { %1047 = vst.msk [vmem:[%s2401_s4 + $0x28] sm:$0xff] %vm522_vm4, %v998_v20  ;;  %1048 = vst.msk [vmem:[%s2401_s4 + $0x30] sm:$0xff] %vm522_vm4, %v999_v25  ;;  %v1010_v52 = vmax.f32 %v2058_v30, 0.0  ;;  %v1011_v62 = vmax.f32 %v2061_v1, 0.0  ;;  %v1012_v27 = vmax.f32 %v2064_v24, 0.0  ;;  %v1013_v39 = vmax.f32 %v2067_v14, 0.0 }
 0x1c2   :  { %1049 = vst.msk [vmem:[%s2401_s4 + $0x38] sm:$0xff] %vm522_vm4, %v1000_v41  ;;  %1050 = vst.msk [vmem:[%s2401_s4 + $0x40] sm:$0xff] %vm522_vm4, %v1001_v47  ;;  %v1014_v10 = vmax.f32 %v2070_v22, 0.0  ;;  %v1015_v59 = vmax.f32 %v2073_v31, 0.0  ;;  %v1016_v33 = vmax.f32 %v2076_v57, 0.0  ;;  %v1017_v8 = vmax.f32 %v2079_v36, 0.0 }
 0x1c3   :  { %1051 = vst.msk [vmem:[%s2401_s4 + $0x48] sm:$0xff] %vm522_vm4, %v1002_v32  ;;  %1052 = vst.msk [vmem:[%s2401_s4 + $0x50] sm:$0xff] %vm522_vm4, %v1003_v0  ;;  %v1018_v28 = vmax.f32 %v2082_v5, 0.0  ;;  %v1019_v40 = vmax.f32 %v2085_v50, 0.0  ;;  %v1020_v45 = vmax.f32 %v2088_v43, 0.0  ;;  %v1021_v58 = vmax.f32 %v2091_v21, 0.0 }
 0x1c4   :  { %1053 = vst.msk [vmem:[%s2401_s4 + $0x58] sm:$0xff] %vm522_vm4, %v1004_v6  ;;  %1054 = vst.msk [vmem:[%s2401_s4 + $0x60] sm:$0xff] %vm522_vm4, %v1005_v23  ;;  %v1022_v63 = vmax.f32 %v2094_v16, 0.0  ;;  %v1023_v12 = vmax.f32 %v2097_v37, 0.0  ;;  %v1024_v17 = vmax.f32 %v2100_v54, 0.0  ;;  %v1025_v30 = vmax.f32 %v2103_v60, 0.0 }
 0x1c5   :  { %1055 = vst.msk [vmem:[%s2401_s4 + $0x68] sm:$0xff] %vm522_vm4, %v1006_v29  ;;  %1056 = vst.msk [vmem:[%s2401_s4 + $0x70] sm:$0xff] %vm522_vm4, %v1007_v51  ;;  %v1026_v1 = vmax.f32 %v2106_v13, 0.0  ;;  %v1027_v24 = vmax.f32 %v2109_v19, 0.0  ;;  %v1028_v14 = vmax.f32 %v2112_v38, 0.0  ;;  %v1029_v22 = vmax.f32 %v2115_v46, 0.0 }
 0x1c6   :  { %1057 = vst.msk [vmem:[%s2401_s4 + $0x78] sm:$0xff] %vm522_vm4, %v1008_v18  ;;  %1058 = vst.msk [vmem:[%s2401_s4 + $0x80] sm:$0xff] %vm522_vm4, %v1009_v26  ;;  %v1030_v31 = vmax.f32 %v2118_v56, 0.0  ;;  %v1031_v57 = vmax.f32 %v2121_v15, 0.0  ;;  %v1032_v36 = vmax.f32 %v2124_v61, 0.0  ;;  %v1033_v5 = vmax.f32 %v2127_v42, 0.0 }
 0x1c7   :  { %1059 = vst.msk [vmem:[%s2401_s4 + $0x88] sm:$0xff] %vm522_vm4, %v1010_v52  ;;  %1060 = vst.msk [vmem:[%s2401_s4 + $0x90] sm:$0xff] %vm522_vm4, %v1011_v62  ;;  %v1034_v50 = vmax.f32 %v2130_v49, 0.0  ;;  %v1035_v43 = vmax.f32 %v2133_v55, 0.0  ;;  %v1036_v21 = vmax.f32 %v2136_v9, 0.0  ;;  %v1037_v16 = vmax.f32 %v2139_v44, 0.0 }
 0x1c8   :  { %1061 = vst.msk [vmem:[%s2401_s4 + $0x98] sm:$0xff] %vm522_vm4, %v1012_v27  ;;  %1062 = vst.msk [vmem:[%s2401_s4 + $0xa0] sm:$0xff] %vm522_vm4, %v1013_v39  ;;  %v1038_v37 = vmax.f32 %v2142_v34, 0.0  ;;  %v1039_v54 = vmax.f32 %v2145_v4, 0.0  ;;  %v1040_v60 = vmax.f32 %v2148_v11, 0.0  ;;  %v1041_v13 = vmax.f32 %v2151_v3, 0.0 }
 0x1c9   :  { %1063 = vst.msk [vmem:[%s2401_s4 + $0xa8] sm:$0xff] %vm522_vm4, %v1014_v10  ;;  %1064 = vst.msk [vmem:[%s2401_s4 + $0xb0] sm:$0xff] %vm522_vm4, %v1015_v59 }
 0x1ca   :  { %1065 = vst.msk [vmem:[%s2401_s4 + $0xb8] sm:$0xff] %vm522_vm4, %v1016_v33  ;;  %1066 = vst.msk [vmem:[%s2401_s4 + $0xc0] sm:$0xff] %vm522_vm4, %v1017_v8 }
 0x1cb   :  { %1067 = vst.msk [vmem:[%s2401_s4 + $0xc8] sm:$0xff] %vm522_vm4, %v1018_v28  ;;  %1068 = vst.msk [vmem:[%s2401_s4 + $0xd0] sm:$0xff] %vm522_vm4, %v1019_v40 }
 0x1cc   :  { %1069 = vst.msk [vmem:[%s2401_s4 + $0xd8] sm:$0xff] %vm522_vm4, %v1020_v45  ;;  %1070 = vst.msk [vmem:[%s2401_s4 + $0xe0] sm:$0xff] %vm522_vm4, %v1021_v58 }
 0x1cd   :  { %1071 = vst.msk [vmem:[%s2401_s4 + $0xe8] sm:$0xff] %vm522_vm4, %v1022_v63  ;;  %1072 = vst.msk [vmem:[%s2401_s4 + $0xf0] sm:$0xff] %vm522_vm4, %v1023_v12 }
 0x1ce   :  { %1073 = vst.msk [vmem:[%s2401_s4 + $0xf8] sm:$0xff] %vm522_vm4, %v1024_v17  ;;  %1074 = vst.msk [vmem:[%s2401_s4 + $0x100] sm:$0xff] %vm522_vm4, %v1025_v30 }
 0x1cf   :  { %1075 = vst.msk [vmem:[%s2401_s4 + $0x108] sm:$0xff] %vm522_vm4, %v1026_v1  ;;  %1076 = vst.msk [vmem:[%s2401_s4 + $0x110] sm:$0xff] %vm522_vm4, %v1027_v24 }
 0x1d0   :  { %1077 = vst.msk [vmem:[%s2401_s4 + $0x118] sm:$0xff] %vm522_vm4, %v1028_v14  ;;  %1078 = vst.msk [vmem:[%s2401_s4 + $0x120] sm:$0xff] %vm522_vm4, %v1029_v22 }
 0x1d1   :  { %1079 = vst.msk [vmem:[%s2401_s4 + $0x128] sm:$0xff] %vm522_vm4, %v1030_v31  ;;  %1080 = vst.msk [vmem:[%s2401_s4 + $0x130] sm:$0xff] %vm522_vm4, %v1031_v57 }
 0x1d2   :  { %1081 = vst.msk [vmem:[%s2401_s4 + $0x138] sm:$0xff] %vm522_vm4, %v1032_v36  ;;  %1082 = vst.msk [vmem:[%s2401_s4 + $0x140] sm:$0xff] %vm522_vm4, %v1033_v5 }
 0x1d3   :  { %1083 = vst.msk [vmem:[%s2401_s4 + $0x148] sm:$0xff] %vm522_vm4, %v1034_v50  ;;  %1084 = vst.msk [vmem:[%s2401_s4 + $0x150] sm:$0xff] %vm522_vm4, %v1035_v43 }
 0x1d4   :  { %1085 = vst.msk [vmem:[%s2401_s4 + $0x158] sm:$0xff] %vm522_vm4, %v1036_v21  ;;  %1086 = vst.msk [vmem:[%s2401_s4 + $0x160] sm:$0xff] %vm522_vm4, %v1037_v16 }
 0x1d5   :  { %1087 = vst.msk [vmem:[%s2401_s4 + $0x168] sm:$0xff] %vm522_vm4, %v1038_v37  ;;  %1088 = vst.msk [vmem:[%s2401_s4 + $0x170] sm:$0xff] %vm522_vm4, %v1039_v54 }
 0x1d6   :  { %1089 = vst.msk [vmem:[%s2401_s4 + $0x178] sm:$0xff] %vm522_vm4, %v1040_v60  ;;  %1090 = vst.msk [vmem:[%s2401_s4 + $0x180] sm:$0xff] %vm522_vm4, %v1041_v13 }

// kernel: _lambda_.21
= control target key start
LH: loop header
LB: loop body
LE: loop exit
PB: predicated region body
PF: predicated region fallthrough
CT: control target
= control target key end

     0   :  { %v534_v0 = vmov 0   ;;  %vm163_vm0 = vcmask 130048   ;;  %vm275_vm1 = vcmask 261120   ;;  %s795_s1 = inlined_call_operand.vmem [shape: bf16[144,32], index: 1, kind: input, shape index: {}]   ;;  %s796_s0 = inlined_call_operand.vmem [shape: bf16[104,144], index: 0, kind: input, shape index: {}]   ;;  %s797_s2 = inlined_call_operand.vmem [shape: f32[1,32], index: 2, kind: input, shape index: {}]   ;;  %s798_s3 = inlined_call_operand.vmem [shape: f32[1,32], index: 3, kind: input, shape index: {}]   ;;  %s799_s4 = inlined_call_operand.vmem [shape: f32[104,32], index: 4, kind: output, shape index: {}]  }
   0x1   :  { %185 = vmatprep.subr.bf16.mxu0 %v534_v0  ;;  %v503_v1 = vld [vmem:[%s795_s1] sm:$0xff]   ;;  %484 = vmatprep.subr.bf16.mxu1 %v534_v0  ;;  %v504_v2 = vld [vmem:[%s795_s1 + $0x8] sm:$0xff]   ;;  %v505_v3 = vld [vmem:[%s795_s1 + $0x10] sm:$0xff]  }
   0x2   :  { %186 = vmatpush1.bf16.msra.mxu0 %v503_v1  ;;  %493 = vmatpush1.bf16.msra.mxu1 %v503_v1  ;;  %v506_v4 = vld [vmem:[%s795_s1 + $0x18] sm:$0xff]   ;;  %v514_v5 = vld [vmem:[%s796_s0 + $0x4] ss:$8 sps:$4 sm:$0xff]   ;;  %v509_v9 = vld [vmem:[%s795_s1 + $0x30] sm:$0xff]  }
   0x3   :  { %187 = vmatprep.subr.bf16.mxu0 %v534_v0  ;;  %485 = vmatprep.subr.bf16.mxu1 %v534_v0  ;;  %v507_v6 = vld [vmem:[%s795_s1 + $0x20] sm:$0xff]   ;;  %v508_v8 = vld [vmem:[%s795_s1 + $0x28] sm:$0xff]   ;;  %v510_v10 = vld [vmem:[%s795_s1 + $0x38] sm:$0xff]  }
   0x4   :  { %475 = vmatprep.mubr.msk.bf16.mxu0 %vm163_vm0, %v514_v5  ;;  %v523_v7 = vld [vmem:[%s796_s0 + $0x44] ss:$8 sps:$4 sm:$0xff]   ;;  %v512_v12 = vld [vmem:[%s796_s0] ss:$8 sps:$4 sm:$0xff]   ;;  %v515_v14 = vld [vmem:[%s796_s0 + $0x14] ss:$8 sps:$4 sm:$0xff]  }
   0x5   :  { %479 = vmatprep.mubr.msk.bf16.mxu1 %vm163_vm0, %v523_v7  ;;  %v511_v11 = vld [vmem:[%s795_s1 + $0x40] sm:$0xff]   ;;  %v527_v15 = vld [vmem:[%s796_s0 + $0x54] ss:$8 sps:$4 sm:$0xff]   ;;  %v517_v17 = vld [vmem:[%s796_s0 + $0x10] ss:$8 sps:$4 sm:$0xff]  }
   0x6   :  { %188 = vmatpush1.bf16.msra.mxu0 %v504_v2  ;;  %494 = vmatpush1.bf16.msra.mxu1 %v504_v2  ;;  %v521_v13 = vld [vmem:[%s796_s0 + $0x40] ss:$8 sps:$4 sm:$0xff]   ;;  %v529_v18 = vld [vmem:[%s796_s0 + $0x50] ss:$8 sps:$4 sm:$0xff]   ;;  %v518_v19 = vld [vmem:[%s796_s0 + $0x24] ss:$8 sps:$4 sm:$0xff]  }
   0x7   :  { %189 = vmatprep.subr.bf16.mxu0 %v534_v0  ;;  %486 = vmatprep.subr.bf16.mxu1 %v534_v0  ;;  %v30_v16 = vld [vmem:[%s796_s0 + $0x60] sm:$0xff]  ;;  %v524_v23 = vld [vmem:[%s796_s0 + $0x34] ss:$8 sps:$4 sm:$0xff]   ;;  %v526_v24 = vld [vmem:[%s796_s0 + $0x30] ss:$8 sps:$4 sm:$0xff]  }
   0x8   :  { %v465_v20 = vcombine.high %v30_v16, %v30_v16  ;;  %v520_v21 = vld [vmem:[%s796_s0 + $0x20] ss:$8 sps:$4 sm:$0xff]   ;;  %v464_v22 = vcombine.low %v30_v16, %v30_v16 }
   0xa   :  { %190 = vmatpush1.bf16.msra.mxu0 %v505_v3  ;;  %495 = vmatpush1.bf16.msra.mxu1 %v505_v3 }
   0xb   :  { %191 = vmatprep.subr.bf16.mxu0 %v534_v0  ;;  %487 = vmatprep.subr.bf16.mxu1 %v534_v0 }
   0xe   :  { %192 = vmatpush1.bf16.msra.mxu0 %v506_v4  ;;  %496 = vmatpush1.bf16.msra.mxu1 %v506_v4 }
   0xf   :  { %193 = vmatprep.subr.bf16.mxu0 %v534_v0  ;;  %488 = vmatprep.subr.bf16.mxu1 %v534_v0 }
  0x12   :  { %194 = vmatpush1.bf16.msra.mxu0 %v507_v6  ;;  %497 = vmatpush1.bf16.msra.mxu1 %v507_v6 }
  0x13   :  { %195 = vmatprep.subr.bf16.mxu0 %v534_v0  ;;  %489 = vmatprep.subr.bf16.mxu1 %v534_v0 }
  0x16   :  { %196 = vmatpush1.bf16.msra.mxu0 %v508_v8  ;;  %498 = vmatpush1.bf16.msra.mxu1 %v508_v8 }
  0x17   :  { %197 = vmatprep.subr.bf16.mxu0 %v534_v0  ;;  %490 = vmatprep.subr.bf16.mxu1 %v534_v0 }
  0x1a   :  { %198 = vmatpush1.bf16.msra.mxu0 %v509_v9  ;;  %499 = vmatpush1.bf16.msra.mxu1 %v509_v9 }
  0x1b   :  { %199 = vmatprep.subr.bf16.mxu0 %v534_v0  ;;  %491 = vmatprep.subr.bf16.mxu1 %v534_v0 }
  0x1e   :  { %200 = vmatpush1.bf16.msra.mxu0 %v510_v10  ;;  %500 = vmatpush1.bf16.msra.mxu1 %v510_v10 }
  0x1f   :  { %201 = vmatprep.subr.bf16.mxu0 %v534_v0  ;;  %492 = vmatprep.subr.bf16.mxu1 %v534_v0 }
  0x22   :  { %202 = vmatpush1.bf16.msra.mxu0 %v511_v11  ;;  %501 = vmatpush1.bf16.msra.mxu1 %v511_v11 }
  0x25   :  { %218 = vmatmul.mubr.bf16.vlgmr.msra.gmra.mrb[0].mxu0 %v512_v12  ;;  %250 = vmatmul.mubr.bf16.vlgmr.msra.gmra.mrb[0].mxu1 %v521_v13 }
  0x26   :  { %476 = vmatprep.mubr.msk.bf16.mxu0 %vm163_vm0, %v515_v14  ;;  %480 = vmatprep.mubr.msk.bf16.mxu1 %vm163_vm0, %v527_v15 }
  0x2d   :  { %226 = vmatmul.mubr.bf16.gmra.mrb[4].mxu0 %v517_v17  ;;  %258 = vmatmul.mubr.bf16.gmra.mrb[4].mxu1 %v529_v18 }
  0x2e   :  { %477 = vmatprep.mubr.msk.bf16.mxu0 %vm163_vm0, %v518_v19  ;;  %481 = vmatprep.mubr.msk.bf16.mxu1 %vm163_vm0, %v465_v20 }
  0x35   :  { %234 = vmatmul.mubr.bf16.gmra.mrb[8].mxu0 %v520_v21  ;;  %266 = vmatmul.mubr.bf16.gmra.mrb[8].mxu1 %v464_v22 }
  0x36   :  { %478 = vmatprep.mubr.msk.bf16.mxu0 %vm163_vm0, %v524_v23 }
  0x3d   :  { %242 = vmatmul.mubr.bf16.gmra.mrb[12].mxu0 %v526_v24 }
  0xf8   :  { %v633_v25 = vpop.f32.mrb[0].mxu0  ;;  %v635_v26 = vpop.f32.mrb[0].mxu1 }
  0xf9   :  { %v308_v27 = vmul.f32 %v633_v25, %v633_v25  ;;  %v221_v28 = vpop.f32.mrb[1].mxu0  ;;  %v253_v29 = vpop.f32.mrb[1].mxu1  ;;  %v276_v32 = vsel %vm275_vm1, %v633_v25, 0.0  ;;  %v316_v19 = vmul.f32 %v635_v26, %v635_v26 }
  0xfa   :  { %v639_v30 = vpop.f32.mrb[2].mxu0  ;;  %v641_v31 = vpop.f32.mrb[2].mxu1  ;;  %v291_v28 = vsel %vm275_vm1, %v635_v26, 0.0 }
  0xfb   :  { %v277_v33 = vsel %vm275_vm1, %v639_v30, 0.0  ;;  %v309_v34 = vmul.f32 %v639_v30, %v639_v30  ;;  %v224_v35 = vpop.f32.mrb[3].mxu0  ;;  %v256_v36 = vpop.f32.mrb[3].mxu1  ;;  %v321_v38 = vsel %vm275_vm1, %v308_v27, 0.0  ;;  %v317_v29 = vmul.f32 %v641_v31, %v641_v31 }
  0xfc   :  { %v278_v37 = vadd.f32 %v277_v33, %v276_v32  ;;  %v336_v35 = vsel %vm275_vm1, %v316_v19, 0.0  ;;  %v293_v36 = vsel %vm275_vm1, %v641_v31, 0.0 }
  0xfd   :  { %v322_v39 = vsel %vm275_vm1, %v309_v34, 0.0 }
  0xfe   :  { %v323_v40 = vadd.f32 %v322_v39, %v321_v38 }
 0x100   :  { %v651_v41 = vpop.f32.mrb[4].mxu0  ;;  %v653_v42 = vpop.f32.mrb[4].mxu1 }
 0x101   :  { %v279_v43 = vsel %vm275_vm1, %v651_v41, 0.0  ;;  %v310_v44 = vmul.f32 %v651_v41, %v651_v41  ;;  %v229_v45 = vpop.f32.mrb[5].mxu0  ;;  %v261_v46 = vpop.f32.mrb[5].mxu1 }
 0x102   :  { %v280_v47 = vadd.f32 %v279_v43, %v278_v37  ;;  %v659_v48 = vpop.f32.mrb[6].mxu0  ;;  %v661_v49 = vpop.f32.mrb[6].mxu1  ;;  %v318_v37 = vmul.f32 %v653_v42, %v653_v42  ;;  %v295_v43 = vsel %vm275_vm1, %v653_v42, 0.0 }
 0x103   :  { %v324_v50 = vsel %vm275_vm1, %v310_v44, 0.0  ;;  %v281_v51 = vsel %vm275_vm1, %v659_v48, 0.0  ;;  %v311_v52 = vmul.f32 %v659_v48, %v659_v48  ;;  %v232_v53 = vpop.f32.mrb[7].mxu0  ;;  %v264_v54 = vpop.f32.mrb[7].mxu1  ;;  %v319_v44 = vmul.f32 %v661_v49, %v661_v49 }
 0x104   :  { %v325_v55 = vadd.f32 %v324_v50, %v323_v40  ;;  %v282_v56 = vadd.f32 %v281_v51, %v280_v47  ;;  %v338_v40 = vsel %vm275_vm1, %v317_v29, 0.0  ;;  %v340_v50 = vsel %vm275_vm1, %v318_v37, 0.0  ;;  %v483_v37 = vld [vmem:[%s798_s3] ss:$0 sm:$0xff] }
 0x105   :  { %v326_v57 = vsel %vm275_vm1, %v311_v52, 0.0  ;;  %v297_v51 = vsel %vm275_vm1, %v661_v49, 0.0 }
 0x106   :  { %v327_v58 = vadd.f32 %v326_v57, %v325_v55  ;;  %v342_v55 = vsel %vm275_vm1, %v319_v44, 0.0 }
 0x108   :  { %v669_v59 = vpop.f32.mrb[8].mxu0  ;;  %v671_v60 = vpop.f32.mrb[8].mxu1 }
 0x109   :  { %v283_v61 = vsel %vm275_vm1, %v669_v59, 0.0  ;;  %v312_v62 = vmul.f32 %v669_v59, %v669_v59  ;;  %v237_v63 = vpop.f32.mrb[9].mxu0  ;;  %v269_v0 = vpop.f32.mrb[9].mxu1  ;;  %v320_v45 = vmul.f32 %v671_v60, %v671_v60  ;;  %v299_v52 = vsel %vm275_vm1, %v671_v60, 0.0 }
 0x10a   :  { %v284_v1 = vadd.f32 %v283_v61, %v282_v56  ;;  %v677_v2 = vpop.f32.mrb[10].mxu0  ;;  %v270_v3 = vpop.f32.mrb[10].mxu1 }
 0x10b   :  { %v328_v4 = vsel %vm275_vm1, %v312_v62, 0.0  ;;  %v285_v5 = vsel %vm275_vm1, %v677_v2, 0.0  ;;  %v313_v6 = vmul.f32 %v677_v2, %v677_v2  ;;  %v240_v7 = vpop.f32.mrb[11].mxu0  ;;  %v271_v8 = vpop.f32.mrb[11].mxu1  ;;  %v344_v56 = vsel %vm275_vm1, %v320_v45, 0.0 }
 0x10c   :  { %v329_v9 = vadd.f32 %v328_v4, %v327_v58  ;;  %v286_v10 = vadd.f32 %v285_v5, %v284_v1 }
 0x10d   :  { %v330_v11 = vsel %vm275_vm1, %v313_v6, 0.0 }
 0x10e   :  { %v331_v12 = vadd.f32 %v330_v11, %v329_v9 }
 0x110   :  { %v685_v13 = vpop.f32.mrb[12].mxu0 }
 0x111   :  { %v287_v14 = vsel %vm275_vm1, %v685_v13, 0.0  ;;  %v314_v15 = vmul.f32 %v685_v13, %v685_v13  ;;  %v245_v16 = vpop.f32.mrb[13].mxu0 }
 0x112   :  { %v288_v17 = vadd.f32 %v287_v14, %v286_v10  ;;  %v691_v18 = vpop.f32.mrb[14].mxu0 }
 0x113   :  { %v332_v20 = vsel %vm275_vm1, %v314_v15, 0.0  ;;  %v289_v21 = vsel %vm275_vm1, %v691_v18, 0.0  ;;  %v315_v22 = vmul.f32 %v691_v18, %v691_v18  ;;  %v248_v23 = vpop.f32.mrb[15].mxu0 }
 0x114   :  { %v333_v24 = vadd.f32 %v332_v20, %v331_v12  ;;  %v290_v27 = vadd.f32 %v289_v21, %v288_v17 }
 0x115   :  { %v334_v32 = vsel %vm275_vm1, %v315_v22, 0.0 }
 0x116   :  { %v292_v33 = vadd.f32 %v291_v28, %v290_v27  ;;  %v335_v34 = vadd.f32 %v334_v32, %v333_v24 }
 0x118   :  { %v337_v38 = vadd.f32 %v336_v35, %v335_v34  ;;  %v294_v39 = vadd.f32 %v293_v36, %v292_v33 }
 0x11a   :  { %v296_v46 = vadd.f32 %v295_v43, %v294_v39  ;;  %v339_v47 = vadd.f32 %v338_v40, %v337_v38 }
 0x11c   :  { %v298_v53 = vadd.f32 %v297_v51, %v296_v46  ;;  %v341_v54 = vadd.f32 %v340_v50, %v339_v47 }
 0x11e   :  { %v343_v57 = vadd.f32 %v342_v55, %v341_v54  ;;  %v300_v58 = vadd.f32 %v299_v52, %v298_v53 }
 0x120   :  { %v301_v61 = vrot.slane %v300_v58, 4  ;;  %v345_v62 = vadd.f32 %v344_v56, %v343_v57 }
 0x122   :  { %v302_v63 = vadd.f32 %v301_v61, %v300_v58  ;;  %v346_v0 = vrot.slane %v345_v62, 4 }
 0x124   :  { %v303_v1 = vrot.slane %v302_v63, 2  ;;  %v347_v3 = vadd.f32 %v346_v0, %v345_v62 }
 0x126   :  { %v304_v4 = vadd.f32 %v303_v1, %v302_v63  ;;  %v348_v5 = vrot.slane %v347_v3, 2 }
 0x128   :  { %v305_v6 = vrot.slane %v304_v4, 1  ;;  %v349_v7 = vadd.f32 %v348_v5, %v347_v3 }
 0x12a   :  { %v306_v8 = vadd.f32 %v305_v6, %v304_v4  ;;  %v350_v9 = vrot.slane %v349_v7, 1 }
 0x12c   :  { %v307_v10 = vmul.f32 0.010204081, %v306_v8  ;;  %v351_v11 = vadd.f32 %v350_v9, %v349_v7 }
 0x12e   :  { %v352_v12 = vmul.f32 0.010204081, %v351_v11  ;;  %v353_v14 = vmul.f32 %v307_v10, %v307_v10  ;;  %v356_v15 = vsub.f32 %v633_v25, %v307_v10  ;;  %v357_v16 = vsub.f32 %v639_v30, %v307_v10 }
 0x12f   :  { %v358_v17 = vsub.f32 %v651_v41, %v307_v10  ;;  %v359_v19 = vsub.f32 %v659_v48, %v307_v10  ;;  %v360_v20 = vsub.f32 %v669_v59, %v307_v10  ;;  %v361_v21 = vsub.f32 %v677_v2, %v307_v10  ;;  %v482_v2 = vld [vmem:[%s797_s2] ss:$0 sm:$0xff] }
 0x130   :  { %v354_v22 = vsub.f32 %v352_v12, %v353_v14  ;;  %v362_v23 = vsub.f32 %v685_v13, %v307_v10  ;;  %v363_v24 = vsub.f32 %v691_v18, %v307_v10  ;;  %v364_v27 = vsub.f32 %v635_v26, %v307_v10 }
 0x131   :  { %v365_v28 = vsub.f32 %v641_v31, %v307_v10  ;;  %v366_v25 = vsub.f32 %v653_v42, %v307_v10  ;;  %v367_v30 = vsub.f32 %v661_v49, %v307_v10  ;;  %v368_v41 = vsub.f32 %v671_v60, %v307_v10 }
 0x132   :  { %v355_v48 = vmax.f32 %v354_v22, 0.0 }
 0x134   :  { %v369_v29 = vadd.f32 1e-05, %v355_v48 }
 0x136   :  { %532 = vrsqrt.f32 %v369_v29 }
 0x140   :  { %v533_v59 = vpop.eup %532 }
 0x141   :  { %v371_v13 = vmul.f32 %v533_v59, %v356_v15  ;;  %v372_v18 = vmul.f32 %v533_v59, %v357_v16  ;;  %v373_v32 = vmul.f32 %v533_v59, %v358_v17  ;;  %v374_v26 = vmul.f32 %v533_v59, %v359_v19 }
 0x142   :  { %v375_v33 = vmul.f32 %v533_v59, %v360_v20  ;;  %v376_v31 = vmul.f32 %v533_v59, %v361_v21  ;;  %v377_v34 = vmul.f32 %v533_v59, %v362_v23  ;;  %v378_v42 = vmul.f32 %v533_v59, %v363_v24 }
 0x143   :  { %v379_v35 = vmul.f32 %v533_v59, %v364_v27  ;;  %v380_v49 = vmul.f32 %v533_v59, %v365_v28  ;;  %v381_v36 = vmul.f32 %v533_v59, %v366_v25  ;;  %v382_v60 = vmul.f32 %v533_v59, %v367_v30 }
 0x144   :  { %v383_v38 = vmul.f32 %v533_v59, %v368_v41  ;;  %v390_v39 = vmul.f32 %v482_v2, %v371_v13  ;;  %v391_v40 = vmul.f32 %v482_v2, %v372_v18  ;;  %v392_v43 = vmul.f32 %v482_v2, %v373_v32 }
 0x145   :  { %v393_v44 = vmul.f32 %v482_v2, %v374_v26  ;;  %v394_v45 = vmul.f32 %v482_v2, %v375_v33  ;;  %v395_v46 = vmul.f32 %v482_v2, %v376_v31  ;;  %v396_v47 = vmul.f32 %v482_v2, %v377_v34 }
 0x146   :  { %v397_v50 = vmul.f32 %v482_v2, %v378_v42  ;;  %v398_v51 = vmul.f32 %v482_v2, %v379_v35  ;;  %v399_v52 = vmul.f32 %v482_v2, %v380_v49  ;;  %v400_v53 = vmul.f32 %v482_v2, %v381_v36 }
 0x147   :  { %v401_v54 = vmul.f32 %v482_v2, %v382_v60  ;;  %v402_v55 = vmul.f32 %v482_v2, %v383_v38  ;;  %v409_v56 = vadd.f32 %v483_v37, %v390_v39  ;;  %v410_v57 = vadd.f32 %v483_v37, %v391_v40 }
 0x148   :  { %v411_v58 = vadd.f32 %v483_v37, %v392_v43  ;;  %v412_v61 = vadd.f32 %v483_v37, %v393_v44  ;;  %v413_v62 = vadd.f32 %v483_v37, %v394_v45  ;;  %v414_v63 = vadd.f32 %v483_v37, %v395_v46 }
 0x149   :  { %v415_v0 = vadd.f32 %v483_v37, %v396_v47  ;;  %v416_v1 = vadd.f32 %v483_v37, %v397_v50  ;;  %v417_v3 = vadd.f32 %v483_v37, %v398_v51  ;;  %v418_v4 = vadd.f32 %v483_v37, %v399_v52 }
 0x14a   :  { %v419_v5 = vadd.f32 %v483_v37, %v400_v53  ;;  %v420_v6 = vadd.f32 %v483_v37, %v401_v54  ;;  %v421_v7 = vadd.f32 %v483_v37, %v402_v55  ;;  %v422_v8 = vmax.f32 %v409_v56, 0.0 }
 0x14b   :  { %v423_v9 = vmax.f32 %v410_v57, 0.0  ;;  %v424_v10 = vmax.f32 %v411_v58, 0.0  ;;  %v425_v11 = vmax.f32 %v412_v61, 0.0  ;;  %v426_v12 = vmax.f32 %v413_v62, 0.0 }
 0x14c   :  { %v427_v14 = vmax.f32 %v414_v63, 0.0  ;;  %v428_v15 = vmax.f32 %v415_v0, 0.0  ;;  %v429_v16 = vmax.f32 %v416_v1, 0.0  ;;  %v430_v17 = vmax.f32 %v417_v3, 0.0  ;;  %435 = vst.msk [vmem:[%s799_s4] sm:$0xff] %vm275_vm1, %v422_v8 }
 0x14d   :  { %v431_v19 = vmax.f32 %v418_v4, 0.0  ;;  %v432_v20 = vmax.f32 %v419_v5, 0.0  ;;  %v433_v21 = vmax.f32 %v420_v6, 0.0  ;;  %v434_v22 = vmax.f32 %v421_v7, 0.0  ;;  %436 = vst.msk [vmem:[%s799_s4 + $0x8] sm:$0xff] %vm275_vm1, %v423_v9  ;;  %437 = vst.msk [vmem:[%s799_s4 + $0x10] sm:$0xff] %vm275_vm1, %v424_v10 }
 0x14e   :  { %438 = vst.msk [vmem:[%s799_s4 + $0x18] sm:$0xff] %vm275_vm1, %v425_v11  ;;  %439 = vst.msk [vmem:[%s799_s4 + $0x20] sm:$0xff] %vm275_vm1, %v426_v12 }
 0x14f   :  { %440 = vst.msk [vmem:[%s799_s4 + $0x28] sm:$0xff] %vm275_vm1, %v427_v14  ;;  %441 = vst.msk [vmem:[%s799_s4 + $0x30] sm:$0xff] %vm275_vm1, %v428_v15 }
 0x150   :  { %442 = vst.msk [vmem:[%s799_s4 + $0x38] sm:$0xff] %vm275_vm1, %v429_v16  ;;  %443 = vst.msk [vmem:[%s799_s4 + $0x40] sm:$0xff] %vm275_vm1, %v430_v17 }
 0x151   :  { %444 = vst.msk [vmem:[%s799_s4 + $0x48] sm:$0xff] %vm275_vm1, %v431_v19  ;;  %445 = vst.msk [vmem:[%s799_s4 + $0x50] sm:$0xff] %vm275_vm1, %v432_v20 }
 0x152   :  { %446 = vst.msk [vmem:[%s799_s4 + $0x58] sm:$0xff] %vm275_vm1, %v433_v21  ;;  %447 = vst.msk [vmem:[%s799_s4 + $0x60] sm:$0xff] %vm275_vm1, %v434_v22 }

// kernel: _lambda_.23
= control target key start
LH: loop header
LB: loop body
LE: loop exit
PB: predicated region body
PF: predicated region fallthrough
CT: control target
= control target key end

     0   :  { %v860_v1 = vmov 0.0   ;;  %vm861_vm0 = vmmov 0   ;;  %vm288_vm1 = vcmask 261120   ;;  %s1180_s1 = inlined_call_operand.vmem [shape: bf16[288,32], index: 1, kind: input, shape index: {}]   ;;  %s1181_s0 = inlined_call_operand.vmem [shape: bf16[104,288], index: 0, kind: input, shape index: {}]   ;;  %s1182_s2 = inlined_call_operand.vmem [shape: f32[1,32], index: 2, kind: input, shape index: {}]   ;;  %s1183_s3 = inlined_call_operand.vmem [shape: f32[1,32], index: 3, kind: input, shape index: {}]   ;;  %s1184_s4 = inlined_call_operand.vmem [shape: f32[104,32], index: 4, kind: output, shape index: {}]  }
   0x1   :  { %v813_v0 = vld [vmem:[%s1180_s1 + $0x40] sm:$0xff]   ;;  %779 = vmatprep.subr.bf16.mxu1 %v860_v1  ;;  %783 = vmatprep.mubr.msk.bf16.mxu1 %vm861_vm0, %v860_v1  ;;  %v815_v3 = vld [vmem:[%s1180_s1 + $0x48] sm:$0xff]   ;;  %v817_v5 = vld [vmem:[%s1180_s1 + $0x50] sm:$0xff]  }
   0x2   :  { %v814_v2 = vld [vmem:[%s1180_s1] sm:$0xff]   ;;  %712 = vmatprep.subr.bf16.mxu0 %v813_v0  ;;  %v816_v4 = vld [vmem:[%s1180_s1 + $0x8] sm:$0xff]   ;;  %v818_v6 = vld [vmem:[%s1180_s1 + $0x10] sm:$0xff]  }
   0x3   :  { %713 = vmatpush3.bf16.msra.mxu0 %v814_v2  ;;  %v819_v7 = vld [vmem:[%s1180_s1 + $0x58] sm:$0xff]   ;;  %v821_v9 = vld [vmem:[%s1180_s1 + $0x60] sm:$0xff]   ;;  %v823_v12 = vld [vmem:[%s1180_s1 + $0x68] sm:$0xff]  }
   0x4   :  { %714 = vmatprep.subr.bf16.mxu0 %v815_v3  ;;  %v820_v8 = vld [vmem:[%s1180_s1 + $0x18] sm:$0xff]   ;;  %v827_v10 = vld [vmem:[%s1180_s1 + $0x80] sm:$0xff]   ;;  %v824_v13 = vld [vmem:[%s1180_s1 + $0x28] sm:$0xff]  }
   0x5   :  { %v822_v11 = vld [vmem:[%s1180_s1 + $0x20] sm:$0xff]   ;;  %780 = vmatpush3.bf16.msra.mxu1 %v827_v10  ;;  %v830_v14 = vld [vmem:[%s1180_s1 + $0x88] sm:$0xff]   ;;  %v825_v15 = vld [vmem:[%s1180_s1 + $0x70] sm:$0xff]  }
   0x6   :  { %781 = vmatprep.subr.bf16.mxu1 %v860_v1  ;;  %v833_v16 = vld [vmem:[%s1181_s0 + $0x4] ss:$12 sps:$4 sm:$0xff]   ;;  %v834_v17 = vld [vmem:[%s1181_s0 + $0x8] ss:$12 sps:$4 sm:$0xff]   ;;  %v828_v19 = vld [vmem:[%s1180_s1 + $0x78] sm:$0xff]  }
   0x7   :  { %715 = vmatpush3.bf16.msra.mxu0 %v816_v4  ;;  %342 = vmatprep.mubr.bf16.mxu0 %v833_v16  ;;  %v826_v18 = vld [vmem:[%s1180_s1 + $0x30] sm:$0xff]   ;;  %v829_v20 = vld [vmem:[%s1180_s1 + $0x38] sm:$0xff]   ;;  %v838_v21 = vld [vmem:[%s1181_s0 + $0x20] ss:$12 sps:$4 sm:$0xff]  }
   0x8   :  { %716 = vmatprep.subr.bf16.mxu0 %v817_v5  ;;  %v831_v22 = vld [vmem:[%s1181_s0] ss:$12 sps:$4 sm:$0xff]   ;;  %v835_v23 = vld [vmem:[%s1181_s0 + $0x1c] ss:$12 sps:$4 sm:$0xff]   ;;  %v842_v24 = vld [vmem:[%s1181_s0 + $0x38] ss:$12 sps:$4 sm:$0xff]  }
   0x9   :  { %782 = vmatpush3.bf16.msra.mxu1 %v830_v14  ;;  %v837_v25 = vld [vmem:[%s1181_s0 + $0x18] ss:$12 sps:$4 sm:$0xff]   ;;  %v839_v26 = vld [vmem:[%s1181_s0 + $0x34] ss:$12 sps:$4 sm:$0xff]   ;;  %v846_v27 = vld [vmem:[%s1181_s0 + $0x50] ss:$12 sps:$4 sm:$0xff]  }
   0xa   :  { %v841_v28 = vld [vmem:[%s1181_s0 + $0x30] ss:$12 sps:$4 sm:$0xff]   ;;  %v843_v29 = vld [vmem:[%s1181_s0 + $0x4c] ss:$12 sps:$4 sm:$0xff]   ;;  %v850_v30 = vld [vmem:[%s1181_s0 + $0x68] ss:$12 sps:$4 sm:$0xff]  }
   0xb   :  { %717 = vmatpush3.bf16.msra.mxu0 %v818_v6  ;;  %v845_v31 = vld [vmem:[%s1181_s0 + $0x48] ss:$12 sps:$4 sm:$0xff]   ;;  %v847_v32 = vld [vmem:[%s1181_s0 + $0x64] ss:$12 sps:$4 sm:$0xff]   ;;  %v854_v33 = vld [vmem:[%s1181_s0 + $0x80] ss:$12 sps:$4 sm:$0xff]  }
   0xc   :  { %718 = vmatprep.subr.bf16.mxu0 %v819_v7  ;;  %784 = vmatmul.mubr.msk.bf16.vlgmr.msra.gmra.mrb[0].mxu1 %vm288_vm1, %v834_v17  ;;  %v849_v34 = vld [vmem:[%s1181_s0 + $0x60] ss:$12 sps:$4 sm:$0xff]   ;;  %v851_v35 = vld [vmem:[%s1181_s0 + $0x7c] ss:$12 sps:$4 sm:$0xff]   ;;  %v857_v36 = vld [vmem:[%s1181_s0 + $0x98] ss:$0 sps:$4 sm:$0xff]  }
   0xd   :  { %787 = vmatprep.mubr.msk.bf16.mxu1 %vm861_vm0, %v860_v1  ;;  %v42_v37 = vld [vmem:[%s1181_s0 + $0x90] sm:$0xff]  ;;  %v853_v38 = vld [vmem:[%s1181_s0 + $0x78] ss:$12 sps:$4 sm:$0xff]  }
   0xe   :  { %v683_v39 = vcombine.high %v42_v37, %v42_v37  ;;  %v682_v40 = vcombine.low %v42_v37, %v42_v37 }
   0xf   :  { %719 = vmatpush3.bf16.msra.mxu0 %v820_v8 }
  0x10   :  { %720 = vmatprep.subr.bf16.mxu0 %v821_v9 }
  0x13   :  { %721 = vmatpush3.bf16.msra.mxu0 %v822_v11 }
  0x14   :  { %722 = vmatprep.subr.bf16.mxu0 %v823_v12  ;;  %788 = vmatmul.mubr.msk.bf16.gmra.mrb[4].mxu1 %vm288_vm1, %v838_v21 }
  0x15   :  { %791 = vmatprep.mubr.msk.bf16.mxu1 %vm861_vm0, %v860_v1 }
  0x17   :  { %723 = vmatpush3.bf16.msra.mxu0 %v824_v13 }
  0x18   :  { %724 = vmatprep.subr.bf16.mxu0 %v825_v15 }
  0x1b   :  { %725 = vmatpush3.bf16.msra.mxu0 %v826_v18 }
  0x1c   :  { %726 = vmatprep.subr.bf16.mxu0 %v828_v19  ;;  %792 = vmatmul.mubr.msk.bf16.gmra.mrb[8].mxu1 %vm288_vm1, %v842_v24 }
  0x1d   :  { %795 = vmatprep.mubr.msk.bf16.mxu1 %vm861_vm0, %v860_v1 }
  0x1f   :  { %727 = vmatpush3.bf16.msra.mxu0 %v829_v20 }
  0x22   :  { %343 = vmatmul.mubr.bf16.vlgmr.msra.gmra.mrb[0].mxu0 %v831_v22 }
  0x23   :  { %350 = vmatprep.mubr.bf16.mxu0 %v835_v23 }
  0x24   :  { %796 = vmatmul.mubr.msk.bf16.gmra.mrb[12].mxu1 %vm288_vm1, %v846_v27 }
  0x25   :  { %799 = vmatprep.mubr.msk.bf16.mxu1 %vm861_vm0, %v860_v1 }
  0x2a   :  { %351 = vmatmul.mubr.bf16.gmra.mrb[4].mxu0 %v837_v25 }
  0x2b   :  { %358 = vmatprep.mubr.bf16.mxu0 %v839_v26 }
  0x2c   :  { %800 = vmatmul.mubr.msk.bf16.gmra.mrb[16].mxu1 %vm288_vm1, %v850_v30 }
  0x2d   :  { %803 = vmatprep.mubr.msk.bf16.mxu1 %vm861_vm0, %v860_v1 }
  0x32   :  { %359 = vmatmul.mubr.bf16.gmra.mrb[8].mxu0 %v841_v28 }
  0x33   :  { %366 = vmatprep.mubr.bf16.mxu0 %v843_v29 }
  0x34   :  { %804 = vmatmul.mubr.msk.bf16.gmra.mrb[20].mxu1 %vm288_vm1, %v854_v33 }
  0x35   :  { %807 = vmatprep.mubr.msk.bf16.mxu1 %vm861_vm0, %v860_v1 }
  0x3a   :  { %367 = vmatmul.mubr.bf16.gmra.mrb[12].mxu0 %v845_v31 }
  0x3b   :  { %374 = vmatprep.mubr.bf16.mxu0 %v847_v32 }
  0x3c   :  { %808 = vmatmul.mubr.msk.bf16.gmra.mrb[24].mxu1 %vm288_vm1, %v857_v36 }
  0x42   :  { %375 = vmatmul.mubr.bf16.gmra.mrb[16].mxu0 %v849_v34 }
  0x43   :  { %382 = vmatprep.mubr.bf16.mxu0 %v851_v35 }
  0x4a   :  { %383 = vmatmul.mubr.bf16.gmra.mrb[20].mxu0 %v853_v38 }
  0x4b   :  { %390 = vmatprep.mubr.bf16.mxu0 %v683_v39 }
  0x52   :  { %391 = vmatmul.mubr.bf16.gmra.mrb[24].mxu0 %v682_v40 }
  0xdf   :  { %v432_v41 = vpop.f32.mrb[0].mxu1 }
  0xe0   :  { %v785_v42 = vpop.f32.mrb[1].mxu1 }
  0xe1   :  { %v435_v43 = vpop.f32.mrb[2].mxu1 }
  0xe2   :  { %v786_v44 = vpop.f32.mrb[3].mxu1 }
  0xe7   :  { %v440_v45 = vpop.f32.mrb[4].mxu1 }
  0xe8   :  { %v789_v46 = vpop.f32.mrb[5].mxu1 }
  0xe9   :  { %v443_v47 = vpop.f32.mrb[6].mxu1 }
  0xea   :  { %v790_v49 = vpop.f32.mrb[7].mxu1 }
  0xef   :  { %v448_v56 = vpop.f32.mrb[8].mxu1 }
  0xf0   :  { %v793_v59 = vpop.f32.mrb[9].mxu1 }
  0xf1   :  { %v451_v60 = vpop.f32.mrb[10].mxu1 }
  0xf2   :  { %v794_v1 = vpop.f32.mrb[11].mxu1 }
  0xf5   :  { %v728_v48 = vpop.f32.mrb[0].mxu0 }
  0xf6   :  { %v729_v50 = vpop.f32.mrb[1].mxu0 }
  0xf7   :  { %v730_v51 = vadd.f32 %v729_v50, %v728_v48  ;;  %v731_v52 = vpop.f32.mrb[2].mxu0  ;;  %v456_v12 = vpop.f32.mrb[12].mxu1 }
  0xf8   :  { %v732_v53 = vpop.f32.mrb[3].mxu0  ;;  %v797_v16 = vpop.f32.mrb[13].mxu1 }
  0xf9   :  { %v1024_v54 = vadd.f32 %v730_v51, %v432_v41  ;;  %v733_v55 = vadd.f32 %v732_v53, %v731_v52  ;;  %v459_v18 = vpop.f32.mrb[14].mxu1 }
  0xfa   :  { %v798_v23 = vpop.f32.mrb[15].mxu1 }
  0xfb   :  { %v520_v57 = vmul.f32 %v1024_v54, %v1024_v54  ;;  %v1028_v58 = vadd.f32 %v733_v55, %v435_v43  ;;  %v488_v61 = vsel %vm288_vm1, %v1024_v54, 0.0 }
  0xfd   :  { %v489_v62 = vsel %vm288_vm1, %v1028_v58, 0.0  ;;  %v521_v63 = vmul.f32 %v1028_v58, %v1028_v58  ;;  %v734_v0 = vpop.f32.mrb[4].mxu0  ;;  %v533_v4 = vsel %vm288_vm1, %v520_v57, 0.0 }
  0xfe   :  { %v490_v2 = vadd.f32 %v489_v62, %v488_v61  ;;  %v735_v3 = vpop.f32.mrb[5].mxu0 }
  0xff   :  { %v534_v5 = vsel %vm288_vm1, %v521_v63, 0.0  ;;  %v736_v6 = vadd.f32 %v735_v3, %v734_v0  ;;  %v737_v7 = vpop.f32.mrb[6].mxu0  ;;  %v464_v34 = vpop.f32.mrb[16].mxu1 }
 0x100   :  { %v535_v8 = vadd.f32 %v534_v5, %v533_v4  ;;  %v738_v9 = vpop.f32.mrb[7].mxu0  ;;  %v801_v38 = vpop.f32.mrb[17].mxu1 }
 0x101   :  { %v1038_v10 = vadd.f32 %v736_v6, %v440_v45  ;;  %v739_v11 = vadd.f32 %v738_v9, %v737_v7  ;;  %v467_v40 = vpop.f32.mrb[18].mxu1 }
 0x102   :  { %v802_v45 = vpop.f32.mrb[19].mxu1 }
 0x103   :  { %v491_v13 = vsel %vm288_vm1, %v1038_v10, 0.0  ;;  %v522_v14 = vmul.f32 %v1038_v10, %v1038_v10  ;;  %v1044_v15 = vadd.f32 %v739_v11, %v443_v47 }
 0x104   :  { %v492_v17 = vadd.f32 %v491_v13, %v490_v2 }
 0x105   :  { %v536_v19 = vsel %vm288_vm1, %v522_v14, 0.0  ;;  %v493_v20 = vsel %vm288_vm1, %v1044_v15, 0.0  ;;  %v523_v21 = vmul.f32 %v1044_v15, %v1044_v15  ;;  %v740_v22 = vpop.f32.mrb[8].mxu0 }
 0x106   :  { %v537_v24 = vadd.f32 %v536_v19, %v535_v8  ;;  %v494_v25 = vadd.f32 %v493_v20, %v492_v17  ;;  %v741_v26 = vpop.f32.mrb[9].mxu0 }
 0x107   :  { %v538_v27 = vsel %vm288_vm1, %v523_v21, 0.0  ;;  %v742_v28 = vadd.f32 %v741_v26, %v740_v22  ;;  %v743_v29 = vpop.f32.mrb[10].mxu0  ;;  %v472_v57 = vpop.f32.mrb[20].mxu1 }
 0x108   :  { %v539_v30 = vadd.f32 %v538_v27, %v537_v24  ;;  %v744_v31 = vpop.f32.mrb[11].mxu0  ;;  %v805_v62 = vpop.f32.mrb[21].mxu1 }
 0x109   :  { %v1052_v32 = vadd.f32 %v742_v28, %v448_v56  ;;  %v745_v33 = vadd.f32 %v744_v31, %v743_v29  ;;  %v475_v0 = vpop.f32.mrb[22].mxu1 }
 0x10a   :  { %v806_v5 = vpop.f32.mrb[23].mxu1 }
 0x10b   :  { %v495_v35 = vsel %vm288_vm1, %v1052_v32, 0.0  ;;  %v524_v36 = vmul.f32 %v1052_v32, %v1052_v32  ;;  %v1058_v37 = vadd.f32 %v745_v33, %v451_v60 }
 0x10c   :  { %v496_v39 = vadd.f32 %v495_v35, %v494_v25 }
 0x10d   :  { %v540_v41 = vsel %vm288_vm1, %v524_v36, 0.0  ;;  %v497_v42 = vsel %vm288_vm1, %v1058_v37, 0.0  ;;  %v525_v43 = vmul.f32 %v1058_v37, %v1058_v37  ;;  %v746_v44 = vpop.f32.mrb[12].mxu0 }
 0x10e   :  { %v541_v46 = vadd.f32 %v540_v41, %v539_v30  ;;  %v498_v47 = vadd.f32 %v497_v42, %v496_v39  ;;  %v747_v48 = vpop.f32.mrb[13].mxu0 }
 0x10f   :  { %v542_v49 = vsel %vm288_vm1, %v525_v43, 0.0  ;;  %v748_v50 = vadd.f32 %v747_v48, %v746_v44  ;;  %v749_v51 = vpop.f32.mrb[14].mxu0 }
 0x110   :  { %v543_v52 = vadd.f32 %v542_v49, %v541_v46  ;;  %v750_v53 = vpop.f32.mrb[15].mxu0 }
 0x111   :  { %v1066_v55 = vadd.f32 %v748_v50, %v456_v12  ;;  %v751_v56 = vadd.f32 %v750_v53, %v749_v51 }
 0x113   :  { %v499_v59 = vsel %vm288_vm1, %v1066_v55, 0.0  ;;  %v526_v60 = vmul.f32 %v1066_v55, %v1066_v55  ;;  %v1072_v61 = vadd.f32 %v751_v56, %v459_v18  ;;  %v480_v18 = vpop.f32.mrb[24].mxu1 }
 0x114   :  { %v500_v63 = vadd.f32 %v499_v59, %v498_v47  ;;  %v809_v22 = vpop.f32.mrb[25].mxu1 }
 0x115   :  { %v544_v1 = vsel %vm288_vm1, %v526_v60, 0.0  ;;  %v501_v2 = vsel %vm288_vm1, %v1072_v61, 0.0  ;;  %v527_v3 = vmul.f32 %v1072_v61, %v1072_v61  ;;  %v752_v4 = vpop.f32.mrb[16].mxu0  ;;  %v483_v24 = vpop.f32.mrb[26].mxu1 }
 0x116   :  { %v545_v6 = vadd.f32 %v544_v1, %v543_v52  ;;  %v502_v7 = vadd.f32 %v501_v2, %v500_v63  ;;  %v753_v8 = vpop.f32.mrb[17].mxu0  ;;  %v810_v29 = vpop.f32.mrb[27].mxu1 }
 0x117   :  { %v546_v9 = vsel %vm288_vm1, %v527_v3, 0.0  ;;  %v754_v11 = vadd.f32 %v753_v8, %v752_v4  ;;  %v755_v12 = vpop.f32.mrb[18].mxu0 }
 0x118   :  { %v547_v13 = vadd.f32 %v546_v9, %v545_v6  ;;  %v756_v14 = vpop.f32.mrb[19].mxu0 }
 0x119   :  { %v1080_v16 = vadd.f32 %v754_v11, %v464_v34  ;;  %v757_v17 = vadd.f32 %v756_v14, %v755_v12 }
 0x11b   :  { %v503_v19 = vsel %vm288_vm1, %v1080_v16, 0.0  ;;  %v528_v20 = vmul.f32 %v1080_v16, %v1080_v16  ;;  %v1086_v21 = vadd.f32 %v757_v17, %v467_v40 }
 0x11c   :  { %v504_v23 = vadd.f32 %v503_v19, %v502_v7 }
 0x11d   :  { %v548_v25 = vsel %vm288_vm1, %v528_v20, 0.0  ;;  %v505_v26 = vsel %vm288_vm1, %v1086_v21, 0.0  ;;  %v529_v27 = vmul.f32 %v1086_v21, %v1086_v21  ;;  %v758_v28 = vpop.f32.mrb[20].mxu0 }
 0x11e   :  { %v549_v30 = vadd.f32 %v548_v25, %v547_v13  ;;  %v506_v31 = vadd.f32 %v505_v26, %v504_v23  ;;  %v759_v33 = vpop.f32.mrb[21].mxu0 }
 0x11f   :  { %v550_v34 = vsel %vm288_vm1, %v529_v27, 0.0  ;;  %v760_v35 = vadd.f32 %v759_v33, %v758_v28  ;;  %v761_v36 = vpop.f32.mrb[22].mxu0 }
 0x120   :  { %v551_v38 = vadd.f32 %v550_v34, %v549_v30  ;;  %v762_v39 = vpop.f32.mrb[23].mxu0 }
 0x121   :  { %v1094_v40 = vadd.f32 %v760_v35, %v472_v57  ;;  %v763_v41 = vadd.f32 %v762_v39, %v761_v36 }
 0x123   :  { %v507_v42 = vsel %vm288_vm1, %v1094_v40, 0.0  ;;  %v530_v43 = vmul.f32 %v1094_v40, %v1094_v40  ;;  %v1100_v44 = vadd.f32 %v763_v41, %v475_v0 }
 0x124   :  { %v508_v45 = vadd.f32 %v507_v42, %v506_v31 }
 0x125   :  { %v552_v46 = vsel %vm288_vm1, %v530_v43, 0.0  ;;  %v509_v47 = vsel %vm288_vm1, %v1100_v44, 0.0  ;;  %v531_v48 = vmul.f32 %v1100_v44, %v1100_v44  ;;  %v764_v49 = vpop.f32.mrb[24].mxu0 }
 0x126   :  { %v553_v50 = vadd.f32 %v552_v46, %v551_v38  ;;  %v510_v51 = vadd.f32 %v509_v47, %v508_v45  ;;  %v765_v52 = vpop.f32.mrb[25].mxu0  ;;  %v711_v45 = vld [vmem:[%s1183_s3] ss:$0 sm:$0xff] }
 0x127   :  { %v554_v53 = vsel %vm288_vm1, %v531_v48, 0.0  ;;  %v766_v56 = vadd.f32 %v765_v52, %v764_v49  ;;  %v767_v57 = vpop.f32.mrb[26].mxu0 }
 0x128   :  { %v555_v59 = vadd.f32 %v554_v53, %v553_v50  ;;  %v768_v60 = vpop.f32.mrb[27].mxu0 }
 0x129   :  { %v481_v62 = vadd.f32 %v766_v56, %v480_v18 }
 0x12b   :  { %v511_v63 = vsel %vm288_vm1, %v481_v62, 0.0  ;;  %v532_v0 = vmul.f32 %v481_v62, %v481_v62 }
 0x12c   :  { %v512_v1 = vadd.f32 %v511_v63, %v510_v51 }
 0x12d   :  { %v556_v2 = vsel %vm288_vm1, %v532_v0, 0.0 }
 0x12e   :  { %v513_v3 = vrot.slane %v512_v1, 4  ;;  %v557_v4 = vadd.f32 %v556_v2, %v555_v59 }
 0x130   :  { %v514_v5 = vadd.f32 %v513_v3, %v512_v1  ;;  %v558_v6 = vrot.slane %v557_v4, 4 }
 0x132   :  { %v515_v7 = vrot.slane %v514_v5, 2  ;;  %v559_v8 = vadd.f32 %v558_v6, %v557_v4 }
 0x134   :  { %v516_v9 = vadd.f32 %v515_v7, %v514_v5  ;;  %v560_v11 = vrot.slane %v559_v8, 2 }
 0x136   :  { %v517_v12 = vrot.slane %v516_v9, 1  ;;  %v561_v13 = vadd.f32 %v560_v11, %v559_v8 }
 0x138   :  { %v518_v14 = vadd.f32 %v517_v12, %v516_v9  ;;  %v562_v17 = vrot.slane %v561_v13, 1 }
 0x13a   :  { %v519_v19 = vmul.f32 0.010204081, %v518_v14  ;;  %v563_v18 = vadd.f32 %v562_v17, %v561_v13 }
 0x13c   :  { %v564_v20 = vmul.f32 0.010204081, %v563_v18  ;;  %v565_v22 = vmul.f32 %v519_v19, %v519_v19  ;;  %v568_v23 = vsub.f32 %v1024_v54, %v519_v19  ;;  %v569_v24 = vsub.f32 %v1028_v58, %v519_v19 }
 0x13d   :  { %v570_v25 = vsub.f32 %v1038_v10, %v519_v19  ;;  %v571_v26 = vsub.f32 %v1044_v15, %v519_v19  ;;  %v572_v27 = vsub.f32 %v1052_v32, %v519_v19  ;;  %v573_v28 = vsub.f32 %v1058_v37, %v519_v19  ;;  %v710_v37 = vld [vmem:[%s1182_s2] ss:$0 sm:$0xff] }
 0x13e   :  { %v566_v29 = vsub.f32 %v564_v20, %v565_v22  ;;  %v574_v30 = vsub.f32 %v1066_v55, %v519_v19  ;;  %v575_v31 = vsub.f32 %v1072_v61, %v519_v19  ;;  %v576_v33 = vsub.f32 %v1080_v16, %v519_v19 }
 0x13f   :  { %v577_v34 = vsub.f32 %v1086_v21, %v519_v19  ;;  %v578_v54 = vsub.f32 %v1094_v40, %v519_v19  ;;  %v579_v58 = vsub.f32 %v1100_v44, %v519_v19  ;;  %v580_v10 = vsub.f32 %v481_v62, %v519_v19 }
 0x140   :  { %v567_v35 = vmax.f32 %v566_v29, 0.0 }
 0x142   :  { %v581_v15 = vadd.f32 1e-05, %v567_v35 }
 0x144   :  { %858 = vrsqrt.f32 %v581_v15 }
 0x14e   :  { %v859_v32 = vpop.eup %858 }
 0x14f   :  { %v583_v55 = vmul.f32 %v859_v32, %v568_v23  ;;  %v584_v36 = vmul.f32 %v859_v32, %v569_v24  ;;  %v585_v61 = vmul.f32 %v859_v32, %v570_v25  ;;  %v586_v38 = vmul.f32 %v859_v32, %v571_v26 }
 0x150   :  { %v587_v16 = vmul.f32 %v859_v32, %v572_v27  ;;  %v588_v39 = vmul.f32 %v859_v32, %v573_v28  ;;  %v589_v21 = vmul.f32 %v859_v32, %v574_v30  ;;  %v590_v41 = vmul.f32 %v859_v32, %v575_v31 }
 0x151   :  { %v591_v40 = vmul.f32 %v859_v32, %v576_v33  ;;  %v592_v42 = vmul.f32 %v859_v32, %v577_v34  ;;  %v593_v43 = vmul.f32 %v859_v32, %v578_v54  ;;  %v594_v44 = vmul.f32 %v859_v32, %v579_v58 }
 0x152   :  { %v595_v46 = vmul.f32 %v859_v32, %v580_v10  ;;  %v602_v47 = vmul.f32 %v710_v37, %v583_v55  ;;  %v603_v48 = vmul.f32 %v710_v37, %v584_v36  ;;  %v604_v49 = vmul.f32 %v710_v37, %v585_v61 }
 0x153   :  { %v605_v50 = vmul.f32 %v710_v37, %v586_v38  ;;  %v606_v51 = vmul.f32 %v710_v37, %v587_v16  ;;  %v607_v52 = vmul.f32 %v710_v37, %v588_v39  ;;  %v608_v53 = vmul.f32 %v710_v37, %v589_v21 }
 0x154   :  { %v609_v56 = vmul.f32 %v710_v37, %v590_v41  ;;  %v610_v57 = vmul.f32 %v710_v37, %v591_v40  ;;  %v611_v59 = vmul.f32 %v710_v37, %v592_v42  ;;  %v612_v60 = vmul.f32 %v710_v37, %v593_v43 }
 0x155   :  { %v613_v62 = vmul.f32 %v710_v37, %v594_v44  ;;  %v614_v63 = vmul.f32 %v710_v37, %v595_v46  ;;  %v621_v0 = vadd.f32 %v711_v45, %v602_v47  ;;  %v622_v1 = vadd.f32 %v711_v45, %v603_v48 }
 0x156   :  { %v623_v2 = vadd.f32 %v711_v45, %v604_v49  ;;  %v624_v3 = vadd.f32 %v711_v45, %v605_v50  ;;  %v625_v4 = vadd.f32 %v711_v45, %v606_v51  ;;  %v626_v5 = vadd.f32 %v711_v45, %v607_v52 }
 0x157   :  { %v627_v6 = vadd.f32 %v711_v45, %v608_v53  ;;  %v628_v7 = vadd.f32 %v711_v45, %v609_v56  ;;  %v629_v8 = vadd.f32 %v711_v45, %v610_v57  ;;  %v630_v9 = vadd.f32 %v711_v45, %v611_v59 }
 0x158   :  { %v631_v11 = vadd.f32 %v711_v45, %v612_v60  ;;  %v632_v12 = vadd.f32 %v711_v45, %v613_v62  ;;  %v633_v13 = vadd.f32 %v711_v45, %v614_v63  ;;  %v634_v14 = vmax.f32 %v621_v0, 0.0 }
 0x159   :  { %v635_v17 = vmax.f32 %v622_v1, 0.0  ;;  %v636_v19 = vmax.f32 %v623_v2, 0.0  ;;  %v637_v18 = vmax.f32 %v624_v3, 0.0  ;;  %v638_v20 = vmax.f32 %v625_v4, 0.0 }
 0x15a   :  { %v639_v22 = vmax.f32 %v626_v5, 0.0  ;;  %v640_v23 = vmax.f32 %v627_v6, 0.0  ;;  %v641_v24 = vmax.f32 %v628_v7, 0.0  ;;  %v642_v25 = vmax.f32 %v629_v8, 0.0  ;;  %647 = vst.msk [vmem:[%s1184_s4] sm:$0xff] %vm288_vm1, %v634_v14 }
 0x15b   :  { %v643_v26 = vmax.f32 %v630_v9, 0.0  ;;  %v644_v27 = vmax.f32 %v631_v11, 0.0  ;;  %v645_v28 = vmax.f32 %v632_v12, 0.0  ;;  %v646_v29 = vmax.f32 %v633_v13, 0.0  ;;  %648 = vst.msk [vmem:[%s1184_s4 + $0x8] sm:$0xff] %vm288_vm1, %v635_v17  ;;  %649 = vst.msk [vmem:[%s1184_s4 + $0x10] sm:$0xff] %vm288_vm1, %v636_v19 }
 0x15c   :  { %650 = vst.msk [vmem:[%s1184_s4 + $0x18] sm:$0xff] %vm288_vm1, %v637_v18  ;;  %651 = vst.msk [vmem:[%s1184_s4 + $0x20] sm:$0xff] %vm288_vm1, %v638_v20 }
 0x15d   :  { %652 = vst.msk [vmem:[%s1184_s4 + $0x28] sm:$0xff] %vm288_vm1, %v639_v22  ;;  %653 = vst.msk [vmem:[%s1184_s4 + $0x30] sm:$0xff] %vm288_vm1, %v640_v23 }
 0x15e   :  { %654 = vst.msk [vmem:[%s1184_s4 + $0x38] sm:$0xff] %vm288_vm1, %v641_v24  ;;  %655 = vst.msk [vmem:[%s1184_s4 + $0x40] sm:$0xff] %vm288_vm1, %v642_v25 }
 0x15f   :  { %656 = vst.msk [vmem:[%s1184_s4 + $0x48] sm:$0xff] %vm288_vm1, %v643_v26  ;;  %657 = vst.msk [vmem:[%s1184_s4 + $0x50] sm:$0xff] %vm288_vm1, %v644_v27 }
 0x160   :  { %658 = vst.msk [vmem:[%s1184_s4 + $0x58] sm:$0xff] %vm288_vm1, %v645_v28  ;;  %659 = vst.msk [vmem:[%s1184_s4 + $0x60] sm:$0xff] %vm288_vm1, %v646_v29 }

// kernel: _lambda_.22
= control target key start
LH: loop header
LB: loop body
LE: loop exit
PB: predicated region body
PF: predicated region fallthrough
CT: control target
= control target key end

     0   :  { %v1266_v0 = vmov 0.0   ;;  %vm1267_vm0 = vmmov 0   ;;  %vm300_vm1 = vcmask 261120   ;;  %vm700_vm2 = vcmask 130048   ;;  %s1837_s1 = inlined_call_operand.vmem [shape: bf16[288,32], index: 1, kind: input, shape index: {}]   ;;  %s1838_s0 = inlined_call_operand.vmem [shape: bf16[104,288], index: 0, kind: input, shape index: {}]   ;;  %s1839_s5 = inlined_call_operand.vmem [shape: bf16[16,32], index: 5, kind: input, shape index: {}]   ;;  %s1840_s4 = inlined_call_operand.vmem [shape: bf16[104,16], index: 4, kind: input, shape index: {}]   ;;  %s1841_s6 = inlined_call_operand.vmem [shape: f32[1,32], index: 6, kind: input, shape index: {}, may-alias: {2,6}]   ;;  %s1842_s7 = inlined_call_operand.vmem [shape: f32[1,32], index: 7, kind: input, shape index: {}, may-alias: {3,7}]   ;;  %s1843_s2 = inlined_call_operand.vmem [shape: f32[1,32], index: 2, kind: input, shape index: {}, may-alias: {2,6}]   ;;  %s1844_s3 = inlined_call_operand.vmem [shape: f32[1,32], index: 3, kind: input, shape index: {}, may-alias: {3,7}]   ;;  %s1845_s8 = inlined_call_operand.vmem [shape: f32[104,32], index: 8, kind: output, shape index: {}]  }
   0x1   :  { %1203 = vmatprep.subr.bf16.mxu1 %v1266_v0  ;;  %v1209_v1 = vld [vmem:[%s1837_s1 + $0x40] sm:$0xff]   ;;  %1153 = vmatprep.mubr.msk.bf16.mxu1 %vm1267_vm0, %v1266_v0  ;;  %v1212_v4 = vld [vmem:[%s1837_s1 + $0x48] sm:$0xff]   ;;  %v1216_v8 = vld [vmem:[%s1837_s1 + $0x50] sm:$0xff]  }
   0x2   :  { %v1210_v2 = vld [vmem:[%s1837_s1 + $0x80] sm:$0xff]   ;;  %1066 = vmatprep.subr.bf16.mxu0 %v1209_v1  ;;  %v1213_v5 = vld [vmem:[%s1837_s1 + $0x88] sm:$0xff]   ;;  %v1217_v9 = vld [vmem:[%s1837_s1 + $0x10] sm:$0xff]  }
   0x3   :  { %v1211_v3 = vld [vmem:[%s1837_s1] sm:$0xff]   ;;  %1205 = vmatpush3.bf16.msra.mxu1 %v1210_v2  ;;  %v1214_v6 = vld [vmem:[%s1837_s1 + $0x8] sm:$0xff]   ;;  %v1218_v10 = vld [vmem:[%s1837_s1 + $0x58] sm:$0xff]  }
   0x4   :  { %1067 = vmatpush3.bf16.msra.mxu0 %v1211_v3  ;;  %1204 = vmatprep.subr.bf16.mxu1 %v1266_v0  ;;  %v1215_v7 = vld [vmem:[%s1838_s0 + $0x38] ss:$12 sps:$4 sm:$0xff]   ;;  %v1220_v13 = vld [vmem:[%s1838_s0 + $0x50] ss:$12 sps:$4 sm:$0xff]   ;;  %v1223_v15 = vld [vmem:[%s1837_s1 + $0x68] sm:$0xff]  }
   0x5   :  { %1068 = vmatprep.subr.bf16.mxu0 %v1212_v4  ;;  %v1219_v11 = vld [vmem:[%s1837_s1 + $0x18] sm:$0xff]   ;;  %v1221_v12 = vld [vmem:[%s1837_s1 + $0x60] sm:$0xff]   ;;  %v1224_v16 = vld [vmem:[%s1837_s1 + $0x28] sm:$0xff]  }
   0x6   :  { %v1222_v14 = vld [vmem:[%s1837_s1 + $0x20] sm:$0xff]   ;;  %v1225_v17 = vld [vmem:[%s1838_s0 + $0x68] ss:$12 sps:$4 sm:$0xff]   ;;  %v1228_v22 = vld [vmem:[%s1837_s1 + $0x78] sm:$0xff]  }
   0x7   :  { %1206 = vmatpush3.bf16.msra.mxu1 %v1213_v5  ;;  %v1226_v18 = vld [vmem:[%s1837_s1 + $0x70] sm:$0xff]   ;;  %v1234_v21 = vld [vmem:[%s1839_s5] sm:$0xff]   ;;  %v1229_v23 = vld [vmem:[%s1837_s1 + $0x38] sm:$0xff]  }
   0x8   :  { %1069 = vmatpush3.bf16.msra.mxu0 %v1214_v6  ;;  %1173 = vmatprep.subr.bf16.mxu1 %v1266_v0  ;;  %v1232_v19 = vld [vmem:[%s1838_s0 + $0x4] ss:$12 sps:$4 sm:$0xff]   ;;  %v1233_v24 = vld [vmem:[%s1838_s0 + $0x80] ss:$12 sps:$4 sm:$0xff]   ;;  %v1235_v26 = vld [vmem:[%s1838_s0 + $0x1c] ss:$12 sps:$4 sm:$0xff]  }
   0x9   :  { %1070 = vmatprep.subr.bf16.mxu0 %v1216_v8  ;;  %v1227_v20 = vld [vmem:[%s1837_s1 + $0x30] sm:$0xff]   ;;  %354 = vmatprep.mubr.bf16.mxu0 %v1232_v19  ;;  %v1230_v25 = vld [vmem:[%s1838_s0] ss:$12 sps:$4 sm:$0xff]   ;;  %v1237_v27 = vld [vmem:[%s1838_s0 + $0x98] ss:$0 sps:$4 sm:$0xff]  }
   0xa   :  { %1154 = vmatmul.mubr.msk.bf16.vlgmr.msra.gmra.mrb[0].mxu1 %vm300_vm1, %v1215_v7  ;;  %v1238_v28 = vld [vmem:[%s1838_s0 + $0x18] ss:$12 sps:$4 sm:$0xff]   ;;  %v1239_v29 = vld [vmem:[%s1838_s0 + $0x34] ss:$12 sps:$4 sm:$0xff]   ;;  %v1242_v31 = vld [vmem:[%s1838_s0 + $0x30] ss:$12 sps:$4 sm:$0xff]  }
   0xb   :  { %1157 = vmatprep.mubr.msk.bf16.mxu1 %vm1267_vm0, %v1266_v0  ;;  %1174 = vmatpush3.bf16.msra.mxu1 %v1234_v21  ;;  %v1241_v30 = vld [vmem:[%s1840_s4] sm:$0xff]   ;;  %v1243_v32 = vld [vmem:[%s1838_s0 + $0x4c] ss:$12 sps:$4 sm:$0xff]   ;;  %v1246_v34 = vld [vmem:[%s1838_s0 + $0x48] ss:$12 sps:$4 sm:$0xff]  }
   0xc   :  { %1071 = vmatpush3.bf16.msra.mxu0 %v1217_v9  ;;  %v1245_v33 = vld [vmem:[%s1840_s4 + $0x8] sm:$0xff]   ;;  %v1247_v35 = vld [vmem:[%s1838_s0 + $0x64] ss:$12 sps:$4 sm:$0xff]   ;;  %v1253_v40 = vld [vmem:[%s1840_s4 + $0x18] sm:$0xff]  }
   0xd   :  { %1072 = vmatprep.subr.bf16.mxu0 %v1218_v10  ;;  %v1249_v36 = vld [vmem:[%s1840_s4 + $0x10] sm:$0xff]   ;;  %v1250_v37 = vld [vmem:[%s1838_s0 + $0x60] ss:$12 sps:$4 sm:$0xff]   ;;  %v1251_v38 = vld [vmem:[%s1838_s0 + $0x7c] ss:$12 sps:$4 sm:$0xff]  }
   0xe   :  { %v54_v39 = vld [vmem:[%s1838_s0 + $0x90] sm:$0xff]  ;;  %v1254_v41 = vld [vmem:[%s1838_s0 + $0x78] ss:$12 sps:$4 sm:$0xff]   ;;  %v1258_v45 = vld [vmem:[%s1840_s4 + $0x28] sm:$0xff]  }
   0xf   :  { %v1020_v42 = vcombine.high %v54_v39, %v54_v39  ;;  %v1256_v43 = vld [vmem:[%s1840_s4 + $0x20] sm:$0xff]   ;;  %v1019_v44 = vcombine.low %v54_v39, %v54_v39  ;;  %v1259_v46 = vld [vmem:[%s1838_s0 + $0x8] ss:$12 sps:$4 sm:$0xff]   ;;  %v1260_v47 = vld [vmem:[%s1840_s4 + $0x30] ss:$0 sps:$4 sm:$0xff]  }
  0x10   :  { %1073 = vmatpush3.bf16.msra.mxu0 %v1219_v11  ;;  %v1261_v48 = vld [vmem:[%s1838_s0 + $0x20] ss:$12 sps:$4 sm:$0xff]  }
  0x11   :  { %1074 = vmatprep.subr.bf16.mxu0 %v1221_v12 }
  0x12   :  { %1158 = vmatmul.mubr.msk.bf16.gmra.mrb[4].mxu1 %vm300_vm1, %v1220_v13 }
  0x13   :  { %1161 = vmatprep.mubr.msk.bf16.mxu1 %vm1267_vm0, %v1266_v0 }
  0x14   :  { %1075 = vmatpush3.bf16.msra.mxu0 %v1222_v14 }
  0x15   :  { %1076 = vmatprep.subr.bf16.mxu0 %v1223_v15 }
  0x18   :  { %1077 = vmatpush3.bf16.msra.mxu0 %v1224_v16 }
  0x19   :  { %1078 = vmatprep.subr.bf16.mxu0 %v1226_v18 }
  0x1a   :  { %1162 = vmatmul.mubr.msk.bf16.gmra.mrb[8].mxu1 %vm300_vm1, %v1225_v17 }
  0x1b   :  { %1165 = vmatprep.mubr.msk.bf16.mxu1 %vm1267_vm0, %v1266_v0 }
  0x1c   :  { %1079 = vmatpush3.bf16.msra.mxu0 %v1227_v20 }
  0x1d   :  { %1080 = vmatprep.subr.bf16.mxu0 %v1228_v22 }
  0x20   :  { %1081 = vmatpush3.bf16.msra.mxu0 %v1229_v23 }
  0x21   :  { %1141 = vmatprep.subr.bf16.mxu0 %v1266_v0 }
  0x22   :  { %1166 = vmatmul.mubr.msk.bf16.gmra.mrb[12].mxu1 %vm300_vm1, %v1233_v24 }
  0x23   :  { %355 = vmatmul.mubr.bf16.vlgmr.msra.gmra.mrb[0].mxu0 %v1230_v25  ;;  %1169 = vmatprep.mubr.msk.bf16.mxu1 %vm1267_vm0, %v1266_v0 }
  0x24   :  { %1142 = vmatpush3.bf16.msra.mxu0 %v1210_v2  ;;  %362 = vmatprep.mubr.bf16.mxu0 %v1235_v26 }
  0x25   :  { %1143 = vmatprep.subr.bf16.mxu0 %v1266_v0 }
  0x28   :  { %1144 = vmatpush3.bf16.msra.mxu0 %v1213_v5 }
  0x2a   :  { %1170 = vmatmul.mubr.msk.bf16.gmra.mrb[16].mxu1 %vm300_vm1, %v1237_v27 }
  0x2b   :  { %363 = vmatmul.mubr.bf16.gmra.mrb[4].mxu0 %v1238_v28  ;;  %1175 = vmatprep.mubr.msk.bf16.mxu1 %vm1267_vm0, %v1266_v0 }
  0x2c   :  { %370 = vmatprep.mubr.bf16.mxu0 %v1239_v29 }
  0x32   :  { %1176 = vmatmul.mubr.msk.bf16.vlgmr.msra.gmra.mrb[20].mxu1 %vm700_vm2, %v1241_v30 }
  0x33   :  { %371 = vmatmul.mubr.bf16.gmra.mrb[8].mxu0 %v1242_v31  ;;  %1179 = vmatprep.mubr.msk.bf16.mxu1 %vm1267_vm0, %v1266_v0 }
  0x34   :  { %378 = vmatprep.mubr.bf16.mxu0 %v1243_v32 }
  0x3a   :  { %1180 = vmatmul.mubr.msk.bf16.gmra.mrb[24].mxu1 %vm700_vm2, %v1245_v33 }
  0x3b   :  { %379 = vmatmul.mubr.bf16.gmra.mrb[12].mxu0 %v1246_v34  ;;  %1183 = vmatprep.mubr.msk.bf16.mxu1 %vm1267_vm0, %v1266_v0 }
  0x3c   :  { %386 = vmatprep.mubr.bf16.mxu0 %v1247_v35 }
  0x42   :  { %1184 = vmatmul.mubr.msk.bf16.gmra.mrb[28].mxu1 %vm700_vm2, %v1249_v36 }
  0x43   :  { %387 = vmatmul.mubr.bf16.gmra.mrb[16].mxu0 %v1250_v37  ;;  %1187 = vmatprep.mubr.msk.bf16.mxu1 %vm1267_vm0, %v1266_v0 }
  0x44   :  { %394 = vmatprep.mubr.bf16.mxu0 %v1251_v38 }
  0x4a   :  { %1188 = vmatmul.mubr.msk.bf16.gmra.mrb[32].mxu1 %vm700_vm2, %v1253_v40 }
  0x4b   :  { %395 = vmatmul.mubr.bf16.gmra.mrb[20].mxu0 %v1254_v41  ;;  %1191 = vmatprep.mubr.msk.bf16.mxu1 %vm1267_vm0, %v1266_v0 }
  0x4c   :  { %402 = vmatprep.mubr.bf16.mxu0 %v1020_v42 }
  0x52   :  { %1192 = vmatmul.mubr.msk.bf16.gmra.mrb[36].mxu1 %vm700_vm2, %v1256_v43 }
  0x53   :  { %403 = vmatmul.mubr.bf16.gmra.mrb[24].mxu0 %v1019_v44  ;;  %1195 = vmatprep.mubr.msk.bf16.mxu1 %vm1267_vm0, %v1266_v0 }
  0x54   :  { %1145 = vmatprep.mubr.msk.bf16.mxu0 %vm1267_vm0, %v1266_v0 }
  0x5a   :  { %1196 = vmatmul.mubr.msk.bf16.gmra.mrb[40].mxu1 %vm700_vm2, %v1258_v45 }
  0x5b   :  { %1146 = vmatmul.mubr.msk.bf16.vlgmr.msra.gmra.mrb[28].mxu0 %vm300_vm1, %v1259_v46  ;;  %1199 = vmatprep.mubr.msk.bf16.mxu1 %vm1267_vm0, %v1266_v0 }
  0x5c   :  { %1149 = vmatprep.mubr.msk.bf16.mxu0 %vm1267_vm0, %v1266_v0 }
  0x62   :  { %1200 = vmatmul.mubr.msk.bf16.gmra.mrb[44].mxu1 %vm700_vm2, %v1260_v47 }
  0x63   :  { %1150 = vmatmul.mubr.msk.bf16.gmra.mrb[32].mxu0 %vm300_vm1, %v1261_v48 }
  0xdd   :  { %v460_v49 = vpop.f32.mrb[0].mxu1 }
  0xde   :  { %v1155_v50 = vpop.f32.mrb[1].mxu1 }
  0xdf   :  { %v463_v51 = vpop.f32.mrb[2].mxu1 }
  0xe0   :  { %v1156_v52 = vpop.f32.mrb[3].mxu1 }
  0xe5   :  { %v1498_v53 = vpop.f32.mrb[4].mxu1 }
  0xe6   :  { %v1159_v54 = vpop.f32.mrb[5].mxu1 }
  0xe7   :  { %v1500_v55 = vpop.f32.mrb[6].mxu1 }
  0xe8   :  { %v1160_v56 = vpop.f32.mrb[7].mxu1 }
  0xed   :  { %v1502_v57 = vpop.f32.mrb[8].mxu1 }
  0xee   :  { %v1163_v58 = vpop.f32.mrb[9].mxu1 }
  0xef   :  { %v1504_v59 = vpop.f32.mrb[10].mxu1 }
  0xf0   :  { %v1164_v60 = vpop.f32.mrb[11].mxu1 }
  0xf5   :  { %v1506_v61 = vpop.f32.mrb[12].mxu1 }
  0xf6   :  { %v1082_v62 = vpop.f32.mrb[0].mxu0  ;;  %v1167_v63 = vpop.f32.mrb[13].mxu1 }
  0xf7   :  { %v1083_v0 = vpop.f32.mrb[1].mxu0  ;;  %v1508_v1 = vpop.f32.mrb[14].mxu1 }
  0xf8   :  { %v1510_v2 = vadd.f32 %v1083_v0, %v1082_v62  ;;  %v1085_v3 = vpop.f32.mrb[2].mxu0  ;;  %v1168_v4 = vpop.f32.mrb[15].mxu1 }
  0xf9   :  { %v1086_v5 = vpop.f32.mrb[3].mxu0 }
  0xfa   :  { %v1512_v6 = vadd.f32 %v1086_v5, %v1085_v3 }
  0xfd   :  { %v1514_v7 = vpop.f32.mrb[16].mxu1 }
  0xfe   :  { %v1088_v8 = vpop.f32.mrb[4].mxu0  ;;  %v1171_v9 = vpop.f32.mrb[17].mxu1 }
  0xff   :  { %v1089_v10 = vpop.f32.mrb[5].mxu0  ;;  %v495_v11 = vpop.f32.mrb[18].mxu1 }
 0x100   :  { %v1516_v12 = vadd.f32 %v1089_v10, %v1088_v8  ;;  %v1091_v13 = vpop.f32.mrb[6].mxu0  ;;  %v1172_v14 = vpop.f32.mrb[19].mxu1 }
 0x101   :  { %v1092_v15 = vpop.f32.mrb[7].mxu0 }
 0x102   :  { %v1518_v16 = vadd.f32 %v1092_v15, %v1091_v13 }
 0x105   :  { %v1520_v17 = vpop.f32.mrb[20].mxu1 }
 0x106   :  { %v1094_v18 = vpop.f32.mrb[8].mxu0  ;;  %v812_v19 = vsel %vm300_vm1, %v1520_v17, 0.0  ;;  %v844_v20 = vmul.f32 %v1520_v17, %v1520_v17  ;;  %v1177_v21 = vpop.f32.mrb[21].mxu1 }
 0x107   :  { %v1095_v22 = vpop.f32.mrb[9].mxu0  ;;  %v1526_v23 = vpop.f32.mrb[22].mxu1 }
 0x108   :  { %v1096_v24 = vadd.f32 %v1095_v22, %v1094_v18  ;;  %v1097_v25 = vpop.f32.mrb[10].mxu0  ;;  %v857_v26 = vsel %vm300_vm1, %v844_v20, 0.0  ;;  %v813_v27 = vsel %vm300_vm1, %v1526_v23, 0.0  ;;  %v845_v28 = vmul.f32 %v1526_v23, %v1526_v23  ;;  %v1178_v29 = vpop.f32.mrb[23].mxu1 }
 0x109   :  { %v1098_v30 = vpop.f32.mrb[11].mxu0  ;;  %v814_v31 = vadd.f32 %v813_v27, %v812_v19 }
 0x10a   :  { %v1533_v32 = vadd.f32 %v1096_v24, %v460_v49  ;;  %v1099_v33 = vadd.f32 %v1098_v30, %v1097_v25  ;;  %v858_v34 = vsel %vm300_vm1, %v845_v28, 0.0 }
 0x10b   :  { %v859_v35 = vadd.f32 %v858_v34, %v857_v26 }
 0x10c   :  { %v1536_v36 = vadd.f32 %v1099_v33, %v463_v51 }
 0x10d   :  { %v1538_v37 = vpop.f32.mrb[24].mxu1 }
 0x10e   :  { %v1100_v38 = vpop.f32.mrb[12].mxu0  ;;  %v815_v39 = vsel %vm300_vm1, %v1538_v37, 0.0  ;;  %v1181_v40 = vpop.f32.mrb[25].mxu1  ;;  %v846_v43 = vmul.f32 %v1538_v37, %v1538_v37 }
 0x10f   :  { %v1101_v41 = vpop.f32.mrb[13].mxu0  ;;  %v816_v42 = vadd.f32 %v815_v39, %v814_v31  ;;  %v1544_v44 = vpop.f32.mrb[26].mxu1 }
 0x110   :  { %v1102_v45 = vadd.f32 %v1101_v41, %v1100_v38  ;;  %v1103_v46 = vpop.f32.mrb[14].mxu0  ;;  %v817_v47 = vsel %vm300_vm1, %v1544_v44, 0.0  ;;  %v847_v48 = vmul.f32 %v1544_v44, %v1544_v44  ;;  %v1182_v49 = vpop.f32.mrb[27].mxu1  ;;  %v860_v51 = vsel %vm300_vm1, %v846_v43, 0.0 }
 0x111   :  { %v1104_v50 = vpop.f32.mrb[15].mxu0  ;;  %v818_v52 = vadd.f32 %v817_v47, %v816_v42  ;;  %v861_v58 = vadd.f32 %v860_v51, %v859_v35 }
 0x112   :  { %v1552_v54 = vadd.f32 %v1102_v45, %v1498_v53  ;;  %v1105_v56 = vadd.f32 %v1104_v50, %v1103_v46  ;;  %v862_v60 = vsel %vm300_vm1, %v847_v48, 0.0 }
 0x113   :  { %v863_v63 = vadd.f32 %v862_v60, %v861_v58 }
 0x114   :  { %v1556_v62 = vadd.f32 %v1105_v56, %v1500_v55 }
 0x115   :  { %v1558_v0 = vpop.f32.mrb[28].mxu1 }
 0x116   :  { %v1106_v3 = vpop.f32.mrb[16].mxu0  ;;  %v819_v4 = vsel %vm300_vm1, %v1558_v0, 0.0  ;;  %v1185_v5 = vpop.f32.mrb[29].mxu1  ;;  %v848_v53 = vmul.f32 %v1558_v0, %v1558_v0 }
 0x117   :  { %v1107_v8 = vpop.f32.mrb[17].mxu0  ;;  %v820_v9 = vadd.f32 %v819_v4, %v818_v52  ;;  %v1564_v10 = vpop.f32.mrb[30].mxu1 }
 0x118   :  { %v1108_v11 = vadd.f32 %v1107_v8, %v1106_v3  ;;  %v1109_v13 = vpop.f32.mrb[18].mxu0  ;;  %v821_v55 = vsel %vm300_vm1, %v1564_v10, 0.0  ;;  %v849_v14 = vmul.f32 %v1564_v10, %v1564_v10  ;;  %v1186_v15 = vpop.f32.mrb[31].mxu1  ;;  %v864_v19 = vsel %vm300_vm1, %v848_v53, 0.0 }
 0x119   :  { %v1110_v18 = vpop.f32.mrb[19].mxu0  ;;  %v822_v20 = vadd.f32 %v821_v55, %v820_v9  ;;  %v865_v24 = vadd.f32 %v864_v19, %v863_v63 }
 0x11a   :  { %v1572_v21 = vadd.f32 %v1108_v11, %v1502_v57  ;;  %v1111_v22 = vadd.f32 %v1110_v18, %v1109_v13  ;;  %v866_v25 = vsel %vm300_vm1, %v849_v14, 0.0 }
 0x11b   :  { %v867_v27 = vadd.f32 %v866_v25, %v865_v24 }
 0x11c   :  { %v1576_v26 = vadd.f32 %v1111_v22, %v1504_v59 }
 0x11d   :  { %v1578_v28 = vpop.f32.mrb[32].mxu1 }
 0x11e   :  { %v1112_v29 = vpop.f32.mrb[20].mxu0  ;;  %v823_v30 = vsel %vm300_vm1, %v1578_v28, 0.0  ;;  %v1189_v31 = vpop.f32.mrb[33].mxu1  ;;  %v850_v57 = vmul.f32 %v1578_v28, %v1578_v28 }
 0x11f   :  { %v1113_v33 = vpop.f32.mrb[21].mxu0  ;;  %v824_v34 = vadd.f32 %v823_v30, %v822_v20  ;;  %v1584_v35 = vpop.f32.mrb[34].mxu1 }
 0x120   :  { %v1114_v38 = vadd.f32 %v1113_v33, %v1112_v29  ;;  %v1115_v39 = vpop.f32.mrb[22].mxu0  ;;  %v825_v59 = vsel %vm300_vm1, %v1584_v35, 0.0  ;;  %v851_v40 = vmul.f32 %v1584_v35, %v1584_v35  ;;  %v1190_v41 = vpop.f32.mrb[35].mxu1  ;;  %v868_v43 = vsel %vm300_vm1, %v850_v57, 0.0 }
 0x121   :  { %v1116_v42 = vpop.f32.mrb[23].mxu0  ;;  %v826_v45 = vadd.f32 %v825_v59, %v824_v34  ;;  %v869_v48 = vadd.f32 %v868_v43, %v867_v27 }
 0x122   :  { %v1592_v46 = vadd.f32 %v1114_v38, %v1506_v61  ;;  %v1117_v47 = vadd.f32 %v1116_v42, %v1115_v39  ;;  %v870_v49 = vsel %vm300_vm1, %v851_v40, 0.0 }
 0x123   :  { %v871_v51 = vadd.f32 %v870_v49, %v869_v48 }
 0x124   :  { %v1596_v50 = vadd.f32 %v1117_v47, %v1508_v1 }
 0x125   :  { %v1598_v52 = vpop.f32.mrb[36].mxu1 }
 0x126   :  { %v1118_v56 = vpop.f32.mrb[24].mxu0  ;;  %v827_v58 = vsel %vm300_vm1, %v1598_v52, 0.0  ;;  %v1193_v60 = vpop.f32.mrb[37].mxu1  ;;  %v852_v61 = vmul.f32 %v1598_v52, %v1598_v52 }
 0x127   :  { %v1119_v63 = vpop.f32.mrb[25].mxu0  ;;  %v828_v3 = vadd.f32 %v827_v58, %v826_v45  ;;  %v1604_v4 = vpop.f32.mrb[38].mxu1 }
 0x128   :  { %v1120_v5 = vadd.f32 %v1119_v63, %v1118_v56  ;;  %v1121_v8 = vpop.f32.mrb[26].mxu0  ;;  %v829_v1 = vsel %vm300_vm1, %v1604_v4, 0.0  ;;  %v853_v9 = vmul.f32 %v1604_v4, %v1604_v4  ;;  %v1194_v53 = vpop.f32.mrb[39].mxu1  ;;  %v872_v13 = vsel %vm300_vm1, %v852_v61, 0.0 }
 0x129   :  { %v1122_v11 = vpop.f32.mrb[27].mxu0  ;;  %v830_v55 = vadd.f32 %v829_v1, %v828_v3  ;;  %v873_v15 = vadd.f32 %v872_v13, %v871_v51 }
 0x12a   :  { %v1612_v14 = vadd.f32 %v1120_v5, %v1514_v7  ;;  %v874_v18 = vsel %vm300_vm1, %v853_v9, 0.0 }
 0x12b   :  { %v875_v19 = vadd.f32 %v874_v18, %v873_v15 }
 0x12d   :  { %v1615_v20 = vpop.f32.mrb[40].mxu1 }
 0x12e   :  { %v444_v22 = vpop.f32.mrb[28].mxu0  ;;  %v831_v24 = vsel %vm300_vm1, %v1615_v20, 0.0  ;;  %v854_v25 = vmul.f32 %v1615_v20, %v1615_v20  ;;  %v1197_v27 = vpop.f32.mrb[41].mxu1 }
 0x12f   :  { %v1622_v29 = vadd.f32 %v1510_v2, %v444_v22  ;;  %v1147_v30 = vpop.f32.mrb[29].mxu0  ;;  %v832_v7 = vadd.f32 %v831_v24, %v830_v55  ;;  %v1624_v31 = vpop.f32.mrb[42].mxu1 }
 0x130   :  { %v876_v33 = vsel %vm300_vm1, %v854_v25, 0.0  ;;  %v447_v34 = vpop.f32.mrb[30].mxu0  ;;  %v833_v57 = vsel %vm300_vm1, %v1624_v31, 0.0  ;;  %v855_v38 = vmul.f32 %v1624_v31, %v1624_v31  ;;  %v1198_v39 = vpop.f32.mrb[43].mxu1 }
 0x131   :  { %v532_v59 = vmul.f32 %v1622_v29, %v1622_v29  ;;  %v877_v40 = vadd.f32 %v876_v33, %v875_v19  ;;  %v1634_v2 = vadd.f32 %v1512_v6, %v447_v34  ;;  %v1148_v41 = vpop.f32.mrb[31].mxu0  ;;  %v834_v42 = vadd.f32 %v833_v57, %v832_v7 }
 0x132   :  { %v878_v43 = vsel %vm300_vm1, %v855_v38, 0.0  ;;  %v500_v45 = vsel %vm300_vm1, %v1622_v29, 0.0  ;;  %v536_v33 = vmul.f32 %v1533_v32, %v1533_v32  ;;  %v537_v41 = vmul.f32 %v1536_v36, %v1536_v36 }
 0x133   :  { %v501_v47 = vsel %vm300_vm1, %v1634_v2, 0.0  ;;  %v533_v48 = vmul.f32 %v1634_v2, %v1634_v2  ;;  %v879_v49 = vadd.f32 %v878_v43, %v877_v40  ;;  %v545_v56 = vsel %vm300_vm1, %v532_v59, 0.0 }
 0x134   :  { %v502_v51 = vadd.f32 %v501_v47, %v500_v45 }
 0x135   :  { %v546_v6 = vsel %vm300_vm1, %v533_v48, 0.0  ;;  %v1645_v58 = vpop.f32.mrb[44].mxu1 }
 0x136   :  { %v547_v60 = vadd.f32 %v546_v6, %v545_v56  ;;  %v835_v63 = vsel %vm300_vm1, %v1645_v58, 0.0  ;;  %v856_v3 = vmul.f32 %v1645_v58, %v1645_v58  ;;  %v452_v61 = vpop.f32.mrb[32].mxu0  ;;  %v1201_v5 = vpop.f32.mrb[45].mxu1  ;;  %v538_v56 = vmul.f32 %v1552_v54, %v1552_v54 }
 0x137   :  { %v836_v8 = vadd.f32 %v835_v63, %v834_v42  ;;  %v1652_v1 = vadd.f32 %v1516_v12, %v452_v61  ;;  %v1151_v9 = vpop.f32.mrb[33].mxu0  ;;  %v807_v53 = vpop.f32.mrb[46].mxu1  ;;  %v554_v61 = vsel %vm300_vm1, %v537_v41, 0.0  ;;  %v511_v5 = vsel %vm300_vm1, %v1552_v54, 0.0 }
 0x138   :  { %v880_v11 = vsel %vm300_vm1, %v856_v3, 0.0  ;;  %v455_v13 = vpop.f32.mrb[34].mxu0  ;;  %v1202_v55 = vpop.f32.mrb[47].mxu1 }
 0x139   :  { %v837_v15 = vrot.slane %v836_v8, 4  ;;  %v881_v18 = vadd.f32 %v880_v11, %v879_v49  ;;  %v503_v19 = vsel %vm300_vm1, %v1652_v1, 0.0  ;;  %v534_v22 = vmul.f32 %v1652_v1, %v1652_v1  ;;  %v1152_v24 = vpop.f32.mrb[35].mxu0 }
 0x13a   :  { %v504_v25 = vadd.f32 %v503_v19, %v502_v51  ;;  %v1660_v27 = vadd.f32 %v1518_v16, %v455_v13  ;;  %v507_v16 = vsel %vm300_vm1, %v1533_v32, 0.0  ;;  %v552_v49 = vsel %vm300_vm1, %v536_v33, 0.0 }
 0x13b   :  { %v838_v12 = vadd.f32 %v837_v15, %v836_v8  ;;  %v882_v30 = vrot.slane %v881_v18, 4  ;;  %v548_v7 = vsel %vm300_vm1, %v534_v22, 0.0  ;;  %v509_v51 = vsel %vm300_vm1, %v1536_v36, 0.0 }
 0x13c   :  { %v549_v34 = vadd.f32 %v548_v7, %v547_v60  ;;  %v505_v57 = vsel %vm300_vm1, %v1660_v27, 0.0  ;;  %v535_v38 = vmul.f32 %v1660_v27, %v1660_v27  ;;  %v539_v8 = vmul.f32 %v1556_v62, %v1556_v62 }
 0x13d   :  { %v839_v39 = vrot.slane %v838_v12, 2  ;;  %v883_v59 = vadd.f32 %v882_v30, %v881_v18  ;;  %v506_v40 = vadd.f32 %v505_v57, %v504_v25  ;;  %v556_v55 = vsel %vm300_vm1, %v538_v56, 0.0 }
 0x13e   :  { %v550_v42 = vsel %vm300_vm1, %v535_v38, 0.0  ;;  %v513_v15 = vsel %vm300_vm1, %v1556_v62, 0.0  ;;  %v558_v25 = vsel %vm300_vm1, %v539_v8, 0.0  ;;  %v540_v30 = vmul.f32 %v1572_v21, %v1572_v21 }
 0x13f   :  { %v840_v43 = vadd.f32 %v839_v39, %v838_v12  ;;  %v884_v45 = vrot.slane %v883_v59, 2  ;;  %v508_v47 = vadd.f32 %v507_v16, %v506_v40  ;;  %v551_v48 = vadd.f32 %v550_v42, %v549_v34 }
 0x140   :  { %v515_v12 = vsel %vm300_vm1, %v1572_v21, 0.0  ;;  %v541_v7 = vmul.f32 %v1576_v26, %v1576_v26 }
 0x141   :  { %v841_v6 = vrot.slane %v840_v43, 1  ;;  %v885_v60 = vadd.f32 %v884_v45, %v883_v59  ;;  %v510_v63 = vadd.f32 %v509_v51, %v508_v47  ;;  %v553_v3 = vadd.f32 %v552_v49, %v551_v48 }
 0x142   :  { %v562_v49 = vsel %vm300_vm1, %v541_v7, 0.0  ;;  %v543_v51 = vmul.f32 %v1596_v50, %v1596_v50 }
 0x143   :  { %v842_v9 = vadd.f32 %v841_v6, %v840_v43  ;;  %v886_v53 = vrot.slane %v885_v60, 1  ;;  %v512_v11 = vadd.f32 %v511_v5, %v510_v63  ;;  %v555_v13 = vadd.f32 %v554_v61, %v553_v3 }
 0x144   :  { %v517_v43 = vsel %vm300_vm1, %v1576_v26, 0.0  ;;  %v544_v63 = vmul.f32 %v1612_v14, %v1612_v14  ;;  %v523_v61 = vsel %vm300_vm1, %v1612_v14, 0.0  ;;  %v566_v8 = vsel %vm300_vm1, %v543_v51, 0.0 }
 0x145   :  { %v1687_v18 = vmul.f32 0.010204081, %v842_v9  ;;  %v887_v19 = vadd.f32 %v886_v53, %v885_v60  ;;  %v514_v22 = vadd.f32 %v513_v15, %v512_v11  ;;  %v557_v24 = vadd.f32 %v556_v55, %v555_v13 }
 0x146   :  { %v568_v11 = vsel %vm300_vm1, %v544_v63, 0.0 }
 0x147   :  { %v888_v33 = vmul.f32 0.010204081, %v887_v19  ;;  %v889_v34 = vmul.f32 %v1687_v18, %v1687_v18  ;;  %v892_v57 = vsub.f32 %v1520_v17, %v1687_v18  ;;  %v893_v38 = vsub.f32 %v1526_v23, %v1687_v18 }
 0x148   :  { %v894_v39 = vsub.f32 %v1538_v37, %v1687_v18  ;;  %v896_v59 = vsub.f32 %v1558_v0, %v1687_v18  ;;  %v897_v40 = vsub.f32 %v1564_v10, %v1687_v18  ;;  %v898_v16 = vsub.f32 %v1578_v28, %v1687_v18 }
 0x149   :  { %v890_v41 = vsub.f32 %v888_v33, %v889_v34  ;;  %v899_v42 = vsub.f32 %v1584_v35, %v1687_v18  ;;  %v900_v17 = vsub.f32 %v1598_v52, %v1687_v18  ;;  %v901_v23 = vsub.f32 %v1604_v4, %v1687_v18 }
 0x14a   :  { %v902_v37 = vsub.f32 %v1615_v20, %v1687_v18  ;;  %v903_v0 = vsub.f32 %v1624_v31, %v1687_v18  ;;  %v904_v10 = vsub.f32 %v1645_v58, %v1687_v18  ;;  %v516_v28 = vadd.f32 %v515_v12, %v514_v22 }
 0x14b   :  { %v891_v35 = vmax.f32 %v890_v41, 0.0  ;;  %v559_v45 = vadd.f32 %v558_v25, %v557_v24  ;;  %v895_v52 = vsub.f32 %v1544_v44, %v1687_v18  ;;  %v560_v4 = vsel %vm300_vm1, %v540_v30, 0.0 }
 0x14c   :  { %v542_v20 = vmul.f32 %v1592_v46, %v1592_v46  ;;  %v518_v47 = vadd.f32 %v517_v43, %v516_v28  ;;  %v519_v31 = vsel %vm300_vm1, %v1592_v46, 0.0  ;;  %v521_v44 = vsel %vm300_vm1, %v1596_v50, 0.0 }
 0x14d   :  { %v905_v48 = vadd.f32 1e-05, %v891_v35  ;;  %v561_v58 = vadd.f32 %v560_v4, %v559_v45 }
 0x14e   :  { %v520_v56 = vadd.f32 %v519_v31, %v518_v47  ;;  %v564_v60 = vsel %vm300_vm1, %v542_v20, 0.0 }
 0x14f   :  { %1262 = vrsqrt.f32 %v905_v48  ;;  %v563_v6 = vadd.f32 %v562_v49, %v561_v58 }
 0x150   :  { %v522_v3 = vadd.f32 %v521_v44, %v520_v56 }
 0x151   :  { %v565_v5 = vadd.f32 %v564_v60, %v563_v6 }
 0x152   :  { %v524_v9 = vadd.f32 %v523_v61, %v522_v3 }
 0x153   :  { %v567_v53 = vadd.f32 %v566_v8, %v565_v5 }
 0x154   :  { %v525_v13 = vrot.slane %v524_v9, 4 }
 0x155   :  { %v569_v55 = vadd.f32 %v568_v11, %v567_v53 }
 0x156   :  { %v526_v18 = vadd.f32 %v525_v13, %v524_v9 }
 0x157   :  { %v570_v19 = vrot.slane %v569_v55, 4 }
 0x158   :  { %v527_v45 = vrot.slane %v526_v18, 2 }
 0x159   :  { %v1263_v15 = vpop.eup %1262  ;;  %v571_v4 = vadd.f32 %v570_v19, %v569_v55 }
 0x15a   :  { %v907_v22 = vmul.f32 %v1263_v15, %v892_v57  ;;  %v908_v24 = vmul.f32 %v1263_v15, %v893_v38  ;;  %v909_v25 = vmul.f32 %v1263_v15, %v894_v39  ;;  %v911_v12 = vmul.f32 %v1263_v15, %v896_v59 }
 0x15b   :  { %v912_v30 = vmul.f32 %v1263_v15, %v897_v40  ;;  %v913_v7 = vmul.f32 %v1263_v15, %v898_v16  ;;  %v914_v33 = vmul.f32 %v1263_v15, %v899_v42  ;;  %v915_v34 = vmul.f32 %v1263_v15, %v900_v17 }
 0x15c   :  { %v916_v41 = vmul.f32 %v1263_v15, %v901_v23  ;;  %v917_v28 = vmul.f32 %v1263_v15, %v902_v37  ;;  %v918_v43 = vmul.f32 %v1263_v15, %v903_v0  ;;  %v919_v35 = vmul.f32 %v1263_v15, %v904_v10 }
 0x15d   :  { %v528_v20 = vadd.f32 %v527_v45, %v526_v18  ;;  %v572_v47 = vrot.slane %v571_v4, 2  ;;  %v910_v31 = vmul.f32 %v1263_v15, %v895_v52 }
 0x15f   :  { %v529_v48 = vrot.slane %v528_v20, 1  ;;  %v573_v58 = vadd.f32 %v572_v47, %v571_v4 }
 0x161   :  { %v530_v49 = vadd.f32 %v529_v48, %v528_v20  ;;  %v574_v57 = vrot.slane %v573_v58, 1 }
 0x163   :  { %v1743_v38 = vmul.f32 0.010204081, %v530_v49  ;;  %v575_v39 = vadd.f32 %v574_v57, %v573_v58  ;;  %v1048_v49 = vld [vmem:[%s1844_s3] ss:$0 sm:$0xff] }
 0x165   :  { %v576_v59 = vmul.f32 0.010204081, %v575_v39  ;;  %v577_v40 = vmul.f32 %v1743_v38, %v1743_v38  ;;  %v580_v16 = vsub.f32 %v1622_v29, %v1743_v38  ;;  %v581_v42 = vsub.f32 %v1634_v2, %v1743_v38 }
 0x166   :  { %v582_v17 = vsub.f32 %v1652_v1, %v1743_v38  ;;  %v583_v23 = vsub.f32 %v1660_v27, %v1743_v38  ;;  %v584_v37 = vsub.f32 %v1533_v32, %v1743_v38  ;;  %v585_v0 = vsub.f32 %v1536_v36, %v1743_v38 }
 0x167   :  { %v578_v10 = vsub.f32 %v576_v59, %v577_v40  ;;  %v586_v52 = vsub.f32 %v1552_v54, %v1743_v38  ;;  %v587_v29 = vsub.f32 %v1556_v62, %v1743_v38  ;;  %v588_v2 = vsub.f32 %v1572_v21, %v1743_v38  ;;  %v1064_v62 = vld [vmem:[%s1841_s6] ss:$0 sm:$0xff] }
 0x168   :  { %v589_v1 = vsub.f32 %v1576_v26, %v1743_v38  ;;  %v590_v27 = vsub.f32 %v1592_v46, %v1743_v38  ;;  %v591_v32 = vsub.f32 %v1596_v50, %v1743_v38  ;;  %v592_v36 = vsub.f32 %v1612_v14, %v1743_v38  ;;  %v1065_v26 = vld [vmem:[%s1842_s7] ss:$0 sm:$0xff] }
 0x169   :  { %v579_v51 = vmax.f32 %v578_v10, 0.0  ;;  %v926_v21 = vmul.f32 %v1064_v62, %v907_v22  ;;  %v927_v56 = vmul.f32 %v1064_v62, %v908_v24  ;;  %v928_v46 = vmul.f32 %v1064_v62, %v909_v25 }
 0x16a   :  { %v930_v44 = vmul.f32 %v1064_v62, %v911_v12  ;;  %v931_v6 = vmul.f32 %v1064_v62, %v912_v30  ;;  %v932_v50 = vmul.f32 %v1064_v62, %v913_v7  ;;  %v933_v60 = vmul.f32 %v1064_v62, %v914_v33  ;;  %v1047_v33 = vld [vmem:[%s1843_s2] ss:$0 sm:$0xff] }
 0x16b   :  { %v593_v54 = vadd.f32 1e-05, %v579_v51  ;;  %v934_v63 = vmul.f32 %v1064_v62, %v915_v34  ;;  %v935_v14 = vmul.f32 %v1064_v62, %v916_v41  ;;  %v936_v3 = vmul.f32 %v1064_v62, %v917_v28 }
 0x16c   :  { %v937_v61 = vmul.f32 %v1064_v62, %v918_v43  ;;  %v938_v5 = vmul.f32 %v1064_v62, %v919_v35  ;;  %v929_v8 = vmul.f32 %v1064_v62, %v910_v31  ;;  %v945_v9 = vadd.f32 %v1065_v26, %v926_v21 }
 0x16d   :  { %1264 = vrsqrt.f32 %v593_v54  ;;  %v946_v53 = vadd.f32 %v1065_v26, %v927_v56  ;;  %v947_v11 = vadd.f32 %v1065_v26, %v928_v46  ;;  %v949_v13 = vadd.f32 %v1065_v26, %v930_v44 }
 0x16e   :  { %v950_v55 = vadd.f32 %v1065_v26, %v931_v6  ;;  %v951_v15 = vadd.f32 %v1065_v26, %v932_v50  ;;  %v952_v18 = vadd.f32 %v1065_v26, %v933_v60  ;;  %v953_v19 = vadd.f32 %v1065_v26, %v934_v63 }
 0x16f   :  { %v954_v22 = vadd.f32 %v1065_v26, %v935_v14  ;;  %v955_v25 = vadd.f32 %v1065_v26, %v936_v3  ;;  %v956_v12 = vadd.f32 %v1065_v26, %v937_v61  ;;  %v957_v30 = vadd.f32 %v1065_v26, %v938_v5 }
 0x170   :  { %v948_v7 = vadd.f32 %v1065_v26, %v929_v8 }
 0x177   :  { %v1265_v24 = vpop.eup %1264 }
 0x178   :  { %v595_v34 = vmul.f32 %v1265_v24, %v580_v16  ;;  %v596_v41 = vmul.f32 %v1265_v24, %v581_v42  ;;  %v597_v28 = vmul.f32 %v1265_v24, %v582_v17  ;;  %v598_v43 = vmul.f32 %v1265_v24, %v583_v23 }
 0x179   :  { %v599_v35 = vmul.f32 %v1265_v24, %v584_v37  ;;  %v600_v45 = vmul.f32 %v1265_v24, %v585_v0  ;;  %v601_v4 = vmul.f32 %v1265_v24, %v586_v52  ;;  %v602_v20 = vmul.f32 %v1265_v24, %v587_v29 }
 0x17a   :  { %v603_v47 = vmul.f32 %v1265_v24, %v588_v2  ;;  %v604_v31 = vmul.f32 %v1265_v24, %v589_v1  ;;  %v605_v48 = vmul.f32 %v1265_v24, %v590_v27  ;;  %v606_v58 = vmul.f32 %v1265_v24, %v591_v32 }
 0x17b   :  { %v607_v57 = vmul.f32 %v1265_v24, %v592_v36  ;;  %v614_v38 = vmul.f32 %v1047_v33, %v595_v34  ;;  %v615_v39 = vmul.f32 %v1047_v33, %v596_v41  ;;  %v616_v59 = vmul.f32 %v1047_v33, %v597_v28 }
 0x17c   :  { %v617_v40 = vmul.f32 %v1047_v33, %v598_v43  ;;  %v618_v16 = vmul.f32 %v1047_v33, %v599_v35  ;;  %v619_v42 = vmul.f32 %v1047_v33, %v600_v45  ;;  %v620_v17 = vmul.f32 %v1047_v33, %v601_v4 }
 0x17d   :  { %v621_v23 = vmul.f32 %v1047_v33, %v602_v20  ;;  %v622_v37 = vmul.f32 %v1047_v33, %v603_v47  ;;  %v623_v0 = vmul.f32 %v1047_v33, %v604_v31  ;;  %v624_v10 = vmul.f32 %v1047_v33, %v605_v48 }
 0x17e   :  { %v625_v52 = vmul.f32 %v1047_v33, %v606_v58  ;;  %v626_v29 = vmul.f32 %v1047_v33, %v607_v57  ;;  %v633_v2 = vadd.f32 %v1048_v49, %v614_v38  ;;  %v634_v1 = vadd.f32 %v1048_v49, %v615_v39 }
 0x17f   :  { %v635_v27 = vadd.f32 %v1048_v49, %v616_v59  ;;  %v636_v32 = vadd.f32 %v1048_v49, %v617_v40  ;;  %v637_v51 = vadd.f32 %v1048_v49, %v618_v16  ;;  %v638_v54 = vadd.f32 %v1048_v49, %v619_v42 }
 0x180   :  { %v639_v36 = vadd.f32 %v1048_v49, %v620_v17  ;;  %v640_v62 = vadd.f32 %v1048_v49, %v621_v23  ;;  %v641_v21 = vadd.f32 %v1048_v49, %v622_v37  ;;  %v642_v26 = vadd.f32 %v1048_v49, %v623_v0 }
 0x181   :  { %v643_v56 = vadd.f32 %v1048_v49, %v624_v10  ;;  %v644_v46 = vadd.f32 %v1048_v49, %v625_v52  ;;  %v645_v44 = vadd.f32 %v1048_v49, %v626_v29  ;;  %v958_v6 = vadd.f32 %v945_v9, %v633_v2 }
 0x182   :  { %v959_v50 = vadd.f32 %v946_v53, %v634_v1  ;;  %v960_v60 = vadd.f32 %v947_v11, %v635_v27  ;;  %v961_v63 = vadd.f32 %v948_v7, %v636_v32  ;;  %v962_v14 = vadd.f32 %v949_v13, %v637_v51 }
 0x183   :  { %v963_v3 = vadd.f32 %v950_v55, %v638_v54  ;;  %v964_v61 = vadd.f32 %v951_v15, %v639_v36  ;;  %v965_v5 = vadd.f32 %v952_v18, %v640_v62  ;;  %v966_v8 = vadd.f32 %v953_v19, %v641_v21 }
 0x184   :  { %v967_v24 = vadd.f32 %v954_v22, %v642_v26  ;;  %v968_v33 = vadd.f32 %v955_v25, %v643_v56  ;;  %v969_v34 = vadd.f32 %v956_v12, %v644_v46  ;;  %v970_v41 = vadd.f32 %v957_v30, %v645_v44 }
 0x185   :  { %v971_v28 = vmax.f32 %v958_v6, 0.0  ;;  %v972_v43 = vmax.f32 %v959_v50, 0.0  ;;  %v973_v35 = vmax.f32 %v960_v60, 0.0  ;;  %v974_v45 = vmax.f32 %v961_v63, 0.0 }
 0x186   :  { %v975_v4 = vmax.f32 %v962_v14, 0.0  ;;  %v976_v20 = vmax.f32 %v963_v3, 0.0  ;;  %v977_v47 = vmax.f32 %v964_v61, 0.0  ;;  %v978_v9 = vmax.f32 %v965_v5, 0.0 }
 0x187   :  { %v979_v53 = vmax.f32 %v966_v8, 0.0  ;;  %v980_v11 = vmax.f32 %v967_v24, 0.0  ;;  %v981_v7 = vmax.f32 %v968_v33, 0.0  ;;  %v982_v13 = vmax.f32 %v969_v34, 0.0  ;;  %984 = vst.msk [vmem:[%s1845_s8] sm:$0xff] %vm300_vm1, %v971_v28  ;;  %985 = vst.msk [vmem:[%s1845_s8 + $0x8] sm:$0xff] %vm300_vm1, %v972_v43 }
 0x188   :  { %986 = vst.msk [vmem:[%s1845_s8 + $0x10] sm:$0xff] %vm300_vm1, %v973_v35  ;;  %987 = vst.msk [vmem:[%s1845_s8 + $0x18] sm:$0xff] %vm300_vm1, %v974_v45  ;;  %v983_v55 = vmax.f32 %v970_v41, 0.0 }
 0x189   :  { %988 = vst.msk [vmem:[%s1845_s8 + $0x20] sm:$0xff] %vm300_vm1, %v975_v4  ;;  %989 = vst.msk [vmem:[%s1845_s8 + $0x28] sm:$0xff] %vm300_vm1, %v976_v20 }
 0x18a   :  { %990 = vst.msk [vmem:[%s1845_s8 + $0x30] sm:$0xff] %vm300_vm1, %v977_v47  ;;  %991 = vst.msk [vmem:[%s1845_s8 + $0x38] sm:$0xff] %vm300_vm1, %v978_v9 }
 0x18b   :  { %992 = vst.msk [vmem:[%s1845_s8 + $0x40] sm:$0xff] %vm300_vm1, %v979_v53  ;;  %993 = vst.msk [vmem:[%s1845_s8 + $0x48] sm:$0xff] %vm300_vm1, %v980_v11 }
 0x18c   :  { %994 = vst.msk [vmem:[%s1845_s8 + $0x50] sm:$0xff] %vm300_vm1, %v981_v7  ;;  %995 = vst.msk [vmem:[%s1845_s8 + $0x58] sm:$0xff] %vm300_vm1, %v982_v13 }
 0x18d   :  { %996 = vst.msk [vmem:[%s1845_s8 + $0x60] sm:$0xff] %vm300_vm1, %v983_v55 }

// kernel: _lambda_.24
= control target key start
LH: loop header
LB: loop body
LE: loop exit
PB: predicated region body
PF: predicated region fallthrough
CT: control target
= control target key end

     0   :  { %v889_v1 = vmov 0.0   ;;  %vm890_vm0 = vmmov 0   ;;  %vm291_vm1 = vcmask 261120   ;;  %s1253_s1 = inlined_call_operand.vmem [shape: bf16[288,32], index: 1, kind: input, shape index: {}]   ;;  %s1254_s0 = inlined_call_operand.vmem [shape: bf16[104,288], index: 0, kind: input, shape index: {}]   ;;  %s1255_s2 = inlined_call_operand.vmem [shape: f32[1,32], index: 2, kind: input, shape index: {}]   ;;  %s1256_s3 = inlined_call_operand.vmem [shape: f32[1,32], index: 3, kind: input, shape index: {}]   ;;  %s1257_s4 = inlined_call_operand.vmem [shape: f32[104,32], index: 4, kind: input, shape index: {}]   ;;  %s1258_s5 = inlined_call_operand.vmem [shape: f32[104,32], index: 5, kind: output, shape index: {}]  }
   0x1   :  { %v842_v0 = vld [vmem:[%s1253_s1 + $0x40] sm:$0xff]   ;;  %808 = vmatprep.subr.bf16.mxu1 %v889_v1  ;;  %812 = vmatprep.mubr.msk.bf16.mxu1 %vm890_vm0, %v889_v1  ;;  %v844_v3 = vld [vmem:[%s1253_s1 + $0x48] sm:$0xff]   ;;  %v846_v5 = vld [vmem:[%s1253_s1 + $0x50] sm:$0xff]  }
   0x2   :  { %v843_v2 = vld [vmem:[%s1253_s1] sm:$0xff]   ;;  %741 = vmatprep.subr.bf16.mxu0 %v842_v0  ;;  %v845_v4 = vld [vmem:[%s1253_s1 + $0x8] sm:$0xff]   ;;  %v847_v6 = vld [vmem:[%s1253_s1 + $0x10] sm:$0xff]  }
   0x3   :  { %742 = vmatpush3.bf16.msra.mxu0 %v843_v2  ;;  %v848_v7 = vld [vmem:[%s1253_s1 + $0x58] sm:$0xff]   ;;  %v850_v9 = vld [vmem:[%s1253_s1 + $0x60] sm:$0xff]   ;;  %v852_v12 = vld [vmem:[%s1253_s1 + $0x68] sm:$0xff]  }
   0x4   :  { %743 = vmatprep.subr.bf16.mxu0 %v844_v3  ;;  %v849_v8 = vld [vmem:[%s1253_s1 + $0x18] sm:$0xff]   ;;  %v856_v10 = vld [vmem:[%s1253_s1 + $0x80] sm:$0xff]   ;;  %v853_v13 = vld [vmem:[%s1253_s1 + $0x28] sm:$0xff]  }
   0x5   :  { %v851_v11 = vld [vmem:[%s1253_s1 + $0x20] sm:$0xff]   ;;  %809 = vmatpush3.bf16.msra.mxu1 %v856_v10  ;;  %v859_v14 = vld [vmem:[%s1253_s1 + $0x88] sm:$0xff]   ;;  %v854_v15 = vld [vmem:[%s1253_s1 + $0x70] sm:$0xff]  }
   0x6   :  { %810 = vmatprep.subr.bf16.mxu1 %v889_v1  ;;  %v862_v16 = vld [vmem:[%s1254_s0 + $0x4] ss:$12 sps:$4 sm:$0xff]   ;;  %v863_v17 = vld [vmem:[%s1254_s0 + $0x8] ss:$12 sps:$4 sm:$0xff]   ;;  %v857_v19 = vld [vmem:[%s1253_s1 + $0x78] sm:$0xff]  }
   0x7   :  { %744 = vmatpush3.bf16.msra.mxu0 %v845_v4  ;;  %345 = vmatprep.mubr.bf16.mxu0 %v862_v16  ;;  %v855_v18 = vld [vmem:[%s1253_s1 + $0x30] sm:$0xff]   ;;  %v858_v20 = vld [vmem:[%s1253_s1 + $0x38] sm:$0xff]   ;;  %v867_v21 = vld [vmem:[%s1254_s0 + $0x20] ss:$12 sps:$4 sm:$0xff]  }
   0x8   :  { %745 = vmatprep.subr.bf16.mxu0 %v846_v5  ;;  %v860_v22 = vld [vmem:[%s1254_s0] ss:$12 sps:$4 sm:$0xff]   ;;  %v864_v23 = vld [vmem:[%s1254_s0 + $0x1c] ss:$12 sps:$4 sm:$0xff]   ;;  %v871_v24 = vld [vmem:[%s1254_s0 + $0x38] ss:$12 sps:$4 sm:$0xff]  }
   0x9   :  { %811 = vmatpush3.bf16.msra.mxu1 %v859_v14  ;;  %v866_v25 = vld [vmem:[%s1254_s0 + $0x18] ss:$12 sps:$4 sm:$0xff]   ;;  %v868_v26 = vld [vmem:[%s1254_s0 + $0x34] ss:$12 sps:$4 sm:$0xff]   ;;  %v875_v27 = vld [vmem:[%s1254_s0 + $0x50] ss:$12 sps:$4 sm:$0xff]  }
   0xa   :  { %v870_v28 = vld [vmem:[%s1254_s0 + $0x30] ss:$12 sps:$4 sm:$0xff]   ;;  %v872_v29 = vld [vmem:[%s1254_s0 + $0x4c] ss:$12 sps:$4 sm:$0xff]   ;;  %v879_v30 = vld [vmem:[%s1254_s0 + $0x68] ss:$12 sps:$4 sm:$0xff]  }
   0xb   :  { %746 = vmatpush3.bf16.msra.mxu0 %v847_v6  ;;  %v874_v31 = vld [vmem:[%s1254_s0 + $0x48] ss:$12 sps:$4 sm:$0xff]   ;;  %v876_v32 = vld [vmem:[%s1254_s0 + $0x64] ss:$12 sps:$4 sm:$0xff]   ;;  %v883_v33 = vld [vmem:[%s1254_s0 + $0x80] ss:$12 sps:$4 sm:$0xff]  }
   0xc   :  { %747 = vmatprep.subr.bf16.mxu0 %v848_v7  ;;  %813 = vmatmul.mubr.msk.bf16.vlgmr.msra.gmra.mrb[0].mxu1 %vm291_vm1, %v863_v17  ;;  %v878_v34 = vld [vmem:[%s1254_s0 + $0x60] ss:$12 sps:$4 sm:$0xff]   ;;  %v880_v35 = vld [vmem:[%s1254_s0 + $0x7c] ss:$12 sps:$4 sm:$0xff]   ;;  %v886_v36 = vld [vmem:[%s1254_s0 + $0x98] ss:$0 sps:$4 sm:$0xff]  }
   0xd   :  { %816 = vmatprep.mubr.msk.bf16.mxu1 %vm890_vm0, %v889_v1  ;;  %v45_v37 = vld [vmem:[%s1254_s0 + $0x90] sm:$0xff]  ;;  %v882_v38 = vld [vmem:[%s1254_s0 + $0x78] ss:$12 sps:$4 sm:$0xff]  }
   0xe   :  { %v712_v39 = vcombine.high %v45_v37, %v45_v37  ;;  %v711_v40 = vcombine.low %v45_v37, %v45_v37 }
   0xf   :  { %748 = vmatpush3.bf16.msra.mxu0 %v849_v8 }
  0x10   :  { %749 = vmatprep.subr.bf16.mxu0 %v850_v9 }
  0x13   :  { %750 = vmatpush3.bf16.msra.mxu0 %v851_v11 }
  0x14   :  { %751 = vmatprep.subr.bf16.mxu0 %v852_v12  ;;  %817 = vmatmul.mubr.msk.bf16.gmra.mrb[4].mxu1 %vm291_vm1, %v867_v21 }
  0x15   :  { %820 = vmatprep.mubr.msk.bf16.mxu1 %vm890_vm0, %v889_v1 }
  0x17   :  { %752 = vmatpush3.bf16.msra.mxu0 %v853_v13 }
  0x18   :  { %753 = vmatprep.subr.bf16.mxu0 %v854_v15 }
  0x1b   :  { %754 = vmatpush3.bf16.msra.mxu0 %v855_v18 }
  0x1c   :  { %755 = vmatprep.subr.bf16.mxu0 %v857_v19  ;;  %821 = vmatmul.mubr.msk.bf16.gmra.mrb[8].mxu1 %vm291_vm1, %v871_v24 }
  0x1d   :  { %824 = vmatprep.mubr.msk.bf16.mxu1 %vm890_vm0, %v889_v1 }
  0x1f   :  { %756 = vmatpush3.bf16.msra.mxu0 %v858_v20 }
  0x22   :  { %346 = vmatmul.mubr.bf16.vlgmr.msra.gmra.mrb[0].mxu0 %v860_v22 }
  0x23   :  { %353 = vmatprep.mubr.bf16.mxu0 %v864_v23 }
  0x24   :  { %825 = vmatmul.mubr.msk.bf16.gmra.mrb[12].mxu1 %vm291_vm1, %v875_v27 }
  0x25   :  { %828 = vmatprep.mubr.msk.bf16.mxu1 %vm890_vm0, %v889_v1 }
  0x2a   :  { %354 = vmatmul.mubr.bf16.gmra.mrb[4].mxu0 %v866_v25 }
  0x2b   :  { %361 = vmatprep.mubr.bf16.mxu0 %v868_v26 }
  0x2c   :  { %829 = vmatmul.mubr.msk.bf16.gmra.mrb[16].mxu1 %vm291_vm1, %v879_v30 }
  0x2d   :  { %832 = vmatprep.mubr.msk.bf16.mxu1 %vm890_vm0, %v889_v1 }
  0x32   :  { %362 = vmatmul.mubr.bf16.gmra.mrb[8].mxu0 %v870_v28 }
  0x33   :  { %369 = vmatprep.mubr.bf16.mxu0 %v872_v29 }
  0x34   :  { %833 = vmatmul.mubr.msk.bf16.gmra.mrb[20].mxu1 %vm291_vm1, %v883_v33 }
  0x35   :  { %836 = vmatprep.mubr.msk.bf16.mxu1 %vm890_vm0, %v889_v1 }
  0x3a   :  { %370 = vmatmul.mubr.bf16.gmra.mrb[12].mxu0 %v874_v31 }
  0x3b   :  { %377 = vmatprep.mubr.bf16.mxu0 %v876_v32 }
  0x3c   :  { %837 = vmatmul.mubr.msk.bf16.gmra.mrb[24].mxu1 %vm291_vm1, %v886_v36 }
  0x42   :  { %378 = vmatmul.mubr.bf16.gmra.mrb[16].mxu0 %v878_v34 }
  0x43   :  { %385 = vmatprep.mubr.bf16.mxu0 %v880_v35 }
  0x4a   :  { %386 = vmatmul.mubr.bf16.gmra.mrb[20].mxu0 %v882_v38 }
  0x4b   :  { %393 = vmatprep.mubr.bf16.mxu0 %v712_v39 }
  0x52   :  { %394 = vmatmul.mubr.bf16.gmra.mrb[24].mxu0 %v711_v40 }
  0xdf   :  { %v435_v41 = vpop.f32.mrb[0].mxu1 }
  0xe0   :  { %v814_v42 = vpop.f32.mrb[1].mxu1 }
  0xe1   :  { %v438_v43 = vpop.f32.mrb[2].mxu1 }
  0xe2   :  { %v815_v44 = vpop.f32.mrb[3].mxu1 }
  0xe7   :  { %v443_v45 = vpop.f32.mrb[4].mxu1 }
  0xe8   :  { %v818_v46 = vpop.f32.mrb[5].mxu1 }
  0xe9   :  { %v446_v47 = vpop.f32.mrb[6].mxu1 }
  0xea   :  { %v819_v49 = vpop.f32.mrb[7].mxu1 }
  0xef   :  { %v451_v56 = vpop.f32.mrb[8].mxu1 }
  0xf0   :  { %v822_v59 = vpop.f32.mrb[9].mxu1 }
  0xf1   :  { %v454_v60 = vpop.f32.mrb[10].mxu1 }
  0xf2   :  { %v823_v1 = vpop.f32.mrb[11].mxu1 }
  0xf5   :  { %v757_v48 = vpop.f32.mrb[0].mxu0 }
  0xf6   :  { %v758_v50 = vpop.f32.mrb[1].mxu0 }
  0xf7   :  { %v759_v51 = vadd.f32 %v758_v50, %v757_v48  ;;  %v760_v52 = vpop.f32.mrb[2].mxu0  ;;  %v459_v12 = vpop.f32.mrb[12].mxu1 }
  0xf8   :  { %v761_v53 = vpop.f32.mrb[3].mxu0  ;;  %v826_v16 = vpop.f32.mrb[13].mxu1 }
  0xf9   :  { %v1058_v54 = vadd.f32 %v759_v51, %v435_v41  ;;  %v762_v55 = vadd.f32 %v761_v53, %v760_v52  ;;  %v462_v18 = vpop.f32.mrb[14].mxu1 }
  0xfa   :  { %v827_v23 = vpop.f32.mrb[15].mxu1 }
  0xfb   :  { %v523_v57 = vmul.f32 %v1058_v54, %v1058_v54  ;;  %v1062_v58 = vadd.f32 %v762_v55, %v438_v43  ;;  %v491_v61 = vsel %vm291_vm1, %v1058_v54, 0.0 }
  0xfd   :  { %v492_v62 = vsel %vm291_vm1, %v1062_v58, 0.0  ;;  %v524_v63 = vmul.f32 %v1062_v58, %v1062_v58  ;;  %v763_v0 = vpop.f32.mrb[4].mxu0  ;;  %v536_v4 = vsel %vm291_vm1, %v523_v57, 0.0 }
  0xfe   :  { %v493_v2 = vadd.f32 %v492_v62, %v491_v61  ;;  %v764_v3 = vpop.f32.mrb[5].mxu0 }
  0xff   :  { %v537_v5 = vsel %vm291_vm1, %v524_v63, 0.0  ;;  %v765_v6 = vadd.f32 %v764_v3, %v763_v0  ;;  %v766_v7 = vpop.f32.mrb[6].mxu0  ;;  %v467_v34 = vpop.f32.mrb[16].mxu1 }
 0x100   :  { %v538_v8 = vadd.f32 %v537_v5, %v536_v4  ;;  %v767_v9 = vpop.f32.mrb[7].mxu0  ;;  %v830_v38 = vpop.f32.mrb[17].mxu1 }
 0x101   :  { %v1072_v10 = vadd.f32 %v765_v6, %v443_v45  ;;  %v768_v11 = vadd.f32 %v767_v9, %v766_v7  ;;  %v470_v40 = vpop.f32.mrb[18].mxu1 }
 0x102   :  { %v831_v45 = vpop.f32.mrb[19].mxu1 }
 0x103   :  { %v494_v13 = vsel %vm291_vm1, %v1072_v10, 0.0  ;;  %v525_v14 = vmul.f32 %v1072_v10, %v1072_v10  ;;  %v1078_v15 = vadd.f32 %v768_v11, %v446_v47 }
 0x104   :  { %v495_v17 = vadd.f32 %v494_v13, %v493_v2 }
 0x105   :  { %v539_v19 = vsel %vm291_vm1, %v525_v14, 0.0  ;;  %v496_v20 = vsel %vm291_vm1, %v1078_v15, 0.0  ;;  %v526_v21 = vmul.f32 %v1078_v15, %v1078_v15  ;;  %v769_v22 = vpop.f32.mrb[8].mxu0 }
 0x106   :  { %v540_v24 = vadd.f32 %v539_v19, %v538_v8  ;;  %v497_v25 = vadd.f32 %v496_v20, %v495_v17  ;;  %v770_v26 = vpop.f32.mrb[9].mxu0 }
 0x107   :  { %v541_v27 = vsel %vm291_vm1, %v526_v21, 0.0  ;;  %v771_v28 = vadd.f32 %v770_v26, %v769_v22  ;;  %v772_v29 = vpop.f32.mrb[10].mxu0  ;;  %v475_v57 = vpop.f32.mrb[20].mxu1 }
 0x108   :  { %v542_v30 = vadd.f32 %v541_v27, %v540_v24  ;;  %v773_v31 = vpop.f32.mrb[11].mxu0  ;;  %v834_v62 = vpop.f32.mrb[21].mxu1 }
 0x109   :  { %v1086_v32 = vadd.f32 %v771_v28, %v451_v56  ;;  %v774_v33 = vadd.f32 %v773_v31, %v772_v29  ;;  %v478_v0 = vpop.f32.mrb[22].mxu1 }
 0x10a   :  { %v835_v5 = vpop.f32.mrb[23].mxu1 }
 0x10b   :  { %v498_v35 = vsel %vm291_vm1, %v1086_v32, 0.0  ;;  %v527_v36 = vmul.f32 %v1086_v32, %v1086_v32  ;;  %v1092_v37 = vadd.f32 %v774_v33, %v454_v60 }
 0x10c   :  { %v499_v39 = vadd.f32 %v498_v35, %v497_v25 }
 0x10d   :  { %v543_v41 = vsel %vm291_vm1, %v527_v36, 0.0  ;;  %v500_v42 = vsel %vm291_vm1, %v1092_v37, 0.0  ;;  %v528_v43 = vmul.f32 %v1092_v37, %v1092_v37  ;;  %v775_v44 = vpop.f32.mrb[12].mxu0 }
 0x10e   :  { %v544_v46 = vadd.f32 %v543_v41, %v542_v30  ;;  %v501_v47 = vadd.f32 %v500_v42, %v499_v39  ;;  %v776_v48 = vpop.f32.mrb[13].mxu0 }
 0x10f   :  { %v545_v49 = vsel %vm291_vm1, %v528_v43, 0.0  ;;  %v777_v50 = vadd.f32 %v776_v48, %v775_v44  ;;  %v778_v51 = vpop.f32.mrb[14].mxu0 }
 0x110   :  { %v546_v52 = vadd.f32 %v545_v49, %v544_v46  ;;  %v779_v53 = vpop.f32.mrb[15].mxu0 }
 0x111   :  { %v1100_v55 = vadd.f32 %v777_v50, %v459_v12  ;;  %v780_v56 = vadd.f32 %v779_v53, %v778_v51 }
 0x113   :  { %v502_v59 = vsel %vm291_vm1, %v1100_v55, 0.0  ;;  %v529_v60 = vmul.f32 %v1100_v55, %v1100_v55  ;;  %v1106_v61 = vadd.f32 %v780_v56, %v462_v18  ;;  %v483_v18 = vpop.f32.mrb[24].mxu1 }
 0x114   :  { %v503_v63 = vadd.f32 %v502_v59, %v501_v47  ;;  %v838_v22 = vpop.f32.mrb[25].mxu1 }
 0x115   :  { %v547_v1 = vsel %vm291_vm1, %v529_v60, 0.0  ;;  %v504_v2 = vsel %vm291_vm1, %v1106_v61, 0.0  ;;  %v530_v3 = vmul.f32 %v1106_v61, %v1106_v61  ;;  %v781_v4 = vpop.f32.mrb[16].mxu0  ;;  %v486_v24 = vpop.f32.mrb[26].mxu1 }
 0x116   :  { %v548_v6 = vadd.f32 %v547_v1, %v546_v52  ;;  %v505_v7 = vadd.f32 %v504_v2, %v503_v63  ;;  %v782_v8 = vpop.f32.mrb[17].mxu0  ;;  %v839_v29 = vpop.f32.mrb[27].mxu1 }
 0x117   :  { %v549_v9 = vsel %vm291_vm1, %v530_v3, 0.0  ;;  %v783_v11 = vadd.f32 %v782_v8, %v781_v4  ;;  %v784_v12 = vpop.f32.mrb[18].mxu0 }
 0x118   :  { %v550_v13 = vadd.f32 %v549_v9, %v548_v6  ;;  %v785_v14 = vpop.f32.mrb[19].mxu0 }
 0x119   :  { %v1114_v16 = vadd.f32 %v783_v11, %v467_v34  ;;  %v786_v17 = vadd.f32 %v785_v14, %v784_v12 }
 0x11b   :  { %v506_v19 = vsel %vm291_vm1, %v1114_v16, 0.0  ;;  %v531_v20 = vmul.f32 %v1114_v16, %v1114_v16  ;;  %v1120_v21 = vadd.f32 %v786_v17, %v470_v40 }
 0x11c   :  { %v507_v23 = vadd.f32 %v506_v19, %v505_v7 }
 0x11d   :  { %v551_v25 = vsel %vm291_vm1, %v531_v20, 0.0  ;;  %v508_v26 = vsel %vm291_vm1, %v1120_v21, 0.0  ;;  %v532_v27 = vmul.f32 %v1120_v21, %v1120_v21  ;;  %v787_v28 = vpop.f32.mrb[20].mxu0 }
 0x11e   :  { %v552_v30 = vadd.f32 %v551_v25, %v550_v13  ;;  %v509_v31 = vadd.f32 %v508_v26, %v507_v23  ;;  %v788_v33 = vpop.f32.mrb[21].mxu0 }
 0x11f   :  { %v553_v34 = vsel %vm291_vm1, %v532_v27, 0.0  ;;  %v789_v35 = vadd.f32 %v788_v33, %v787_v28  ;;  %v790_v36 = vpop.f32.mrb[22].mxu0 }
 0x120   :  { %v554_v38 = vadd.f32 %v553_v34, %v552_v30  ;;  %v791_v39 = vpop.f32.mrb[23].mxu0 }
 0x121   :  { %v1128_v40 = vadd.f32 %v789_v35, %v475_v57  ;;  %v792_v41 = vadd.f32 %v791_v39, %v790_v36 }
 0x123   :  { %v510_v42 = vsel %vm291_vm1, %v1128_v40, 0.0  ;;  %v533_v43 = vmul.f32 %v1128_v40, %v1128_v40  ;;  %v1134_v44 = vadd.f32 %v792_v41, %v478_v0 }
 0x124   :  { %v511_v45 = vadd.f32 %v510_v42, %v509_v31 }
 0x125   :  { %v555_v46 = vsel %vm291_vm1, %v533_v43, 0.0  ;;  %v512_v47 = vsel %vm291_vm1, %v1134_v44, 0.0  ;;  %v534_v48 = vmul.f32 %v1134_v44, %v1134_v44  ;;  %v793_v49 = vpop.f32.mrb[24].mxu0 }
 0x126   :  { %v556_v50 = vadd.f32 %v555_v46, %v554_v38  ;;  %v513_v51 = vadd.f32 %v512_v47, %v511_v45  ;;  %v794_v52 = vpop.f32.mrb[25].mxu0  ;;  %v740_v45 = vld [vmem:[%s1256_s3] ss:$0 sm:$0xff] }
 0x127   :  { %v557_v53 = vsel %vm291_vm1, %v534_v48, 0.0  ;;  %v795_v56 = vadd.f32 %v794_v52, %v793_v49  ;;  %v796_v57 = vpop.f32.mrb[26].mxu0 }
 0x128   :  { %v558_v59 = vadd.f32 %v557_v53, %v556_v50  ;;  %v797_v60 = vpop.f32.mrb[27].mxu0 }
 0x129   :  { %v484_v62 = vadd.f32 %v795_v56, %v483_v18 }
 0x12b   :  { %v514_v63 = vsel %vm291_vm1, %v484_v62, 0.0  ;;  %v535_v0 = vmul.f32 %v484_v62, %v484_v62 }
 0x12c   :  { %v515_v1 = vadd.f32 %v514_v63, %v513_v51 }
 0x12d   :  { %v559_v2 = vsel %vm291_vm1, %v535_v0, 0.0 }
 0x12e   :  { %v516_v3 = vrot.slane %v515_v1, 4  ;;  %v560_v4 = vadd.f32 %v559_v2, %v558_v59 }
 0x130   :  { %v517_v5 = vadd.f32 %v516_v3, %v515_v1  ;;  %v561_v6 = vrot.slane %v560_v4, 4  ;;  %v638_v3 = vld [vmem:[%s1257_s4 + $0x8] sm:$0xff] }
 0x132   :  { %v518_v7 = vrot.slane %v517_v5, 2  ;;  %v562_v8 = vadd.f32 %v561_v6, %v560_v4  ;;  %v639_v4 = vld [vmem:[%s1257_s4 + $0x10] sm:$0xff] }
 0x134   :  { %v519_v9 = vadd.f32 %v518_v7, %v517_v5  ;;  %v563_v11 = vrot.slane %v562_v8, 2  ;;  %v640_v5 = vld [vmem:[%s1257_s4 + $0x18] sm:$0xff] }
 0x136   :  { %v520_v12 = vrot.slane %v519_v9, 1  ;;  %v564_v13 = vadd.f32 %v563_v11, %v562_v8  ;;  %v641_v11 = vld [vmem:[%s1257_s4 + $0x20] sm:$0xff] }
 0x138   :  { %v521_v14 = vadd.f32 %v520_v12, %v519_v9  ;;  %v565_v17 = vrot.slane %v564_v13, 1  ;;  %v642_v12 = vld [vmem:[%s1257_s4 + $0x28] sm:$0xff] }
 0x13a   :  { %v522_v19 = vmul.f32 0.010204081, %v521_v14  ;;  %v566_v18 = vadd.f32 %v565_v17, %v564_v13  ;;  %v643_v13 = vld [vmem:[%s1257_s4 + $0x30] sm:$0xff] }
 0x13c   :  { %v567_v20 = vmul.f32 0.010204081, %v566_v18  ;;  %v568_v22 = vmul.f32 %v522_v19, %v522_v19  ;;  %v571_v23 = vsub.f32 %v1058_v54, %v522_v19  ;;  %v572_v24 = vsub.f32 %v1062_v58, %v522_v19 }
 0x13d   :  { %v573_v25 = vsub.f32 %v1072_v10, %v522_v19  ;;  %v574_v26 = vsub.f32 %v1078_v15, %v522_v19  ;;  %v575_v27 = vsub.f32 %v1086_v32, %v522_v19  ;;  %v576_v28 = vsub.f32 %v1092_v37, %v522_v19  ;;  %v739_v37 = vld [vmem:[%s1255_s2] ss:$0 sm:$0xff] }
 0x13e   :  { %v569_v29 = vsub.f32 %v567_v20, %v568_v22  ;;  %v577_v30 = vsub.f32 %v1100_v55, %v522_v19  ;;  %v578_v31 = vsub.f32 %v1106_v61, %v522_v19  ;;  %v579_v33 = vsub.f32 %v1114_v16, %v522_v19  ;;  %v644_v20 = vld [vmem:[%s1257_s4 + $0x38] sm:$0xff]  ;;  %v645_v22 = vld [vmem:[%s1257_s4 + $0x40] sm:$0xff] }
 0x13f   :  { %v580_v34 = vsub.f32 %v1120_v21, %v522_v19  ;;  %v581_v54 = vsub.f32 %v1128_v40, %v522_v19  ;;  %v582_v58 = vsub.f32 %v1134_v44, %v522_v19  ;;  %v583_v10 = vsub.f32 %v484_v62, %v522_v19  ;;  %v637_v62 = vld [vmem:[%s1257_s4] sm:$0xff] }
 0x140   :  { %v570_v35 = vmax.f32 %v569_v29, 0.0  ;;  %v649_v29 = vld [vmem:[%s1257_s4 + $0x60] sm:$0xff] }
 0x142   :  { %v584_v15 = vadd.f32 1e-05, %v570_v35 }
 0x144   :  { %887 = vrsqrt.f32 %v584_v15 }
 0x14e   :  { %v888_v32 = vpop.eup %887 }
 0x14f   :  { %v586_v55 = vmul.f32 %v888_v32, %v571_v23  ;;  %v587_v36 = vmul.f32 %v888_v32, %v572_v24  ;;  %v588_v61 = vmul.f32 %v888_v32, %v573_v25  ;;  %v589_v38 = vmul.f32 %v888_v32, %v574_v26  ;;  %v646_v23 = vld [vmem:[%s1257_s4 + $0x48] sm:$0xff] }
 0x150   :  { %v590_v16 = vmul.f32 %v888_v32, %v575_v27  ;;  %v591_v39 = vmul.f32 %v888_v32, %v576_v28  ;;  %v592_v21 = vmul.f32 %v888_v32, %v577_v30  ;;  %v593_v41 = vmul.f32 %v888_v32, %v578_v31  ;;  %v647_v27 = vld [vmem:[%s1257_s4 + $0x50] sm:$0xff]  ;;  %v648_v28 = vld [vmem:[%s1257_s4 + $0x58] sm:$0xff] }
 0x151   :  { %v594_v40 = vmul.f32 %v888_v32, %v579_v33  ;;  %v595_v42 = vmul.f32 %v888_v32, %v580_v34  ;;  %v596_v43 = vmul.f32 %v888_v32, %v581_v54  ;;  %v597_v44 = vmul.f32 %v888_v32, %v582_v58 }
 0x152   :  { %v598_v46 = vmul.f32 %v888_v32, %v583_v10  ;;  %v605_v47 = vmul.f32 %v739_v37, %v586_v55  ;;  %v606_v48 = vmul.f32 %v739_v37, %v587_v36  ;;  %v607_v49 = vmul.f32 %v739_v37, %v588_v61 }
 0x153   :  { %v608_v50 = vmul.f32 %v739_v37, %v589_v38  ;;  %v609_v51 = vmul.f32 %v739_v37, %v590_v16  ;;  %v610_v52 = vmul.f32 %v739_v37, %v591_v39  ;;  %v611_v53 = vmul.f32 %v739_v37, %v592_v21 }
 0x154   :  { %v612_v56 = vmul.f32 %v739_v37, %v593_v41  ;;  %v613_v57 = vmul.f32 %v739_v37, %v594_v40  ;;  %v614_v59 = vmul.f32 %v739_v37, %v595_v42  ;;  %v615_v60 = vmul.f32 %v739_v37, %v596_v43 }
 0x155   :  { %v616_v63 = vmul.f32 %v739_v37, %v597_v44  ;;  %v617_v0 = vmul.f32 %v739_v37, %v598_v46  ;;  %v624_v1 = vadd.f32 %v740_v45, %v605_v47  ;;  %v625_v2 = vadd.f32 %v740_v45, %v606_v48 }
 0x156   :  { %v626_v6 = vadd.f32 %v740_v45, %v607_v49  ;;  %v627_v7 = vadd.f32 %v740_v45, %v608_v50  ;;  %v628_v8 = vadd.f32 %v740_v45, %v609_v51  ;;  %v629_v9 = vadd.f32 %v740_v45, %v610_v52 }
 0x157   :  { %v630_v14 = vadd.f32 %v740_v45, %v611_v53  ;;  %v631_v17 = vadd.f32 %v740_v45, %v612_v56  ;;  %v632_v19 = vadd.f32 %v740_v45, %v613_v57  ;;  %v633_v18 = vadd.f32 %v740_v45, %v614_v59 }
 0x158   :  { %v634_v24 = vadd.f32 %v740_v45, %v615_v60  ;;  %v635_v25 = vadd.f32 %v740_v45, %v616_v63  ;;  %v636_v26 = vadd.f32 %v740_v45, %v617_v0  ;;  %v650_v30 = vadd.f32 %v637_v62, %v624_v1 }
 0x159   :  { %v651_v31 = vadd.f32 %v638_v3, %v625_v2  ;;  %v652_v33 = vadd.f32 %v639_v4, %v626_v6  ;;  %v653_v34 = vadd.f32 %v640_v5, %v627_v7  ;;  %v654_v54 = vadd.f32 %v641_v11, %v628_v8 }
 0x15a   :  { %v655_v58 = vadd.f32 %v642_v12, %v629_v9  ;;  %v656_v10 = vadd.f32 %v643_v13, %v630_v14  ;;  %v657_v35 = vadd.f32 %v644_v20, %v631_v17  ;;  %v658_v15 = vadd.f32 %v645_v22, %v632_v19 }
 0x15b   :  { %v659_v32 = vadd.f32 %v646_v23, %v633_v18  ;;  %v660_v37 = vadd.f32 %v647_v27, %v634_v24  ;;  %v661_v55 = vadd.f32 %v648_v28, %v635_v25  ;;  %v662_v36 = vadd.f32 %v649_v29, %v636_v26 }
 0x15c   :  { %v663_v61 = vmax.f32 %v650_v30, 0.0  ;;  %v664_v38 = vmax.f32 %v651_v31, 0.0  ;;  %v665_v16 = vmax.f32 %v652_v33, 0.0  ;;  %v666_v39 = vmax.f32 %v653_v34, 0.0 }
 0x15d   :  { %v667_v21 = vmax.f32 %v654_v54, 0.0  ;;  %v668_v41 = vmax.f32 %v655_v58, 0.0  ;;  %v669_v40 = vmax.f32 %v656_v10, 0.0  ;;  %v670_v42 = vmax.f32 %v657_v35, 0.0 }
 0x15e   :  { %v671_v43 = vmax.f32 %v658_v15, 0.0  ;;  %v672_v44 = vmax.f32 %v659_v32, 0.0  ;;  %v673_v45 = vmax.f32 %v660_v37, 0.0  ;;  %v674_v46 = vmax.f32 %v661_v55, 0.0  ;;  %676 = vst.msk [vmem:[%s1258_s5] sm:$0xff] %vm291_vm1, %v663_v61  ;;  %677 = vst.msk [vmem:[%s1258_s5 + $0x8] sm:$0xff] %vm291_vm1, %v664_v38 }
 0x15f   :  { %678 = vst.msk [vmem:[%s1258_s5 + $0x10] sm:$0xff] %vm291_vm1, %v665_v16  ;;  %679 = vst.msk [vmem:[%s1258_s5 + $0x18] sm:$0xff] %vm291_vm1, %v666_v39  ;;  %v675_v47 = vmax.f32 %v662_v36, 0.0 }
 0x160   :  { %680 = vst.msk [vmem:[%s1258_s5 + $0x20] sm:$0xff] %vm291_vm1, %v667_v21  ;;  %681 = vst.msk [vmem:[%s1258_s5 + $0x28] sm:$0xff] %vm291_vm1, %v668_v41 }
 0x161   :  { %682 = vst.msk [vmem:[%s1258_s5 + $0x30] sm:$0xff] %vm291_vm1, %v669_v40  ;;  %683 = vst.msk [vmem:[%s1258_s5 + $0x38] sm:$0xff] %vm291_vm1, %v670_v42 }
 0x162   :  { %684 = vst.msk [vmem:[%s1258_s5 + $0x40] sm:$0xff] %vm291_vm1, %v671_v43  ;;  %685 = vst.msk [vmem:[%s1258_s5 + $0x48] sm:$0xff] %vm291_vm1, %v672_v44 }
 0x163   :  { %686 = vst.msk [vmem:[%s1258_s5 + $0x50] sm:$0xff] %vm291_vm1, %v673_v45  ;;  %687 = vst.msk [vmem:[%s1258_s5 + $0x58] sm:$0xff] %vm291_vm1, %v674_v46 }
 0x164   :  { %688 = vst.msk [vmem:[%s1258_s5 + $0x60] sm:$0xff] %vm291_vm1, %v675_v47 }

// kernel: _lambda_.27
= control target key start
LH: loop header
LB: loop body
LE: loop exit
PB: predicated region body
PF: predicated region fallthrough
CT: control target
= control target key end

     0   :  { %vm200_vm0 = vcmask 261120   ;;  %vm307_vm1 = vcmask 523264   ;;  %s608_s1 = inlined_call_operand.vmem [shape: bf16[288,64], index: 1, kind: input, shape index: {}]   ;;  %s609_s0 = inlined_call_operand.vmem [shape: bf16[32,288], index: 0, kind: input, shape index: {}]   ;;  %s610_s2 = inlined_call_operand.vmem [shape: f32[1,64], index: 2, kind: input, shape index: {}]   ;;  %s611_s3 = inlined_call_operand.vmem [shape: f32[1,64], index: 3, kind: input, shape index: {}]   ;;  %s612_s4 = inlined_call_operand.vmem [shape: f32[32,64], index: 4, kind: output, shape index: {}]  }
   0x1   :  { %v453_v0 = vld [vmem:[%s608_s1 + $0x40] sm:$0xff]   ;;  %v455_v2 = vld [vmem:[%s608_s1 + $0x48] sm:$0xff]   ;;  %v457_v4 = vld [vmem:[%s608_s1 + $0x50] sm:$0xff]  }
   0x2   :  { %v454_v1 = vld [vmem:[%s608_s1] sm:$0xff]   ;;  %413 = vmatprep.subr.bf16.mxu0 %v453_v0  ;;  %v456_v3 = vld [vmem:[%s608_s1 + $0x8] sm:$0xff]   ;;  %v458_v5 = vld [vmem:[%s608_s1 + $0x10] sm:$0xff]  }
   0x3   :  { %414 = vmatpush3.bf16.msra.mxu0 %v454_v1  ;;  %v459_v6 = vld [vmem:[%s608_s1 + $0x58] sm:$0xff]   ;;  %v461_v8 = vld [vmem:[%s608_s1 + $0x60] sm:$0xff]   ;;  %v463_v11 = vld [vmem:[%s608_s1 + $0x68] sm:$0xff]  }
   0x4   :  { %415 = vmatprep.subr.bf16.mxu0 %v455_v2  ;;  %v460_v7 = vld [vmem:[%s608_s1 + $0x18] sm:$0xff]   ;;  %v467_v9 = vld [vmem:[%s608_s1 + $0x80] sm:$0xff]   ;;  %v464_v12 = vld [vmem:[%s608_s1 + $0x28] sm:$0xff]  }
   0x5   :  { %v462_v10 = vld [vmem:[%s608_s1 + $0x20] sm:$0xff]   ;;  %445 = vmatprep.subr.bf16.mxu1 %v467_v9  ;;  %v470_v13 = vld [vmem:[%s608_s1 + $0x88] sm:$0xff]   ;;  %v465_v14 = vld [vmem:[%s608_s1 + $0x70] sm:$0xff]  }
   0x6   :  { %446 = vmatpush3.bf16.msra.mxu1 %v467_v9  ;;  %v473_v15 = vld [vmem:[%s609_s0 + $0x4] ss:$12 sps:$4 sm:$0xff]   ;;  %v474_v16 = vld [vmem:[%s609_s0 + $0x8] ss:$12 sps:$4 sm:$0xff]   ;;  %v475_v17 = vld [vmem:[%s609_s0 + $0x20] ss:$12 sps:$4 sm:$0xff]  }
   0x7   :  { %416 = vmatpush3.bf16.msra.mxu0 %v456_v3  ;;  %447 = vmatprep.subr.bf16.mxu1 %v470_v13  ;;  %v466_v18 = vld [vmem:[%s608_s1 + $0x30] sm:$0xff]   ;;  %v468_v19 = vld [vmem:[%s608_s1 + $0x78] sm:$0xff]   ;;  %v471_v21 = vld [vmem:[%s609_s0] ss:$12 sps:$4 sm:$0xff]  }
   0x8   :  { %417 = vmatprep.subr.bf16.mxu0 %v457_v4  ;;  %239 = vmatprep.mubr.bf16.mxu0 %v473_v15  ;;  %v469_v20 = vld [vmem:[%s608_s1 + $0x38] sm:$0xff]  }
   0x9   :  { %449 = vmatprep.mubr.msk.bf16.mxu1 %vm200_vm0, %v474_v16  ;;  %v476_v22 = vld [vmem:[%s609_s0 + $0x1c] ss:$12 sps:$4 sm:$0xff]   ;;  %v478_v23 = vld [vmem:[%s609_s0 + $0x18] ss:$12 sps:$4 sm:$0xff]  }
   0xa   :  { %448 = vmatpush3.bf16.msra.mxu1 %v470_v13 }
   0xb   :  { %418 = vmatpush3.bf16.msra.mxu0 %v458_v5 }
   0xc   :  { %419 = vmatprep.subr.bf16.mxu0 %v459_v6 }
   0xd   :  { %450 = vmatmul.mubr.msk.bf16.vlgmr.msra.gmra.mrb[0].mxu1 %vm200_vm0, %v475_v17 }
   0xf   :  { %420 = vmatpush3.bf16.msra.mxu0 %v460_v7 }
  0x10   :  { %421 = vmatprep.subr.bf16.mxu0 %v461_v8 }
  0x13   :  { %422 = vmatpush3.bf16.msra.mxu0 %v462_v10 }
  0x14   :  { %423 = vmatprep.subr.bf16.mxu0 %v463_v11 }
  0x17   :  { %424 = vmatpush3.bf16.msra.mxu0 %v464_v12 }
  0x18   :  { %425 = vmatprep.subr.bf16.mxu0 %v465_v14 }
  0x1b   :  { %426 = vmatpush3.bf16.msra.mxu0 %v466_v18 }
  0x1c   :  { %427 = vmatprep.subr.bf16.mxu0 %v468_v19 }
  0x1f   :  { %428 = vmatpush3.bf16.msra.mxu0 %v469_v20 }
  0x22   :  { %240 = vmatmul.mubr.bf16.vlgmr.msra.gmra.mrb[0].mxu0 %v471_v21  ;;  %v411_v21 = vld [vmem:[%s610_s2] ss:$0 sm:$0xff] }
  0x23   :  { %247 = vmatprep.mubr.bf16.mxu0 %v476_v22 }
  0x2a   :  { %248 = vmatmul.mubr.bf16.gmra.mrb[4].mxu0 %v478_v23 }
  0xe0   :  { %v451_v24 = vpop.f32.mrb[0].mxu1 }
  0xe1   :  { %v290_v25 = vpop.f32.mrb[1].mxu1 }
  0xe2   :  { %v452_v26 = vpop.f32.mrb[2].mxu1 }
  0xe3   :  { %v293_v27 = vpop.f32.mrb[3].mxu1 }
  0xf5   :  { %v429_v28 = vpop.f32.mrb[0].mxu0 }
  0xf6   :  { %v430_v29 = vpop.f32.mrb[1].mxu0 }
  0xf7   :  { %v431_v30 = vadd.f32 %v430_v29, %v429_v28  ;;  %v432_v31 = vpop.f32.mrb[2].mxu0 }
  0xf8   :  { %v433_v32 = vpop.f32.mrb[3].mxu0 }
  0xf9   :  { %v434_v33 = vadd.f32 %v433_v32, %v432_v31  ;;  %v291_v34 = vadd.f32 %v431_v30, %v290_v25 }
  0xfb   :  { %v322_v35 = vmul.f32 %v291_v34, %v291_v34  ;;  %v294_v36 = vadd.f32 %v434_v33, %v293_v27  ;;  %v308_v37 = vsel %vm307_vm1, %v291_v34, 0.0 }
  0xfd   :  { %v309_v38 = vsel %vm307_vm1, %v294_v36, 0.0  ;;  %v323_v39 = vmul.f32 %v294_v36, %v294_v36  ;;  %v435_v40 = vpop.f32.mrb[4].mxu0  ;;  %v326_v43 = vsel %vm307_vm1, %v322_v35, 0.0 }
  0xfe   :  { %v310_v41 = vadd.f32 %v309_v38, %v308_v37  ;;  %v436_v42 = vpop.f32.mrb[5].mxu0 }
  0xff   :  { %v327_v44 = vsel %vm307_vm1, %v323_v39, 0.0  ;;  %v437_v45 = vadd.f32 %v436_v42, %v435_v40  ;;  %v438_v46 = vpop.f32.mrb[6].mxu0 }
 0x100   :  { %v328_v47 = vadd.f32 %v327_v44, %v326_v43  ;;  %v439_v48 = vpop.f32.mrb[7].mxu0 }
 0x101   :  { %v299_v49 = vadd.f32 %v451_v24, %v437_v45  ;;  %v440_v50 = vadd.f32 %v439_v48, %v438_v46 }
 0x103   :  { %v311_v51 = vsel %vm307_vm1, %v299_v49, 0.0  ;;  %v324_v52 = vmul.f32 %v299_v49, %v299_v49  ;;  %v302_v53 = vadd.f32 %v452_v26, %v440_v50  ;;  %v412_v26 = vld [vmem:[%s611_s3] ss:$0 sm:$0xff] }
 0x104   :  { %v312_v54 = vadd.f32 %v311_v51, %v310_v41 }
 0x105   :  { %v329_v55 = vsel %vm307_vm1, %v324_v52, 0.0  ;;  %v313_v56 = vsel %vm307_vm1, %v302_v53, 0.0  ;;  %v325_v57 = vmul.f32 %v302_v53, %v302_v53 }
 0x106   :  { %v330_v58 = vadd.f32 %v329_v55, %v328_v47  ;;  %v314_v59 = vadd.f32 %v313_v56, %v312_v54 }
 0x107   :  { %v331_v60 = vsel %vm307_vm1, %v325_v57, 0.0 }
 0x108   :  { %v315_v61 = vrot.slane %v314_v59, 4  ;;  %v332_v62 = vadd.f32 %v331_v60, %v330_v58 }
 0x10a   :  { %v316_v63 = vadd.f32 %v315_v61, %v314_v59  ;;  %v333_v0 = vrot.slane %v332_v62, 4 }
 0x10c   :  { %v317_v1 = vrot.slane %v316_v63, 2  ;;  %v334_v2 = vadd.f32 %v333_v0, %v332_v62 }
 0x10e   :  { %v318_v3 = vadd.f32 %v317_v1, %v316_v63  ;;  %v335_v4 = vrot.slane %v334_v2, 2 }
 0x110   :  { %v319_v5 = vrot.slane %v318_v3, 1  ;;  %v336_v6 = vadd.f32 %v335_v4, %v334_v2 }
 0x112   :  { %v320_v7 = vadd.f32 %v319_v5, %v318_v3  ;;  %v337_v8 = vrot.slane %v336_v6, 1 }
 0x114   :  { %v321_v9 = vmul.f32 0.03125, %v320_v7  ;;  %v338_v10 = vadd.f32 %v337_v8, %v336_v6 }
 0x116   :  { %v339_v11 = vmul.f32 0.03125, %v338_v10  ;;  %v340_v12 = vmul.f32 %v321_v9, %v321_v9  ;;  %v343_v13 = vsub.f32 %v291_v34, %v321_v9  ;;  %v344_v14 = vsub.f32 %v294_v36, %v321_v9 }
 0x117   :  { %v345_v15 = vsub.f32 %v299_v49, %v321_v9  ;;  %v346_v16 = vsub.f32 %v302_v53, %v321_v9 }
 0x118   :  { %v341_v17 = vsub.f32 %v339_v11, %v340_v12 }
 0x11a   :  { %v342_v18 = vmax.f32 %v341_v17, 0.0 }
 0x11c   :  { %v347_v19 = vadd.f32 1e-05, %v342_v18 }
 0x11e   :  { %479 = vrsqrt.f32 %v347_v19 }
 0x128   :  { %v480_v20 = vpop.eup %479 }
 0x129   :  { %v349_v22 = vmul.f32 %v480_v20, %v343_v13  ;;  %v350_v23 = vmul.f32 %v480_v20, %v344_v14  ;;  %v351_v24 = vmul.f32 %v480_v20, %v345_v15  ;;  %v352_v25 = vmul.f32 %v480_v20, %v346_v16 }
 0x12b   :  { %v359_v27 = vmul.f32 %v411_v21, %v349_v22  ;;  %v360_v28 = vmul.f32 %v411_v21, %v350_v23  ;;  %v361_v29 = vmul.f32 %v411_v21, %v351_v24  ;;  %v362_v30 = vmul.f32 %v411_v21, %v352_v25 }
 0x12d   :  { %v369_v31 = vadd.f32 %v412_v26, %v359_v27  ;;  %v370_v32 = vadd.f32 %v412_v26, %v360_v28  ;;  %v371_v33 = vadd.f32 %v412_v26, %v361_v29  ;;  %v372_v34 = vadd.f32 %v412_v26, %v362_v30 }
 0x12f   :  { %v373_v35 = vmax.f32 %v369_v31, 0.0  ;;  %v374_v36 = vmax.f32 %v370_v32, 0.0  ;;  %v375_v37 = vmax.f32 %v371_v33, 0.0  ;;  %v376_v38 = vmax.f32 %v372_v34, 0.0 }
 0x131   :  { %377 = vst.msk [vmem:[%s612_s4] sm:$0xff] %vm307_vm1, %v373_v35  ;;  %378 = vst.msk [vmem:[%s612_s4 + $0x8] sm:$0xff] %vm307_vm1, %v374_v36 }
 0x132   :  { %379 = vst.msk [vmem:[%s612_s4 + $0x10] sm:$0xff] %vm307_vm1, %v375_v37  ;;  %380 = vst.msk [vmem:[%s612_s4 + $0x18] sm:$0xff] %vm307_vm1, %v376_v38 }

// kernel: _lambda_.28
= control target key start
LH: loop header
LB: loop body
LE: loop exit
PB: predicated region body
PF: predicated region fallthrough
CT: control target
= control target key end

     0   :  { %vm380_vm0 = vcmask 523264   ;;  %vm631_vm1 = vcmask 261120   ;;  %s1261_s1 = inlined_call_operand.vmem [shape: bf16[576,64], index: 1, kind: input, shape index: {}]   ;;  %s1262_s0 = inlined_call_operand.vmem [shape: bf16[32,576], index: 0, kind: input, shape index: {}]   ;;  %s1263_s5 = inlined_call_operand.vmem [shape: bf16[32,64], index: 5, kind: input, shape index: {}]   ;;  %s1264_s4 = inlined_call_operand.vmem [shape: bf16[32,32], index: 4, kind: input, shape index: {}]   ;;  %s1265_s6 = inlined_call_operand.vmem [shape: f32[1,64], index: 6, kind: input, shape index: {}, may-alias: {2,6}]   ;;  %s1266_s2 = inlined_call_operand.vmem [shape: f32[1,64], index: 2, kind: input, shape index: {}, may-alias: {2,6}]   ;;  %s1267_s7 = inlined_call_operand.vmem [shape: f32[1,64], index: 7, kind: input, shape index: {}, may-alias: {3,7}]   ;;  %s1268_s3 = inlined_call_operand.vmem [shape: f32[1,64], index: 3, kind: input, shape index: {}, may-alias: {3,7}]   ;;  %s1269_s8 = inlined_call_operand.vmem [shape: f32[32,64], index: 8, kind: output, shape index: {}]  }
   0x1   :  { %v914_v0 = vld [vmem:[%s1261_s1 + $0x40] sm:$0xff]   ;;  %v918_v4 = vld [vmem:[%s1261_s1 + $0x48] sm:$0xff]   ;;  %v922_v8 = vld [vmem:[%s1261_s1 + $0x50] sm:$0xff]  }
   0x2   :  { %v915_v1 = vld [vmem:[%s1261_s1 + $0xc0] sm:$0xff]   ;;  %828 = vmatprep.subr.bf16.mxu0 %v914_v0  ;;  %v919_v5 = vld [vmem:[%s1261_s1 + $0xc8] sm:$0xff]   ;;  %v923_v9 = vld [vmem:[%s1261_s1 + $0xd0] sm:$0xff]  }
   0x3   :  { %v916_v2 = vld [vmem:[%s1261_s1] sm:$0xff]   ;;  %856 = vmatprep.subr.bf16.mxu1 %v915_v1  ;;  %v920_v6 = vld [vmem:[%s1261_s1 + $0x8] sm:$0xff]   ;;  %v924_v10 = vld [vmem:[%s1261_s1 + $0x10] sm:$0xff]  }
   0x4   :  { %v917_v3 = vld [vmem:[%s1261_s1 + $0x80] sm:$0xff]   ;;  %829 = vmatpush3.bf16.msra.mxu0 %v916_v2  ;;  %v921_v7 = vld [vmem:[%s1261_s1 + $0x88] sm:$0xff]   ;;  %v925_v11 = vld [vmem:[%s1261_s1 + $0x90] sm:$0xff]  }
   0x5   :  { %857 = vmatpush3.bf16.msra.mxu1 %v917_v3  ;;  %830 = vmatprep.subr.bf16.mxu0 %v918_v4  ;;  %v926_v12 = vld [vmem:[%s1261_s1 + $0x58] sm:$0xff]   ;;  %v930_v16 = vld [vmem:[%s1261_s1 + $0x60] sm:$0xff]   ;;  %v934_v20 = vld [vmem:[%s1261_s1 + $0x68] sm:$0xff]  }
   0x6   :  { %858 = vmatprep.subr.bf16.mxu1 %v919_v5  ;;  %v927_v13 = vld [vmem:[%s1261_s1 + $0xd8] sm:$0xff]   ;;  %v931_v17 = vld [vmem:[%s1261_s1 + $0xe0] sm:$0xff]   ;;  %v935_v21 = vld [vmem:[%s1261_s1 + $0xe8] sm:$0xff]  }
   0x7   :  { %v928_v14 = vld [vmem:[%s1261_s1 + $0x18] sm:$0xff]   ;;  %v932_v18 = vld [vmem:[%s1261_s1 + $0x20] sm:$0xff]   ;;  %v936_v22 = vld [vmem:[%s1261_s1 + $0x28] sm:$0xff]  }
   0x8   :  { %831 = vmatpush3.bf16.msra.mxu0 %v920_v6  ;;  %v929_v15 = vld [vmem:[%s1261_s1 + $0x98] sm:$0xff]   ;;  %v933_v19 = vld [vmem:[%s1261_s1 + $0xa0] sm:$0xff]   ;;  %v937_v23 = vld [vmem:[%s1261_s1 + $0xa8] sm:$0xff]  }
   0x9   :  { %859 = vmatpush3.bf16.msra.mxu1 %v921_v7  ;;  %832 = vmatprep.subr.bf16.mxu0 %v922_v8  ;;  %v938_v24 = vld [vmem:[%s1261_s1 + $0x70] sm:$0xff]   ;;  %v942_v28 = vld [vmem:[%s1261_s1 + $0x78] sm:$0xff]   ;;  %v951_v35 = vld [vmem:[%s1262_s0 + $0xc] ss:$20 sps:$4 sm:$0xff]  }
   0xa   :  { %860 = vmatprep.subr.bf16.mxu1 %v923_v9  ;;  %v939_v25 = vld [vmem:[%s1261_s1 + $0xf0] sm:$0xff]   ;;  %v943_v29 = vld [vmem:[%s1261_s1 + $0xf8] sm:$0xff]   ;;  %v952_v36 = vld [vmem:[%s1261_s1 + $0x100] sm:$0xff]   ;;  %468 = vmatprep.mubr.bf16.mxu1 %v951_v35 }
   0xb   :  { %v940_v26 = vld [vmem:[%s1261_s1 + $0x30] sm:$0xff]   ;;  %v944_v30 = vld [vmem:[%s1261_s1 + $0x38] sm:$0xff]   ;;  %v953_v37 = vld [vmem:[%s1263_s5] sm:$0xff]  }
   0xc   :  { %833 = vmatpush3.bf16.msra.mxu0 %v924_v10  ;;  %v941_v27 = vld [vmem:[%s1261_s1 + $0xb0] sm:$0xff]   ;;  %v945_v31 = vld [vmem:[%s1261_s1 + $0xb8] sm:$0xff]   ;;  %v954_v38 = vld [vmem:[%s1261_s1 + $0x108] sm:$0xff]  }
   0xd   :  { %861 = vmatpush3.bf16.msra.mxu1 %v925_v11  ;;  %834 = vmatprep.subr.bf16.mxu0 %v926_v12  ;;  %v946_v32 = vld [vmem:[%s1262_s0] ss:$20 sps:$4 sm:$0xff]   ;;  %v948_v33 = vld [vmem:[%s1262_s0 + $0x4] ss:$20 sps:$4 sm:$0xff]   ;;  %v949_v34 = vld [vmem:[%s1262_s0 + $0x8] ss:$20 sps:$4 sm:$0xff]  }
   0xe   :  { %862 = vmatprep.subr.bf16.mxu1 %v927_v13  ;;  %419 = vmatprep.mubr.bf16.mxu0 %v948_v33  ;;  %v955_v39 = vld [vmem:[%s1262_s0 + $0x2c] ss:$20 sps:$4 sm:$0xff]   ;;  %v957_v40 = vld [vmem:[%s1262_s0 + $0x34] ss:$20 sps:$4 sm:$0xff]   ;;  %v960_v42 = vld [vmem:[%s1262_s0 + $0x30] ss:$20 sps:$4 sm:$0xff]  }
   0xf   :  { %v959_v41 = vld [vmem:[%s1262_s0 + $0x28] ss:$20 sps:$4 sm:$0xff]   ;;  %v961_v43 = vld [vmem:[%s1261_s1 + $0x110] sm:$0xff]   ;;  %v965_v47 = vld [vmem:[%s1264_s4] sm:$0xff]  }
  0x10   :  { %835 = vmatpush3.bf16.msra.mxu0 %v928_v14  ;;  %v962_v44 = vld [vmem:[%s1263_s5 + $0x8] sm:$0xff]   ;;  %v963_v45 = vld [vmem:[%s1261_s1 + $0x118] sm:$0xff]   ;;  %v964_v46 = vld [vmem:[%s1262_s0 + $0x10] ss:$20 sps:$4 sm:$0xff]  }
  0x11   :  { %863 = vmatpush3.bf16.msra.mxu1 %v929_v15  ;;  %836 = vmatprep.subr.bf16.mxu0 %v930_v16  ;;  %v966_v48 = vld [vmem:[%s1262_s0 + $0x38] ss:$20 sps:$4 sm:$0xff]  }
  0x12   :  { %864 = vmatprep.subr.bf16.mxu1 %v931_v17  ;;  %v967_v49 = vld [vmem:[%s1264_s4 + $0x8] sm:$0xff]  }
  0x14   :  { %837 = vmatpush3.bf16.msra.mxu0 %v932_v18 }
  0x15   :  { %865 = vmatpush3.bf16.msra.mxu1 %v933_v19  ;;  %838 = vmatprep.subr.bf16.mxu0 %v934_v20 }
  0x16   :  { %866 = vmatprep.subr.bf16.mxu1 %v935_v21 }
  0x18   :  { %839 = vmatpush3.bf16.msra.mxu0 %v936_v22 }
  0x19   :  { %867 = vmatpush3.bf16.msra.mxu1 %v937_v23  ;;  %840 = vmatprep.subr.bf16.mxu0 %v938_v24 }
  0x1a   :  { %868 = vmatprep.subr.bf16.mxu1 %v939_v25 }
  0x1c   :  { %841 = vmatpush3.bf16.msra.mxu0 %v940_v26 }
  0x1d   :  { %869 = vmatpush3.bf16.msra.mxu1 %v941_v27  ;;  %842 = vmatprep.subr.bf16.mxu0 %v942_v28 }
  0x1e   :  { %870 = vmatprep.subr.bf16.mxu1 %v943_v29 }
  0x20   :  { %843 = vmatpush3.bf16.msra.mxu0 %v944_v30 }
  0x21   :  { %871 = vmatpush3.bf16.msra.mxu1 %v945_v31  ;;  %894 = vmatprep.subr.bf16.mxu0 %v952_v36 }
  0x22   :  { %906 = vmatprep.subr.bf16.mxu1 %v953_v37 }
  0x23   :  { %420 = vmatmul.mubr.bf16.vlgmr.msra.gmra.mrb[0].mxu0 %v946_v32 }
  0x24   :  { %469 = vmatmul.mubr.bf16.vlgmr.msra.gmra.mrb[0].mxu1 %v949_v34  ;;  %895 = vmatpush3.bf16.msra.mxu0 %v952_v36 }
  0x25   :  { %907 = vmatpush3.bf16.msra.mxu1 %v953_v37  ;;  %896 = vmatprep.subr.bf16.mxu0 %v954_v38 }
  0x26   :  { %427 = vmatprep.mubr.bf16.mxu0 %v955_v39  ;;  %476 = vmatprep.mubr.bf16.mxu1 %v957_v40 }
  0x27   :  { %908 = vmatprep.subr.bf16.mxu1 %v962_v44 }
  0x28   :  { %897 = vmatpush3.bf16.msra.mxu0 %v954_v38 }
  0x29   :  { %898 = vmatprep.subr.bf16.mxu0 %v961_v43  ;;  %909 = vmatpush3.bf16.msra.mxu1 %v962_v44 }
  0x2b   :  { %428 = vmatmul.mubr.bf16.gmra.mrb[4].mxu0 %v959_v41 }
  0x2c   :  { %477 = vmatmul.mubr.bf16.gmra.mrb[4].mxu1 %v960_v42  ;;  %899 = vmatpush3.bf16.msra.mxu0 %v961_v43 }
  0x2d   :  { %900 = vmatprep.subr.bf16.mxu0 %v963_v45  ;;  %902 = vmatprep.mubr.msk.bf16.mxu0 %vm380_vm0, %v964_v46 }
  0x2e   :  { %910 = vmatprep.mubr.msk.bf16.mxu1 %vm631_vm1, %v965_v47 }
  0x30   :  { %901 = vmatpush3.bf16.msra.mxu0 %v963_v45 }
  0x33   :  { %903 = vmatmul.mubr.msk.bf16.vlgmr.msra.gmra.mrb[8].mxu0 %vm380_vm0, %v966_v48 }
  0x34   :  { %911 = vmatmul.mubr.msk.bf16.vlgmr.msra.gmra.mrb[8].mxu1 %vm631_vm1, %v967_v49 }
  0xf6   :  { %v844_v50 = vpop.f32.mrb[0].mxu0 }
  0xf7   :  { %v872_v51 = vpop.f32.mrb[0].mxu1  ;;  %v845_v52 = vpop.f32.mrb[1].mxu0 }
  0xf8   :  { %v846_v53 = vadd.f32 %v845_v52, %v844_v50  ;;  %v873_v54 = vpop.f32.mrb[1].mxu1  ;;  %v847_v55 = vpop.f32.mrb[2].mxu0 }
  0xf9   :  { %v874_v56 = vadd.f32 %v873_v54, %v872_v51  ;;  %v875_v57 = vpop.f32.mrb[2].mxu1  ;;  %v848_v58 = vpop.f32.mrb[3].mxu0 }
  0xfa   :  { %v849_v59 = vadd.f32 %v848_v58, %v847_v55  ;;  %v876_v60 = vpop.f32.mrb[3].mxu1 }
  0xfb   :  { %v877_v61 = vadd.f32 %v876_v60, %v875_v57  ;;  %v471_v62 = vadd.f32 %v874_v56, %v846_v53 }
  0xfd   :  { %v474_v63 = vadd.f32 %v877_v61, %v849_v59 }
  0xfe   :  { %v850_v0 = vpop.f32.mrb[4].mxu0 }
  0xff   :  { %v878_v1 = vpop.f32.mrb[4].mxu1  ;;  %v851_v2 = vpop.f32.mrb[5].mxu0 }
 0x100   :  { %v852_v3 = vadd.f32 %v851_v2, %v850_v0  ;;  %v879_v4 = vpop.f32.mrb[5].mxu1  ;;  %v853_v5 = vpop.f32.mrb[6].mxu0 }
 0x101   :  { %v880_v6 = vadd.f32 %v879_v4, %v878_v1  ;;  %v881_v7 = vpop.f32.mrb[6].mxu1  ;;  %v854_v8 = vpop.f32.mrb[7].mxu0 }
 0x102   :  { %v855_v9 = vadd.f32 %v854_v8, %v853_v5  ;;  %v882_v10 = vpop.f32.mrb[7].mxu1 }
 0x103   :  { %v883_v11 = vadd.f32 %v882_v10, %v881_v7  ;;  %v479_v12 = vadd.f32 %v880_v6, %v852_v3 }
 0x105   :  { %v482_v13 = vadd.f32 %v883_v11, %v855_v9 }
 0x106   :  { %v904_v14 = vpop.f32.mrb[8].mxu0 }
 0x107   :  { %v1169_v15 = vpop.f32.mrb[8].mxu1  ;;  %v1171_v16 = vadd.f32 %v904_v14, %v479_v12  ;;  %v519_v17 = vpop.f32.mrb[9].mxu0 }
 0x108   :  { %v1173_v18 = vpop.f32.mrb[9].mxu1  ;;  %v1175_v19 = vadd.f32 %v519_v17, %v471_v62  ;;  %v905_v21 = vpop.f32.mrb[10].mxu0  ;;  %v692_v27 = vsel %vm380_vm0, %v1169_v15, 0.0  ;;  %v705_v28 = vmul.f32 %v1169_v15, %v1169_v15 }
 0x109   :  { %v703_v20 = vmul.f32 %v1173_v18, %v1173_v18  ;;  %v1179_v22 = vpop.f32.mrb[10].mxu1  ;;  %v1181_v23 = vadd.f32 %v905_v21, %v482_v13  ;;  %v522_v24 = vpop.f32.mrb[11].mxu0  ;;  %v689_v26 = vsel %vm380_vm0, %v1173_v18, 0.0  ;;  %v539_v34 = vsel %vm380_vm0, %v1171_v16, 0.0 }
 0x10a   :  { %v1183_v25 = vpop.f32.mrb[11].mxu1  ;;  %v550_v29 = vmul.f32 %v1175_v19, %v1175_v19  ;;  %v1194_v31 = vadd.f32 %v522_v24, %v474_v63  ;;  %v552_v35 = vmul.f32 %v1171_v16, %v1171_v16  ;;  %v536_v36 = vsel %vm380_vm0, %v1175_v19, 0.0 }
 0x10b   :  { %v707_v30 = vsel %vm380_vm0, %v703_v20, 0.0  ;;  %v690_v32 = vsel %vm380_vm0, %v1183_v25, 0.0  ;;  %v704_v33 = vmul.f32 %v1183_v25, %v1183_v25  ;;  %v706_v38 = vmul.f32 %v1179_v22, %v1179_v22 }
 0x10c   :  { %v691_v37 = vadd.f32 %v690_v32, %v689_v26  ;;  %v537_v39 = vsel %vm380_vm0, %v1194_v31, 0.0  ;;  %v551_v40 = vmul.f32 %v1194_v31, %v1194_v31  ;;  %v710_v42 = vsel %vm380_vm0, %v705_v28, 0.0 }
 0x10d   :  { %v708_v41 = vsel %vm380_vm0, %v704_v33, 0.0  ;;  %v538_v43 = vadd.f32 %v537_v39, %v536_v36  ;;  %v554_v46 = vsel %vm380_vm0, %v550_v29, 0.0  ;;  %v553_v47 = vmul.f32 %v1181_v23, %v1181_v23 }
 0x10e   :  { %v693_v44 = vadd.f32 %v692_v27, %v691_v37  ;;  %v709_v45 = vadd.f32 %v708_v41, %v707_v30  ;;  %v694_v48 = vsel %vm380_vm0, %v1179_v22, 0.0  ;;  %v555_v49 = vsel %vm380_vm0, %v551_v40, 0.0 }
 0x10f   :  { %v540_v50 = vadd.f32 %v539_v34, %v538_v43  ;;  %v556_v51 = vadd.f32 %v555_v49, %v554_v46  ;;  %v557_v54 = vsel %vm380_vm0, %v552_v35, 0.0  ;;  %v541_v55 = vsel %vm380_vm0, %v1181_v23, 0.0 }
 0x110   :  { %v695_v52 = vadd.f32 %v694_v48, %v693_v44  ;;  %v711_v53 = vadd.f32 %v710_v42, %v709_v45  ;;  %v712_v56 = vsel %vm380_vm0, %v706_v38, 0.0  ;;  %v559_v61 = vsel %vm380_vm0, %v553_v47, 0.0 }
 0x111   :  { %v542_v57 = vadd.f32 %v541_v55, %v540_v50  ;;  %v558_v58 = vadd.f32 %v557_v54, %v556_v51  ;;  %v827_v54 = vld [vmem:[%s1267_s7] ss:$0 sm:$0xff] }
 0x112   :  { %v696_v59 = vrot.slane %v695_v52, 4  ;;  %v713_v60 = vadd.f32 %v712_v56, %v711_v53  ;;  %v819_v55 = vld [vmem:[%s1268_s3] ss:$0 sm:$0xff] }
 0x113   :  { %v543_v62 = vrot.slane %v542_v57, 4  ;;  %v560_v63 = vadd.f32 %v559_v61, %v558_v58 }
 0x114   :  { %v697_v0 = vadd.f32 %v696_v59, %v695_v52  ;;  %v714_v1 = vrot.slane %v713_v60, 4 }
 0x115   :  { %v544_v2 = vadd.f32 %v543_v62, %v542_v57  ;;  %v561_v3 = vrot.slane %v560_v63, 4 }
 0x116   :  { %v698_v4 = vrot.slane %v697_v0, 2  ;;  %v715_v5 = vadd.f32 %v714_v1, %v713_v60 }
 0x117   :  { %v545_v6 = vrot.slane %v544_v2, 2  ;;  %v562_v7 = vadd.f32 %v561_v3, %v560_v63 }
 0x118   :  { %v699_v8 = vadd.f32 %v698_v4, %v697_v0  ;;  %v716_v9 = vrot.slane %v715_v5, 2 }
 0x119   :  { %v546_v10 = vadd.f32 %v545_v6, %v544_v2  ;;  %v563_v11 = vrot.slane %v562_v7, 2 }
 0x11a   :  { %v700_v12 = vrot.slane %v699_v8, 1  ;;  %v717_v13 = vadd.f32 %v716_v9, %v715_v5 }
 0x11b   :  { %v547_v14 = vrot.slane %v546_v10, 1  ;;  %v564_v17 = vadd.f32 %v563_v11, %v562_v7 }
 0x11c   :  { %v701_v20 = vadd.f32 %v700_v12, %v699_v8  ;;  %v718_v21 = vrot.slane %v717_v13, 1 }
 0x11d   :  { %v548_v24 = vadd.f32 %v547_v14, %v546_v10  ;;  %v565_v26 = vrot.slane %v564_v17, 1 }
 0x11e   :  { %v702_v27 = vmul.f32 0.03125, %v701_v20  ;;  %v719_v28 = vadd.f32 %v718_v21, %v717_v13 }
 0x11f   :  { %v549_v29 = vmul.f32 0.03125, %v548_v24  ;;  %v566_v30 = vadd.f32 %v565_v26, %v564_v17 }
 0x120   :  { %v720_v32 = vmul.f32 0.03125, %v719_v28  ;;  %v721_v33 = vmul.f32 %v702_v27, %v702_v27  ;;  %v724_v34 = vsub.f32 %v1173_v18, %v702_v27  ;;  %v725_v35 = vsub.f32 %v1183_v25, %v702_v27 }
 0x121   :  { %v726_v36 = vsub.f32 %v1169_v15, %v702_v27  ;;  %v727_v37 = vsub.f32 %v1179_v22, %v702_v27  ;;  %v567_v38 = vmul.f32 0.03125, %v566_v30  ;;  %v568_v39 = vmul.f32 %v549_v29, %v549_v29  ;;  %v826_v22 = vld [vmem:[%s1265_s6] ss:$0 sm:$0xff] }
 0x122   :  { %v571_v40 = vsub.f32 %v1175_v19, %v549_v29  ;;  %v572_v41 = vsub.f32 %v1194_v31, %v549_v29  ;;  %v573_v42 = vsub.f32 %v1171_v16, %v549_v29  ;;  %v574_v43 = vsub.f32 %v1181_v23, %v549_v29  ;;  %v818_v16 = vld [vmem:[%s1266_s2] ss:$0 sm:$0xff] }
 0x123   :  { %v722_v44 = vsub.f32 %v720_v32, %v721_v33  ;;  %v569_v45 = vsub.f32 %v567_v38, %v568_v39 }
 0x125   :  { %v723_v46 = vmax.f32 %v722_v44, 0.0  ;;  %v570_v18 = vmax.f32 %v569_v45, 0.0 }
 0x127   :  { %v728_v47 = vadd.f32 1e-05, %v723_v46  ;;  %v575_v25 = vadd.f32 1e-05, %v570_v18 }
 0x129   :  { %968 = vrsqrt.f32 %v728_v47 }
 0x12a   :  { %970 = vrsqrt.f32 %v575_v25 }
 0x133   :  { %v969_v15 = vpop.eup %968 }
 0x134   :  { %v971_v19 = vpop.eup %970  ;;  %v730_v31 = vmul.f32 %v969_v15, %v724_v34  ;;  %v731_v23 = vmul.f32 %v969_v15, %v725_v35  ;;  %v732_v48 = vmul.f32 %v969_v15, %v726_v36  ;;  %v733_v49 = vmul.f32 %v969_v15, %v727_v37 }
 0x135   :  { %v577_v50 = vmul.f32 %v971_v19, %v571_v40  ;;  %v578_v51 = vmul.f32 %v971_v19, %v572_v41  ;;  %v579_v52 = vmul.f32 %v971_v19, %v573_v42  ;;  %v580_v53 = vmul.f32 %v971_v19, %v574_v43 }
 0x136   :  { %v740_v56 = vmul.f32 %v826_v22, %v730_v31  ;;  %v741_v57 = vmul.f32 %v826_v22, %v731_v23  ;;  %v742_v58 = vmul.f32 %v826_v22, %v732_v48  ;;  %v743_v59 = vmul.f32 %v826_v22, %v733_v49 }
 0x137   :  { %v587_v60 = vmul.f32 %v818_v16, %v577_v50  ;;  %v588_v61 = vmul.f32 %v818_v16, %v578_v51  ;;  %v589_v62 = vmul.f32 %v818_v16, %v579_v52  ;;  %v590_v63 = vmul.f32 %v818_v16, %v580_v53 }
 0x138   :  { %v750_v0 = vadd.f32 %v827_v54, %v740_v56  ;;  %v751_v1 = vadd.f32 %v827_v54, %v741_v57  ;;  %v752_v2 = vadd.f32 %v827_v54, %v742_v58  ;;  %v753_v3 = vadd.f32 %v827_v54, %v743_v59 }
 0x139   :  { %v597_v4 = vadd.f32 %v819_v55, %v587_v60  ;;  %v598_v5 = vadd.f32 %v819_v55, %v588_v61  ;;  %v599_v6 = vadd.f32 %v819_v55, %v589_v62  ;;  %v600_v7 = vadd.f32 %v819_v55, %v590_v63 }
 0x13b   :  { %v754_v8 = vadd.f32 %v750_v0, %v597_v4  ;;  %v755_v9 = vadd.f32 %v751_v1, %v598_v5  ;;  %v756_v10 = vadd.f32 %v752_v2, %v599_v6  ;;  %v757_v11 = vadd.f32 %v753_v3, %v600_v7 }
 0x13d   :  { %v758_v12 = vmax.f32 %v754_v8, 0.0  ;;  %v759_v13 = vmax.f32 %v755_v9, 0.0  ;;  %v760_v14 = vmax.f32 %v756_v10, 0.0  ;;  %v761_v17 = vmax.f32 %v757_v11, 0.0 }
 0x13f   :  { %762 = vst.msk [vmem:[%s1269_s8] sm:$0xff] %vm380_vm0, %v758_v12  ;;  %763 = vst.msk [vmem:[%s1269_s8 + $0x8] sm:$0xff] %vm380_vm0, %v759_v13 }
 0x140   :  { %764 = vst.msk [vmem:[%s1269_s8 + $0x10] sm:$0xff] %vm380_vm0, %v760_v14  ;;  %765 = vst.msk [vmem:[%s1269_s8 + $0x18] sm:$0xff] %vm380_vm0, %v761_v17 }

// kernel: _lambda_.29
= control target key start
LH: loop header
LB: loop body
LE: loop exit
PB: predicated region body
PF: predicated region fallthrough
CT: control target
= control target key end

     0   :  { %vm368_vm0 = vcmask 523264   ;;  %s972_s1 = inlined_call_operand.vmem [shape: bf16[576,64], index: 1, kind: input, shape index: {}]   ;;  %s973_s0 = inlined_call_operand.vmem [shape: bf16[32,576], index: 0, kind: input, shape index: {}]   ;;  %s974_s2 = inlined_call_operand.vmem [shape: f32[1,64], index: 2, kind: input, shape index: {}]   ;;  %s975_s3 = inlined_call_operand.vmem [shape: f32[1,64], index: 3, kind: input, shape index: {}]   ;;  %s976_s4 = inlined_call_operand.vmem [shape: f32[32,64], index: 4, kind: output, shape index: {}]  }
   0x1   :  { %v725_v0 = vld [vmem:[%s972_s1 + $0x40] sm:$0xff]   ;;  %v729_v4 = vld [vmem:[%s972_s1 + $0x48] sm:$0xff]   ;;  %v733_v8 = vld [vmem:[%s972_s1 + $0x50] sm:$0xff]  }
   0x2   :  { %v726_v1 = vld [vmem:[%s972_s1 + $0xc0] sm:$0xff]   ;;  %651 = vmatprep.subr.bf16.mxu0 %v725_v0  ;;  %v730_v5 = vld [vmem:[%s972_s1 + $0xc8] sm:$0xff]   ;;  %v734_v9 = vld [vmem:[%s972_s1 + $0xd0] sm:$0xff]  }
   0x3   :  { %v727_v2 = vld [vmem:[%s972_s1] sm:$0xff]   ;;  %679 = vmatprep.subr.bf16.mxu1 %v726_v1  ;;  %v731_v6 = vld [vmem:[%s972_s1 + $0x8] sm:$0xff]   ;;  %v735_v10 = vld [vmem:[%s972_s1 + $0x10] sm:$0xff]  }
   0x4   :  { %v728_v3 = vld [vmem:[%s972_s1 + $0x80] sm:$0xff]   ;;  %652 = vmatpush3.bf16.msra.mxu0 %v727_v2  ;;  %v732_v7 = vld [vmem:[%s972_s1 + $0x88] sm:$0xff]   ;;  %v736_v11 = vld [vmem:[%s972_s1 + $0x90] sm:$0xff]  }
   0x5   :  { %680 = vmatpush3.bf16.msra.mxu1 %v728_v3  ;;  %653 = vmatprep.subr.bf16.mxu0 %v729_v4  ;;  %v737_v12 = vld [vmem:[%s972_s1 + $0x58] sm:$0xff]   ;;  %v741_v16 = vld [vmem:[%s972_s1 + $0x60] sm:$0xff]   ;;  %v745_v20 = vld [vmem:[%s972_s1 + $0x68] sm:$0xff]  }
   0x6   :  { %681 = vmatprep.subr.bf16.mxu1 %v730_v5  ;;  %v738_v13 = vld [vmem:[%s972_s1 + $0xd8] sm:$0xff]   ;;  %v742_v17 = vld [vmem:[%s972_s1 + $0xe0] sm:$0xff]   ;;  %v746_v21 = vld [vmem:[%s972_s1 + $0xe8] sm:$0xff]  }
   0x7   :  { %v739_v14 = vld [vmem:[%s972_s1 + $0x18] sm:$0xff]   ;;  %v743_v18 = vld [vmem:[%s972_s1 + $0x20] sm:$0xff]   ;;  %v747_v22 = vld [vmem:[%s972_s1 + $0x28] sm:$0xff]  }
   0x8   :  { %654 = vmatpush3.bf16.msra.mxu0 %v731_v6  ;;  %v740_v15 = vld [vmem:[%s972_s1 + $0x98] sm:$0xff]   ;;  %v744_v19 = vld [vmem:[%s972_s1 + $0xa0] sm:$0xff]   ;;  %v748_v23 = vld [vmem:[%s972_s1 + $0xa8] sm:$0xff]  }
   0x9   :  { %682 = vmatpush3.bf16.msra.mxu1 %v732_v7  ;;  %655 = vmatprep.subr.bf16.mxu0 %v733_v8  ;;  %v749_v24 = vld [vmem:[%s972_s1 + $0x70] sm:$0xff]   ;;  %v753_v28 = vld [vmem:[%s972_s1 + $0x78] sm:$0xff]   ;;  %v762_v35 = vld [vmem:[%s973_s0 + $0xc] ss:$20 sps:$4 sm:$0xff]  }
   0xa   :  { %683 = vmatprep.subr.bf16.mxu1 %v734_v9  ;;  %v750_v25 = vld [vmem:[%s972_s1 + $0xf0] sm:$0xff]   ;;  %v754_v29 = vld [vmem:[%s972_s1 + $0xf8] sm:$0xff]   ;;  %v763_v36 = vld [vmem:[%s972_s1 + $0x100] sm:$0xff]   ;;  %456 = vmatprep.mubr.bf16.mxu1 %v762_v35 }
   0xb   :  { %v751_v26 = vld [vmem:[%s972_s1 + $0x30] sm:$0xff]   ;;  %v755_v30 = vld [vmem:[%s972_s1 + $0x38] sm:$0xff]   ;;  %v764_v37 = vld [vmem:[%s972_s1 + $0x108] sm:$0xff]  }
   0xc   :  { %656 = vmatpush3.bf16.msra.mxu0 %v735_v10  ;;  %v752_v27 = vld [vmem:[%s972_s1 + $0xb0] sm:$0xff]   ;;  %v756_v31 = vld [vmem:[%s972_s1 + $0xb8] sm:$0xff]   ;;  %v765_v38 = vld [vmem:[%s973_s0 + $0x2c] ss:$20 sps:$4 sm:$0xff]  }
   0xd   :  { %684 = vmatpush3.bf16.msra.mxu1 %v736_v11  ;;  %657 = vmatprep.subr.bf16.mxu0 %v737_v12  ;;  %v757_v32 = vld [vmem:[%s973_s0] ss:$20 sps:$4 sm:$0xff]   ;;  %v759_v33 = vld [vmem:[%s973_s0 + $0x4] ss:$20 sps:$4 sm:$0xff]   ;;  %v760_v34 = vld [vmem:[%s973_s0 + $0x8] ss:$20 sps:$4 sm:$0xff]  }
   0xe   :  { %685 = vmatprep.subr.bf16.mxu1 %v738_v13  ;;  %407 = vmatprep.mubr.bf16.mxu0 %v759_v33  ;;  %v767_v39 = vld [vmem:[%s973_s0 + $0x34] ss:$20 sps:$4 sm:$0xff]   ;;  %v770_v42 = vld [vmem:[%s973_s0 + $0x30] ss:$20 sps:$4 sm:$0xff]   ;;  %v772_v44 = vld [vmem:[%s972_s1 + $0x118] sm:$0xff]  }
   0xf   :  { %v769_v40 = vld [vmem:[%s973_s0 + $0x28] ss:$20 sps:$4 sm:$0xff]   ;;  %v771_v41 = vld [vmem:[%s972_s1 + $0x110] sm:$0xff]   ;;  %v774_v45 = vld [vmem:[%s973_s0 + $0x38] ss:$20 sps:$4 sm:$0xff]  }
  0x10   :  { %658 = vmatpush3.bf16.msra.mxu0 %v739_v14  ;;  %v773_v43 = vld [vmem:[%s973_s0 + $0x10] ss:$20 sps:$4 sm:$0xff]  }
  0x11   :  { %686 = vmatpush3.bf16.msra.mxu1 %v740_v15  ;;  %659 = vmatprep.subr.bf16.mxu0 %v741_v16 }
  0x12   :  { %687 = vmatprep.subr.bf16.mxu1 %v742_v17 }
  0x14   :  { %660 = vmatpush3.bf16.msra.mxu0 %v743_v18 }
  0x15   :  { %688 = vmatpush3.bf16.msra.mxu1 %v744_v19  ;;  %661 = vmatprep.subr.bf16.mxu0 %v745_v20 }
  0x16   :  { %689 = vmatprep.subr.bf16.mxu1 %v746_v21 }
  0x18   :  { %662 = vmatpush3.bf16.msra.mxu0 %v747_v22 }
  0x19   :  { %690 = vmatpush3.bf16.msra.mxu1 %v748_v23  ;;  %663 = vmatprep.subr.bf16.mxu0 %v749_v24 }
  0x1a   :  { %691 = vmatprep.subr.bf16.mxu1 %v750_v25 }
  0x1c   :  { %664 = vmatpush3.bf16.msra.mxu0 %v751_v26 }
  0x1d   :  { %692 = vmatpush3.bf16.msra.mxu1 %v752_v27  ;;  %665 = vmatprep.subr.bf16.mxu0 %v753_v28 }
  0x1e   :  { %693 = vmatprep.subr.bf16.mxu1 %v754_v29 }
  0x20   :  { %666 = vmatpush3.bf16.msra.mxu0 %v755_v30 }
  0x21   :  { %694 = vmatpush3.bf16.msra.mxu1 %v756_v31  ;;  %713 = vmatprep.subr.bf16.mxu0 %v763_v36 }
  0x23   :  { %408 = vmatmul.mubr.bf16.vlgmr.msra.gmra.mrb[0].mxu0 %v757_v32 }
  0x24   :  { %457 = vmatmul.mubr.bf16.vlgmr.msra.gmra.mrb[0].mxu1 %v760_v34  ;;  %714 = vmatpush3.bf16.msra.mxu0 %v763_v36 }
  0x25   :  { %715 = vmatprep.subr.bf16.mxu0 %v764_v37  ;;  %415 = vmatprep.mubr.bf16.mxu0 %v765_v38 }
  0x26   :  { %464 = vmatprep.mubr.bf16.mxu1 %v767_v39 }
  0x28   :  { %716 = vmatpush3.bf16.msra.mxu0 %v764_v37 }
  0x29   :  { %717 = vmatprep.subr.bf16.mxu0 %v771_v41 }
  0x2b   :  { %416 = vmatmul.mubr.bf16.gmra.mrb[4].mxu0 %v769_v40 }
  0x2c   :  { %465 = vmatmul.mubr.bf16.gmra.mrb[4].mxu1 %v770_v42  ;;  %721 = vmatprep.mubr.msk.bf16.mxu0 %vm368_vm0, %v773_v43 }
  0x2d   :  { %718 = vmatpush3.bf16.msra.mxu0 %v771_v41 }
  0x2e   :  { %719 = vmatprep.subr.bf16.mxu0 %v772_v44 }
  0x31   :  { %720 = vmatpush3.bf16.msra.mxu0 %v772_v44 }
  0x34   :  { %722 = vmatmul.mubr.msk.bf16.vlgmr.msra.gmra.mrb[8].mxu0 %vm368_vm0, %v774_v45 }
  0xf6   :  { %v667_v46 = vpop.f32.mrb[0].mxu0 }
  0xf7   :  { %v695_v47 = vpop.f32.mrb[0].mxu1  ;;  %v668_v48 = vpop.f32.mrb[1].mxu0 }
  0xf8   :  { %v669_v49 = vadd.f32 %v668_v48, %v667_v46  ;;  %v696_v50 = vpop.f32.mrb[1].mxu1  ;;  %v670_v51 = vpop.f32.mrb[2].mxu0 }
  0xf9   :  { %v697_v52 = vadd.f32 %v696_v50, %v695_v47  ;;  %v698_v53 = vpop.f32.mrb[2].mxu1  ;;  %v671_v54 = vpop.f32.mrb[3].mxu0 }
  0xfa   :  { %v672_v55 = vadd.f32 %v671_v54, %v670_v51  ;;  %v699_v56 = vpop.f32.mrb[3].mxu1 }
  0xfb   :  { %v700_v57 = vadd.f32 %v699_v56, %v698_v53  ;;  %v459_v58 = vadd.f32 %v697_v52, %v669_v49 }
  0xfd   :  { %v462_v59 = vadd.f32 %v700_v57, %v672_v55 }
  0xfe   :  { %v673_v60 = vpop.f32.mrb[4].mxu0 }
  0xff   :  { %v701_v61 = vpop.f32.mrb[4].mxu1  ;;  %v674_v62 = vpop.f32.mrb[5].mxu0 }
 0x100   :  { %v675_v63 = vadd.f32 %v674_v62, %v673_v60  ;;  %v702_v0 = vpop.f32.mrb[5].mxu1  ;;  %v676_v1 = vpop.f32.mrb[6].mxu0 }
 0x101   :  { %v703_v2 = vadd.f32 %v702_v0, %v701_v61  ;;  %v704_v3 = vpop.f32.mrb[6].mxu1  ;;  %v677_v4 = vpop.f32.mrb[7].mxu0  ;;  %v650_v0 = vld [vmem:[%s975_s3] ss:$0 sm:$0xff] }
 0x102   :  { %v678_v5 = vadd.f32 %v677_v4, %v676_v1  ;;  %v705_v6 = vpop.f32.mrb[7].mxu1 }
 0x103   :  { %v706_v7 = vadd.f32 %v705_v6, %v704_v3  ;;  %v467_v8 = vadd.f32 %v703_v2, %v675_v63 }
 0x105   :  { %v470_v9 = vadd.f32 %v706_v7, %v678_v5 }
 0x107   :  { %v723_v10 = vpop.f32.mrb[8].mxu0 }
 0x108   :  { %v516_v11 = vadd.f32 %v723_v10, %v467_v8  ;;  %v507_v12 = vpop.f32.mrb[9].mxu0 }
 0x109   :  { %v508_v13 = vadd.f32 %v507_v12, %v459_v58  ;;  %v724_v14 = vpop.f32.mrb[10].mxu0 }
 0x10a   :  { %v519_v15 = vadd.f32 %v724_v14, %v470_v9  ;;  %v510_v16 = vpop.f32.mrb[11].mxu0  ;;  %v540_v19 = vmul.f32 %v516_v11, %v516_v11  ;;  %v527_v24 = vsel %vm368_vm0, %v516_v11, 0.0 }
 0x10b   :  { %v538_v17 = vmul.f32 %v508_v13, %v508_v13  ;;  %v511_v18 = vadd.f32 %v510_v16, %v462_v59  ;;  %v524_v20 = vsel %vm368_vm0, %v508_v13, 0.0  ;;  %v649_v59 = vld [vmem:[%s974_s2] ss:$0 sm:$0xff] }
 0x10c   :  { %v541_v26 = vmul.f32 %v519_v15, %v519_v15  ;;  %v545_v30 = vsel %vm368_vm0, %v540_v19, 0.0  ;;  %v529_v31 = vsel %vm368_vm0, %v519_v15, 0.0 }
 0x10d   :  { %v525_v21 = vsel %vm368_vm0, %v511_v18, 0.0  ;;  %v539_v22 = vmul.f32 %v511_v18, %v511_v18  ;;  %v542_v25 = vsel %vm368_vm0, %v538_v17, 0.0 }
 0x10e   :  { %v526_v23 = vadd.f32 %v525_v21, %v524_v20  ;;  %v547_v34 = vsel %vm368_vm0, %v541_v26, 0.0 }
 0x10f   :  { %v543_v27 = vsel %vm368_vm0, %v539_v22, 0.0 }
 0x110   :  { %v528_v28 = vadd.f32 %v527_v24, %v526_v23  ;;  %v544_v29 = vadd.f32 %v543_v27, %v542_v25 }
 0x112   :  { %v530_v32 = vadd.f32 %v529_v31, %v528_v28  ;;  %v546_v33 = vadd.f32 %v545_v30, %v544_v29 }
 0x114   :  { %v531_v35 = vrot.slane %v530_v32, 4  ;;  %v548_v36 = vadd.f32 %v547_v34, %v546_v33 }
 0x116   :  { %v532_v37 = vadd.f32 %v531_v35, %v530_v32  ;;  %v549_v38 = vrot.slane %v548_v36, 4 }
 0x118   :  { %v533_v39 = vrot.slane %v532_v37, 2  ;;  %v550_v40 = vadd.f32 %v549_v38, %v548_v36 }
 0x11a   :  { %v534_v41 = vadd.f32 %v533_v39, %v532_v37  ;;  %v551_v42 = vrot.slane %v550_v40, 2 }
 0x11c   :  { %v535_v43 = vrot.slane %v534_v41, 1  ;;  %v552_v44 = vadd.f32 %v551_v42, %v550_v40 }
 0x11e   :  { %v536_v45 = vadd.f32 %v535_v43, %v534_v41  ;;  %v553_v46 = vrot.slane %v552_v44, 1 }
 0x120   :  { %v537_v47 = vmul.f32 0.03125, %v536_v45  ;;  %v554_v48 = vadd.f32 %v553_v46, %v552_v44 }
 0x122   :  { %v555_v49 = vmul.f32 0.03125, %v554_v48  ;;  %v556_v50 = vmul.f32 %v537_v47, %v537_v47  ;;  %v559_v51 = vsub.f32 %v508_v13, %v537_v47  ;;  %v560_v52 = vsub.f32 %v511_v18, %v537_v47 }
 0x123   :  { %v561_v53 = vsub.f32 %v516_v11, %v537_v47  ;;  %v562_v54 = vsub.f32 %v519_v15, %v537_v47 }
 0x124   :  { %v557_v55 = vsub.f32 %v555_v49, %v556_v50 }
 0x126   :  { %v558_v56 = vmax.f32 %v557_v55, 0.0 }
 0x128   :  { %v563_v57 = vadd.f32 1e-05, %v558_v56 }
 0x12a   :  { %775 = vrsqrt.f32 %v563_v57 }
 0x134   :  { %v776_v58 = vpop.eup %775 }
 0x135   :  { %v565_v60 = vmul.f32 %v776_v58, %v559_v51  ;;  %v566_v61 = vmul.f32 %v776_v58, %v560_v52  ;;  %v567_v62 = vmul.f32 %v776_v58, %v561_v53  ;;  %v568_v63 = vmul.f32 %v776_v58, %v562_v54 }
 0x137   :  { %v575_v1 = vmul.f32 %v649_v59, %v565_v60  ;;  %v576_v2 = vmul.f32 %v649_v59, %v566_v61  ;;  %v577_v3 = vmul.f32 %v649_v59, %v567_v62  ;;  %v578_v4 = vmul.f32 %v649_v59, %v568_v63 }
 0x139   :  { %v585_v5 = vadd.f32 %v650_v0, %v575_v1  ;;  %v586_v6 = vadd.f32 %v650_v0, %v576_v2  ;;  %v587_v7 = vadd.f32 %v650_v0, %v577_v3  ;;  %v588_v8 = vadd.f32 %v650_v0, %v578_v4 }
 0x13b   :  { %v589_v9 = vmax.f32 %v585_v5, 0.0  ;;  %v590_v10 = vmax.f32 %v586_v6, 0.0  ;;  %v591_v11 = vmax.f32 %v587_v7, 0.0  ;;  %v592_v12 = vmax.f32 %v588_v8, 0.0 }
 0x13d   :  { %593 = vst.msk [vmem:[%s976_s4] sm:$0xff] %vm368_vm0, %v589_v9  ;;  %594 = vst.msk [vmem:[%s976_s4 + $0x8] sm:$0xff] %vm368_vm0, %v590_v10 }
 0x13e   :  { %595 = vst.msk [vmem:[%s976_s4 + $0x10] sm:$0xff] %vm368_vm0, %v591_v11  ;;  %596 = vst.msk [vmem:[%s976_s4 + $0x18] sm:$0xff] %vm368_vm0, %v592_v12 }

// kernel: _lambda_.30
= control target key start
LH: loop header
LB: loop body
LE: loop exit
PB: predicated region body
PF: predicated region fallthrough
CT: control target
= control target key end

     0   :  { %vm371_vm0 = vcmask 523264   ;;  %s1000_s1 = inlined_call_operand.vmem [shape: bf16[576,64], index: 1, kind: input, shape index: {}]   ;;  %s1001_s0 = inlined_call_operand.vmem [shape: bf16[32,576], index: 0, kind: input, shape index: {}]   ;;  %s1002_s2 = inlined_call_operand.vmem [shape: f32[1,64], index: 2, kind: input, shape index: {}]   ;;  %s1003_s3 = inlined_call_operand.vmem [shape: f32[1,64], index: 3, kind: input, shape index: {}]   ;;  %s1004_s4 = inlined_call_operand.vmem [shape: f32[32,64], index: 4, kind: input, shape index: {}]   ;;  %s1005_s5 = inlined_call_operand.vmem [shape: f32[32,64], index: 5, kind: output, shape index: {}]  }
   0x1   :  { %v736_v0 = vld [vmem:[%s1000_s1 + $0x40] sm:$0xff]   ;;  %v740_v4 = vld [vmem:[%s1000_s1 + $0x48] sm:$0xff]   ;;  %v744_v8 = vld [vmem:[%s1000_s1 + $0x50] sm:$0xff]  }
   0x2   :  { %v737_v1 = vld [vmem:[%s1000_s1 + $0xc0] sm:$0xff]   ;;  %662 = vmatprep.subr.bf16.mxu0 %v736_v0  ;;  %v741_v5 = vld [vmem:[%s1000_s1 + $0xc8] sm:$0xff]   ;;  %v745_v9 = vld [vmem:[%s1000_s1 + $0xd0] sm:$0xff]  }
   0x3   :  { %v738_v2 = vld [vmem:[%s1000_s1] sm:$0xff]   ;;  %690 = vmatprep.subr.bf16.mxu1 %v737_v1  ;;  %v742_v6 = vld [vmem:[%s1000_s1 + $0x8] sm:$0xff]   ;;  %v746_v10 = vld [vmem:[%s1000_s1 + $0x10] sm:$0xff]  }
   0x4   :  { %v739_v3 = vld [vmem:[%s1000_s1 + $0x80] sm:$0xff]   ;;  %663 = vmatpush3.bf16.msra.mxu0 %v738_v2  ;;  %v743_v7 = vld [vmem:[%s1000_s1 + $0x88] sm:$0xff]   ;;  %v747_v11 = vld [vmem:[%s1000_s1 + $0x90] sm:$0xff]  }
   0x5   :  { %691 = vmatpush3.bf16.msra.mxu1 %v739_v3  ;;  %664 = vmatprep.subr.bf16.mxu0 %v740_v4  ;;  %v748_v12 = vld [vmem:[%s1000_s1 + $0x58] sm:$0xff]   ;;  %v752_v16 = vld [vmem:[%s1000_s1 + $0x60] sm:$0xff]   ;;  %v756_v20 = vld [vmem:[%s1000_s1 + $0x68] sm:$0xff]  }
   0x6   :  { %692 = vmatprep.subr.bf16.mxu1 %v741_v5  ;;  %v749_v13 = vld [vmem:[%s1000_s1 + $0xd8] sm:$0xff]   ;;  %v753_v17 = vld [vmem:[%s1000_s1 + $0xe0] sm:$0xff]   ;;  %v757_v21 = vld [vmem:[%s1000_s1 + $0xe8] sm:$0xff]  }
   0x7   :  { %v750_v14 = vld [vmem:[%s1000_s1 + $0x18] sm:$0xff]   ;;  %v754_v18 = vld [vmem:[%s1000_s1 + $0x20] sm:$0xff]   ;;  %v758_v22 = vld [vmem:[%s1000_s1 + $0x28] sm:$0xff]  }
   0x8   :  { %665 = vmatpush3.bf16.msra.mxu0 %v742_v6  ;;  %v751_v15 = vld [vmem:[%s1000_s1 + $0x98] sm:$0xff]   ;;  %v755_v19 = vld [vmem:[%s1000_s1 + $0xa0] sm:$0xff]   ;;  %v759_v23 = vld [vmem:[%s1000_s1 + $0xa8] sm:$0xff]  }
   0x9   :  { %693 = vmatpush3.bf16.msra.mxu1 %v743_v7  ;;  %666 = vmatprep.subr.bf16.mxu0 %v744_v8  ;;  %v760_v24 = vld [vmem:[%s1000_s1 + $0x70] sm:$0xff]   ;;  %v764_v28 = vld [vmem:[%s1000_s1 + $0x78] sm:$0xff]   ;;  %v773_v35 = vld [vmem:[%s1001_s0 + $0xc] ss:$20 sps:$4 sm:$0xff]  }
   0xa   :  { %694 = vmatprep.subr.bf16.mxu1 %v745_v9  ;;  %v761_v25 = vld [vmem:[%s1000_s1 + $0xf0] sm:$0xff]   ;;  %v765_v29 = vld [vmem:[%s1000_s1 + $0xf8] sm:$0xff]   ;;  %v774_v36 = vld [vmem:[%s1000_s1 + $0x100] sm:$0xff]   ;;  %459 = vmatprep.mubr.bf16.mxu1 %v773_v35 }
   0xb   :  { %v762_v26 = vld [vmem:[%s1000_s1 + $0x30] sm:$0xff]   ;;  %v766_v30 = vld [vmem:[%s1000_s1 + $0x38] sm:$0xff]   ;;  %v775_v37 = vld [vmem:[%s1000_s1 + $0x108] sm:$0xff]  }
   0xc   :  { %667 = vmatpush3.bf16.msra.mxu0 %v746_v10  ;;  %v763_v27 = vld [vmem:[%s1000_s1 + $0xb0] sm:$0xff]   ;;  %v767_v31 = vld [vmem:[%s1000_s1 + $0xb8] sm:$0xff]   ;;  %v776_v38 = vld [vmem:[%s1001_s0 + $0x2c] ss:$20 sps:$4 sm:$0xff]  }
   0xd   :  { %695 = vmatpush3.bf16.msra.mxu1 %v747_v11  ;;  %668 = vmatprep.subr.bf16.mxu0 %v748_v12  ;;  %v768_v32 = vld [vmem:[%s1001_s0] ss:$20 sps:$4 sm:$0xff]   ;;  %v770_v33 = vld [vmem:[%s1001_s0 + $0x4] ss:$20 sps:$4 sm:$0xff]   ;;  %v771_v34 = vld [vmem:[%s1001_s0 + $0x8] ss:$20 sps:$4 sm:$0xff]  }
   0xe   :  { %696 = vmatprep.subr.bf16.mxu1 %v749_v13  ;;  %410 = vmatprep.mubr.bf16.mxu0 %v770_v33  ;;  %v778_v39 = vld [vmem:[%s1001_s0 + $0x34] ss:$20 sps:$4 sm:$0xff]   ;;  %v781_v42 = vld [vmem:[%s1001_s0 + $0x30] ss:$20 sps:$4 sm:$0xff]   ;;  %v783_v44 = vld [vmem:[%s1000_s1 + $0x118] sm:$0xff]  }
   0xf   :  { %v780_v40 = vld [vmem:[%s1001_s0 + $0x28] ss:$20 sps:$4 sm:$0xff]   ;;  %v782_v41 = vld [vmem:[%s1000_s1 + $0x110] sm:$0xff]   ;;  %v785_v45 = vld [vmem:[%s1001_s0 + $0x38] ss:$20 sps:$4 sm:$0xff]  }
  0x10   :  { %669 = vmatpush3.bf16.msra.mxu0 %v750_v14  ;;  %v784_v43 = vld [vmem:[%s1001_s0 + $0x10] ss:$20 sps:$4 sm:$0xff]  }
  0x11   :  { %697 = vmatpush3.bf16.msra.mxu1 %v751_v15  ;;  %670 = vmatprep.subr.bf16.mxu0 %v752_v16 }
  0x12   :  { %698 = vmatprep.subr.bf16.mxu1 %v753_v17 }
  0x14   :  { %671 = vmatpush3.bf16.msra.mxu0 %v754_v18 }
  0x15   :  { %699 = vmatpush3.bf16.msra.mxu1 %v755_v19  ;;  %672 = vmatprep.subr.bf16.mxu0 %v756_v20 }
  0x16   :  { %700 = vmatprep.subr.bf16.mxu1 %v757_v21 }
  0x18   :  { %673 = vmatpush3.bf16.msra.mxu0 %v758_v22 }
  0x19   :  { %701 = vmatpush3.bf16.msra.mxu1 %v759_v23  ;;  %674 = vmatprep.subr.bf16.mxu0 %v760_v24 }
  0x1a   :  { %702 = vmatprep.subr.bf16.mxu1 %v761_v25 }
  0x1c   :  { %675 = vmatpush3.bf16.msra.mxu0 %v762_v26 }
  0x1d   :  { %703 = vmatpush3.bf16.msra.mxu1 %v763_v27  ;;  %676 = vmatprep.subr.bf16.mxu0 %v764_v28 }
  0x1e   :  { %704 = vmatprep.subr.bf16.mxu1 %v765_v29 }
  0x20   :  { %677 = vmatpush3.bf16.msra.mxu0 %v766_v30 }
  0x21   :  { %705 = vmatpush3.bf16.msra.mxu1 %v767_v31  ;;  %724 = vmatprep.subr.bf16.mxu0 %v774_v36 }
  0x23   :  { %411 = vmatmul.mubr.bf16.vlgmr.msra.gmra.mrb[0].mxu0 %v768_v32 }
  0x24   :  { %460 = vmatmul.mubr.bf16.vlgmr.msra.gmra.mrb[0].mxu1 %v771_v34  ;;  %725 = vmatpush3.bf16.msra.mxu0 %v774_v36 }
  0x25   :  { %726 = vmatprep.subr.bf16.mxu0 %v775_v37  ;;  %418 = vmatprep.mubr.bf16.mxu0 %v776_v38 }
  0x26   :  { %467 = vmatprep.mubr.bf16.mxu1 %v778_v39 }
  0x28   :  { %727 = vmatpush3.bf16.msra.mxu0 %v775_v37 }
  0x29   :  { %728 = vmatprep.subr.bf16.mxu0 %v782_v41 }
  0x2b   :  { %419 = vmatmul.mubr.bf16.gmra.mrb[4].mxu0 %v780_v40 }
  0x2c   :  { %468 = vmatmul.mubr.bf16.gmra.mrb[4].mxu1 %v781_v42  ;;  %732 = vmatprep.mubr.msk.bf16.mxu0 %vm371_vm0, %v784_v43 }
  0x2d   :  { %729 = vmatpush3.bf16.msra.mxu0 %v782_v41 }
  0x2e   :  { %730 = vmatprep.subr.bf16.mxu0 %v783_v44 }
  0x31   :  { %731 = vmatpush3.bf16.msra.mxu0 %v783_v44 }
  0x34   :  { %733 = vmatmul.mubr.msk.bf16.vlgmr.msra.gmra.mrb[8].mxu0 %vm371_vm0, %v785_v45 }
  0xf6   :  { %v678_v46 = vpop.f32.mrb[0].mxu0 }
  0xf7   :  { %v706_v47 = vpop.f32.mrb[0].mxu1  ;;  %v679_v48 = vpop.f32.mrb[1].mxu0 }
  0xf8   :  { %v680_v49 = vadd.f32 %v679_v48, %v678_v46  ;;  %v707_v50 = vpop.f32.mrb[1].mxu1  ;;  %v681_v51 = vpop.f32.mrb[2].mxu0 }
  0xf9   :  { %v708_v52 = vadd.f32 %v707_v50, %v706_v47  ;;  %v709_v53 = vpop.f32.mrb[2].mxu1  ;;  %v682_v54 = vpop.f32.mrb[3].mxu0 }
  0xfa   :  { %v683_v55 = vadd.f32 %v682_v54, %v681_v51  ;;  %v710_v56 = vpop.f32.mrb[3].mxu1 }
  0xfb   :  { %v711_v57 = vadd.f32 %v710_v56, %v709_v53  ;;  %v462_v58 = vadd.f32 %v708_v52, %v680_v49 }
  0xfd   :  { %v465_v59 = vadd.f32 %v711_v57, %v683_v55 }
  0xfe   :  { %v684_v60 = vpop.f32.mrb[4].mxu0 }
  0xff   :  { %v712_v61 = vpop.f32.mrb[4].mxu1  ;;  %v685_v62 = vpop.f32.mrb[5].mxu0 }
 0x100   :  { %v686_v63 = vadd.f32 %v685_v62, %v684_v60  ;;  %v713_v0 = vpop.f32.mrb[5].mxu1  ;;  %v687_v1 = vpop.f32.mrb[6].mxu0 }
 0x101   :  { %v714_v2 = vadd.f32 %v713_v0, %v712_v61  ;;  %v715_v3 = vpop.f32.mrb[6].mxu1  ;;  %v688_v4 = vpop.f32.mrb[7].mxu0  ;;  %v661_v0 = vld [vmem:[%s1003_s3] ss:$0 sm:$0xff] }
 0x102   :  { %v689_v5 = vadd.f32 %v688_v4, %v687_v1  ;;  %v716_v6 = vpop.f32.mrb[7].mxu1 }
 0x103   :  { %v717_v7 = vadd.f32 %v716_v6, %v715_v3  ;;  %v470_v8 = vadd.f32 %v714_v2, %v686_v63  ;;  %v593_v6 = vld [vmem:[%s1004_s4 + $0x8] sm:$0xff] }
 0x105   :  { %v473_v9 = vadd.f32 %v717_v7, %v689_v5  ;;  %v592_v5 = vld [vmem:[%s1004_s4] sm:$0xff]  ;;  %v594_v7 = vld [vmem:[%s1004_s4 + $0x10] sm:$0xff] }
 0x107   :  { %v734_v10 = vpop.f32.mrb[8].mxu0 }
 0x108   :  { %v519_v11 = vadd.f32 %v734_v10, %v470_v8  ;;  %v510_v12 = vpop.f32.mrb[9].mxu0  ;;  %v595_v8 = vld [vmem:[%s1004_s4 + $0x18] sm:$0xff] }
 0x109   :  { %v511_v13 = vadd.f32 %v510_v12, %v462_v58  ;;  %v735_v14 = vpop.f32.mrb[10].mxu0 }
 0x10a   :  { %v522_v15 = vadd.f32 %v735_v14, %v473_v9  ;;  %v513_v16 = vpop.f32.mrb[11].mxu0  ;;  %v543_v19 = vmul.f32 %v519_v11, %v519_v11  ;;  %v530_v24 = vsel %vm371_vm0, %v519_v11, 0.0 }
 0x10b   :  { %v541_v17 = vmul.f32 %v511_v13, %v511_v13  ;;  %v514_v18 = vadd.f32 %v513_v16, %v465_v59  ;;  %v527_v20 = vsel %vm371_vm0, %v511_v13, 0.0  ;;  %v660_v59 = vld [vmem:[%s1002_s2] ss:$0 sm:$0xff] }
 0x10c   :  { %v544_v26 = vmul.f32 %v522_v15, %v522_v15  ;;  %v548_v30 = vsel %vm371_vm0, %v543_v19, 0.0  ;;  %v532_v31 = vsel %vm371_vm0, %v522_v15, 0.0 }
 0x10d   :  { %v528_v21 = vsel %vm371_vm0, %v514_v18, 0.0  ;;  %v542_v22 = vmul.f32 %v514_v18, %v514_v18  ;;  %v545_v25 = vsel %vm371_vm0, %v541_v17, 0.0 }
 0x10e   :  { %v529_v23 = vadd.f32 %v528_v21, %v527_v20  ;;  %v550_v34 = vsel %vm371_vm0, %v544_v26, 0.0 }
 0x10f   :  { %v546_v27 = vsel %vm371_vm0, %v542_v22, 0.0 }
 0x110   :  { %v531_v28 = vadd.f32 %v530_v24, %v529_v23  ;;  %v547_v29 = vadd.f32 %v546_v27, %v545_v25 }
 0x112   :  { %v533_v32 = vadd.f32 %v532_v31, %v531_v28  ;;  %v549_v33 = vadd.f32 %v548_v30, %v547_v29 }
 0x114   :  { %v534_v35 = vrot.slane %v533_v32, 4  ;;  %v551_v36 = vadd.f32 %v550_v34, %v549_v33 }
 0x116   :  { %v535_v37 = vadd.f32 %v534_v35, %v533_v32  ;;  %v552_v38 = vrot.slane %v551_v36, 4 }
 0x118   :  { %v536_v39 = vrot.slane %v535_v37, 2  ;;  %v553_v40 = vadd.f32 %v552_v38, %v551_v36 }
 0x11a   :  { %v537_v41 = vadd.f32 %v536_v39, %v535_v37  ;;  %v554_v42 = vrot.slane %v553_v40, 2 }
 0x11c   :  { %v538_v43 = vrot.slane %v537_v41, 1  ;;  %v555_v44 = vadd.f32 %v554_v42, %v553_v40 }
 0x11e   :  { %v539_v45 = vadd.f32 %v538_v43, %v537_v41  ;;  %v556_v46 = vrot.slane %v555_v44, 1 }
 0x120   :  { %v540_v47 = vmul.f32 0.03125, %v539_v45  ;;  %v557_v48 = vadd.f32 %v556_v46, %v555_v44 }
 0x122   :  { %v558_v49 = vmul.f32 0.03125, %v557_v48  ;;  %v559_v50 = vmul.f32 %v540_v47, %v540_v47  ;;  %v562_v51 = vsub.f32 %v511_v13, %v540_v47  ;;  %v563_v52 = vsub.f32 %v514_v18, %v540_v47 }
 0x123   :  { %v564_v53 = vsub.f32 %v519_v11, %v540_v47  ;;  %v565_v54 = vsub.f32 %v522_v15, %v540_v47 }
 0x124   :  { %v560_v55 = vsub.f32 %v558_v49, %v559_v50 }
 0x126   :  { %v561_v56 = vmax.f32 %v560_v55, 0.0 }
 0x128   :  { %v566_v57 = vadd.f32 1e-05, %v561_v56 }
 0x12a   :  { %786 = vrsqrt.f32 %v566_v57 }
 0x134   :  { %v787_v58 = vpop.eup %786 }
 0x135   :  { %v568_v60 = vmul.f32 %v787_v58, %v562_v51  ;;  %v569_v61 = vmul.f32 %v787_v58, %v563_v52  ;;  %v570_v62 = vmul.f32 %v787_v58, %v564_v53  ;;  %v571_v63 = vmul.f32 %v787_v58, %v565_v54 }
 0x137   :  { %v578_v1 = vmul.f32 %v660_v59, %v568_v60  ;;  %v579_v2 = vmul.f32 %v660_v59, %v569_v61  ;;  %v580_v3 = vmul.f32 %v660_v59, %v570_v62  ;;  %v581_v4 = vmul.f32 %v660_v59, %v571_v63 }
 0x139   :  { %v588_v9 = vadd.f32 %v661_v0, %v578_v1  ;;  %v589_v10 = vadd.f32 %v661_v0, %v579_v2  ;;  %v590_v11 = vadd.f32 %v661_v0, %v580_v3  ;;  %v591_v12 = vadd.f32 %v661_v0, %v581_v4 }
 0x13b   :  { %v596_v13 = vadd.f32 %v592_v5, %v588_v9  ;;  %v597_v14 = vadd.f32 %v593_v6, %v589_v10  ;;  %v598_v15 = vadd.f32 %v594_v7, %v590_v11  ;;  %v599_v16 = vadd.f32 %v595_v8, %v591_v12 }
 0x13d   :  { %v600_v17 = vmax.f32 %v596_v13, 0.0  ;;  %v601_v18 = vmax.f32 %v597_v14, 0.0  ;;  %v602_v19 = vmax.f32 %v598_v15, 0.0  ;;  %v603_v20 = vmax.f32 %v599_v16, 0.0 }
 0x13f   :  { %604 = vst.msk [vmem:[%s1005_s5] sm:$0xff] %vm371_vm0, %v600_v17  ;;  %605 = vst.msk [vmem:[%s1005_s5 + $0x8] sm:$0xff] %vm371_vm0, %v601_v18 }
 0x140   :  { %606 = vst.msk [vmem:[%s1005_s5 + $0x10] sm:$0xff] %vm371_vm0, %v602_v19  ;;  %607 = vst.msk [vmem:[%s1005_s5 + $0x18] sm:$0xff] %vm371_vm0, %v603_v20 }

// kernel: _lambda_.33
= control target key start
LH: loop header
LB: loop body
LE: loop exit
PB: predicated region body
PF: predicated region fallthrough
CT: control target
= control target key end

     0   :  { %v644_v36 = vmov 0.0   ;;  %vm645_vm0 = vmmov 0   ;;  %vm326_vm1 = vcmask 523264   ;;  %s797_s1 = inlined_call_operand.vmem [shape: bf16[576,128], index: 1, kind: input, shape index: {}]   ;;  %s798_s0 = inlined_call_operand.vmem [shape: bf16[8,576], index: 0, kind: input, shape index: {}]   ;;  %s799_s2 = inlined_call_operand.vmem [shape: f32[1,128], index: 2, kind: input, shape index: {}]   ;;  %s800_s3 = inlined_call_operand.vmem [shape: f32[1,128], index: 3, kind: input, shape index: {}]   ;;  %s801_s4 = inlined_call_operand.vmem [shape: f32[8,128], index: 4, kind: output, shape index: {}]  }
   0x1   :  { %v601_v0 = vld [vmem:[%s797_s1 + $0x40] sm:$0xff]   ;;  %v605_v4 = vld [vmem:[%s797_s1 + $0x48] sm:$0xff]   ;;  %v609_v8 = vld [vmem:[%s797_s1 + $0x50] sm:$0xff]  }
   0x2   :  { %v602_v1 = vld [vmem:[%s797_s1 + $0xc0] sm:$0xff]   ;;  %538 = vmatprep.subr.bf16.mxu0 %v601_v0  ;;  %v606_v5 = vld [vmem:[%s797_s1 + $0xc8] sm:$0xff]   ;;  %v610_v9 = vld [vmem:[%s797_s1 + $0xd0] sm:$0xff]  }
   0x3   :  { %v603_v2 = vld [vmem:[%s797_s1] sm:$0xff]   ;;  %560 = vmatprep.subr.bf16.mxu1 %v602_v1  ;;  %v607_v6 = vld [vmem:[%s797_s1 + $0x8] sm:$0xff]   ;;  %v611_v10 = vld [vmem:[%s797_s1 + $0x10] sm:$0xff]  }
   0x4   :  { %v604_v3 = vld [vmem:[%s797_s1 + $0x80] sm:$0xff]   ;;  %539 = vmatpush3.bf16.msra.mxu0 %v603_v2  ;;  %v608_v7 = vld [vmem:[%s797_s1 + $0x88] sm:$0xff]   ;;  %v612_v11 = vld [vmem:[%s797_s1 + $0x90] sm:$0xff]  }
   0x5   :  { %561 = vmatpush3.bf16.msra.mxu1 %v604_v3  ;;  %540 = vmatprep.subr.bf16.mxu0 %v605_v4  ;;  %v613_v12 = vld [vmem:[%s797_s1 + $0x58] sm:$0xff]   ;;  %v617_v16 = vld [vmem:[%s797_s1 + $0x60] sm:$0xff]   ;;  %v621_v20 = vld [vmem:[%s797_s1 + $0x68] sm:$0xff]  }
   0x6   :  { %562 = vmatprep.subr.bf16.mxu1 %v606_v5  ;;  %v614_v13 = vld [vmem:[%s797_s1 + $0xd8] sm:$0xff]   ;;  %v618_v17 = vld [vmem:[%s797_s1 + $0xe0] sm:$0xff]   ;;  %v622_v21 = vld [vmem:[%s797_s1 + $0xe8] sm:$0xff]  }
   0x7   :  { %v615_v14 = vld [vmem:[%s797_s1 + $0x18] sm:$0xff]   ;;  %v619_v18 = vld [vmem:[%s797_s1 + $0x20] sm:$0xff]   ;;  %v623_v22 = vld [vmem:[%s797_s1 + $0x28] sm:$0xff]  }
   0x8   :  { %541 = vmatpush3.bf16.msra.mxu0 %v607_v6  ;;  %v616_v15 = vld [vmem:[%s797_s1 + $0x98] sm:$0xff]   ;;  %v620_v19 = vld [vmem:[%s797_s1 + $0xa0] sm:$0xff]   ;;  %v624_v23 = vld [vmem:[%s797_s1 + $0xa8] sm:$0xff]  }
   0x9   :  { %563 = vmatpush3.bf16.msra.mxu1 %v608_v7  ;;  %542 = vmatprep.subr.bf16.mxu0 %v609_v8  ;;  %v625_v24 = vld [vmem:[%s797_s1 + $0x70] sm:$0xff]   ;;  %v629_v28 = vld [vmem:[%s797_s1 + $0x78] sm:$0xff]   ;;  %v18_v32 = vld [vmem:[%s798_s0] sm:$0xff] }
   0xa   :  { %564 = vmatprep.subr.bf16.mxu1 %v610_v9  ;;  %v626_v25 = vld [vmem:[%s797_s1 + $0xf0] sm:$0xff]   ;;  %v630_v29 = vld [vmem:[%s797_s1 + $0xf8] sm:$0xff]   ;;  %v494_v33 = vcombine.low %v18_v32, %v18_v32  ;;  %v495_v34 = vcombine.high %v18_v32, %v18_v32  ;;  %v19_v35 = vld [vmem:[%s798_s0 + $0x8] sm:$0xff] }
   0xb   :  { %v627_v26 = vld [vmem:[%s797_s1 + $0x30] sm:$0xff]   ;;  %v631_v30 = vld [vmem:[%s797_s1 + $0x38] sm:$0xff]   ;;  %v496_v37 = vcombine.low %v19_v35, %v19_v35  ;;  %v497_v38 = vcombine.high %v19_v35, %v19_v35  ;;  %v638_v39 = vld [vmem:[%s797_s1 + $0x100] sm:$0xff]  }
   0xc   :  { %543 = vmatpush3.bf16.msra.mxu0 %v611_v10  ;;  %v628_v27 = vld [vmem:[%s797_s1 + $0xb0] sm:$0xff]   ;;  %v632_v31 = vld [vmem:[%s797_s1 + $0xb8] sm:$0xff]   ;;  %362 = vmatprep.mubr.bf16.mxu0 %v495_v34  ;;  %v639_v40 = vld [vmem:[%s797_s1 + $0x108] sm:$0xff]  }
   0xd   :  { %565 = vmatpush3.bf16.msra.mxu1 %v612_v11  ;;  %544 = vmatprep.subr.bf16.mxu0 %v613_v12  ;;  %v640_v41 = vld [vmem:[%s797_s1 + $0x110] sm:$0xff]   ;;  %v641_v42 = vld [vmem:[%s797_s1 + $0x118] sm:$0xff]  }
   0xe   :  { %566 = vmatprep.subr.bf16.mxu1 %v614_v13  ;;  %402 = vmatprep.mubr.bf16.mxu1 %v497_v38  ;;  %v635_v43 = vld [vmem:[%s798_s0 + $0x10] ss:$0 sps:$4 sm:$0xff]  }
  0x10   :  { %545 = vmatpush3.bf16.msra.mxu0 %v615_v14 }
  0x11   :  { %567 = vmatpush3.bf16.msra.mxu1 %v616_v15  ;;  %546 = vmatprep.subr.bf16.mxu0 %v617_v16 }
  0x12   :  { %568 = vmatprep.subr.bf16.mxu1 %v618_v17  ;;  %v536_v17 = vld [vmem:[%s799_s2] ss:$0 sm:$0xff] }
  0x14   :  { %547 = vmatpush3.bf16.msra.mxu0 %v619_v18 }
  0x15   :  { %569 = vmatpush3.bf16.msra.mxu1 %v620_v19  ;;  %548 = vmatprep.subr.bf16.mxu0 %v621_v20  ;;  %v537_v19 = vld [vmem:[%s800_s3] ss:$0 sm:$0xff] }
  0x16   :  { %570 = vmatprep.subr.bf16.mxu1 %v622_v21 }
  0x18   :  { %549 = vmatpush3.bf16.msra.mxu0 %v623_v22 }
  0x19   :  { %571 = vmatpush3.bf16.msra.mxu1 %v624_v23  ;;  %550 = vmatprep.subr.bf16.mxu0 %v625_v24 }
  0x1a   :  { %572 = vmatprep.subr.bf16.mxu1 %v626_v25 }
  0x1c   :  { %551 = vmatpush3.bf16.msra.mxu0 %v627_v26 }
  0x1d   :  { %573 = vmatpush3.bf16.msra.mxu1 %v628_v27  ;;  %552 = vmatprep.subr.bf16.mxu0 %v629_v28 }
  0x1e   :  { %574 = vmatprep.subr.bf16.mxu1 %v630_v29 }
  0x20   :  { %553 = vmatpush3.bf16.msra.mxu0 %v631_v30 }
  0x21   :  { %575 = vmatpush3.bf16.msra.mxu1 %v632_v31  ;;  %587 = vmatprep.subr.bf16.mxu0 %v644_v36 }
  0x23   :  { %363 = vmatmul.mubr.bf16.vlgmr.msra.gmra.mrb[0].mxu0 %v494_v33 }
  0x24   :  { %403 = vmatmul.mubr.bf16.vlgmr.msra.gmra.mrb[0].mxu1 %v496_v37  ;;  %588 = vmatpush3.bf16.msra.mxu0 %v638_v39 }
  0x25   :  { %589 = vmatprep.subr.bf16.mxu0 %v644_v36  ;;  %595 = vmatprep.mubr.msk.bf16.mxu0 %vm645_vm0, %v644_v36 }
  0x28   :  { %590 = vmatpush3.bf16.msra.mxu0 %v639_v40 }
  0x29   :  { %591 = vmatprep.subr.bf16.mxu0 %v644_v36 }
  0x2c   :  { %592 = vmatpush3.bf16.msra.mxu0 %v640_v41 }
  0x2d   :  { %593 = vmatprep.subr.bf16.mxu0 %v644_v36 }
  0x30   :  { %594 = vmatpush3.bf16.msra.mxu0 %v641_v42 }
  0x33   :  { %596 = vmatmul.mubr.msk.bf16.vlgmr.msra.gmra.mrb[4].mxu0 %vm326_vm1, %v635_v43 }
  0xf6   :  { %v554_v44 = vpop.f32.mrb[0].mxu0 }
  0xf7   :  { %v576_v45 = vpop.f32.mrb[0].mxu1  ;;  %v555_v46 = vpop.f32.mrb[1].mxu0 }
  0xf8   :  { %v556_v47 = vadd.f32 %v555_v46, %v554_v44  ;;  %v577_v48 = vpop.f32.mrb[1].mxu1  ;;  %v557_v49 = vpop.f32.mrb[2].mxu0 }
  0xf9   :  { %v578_v50 = vadd.f32 %v577_v48, %v576_v45  ;;  %v558_v51 = vpop.f32.mrb[3].mxu0  ;;  %v579_v52 = vpop.f32.mrb[2].mxu1 }
  0xfa   :  { %v580_v53 = vpop.f32.mrb[3].mxu1 }
  0xfb   :  { %v405_v54 = vadd.f32 %v578_v50, %v556_v47 }
 0x106   :  { %v444_v55 = vpop.f32.mrb[4].mxu0 }
 0x107   :  { %v445_v56 = vadd.f32 %v444_v55, %v405_v54  ;;  %v597_v57 = vpop.f32.mrb[5].mxu0 }
 0x108   :  { %v447_v58 = vpop.f32.mrb[6].mxu0 }
 0x109   :  { %v452_v59 = vrot.slane %v445_v56, 4  ;;  %v459_v60 = vmul.f32 %v445_v56, %v445_v56  ;;  %v598_v61 = vpop.f32.mrb[7].mxu0 }
 0x10b   :  { %v453_v62 = vadd.f32 %v452_v59, %v445_v56  ;;  %v460_v63 = vrot.slane %v459_v60, 4 }
 0x10d   :  { %v454_v0 = vrot.slane %v453_v62, 2  ;;  %v461_v1 = vadd.f32 %v460_v63, %v459_v60 }
 0x10f   :  { %v455_v2 = vadd.f32 %v454_v0, %v453_v62  ;;  %v462_v3 = vrot.slane %v461_v1, 2 }
 0x111   :  { %v456_v4 = vrot.slane %v455_v2, 1  ;;  %v463_v5 = vadd.f32 %v462_v3, %v461_v1 }
 0x113   :  { %v457_v6 = vadd.f32 %v456_v4, %v455_v2  ;;  %v464_v7 = vrot.slane %v463_v5, 1 }
 0x115   :  { %v458_v8 = vmul.f32 0.125, %v457_v6  ;;  %v465_v9 = vadd.f32 %v464_v7, %v463_v5 }
 0x117   :  { %v466_v10 = vmul.f32 0.125, %v465_v9  ;;  %v467_v11 = vmul.f32 %v458_v8, %v458_v8  ;;  %v470_v15 = vsub.f32 %v445_v56, %v458_v8 }
 0x119   :  { %v468_v12 = vsub.f32 %v466_v10, %v467_v11 }
 0x11b   :  { %v469_v13 = vmax.f32 %v468_v12, 0.0 }
 0x11d   :  { %v471_v14 = vadd.f32 1e-05, %v469_v13 }
 0x11f   :  { %642 = vrsqrt.f32 %v471_v14 }
 0x129   :  { %v643_v16 = vpop.eup %642 }
 0x12a   :  { %v473_v18 = vmul.f32 %v643_v16, %v470_v15 }
 0x12c   :  { %v480_v20 = vmul.f32 %v536_v17, %v473_v18 }
 0x12e   :  { %v487_v21 = vadd.f32 %v537_v19, %v480_v20 }
 0x130   :  { %v488_v22 = vmax.f32 %v487_v21, 0.0 }
 0x132   :  { %489 = vst [vmem:[%s801_s4] sm:$0xff] %v488_v22 }

// kernel: _lambda_.34
= control target key start
LH: loop header
LB: loop body
LE: loop exit
PB: predicated region body
PF: predicated region fallthrough
CT: control target
= control target key end

     0   :  { %vm1319_vm0 = vmmov 0   ;;  %vm914_vm1 = vcmask 523264   ;;  %s1626_s1 = inlined_call_operand.vmem [shape: bf16[1152,128], index: 1, kind: input, shape index: {}]   ;;  %s1627_s0 = inlined_call_operand.vmem [shape: bf16[8,1152], index: 0, kind: input, shape index: {}]   ;;  %s1628_s5 = inlined_call_operand.vmem [shape: bf16[64,128], index: 5, kind: input, shape index: {}]   ;;  %s1629_s4 = inlined_call_operand.vmem [shape: bf16[8,64], index: 4, kind: input, shape index: {}]   ;;  %s1630_s6 = inlined_call_operand.vmem [shape: f32[1,128], index: 6, kind: input, shape index: {}, may-alias: {2,6}]   ;;  %s1631_s2 = inlined_call_operand.vmem [shape: f32[1,128], index: 2, kind: input, shape index: {}, may-alias: {2,6}]   ;;  %s1632_s7 = inlined_call_operand.vmem [shape: f32[1,128], index: 7, kind: input, shape index: {}, may-alias: {3,7}]   ;;  %s1633_s3 = inlined_call_operand.vmem [shape: f32[1,128], index: 3, kind: input, shape index: {}, may-alias: {3,7}]   ;;  %s1634_s8 = inlined_call_operand.vmem [shape: f32[8,128], index: 8, kind: output, shape index: {}]  }
   0x1   :  { %v1229_v0 = vld [vmem:[%s1626_s1 + $0x40] sm:$0xff]   ;;  %v1233_v4 = vld [vmem:[%s1626_s1 + $0x48] sm:$0xff]   ;;  %v1237_v8 = vld [vmem:[%s1626_s1 + $0x50] sm:$0xff]  }
   0x2   :  { %v1230_v1 = vld [vmem:[%s1626_s1 + $0xc0] sm:$0xff]   ;;  %1093 = vmatprep.subr.bf16.mxu0 %v1229_v0  ;;  %v1234_v5 = vld [vmem:[%s1626_s1 + $0xc8] sm:$0xff]   ;;  %v1238_v9 = vld [vmem:[%s1626_s1 + $0xd0] sm:$0xff]  }
   0x3   :  { %v1231_v2 = vld [vmem:[%s1626_s1] sm:$0xff]   ;;  %1115 = vmatprep.subr.bf16.mxu1 %v1230_v1  ;;  %v1235_v6 = vld [vmem:[%s1626_s1 + $0x8] sm:$0xff]   ;;  %v1239_v10 = vld [vmem:[%s1626_s1 + $0x10] sm:$0xff]  }
   0x4   :  { %v1232_v3 = vld [vmem:[%s1626_s1 + $0x80] sm:$0xff]   ;;  %1094 = vmatpush3.bf16.msra.mxu0 %v1231_v2  ;;  %v1236_v7 = vld [vmem:[%s1626_s1 + $0x88] sm:$0xff]   ;;  %v1240_v11 = vld [vmem:[%s1626_s1 + $0x90] sm:$0xff]  }
   0x5   :  { %1116 = vmatpush3.bf16.msra.mxu1 %v1232_v3  ;;  %1095 = vmatprep.subr.bf16.mxu0 %v1233_v4  ;;  %v1241_v12 = vld [vmem:[%s1626_s1 + $0x58] sm:$0xff]   ;;  %v1245_v16 = vld [vmem:[%s1626_s1 + $0x60] sm:$0xff]   ;;  %v1249_v20 = vld [vmem:[%s1626_s1 + $0x68] sm:$0xff]  }
   0x6   :  { %1117 = vmatprep.subr.bf16.mxu1 %v1234_v5  ;;  %v1242_v13 = vld [vmem:[%s1626_s1 + $0xd8] sm:$0xff]   ;;  %v1246_v17 = vld [vmem:[%s1626_s1 + $0xe0] sm:$0xff]   ;;  %v1250_v21 = vld [vmem:[%s1626_s1 + $0xe8] sm:$0xff]  }
   0x7   :  { %v1243_v14 = vld [vmem:[%s1626_s1 + $0x18] sm:$0xff]   ;;  %v1247_v18 = vld [vmem:[%s1626_s1 + $0x20] sm:$0xff]   ;;  %v1251_v22 = vld [vmem:[%s1626_s1 + $0x28] sm:$0xff]  }
   0x8   :  { %1096 = vmatpush3.bf16.msra.mxu0 %v1235_v6  ;;  %v1244_v15 = vld [vmem:[%s1626_s1 + $0x98] sm:$0xff]   ;;  %v1248_v19 = vld [vmem:[%s1626_s1 + $0xa0] sm:$0xff]   ;;  %v1252_v23 = vld [vmem:[%s1626_s1 + $0xa8] sm:$0xff]  }
   0x9   :  { %1118 = vmatpush3.bf16.msra.mxu1 %v1236_v7  ;;  %1097 = vmatprep.subr.bf16.mxu0 %v1237_v8  ;;  %v1253_v24 = vld [vmem:[%s1626_s1 + $0x70] sm:$0xff]   ;;  %v1257_v28 = vld [vmem:[%s1626_s1 + $0x78] sm:$0xff]   ;;  %v30_v32 = vld [vmem:[%s1627_s0] sm:$0xff] }
   0xa   :  { %1119 = vmatprep.subr.bf16.mxu1 %v1238_v9  ;;  %v1254_v25 = vld [vmem:[%s1626_s1 + $0xf0] sm:$0xff]   ;;  %v1258_v29 = vld [vmem:[%s1626_s1 + $0xf8] sm:$0xff]   ;;  %v31_v33 = vld [vmem:[%s1627_s0 + $0x8] sm:$0xff]  ;;  %v1003_v34 = vcombine.low %v30_v32, %v30_v32  ;;  %v1004_v35 = vcombine.high %v30_v32, %v30_v32 }
   0xb   :  { %v1255_v26 = vld [vmem:[%s1626_s1 + $0x30] sm:$0xff]   ;;  %v1259_v30 = vld [vmem:[%s1626_s1 + $0x38] sm:$0xff]   ;;  %v1005_v36 = vcombine.low %v31_v33, %v31_v33  ;;  %v1006_v37 = vcombine.high %v31_v33, %v31_v33  ;;  %v1265_v38 = vld [vmem:[%s1626_s1 + $0x140] sm:$0xff]  }
   0xc   :  { %1098 = vmatpush3.bf16.msra.mxu0 %v1239_v10  ;;  %v1256_v27 = vld [vmem:[%s1626_s1 + $0xb0] sm:$0xff]   ;;  %v1260_v31 = vld [vmem:[%s1626_s1 + $0xb8] sm:$0xff]   ;;  %v1266_v39 = vld [vmem:[%s1626_s1 + $0x1c0] sm:$0xff]   ;;  %675 = vmatprep.mubr.bf16.mxu0 %v1004_v35 }
   0xd   :  { %1120 = vmatpush3.bf16.msra.mxu1 %v1240_v11  ;;  %1099 = vmatprep.subr.bf16.mxu0 %v1241_v12  ;;  %v1267_v40 = vld [vmem:[%s1626_s1 + $0x100] sm:$0xff]   ;;  %v1269_v42 = vld [vmem:[%s1626_s1 + $0x148] sm:$0xff]   ;;  %v1273_v46 = vld [vmem:[%s1626_s1 + $0x150] sm:$0xff]  }
   0xe   :  { %1121 = vmatprep.subr.bf16.mxu1 %v1242_v13  ;;  %715 = vmatprep.mubr.bf16.mxu1 %v1006_v37  ;;  %v1268_v41 = vld [vmem:[%s1626_s1 + $0x180] sm:$0xff]   ;;  %v1270_v43 = vld [vmem:[%s1626_s1 + $0x1c8] sm:$0xff]   ;;  %v1274_v47 = vld [vmem:[%s1626_s1 + $0x1d0] sm:$0xff]   ;;  %v1318_v13 = vmov 0.0  }
   0xf   :  { %v1271_v44 = vld [vmem:[%s1626_s1 + $0x108] sm:$0xff]   ;;  %v1275_v48 = vld [vmem:[%s1626_s1 + $0x110] sm:$0xff]   ;;  %v1277_v50 = vld [vmem:[%s1626_s1 + $0x158] sm:$0xff]  }
  0x10   :  { %1100 = vmatpush3.bf16.msra.mxu0 %v1243_v14  ;;  %v1272_v45 = vld [vmem:[%s1626_s1 + $0x188] sm:$0xff]   ;;  %v1276_v49 = vld [vmem:[%s1626_s1 + $0x190] sm:$0xff]   ;;  %v1278_v51 = vld [vmem:[%s1626_s1 + $0x1d8] sm:$0xff]  }
  0x11   :  { %1122 = vmatpush3.bf16.msra.mxu1 %v1244_v15  ;;  %1101 = vmatprep.subr.bf16.mxu0 %v1245_v16  ;;  %v1279_v52 = vld [vmem:[%s1626_s1 + $0x118] sm:$0xff]   ;;  %v1281_v54 = vld [vmem:[%s1626_s1 + $0x160] sm:$0xff]   ;;  %v1285_v58 = vld [vmem:[%s1626_s1 + $0x168] sm:$0xff]  }
  0x12   :  { %1123 = vmatprep.subr.bf16.mxu1 %v1246_v17  ;;  %v1280_v53 = vld [vmem:[%s1626_s1 + $0x198] sm:$0xff]   ;;  %v1282_v55 = vld [vmem:[%s1626_s1 + $0x1e0] sm:$0xff]   ;;  %v1286_v59 = vld [vmem:[%s1626_s1 + $0x1e8] sm:$0xff]  }
  0x13   :  { %v1283_v56 = vld [vmem:[%s1626_s1 + $0x120] sm:$0xff]   ;;  %v1287_v60 = vld [vmem:[%s1626_s1 + $0x128] sm:$0xff]   ;;  %v1289_v62 = vld [vmem:[%s1626_s1 + $0x170] sm:$0xff]  }
  0x14   :  { %1102 = vmatpush3.bf16.msra.mxu0 %v1247_v18  ;;  %v1284_v57 = vld [vmem:[%s1626_s1 + $0x1a0] sm:$0xff]   ;;  %v1288_v61 = vld [vmem:[%s1626_s1 + $0x1a8] sm:$0xff]   ;;  %v1290_v63 = vld [vmem:[%s1626_s1 + $0x1f0] sm:$0xff]  }
  0x15   :  { %1124 = vmatpush3.bf16.msra.mxu1 %v1248_v19  ;;  %1103 = vmatprep.subr.bf16.mxu0 %v1249_v20  ;;  %v1291_v0 = vld [vmem:[%s1626_s1 + $0x130] sm:$0xff]   ;;  %v1293_v2 = vld [vmem:[%s1626_s1 + $0x178] sm:$0xff]   ;;  %v1301_v12 = vld [vmem:[%s1626_s1 + $0x200] sm:$0xff]  }
  0x16   :  { %1125 = vmatprep.subr.bf16.mxu1 %v1250_v21  ;;  %v1292_v1 = vld [vmem:[%s1626_s1 + $0x1b0] sm:$0xff]   ;;  %v1294_v3 = vld [vmem:[%s1626_s1 + $0x1f8] sm:$0xff]   ;;  %v1302_v14 = vld [vmem:[%s1628_s5] sm:$0xff]  }
  0x17   :  { %v1295_v4 = vld [vmem:[%s1626_s1 + $0x138] sm:$0xff]   ;;  %v32_v6 = vld [vmem:[%s1627_s0 + $0x10] sm:$0xff]  ;;  %v1303_v15 = vld [vmem:[%s1626_s1 + $0x208] sm:$0xff]  }
  0x18   :  { %1104 = vmatpush3.bf16.msra.mxu0 %v1251_v22  ;;  %v1296_v5 = vld [vmem:[%s1626_s1 + $0x1b8] sm:$0xff]   ;;  %v1007_v7 = vcombine.low %v32_v6, %v32_v6  ;;  %v1008_v8 = vcombine.high %v32_v6, %v32_v6  ;;  %v1304_v16 = vld [vmem:[%s1628_s5 + $0x8] sm:$0xff]   ;;  %v1305_v17 = vld [vmem:[%s1626_s1 + $0x210] sm:$0xff]  }
  0x19   :  { %1126 = vmatpush3.bf16.msra.mxu1 %v1252_v23  ;;  %1105 = vmatprep.subr.bf16.mxu0 %v1253_v24  ;;  %v33_v9 = vld [vmem:[%s1627_s0 + $0x18] sm:$0xff]  ;;  %v1306_v18 = vld [vmem:[%s1628_s5 + $0x10] sm:$0xff]   ;;  %v881_v21 = vld [vmem:[%s1629_s4] sm:$0xf] }
  0x1a   :  { %1127 = vmatprep.subr.bf16.mxu1 %v1254_v25  ;;  %v1009_v10 = vcombine.low %v33_v9, %v33_v9  ;;  %v1010_v11 = vcombine.high %v33_v9, %v33_v9  ;;  %v1307_v19 = vld [vmem:[%s1626_s1 + $0x218] sm:$0xff]   ;;  %v1309_v22 = vld [vmem:[%s1626_s1 + $0x220] sm:$0xff]   ;;  %v1310_v23 = vld [vmem:[%s1626_s1 + $0x228] sm:$0xff]  }
  0x1b   :  { %v1308_v20 = vld [vmem:[%s1628_s5 + $0x18] sm:$0xff]   ;;  %v1311_v24 = vld [vmem:[%s1626_s1 + $0x230] sm:$0xff]  }
  0x1c   :  { %1106 = vmatpush3.bf16.msra.mxu0 %v1255_v26  ;;  %v1312_v25 = vld [vmem:[%s1626_s1 + $0x238] sm:$0xff]   ;;  %v1313_v26 = vld [vmem:[%s1627_s0 + $0x20] ss:$0 sps:$4 sm:$0xff]  }
  0x1d   :  { %1128 = vmatpush3.bf16.msra.mxu1 %v1256_v27  ;;  %1107 = vmatprep.subr.bf16.mxu0 %v1257_v28 }
  0x1e   :  { %1129 = vmatprep.subr.bf16.mxu1 %v1258_v29 }
  0x20   :  { %1108 = vmatpush3.bf16.msra.mxu0 %v1259_v30 }
  0x21   :  { %1130 = vmatpush3.bf16.msra.mxu1 %v1260_v31  ;;  %1137 = vmatprep.subr.bf16.mxu0 %v1265_v38 }
  0x22   :  { %1159 = vmatprep.subr.bf16.mxu1 %v1266_v39 }
  0x23   :  { %676 = vmatmul.mubr.bf16.vlgmr.msra.gmra.mrb[0].mxu0 %v1003_v34 }
  0x24   :  { %716 = vmatmul.mubr.bf16.vlgmr.msra.gmra.mrb[0].mxu1 %v1005_v36  ;;  %1138 = vmatpush3.bf16.msra.mxu0 %v1267_v40 }
  0x25   :  { %1160 = vmatpush3.bf16.msra.mxu1 %v1268_v41  ;;  %1139 = vmatprep.subr.bf16.mxu0 %v1269_v42 }
  0x26   :  { %1161 = vmatprep.subr.bf16.mxu1 %v1270_v43  ;;  %755 = vmatprep.mubr.bf16.mxu0 %v1008_v8 }
  0x27   :  { %795 = vmatprep.mubr.bf16.mxu1 %v1010_v11 }
  0x28   :  { %1140 = vmatpush3.bf16.msra.mxu0 %v1271_v44 }
  0x29   :  { %1162 = vmatpush3.bf16.msra.mxu1 %v1272_v45  ;;  %1141 = vmatprep.subr.bf16.mxu0 %v1273_v46 }
  0x2a   :  { %1163 = vmatprep.subr.bf16.mxu1 %v1274_v47 }
  0x2c   :  { %1142 = vmatpush3.bf16.msra.mxu0 %v1275_v48 }
  0x2d   :  { %1164 = vmatpush3.bf16.msra.mxu1 %v1276_v49  ;;  %1143 = vmatprep.subr.bf16.mxu0 %v1277_v50 }
  0x2e   :  { %1165 = vmatprep.subr.bf16.mxu1 %v1278_v51 }
  0x30   :  { %1144 = vmatpush3.bf16.msra.mxu0 %v1279_v52 }
  0x31   :  { %1166 = vmatpush3.bf16.msra.mxu1 %v1280_v53  ;;  %1145 = vmatprep.subr.bf16.mxu0 %v1281_v54 }
  0x32   :  { %1167 = vmatprep.subr.bf16.mxu1 %v1282_v55 }
  0x34   :  { %1146 = vmatpush3.bf16.msra.mxu0 %v1283_v56 }
  0x35   :  { %1168 = vmatpush3.bf16.msra.mxu1 %v1284_v57  ;;  %1147 = vmatprep.subr.bf16.mxu0 %v1285_v58 }
  0x36   :  { %1169 = vmatprep.subr.bf16.mxu1 %v1286_v59 }
  0x38   :  { %1148 = vmatpush3.bf16.msra.mxu0 %v1287_v60 }
  0x39   :  { %1170 = vmatpush3.bf16.msra.mxu1 %v1288_v61  ;;  %1149 = vmatprep.subr.bf16.mxu0 %v1289_v62 }
  0x3a   :  { %1171 = vmatprep.subr.bf16.mxu1 %v1290_v63 }
  0x3c   :  { %1150 = vmatpush3.bf16.msra.mxu0 %v1291_v0 }
  0x3d   :  { %1172 = vmatpush3.bf16.msra.mxu1 %v1292_v1  ;;  %1151 = vmatprep.subr.bf16.mxu0 %v1293_v2 }
  0x3e   :  { %1173 = vmatprep.subr.bf16.mxu1 %v1294_v3 }
  0x40   :  { %1152 = vmatpush3.bf16.msra.mxu0 %v1295_v4 }
  0x41   :  { %1174 = vmatpush3.bf16.msra.mxu1 %v1296_v5  ;;  %1195 = vmatprep.subr.bf16.mxu0 %v1318_v13 }
  0x42   :  { %1215 = vmatprep.subr.bf16.mxu1 %v1318_v13 }
  0x43   :  { %756 = vmatmul.mubr.bf16.vlgmr.msra.gmra.mrb[4].mxu0 %v1007_v7 }
  0x44   :  { %796 = vmatmul.mubr.bf16.vlgmr.msra.gmra.mrb[4].mxu1 %v1009_v10  ;;  %1196 = vmatpush3.bf16.msra.mxu0 %v1301_v12 }
  0x45   :  { %1216 = vmatpush3.bf16.msra.mxu1 %v1302_v14  ;;  %1197 = vmatprep.subr.bf16.mxu0 %v1318_v13 }
  0x46   :  { %1217 = vmatprep.subr.bf16.mxu1 %v1318_v13  ;;  %1223 = vmatprep.mubr.msk.bf16.mxu1 %vm1319_vm0, %v1318_v13 }
  0x47   :  { %1211 = vmatprep.mubr.msk.bf16.mxu0 %vm1319_vm0, %v1318_v13 }
  0x48   :  { %1198 = vmatpush3.bf16.msra.mxu0 %v1303_v15 }
  0x49   :  { %1218 = vmatpush3.bf16.msra.mxu1 %v1304_v16  ;;  %1199 = vmatprep.subr.bf16.mxu0 %v1318_v13 }
  0x4a   :  { %1219 = vmatprep.subr.bf16.mxu1 %v1318_v13 }
  0x4c   :  { %1200 = vmatpush3.bf16.msra.mxu0 %v1305_v17 }
  0x4d   :  { %1220 = vmatpush3.bf16.msra.mxu1 %v1306_v18  ;;  %1201 = vmatprep.subr.bf16.mxu0 %v1318_v13 }
  0x4e   :  { %1221 = vmatprep.subr.bf16.mxu1 %v1318_v13 }
  0x50   :  { %1202 = vmatpush3.bf16.msra.mxu0 %v1307_v19 }
  0x51   :  { %1222 = vmatpush3.bf16.msra.mxu1 %v1308_v20  ;;  %1203 = vmatprep.subr.bf16.mxu0 %v1318_v13 }
  0x54   :  { %1224 = vmatmul.mubr.msk.bf16.vlgmr.msra.gmra.mrb[8].mxu1 %vm914_vm1, %v881_v21  ;;  %1204 = vmatpush3.bf16.msra.mxu0 %v1309_v22 }
  0x55   :  { %1205 = vmatprep.subr.bf16.mxu0 %v1318_v13 }
  0x58   :  { %1206 = vmatpush3.bf16.msra.mxu0 %v1310_v23 }
  0x59   :  { %1207 = vmatprep.subr.bf16.mxu0 %v1318_v13 }
  0x5c   :  { %1208 = vmatpush3.bf16.msra.mxu0 %v1311_v24 }
  0x5d   :  { %1209 = vmatprep.subr.bf16.mxu0 %v1318_v13 }
  0x60   :  { %1210 = vmatpush3.bf16.msra.mxu0 %v1312_v25 }
  0x63   :  { %1212 = vmatmul.mubr.bf16.vlgmr.msra.gmra.mrb[8].mxu0 %v1313_v26 }
  0xf6   :  { %v1109_v27 = vpop.f32.mrb[0].mxu0 }
  0xf7   :  { %v1131_v28 = vpop.f32.mrb[0].mxu1  ;;  %v1110_v29 = vpop.f32.mrb[1].mxu0 }
  0xf8   :  { %v1132_v30 = vpop.f32.mrb[1].mxu1  ;;  %v1111_v31 = vadd.f32 %v1110_v29, %v1109_v27  ;;  %v1112_v33 = vpop.f32.mrb[2].mxu0 }
  0xf9   :  { %v1133_v32 = vadd.f32 %v1132_v30, %v1131_v28  ;;  %v1134_v34 = vpop.f32.mrb[2].mxu1  ;;  %v1113_v35 = vpop.f32.mrb[3].mxu0 }
  0xfa   :  { %v1135_v36 = vpop.f32.mrb[3].mxu1 }
  0xfb   :  { %v718_v37 = vadd.f32 %v1133_v32, %v1111_v31  ;;  %v1091_v36 = vld [vmem:[%s1630_s6] ss:$0 sm:$0xff] }
 0x116   :  { %v1153_v38 = vpop.f32.mrb[4].mxu0 }
 0x117   :  { %v1175_v39 = vpop.f32.mrb[4].mxu1  ;;  %v1154_v40 = vpop.f32.mrb[5].mxu0 }
 0x118   :  { %v1176_v41 = vpop.f32.mrb[5].mxu1  ;;  %v1155_v42 = vadd.f32 %v1154_v40, %v1153_v38  ;;  %v1156_v43 = vpop.f32.mrb[6].mxu0 }
 0x119   :  { %v1177_v44 = vadd.f32 %v1176_v41, %v1175_v39  ;;  %v1178_v45 = vpop.f32.mrb[6].mxu1  ;;  %v1157_v46 = vpop.f32.mrb[7].mxu0  ;;  %v1084_v39 = vld [vmem:[%s1631_s2] ss:$0 sm:$0xff] }
 0x11a   :  { %v1179_v47 = vpop.f32.mrb[7].mxu1  ;;  %v758_v48 = vadd.f32 %v1155_v42, %v718_v37  ;;  %v1092_v42 = vld [vmem:[%s1632_s7] ss:$0 sm:$0xff] }
 0x11b   :  { %v1085_v43 = vld [vmem:[%s1633_s3] ss:$0 sm:$0xff] }
 0x11c   :  { %v798_v49 = vadd.f32 %v1177_v44, %v758_v48 }
 0x127   :  { %v952_v50 = vpop.f32.mrb[8].mxu1 }
 0x128   :  { %v960_v51 = vrot.slane %v952_v50, 4  ;;  %v967_v52 = vmul.f32 %v952_v50, %v952_v50  ;;  %v1225_v53 = vpop.f32.mrb[9].mxu1 }
 0x129   :  { %v955_v54 = vpop.f32.mrb[10].mxu1 }
 0x12a   :  { %v961_v55 = vadd.f32 %v960_v51, %v952_v50  ;;  %v968_v56 = vrot.slane %v967_v52, 4  ;;  %v1226_v57 = vpop.f32.mrb[11].mxu1 }
 0x12c   :  { %v962_v58 = vrot.slane %v961_v55, 2  ;;  %v969_v59 = vadd.f32 %v968_v56, %v967_v52 }
 0x12e   :  { %v963_v60 = vadd.f32 %v962_v58, %v961_v55  ;;  %v970_v61 = vrot.slane %v969_v59, 2 }
 0x130   :  { %v964_v62 = vrot.slane %v963_v60, 1  ;;  %v971_v63 = vadd.f32 %v970_v61, %v969_v59 }
 0x132   :  { %v965_v0 = vadd.f32 %v964_v62, %v963_v60  ;;  %v972_v1 = vrot.slane %v971_v63, 1 }
 0x134   :  { %v966_v2 = vmul.f32 0.125, %v965_v0  ;;  %v973_v3 = vadd.f32 %v972_v1, %v971_v63 }
 0x136   :  { %v837_v4 = vpop.f32.mrb[8].mxu0  ;;  %v974_v8 = vmul.f32 0.125, %v973_v3  ;;  %v975_v9 = vmul.f32 %v966_v2, %v966_v2  ;;  %v978_v34 = vsub.f32 %v952_v50, %v966_v2 }
 0x137   :  { %v838_v5 = vadd.f32 %v837_v4, %v798_v49  ;;  %v1213_v6 = vpop.f32.mrb[9].mxu0 }
 0x138   :  { %v840_v7 = vpop.f32.mrb[10].mxu0  ;;  %v976_v15 = vsub.f32 %v974_v8, %v975_v9 }
 0x139   :  { %v845_v10 = vrot.slane %v838_v5, 4  ;;  %v852_v11 = vmul.f32 %v838_v5, %v838_v5  ;;  %v1214_v12 = vpop.f32.mrb[11].mxu0 }
 0x13a   :  { %v977_v20 = vmax.f32 %v976_v15, 0.0 }
 0x13b   :  { %v846_v13 = vadd.f32 %v845_v10, %v838_v5  ;;  %v853_v14 = vrot.slane %v852_v11, 4 }
 0x13c   :  { %v979_v25 = vadd.f32 1e-05, %v977_v20 }
 0x13d   :  { %v847_v16 = vrot.slane %v846_v13, 2  ;;  %v854_v17 = vadd.f32 %v853_v14, %v852_v11 }
 0x13e   :  { %1314 = vrsqrt.f32 %v979_v25 }
 0x13f   :  { %v848_v18 = vadd.f32 %v847_v16, %v846_v13  ;;  %v855_v19 = vrot.slane %v854_v17, 2 }
 0x141   :  { %v849_v21 = vrot.slane %v848_v18, 1  ;;  %v856_v22 = vadd.f32 %v855_v19, %v854_v17 }
 0x143   :  { %v850_v23 = vadd.f32 %v849_v21, %v848_v18  ;;  %v857_v24 = vrot.slane %v856_v22, 1 }
 0x145   :  { %v851_v26 = vmul.f32 0.125, %v850_v23  ;;  %v858_v27 = vadd.f32 %v857_v24, %v856_v22 }
 0x147   :  { %v859_v28 = vmul.f32 0.125, %v858_v27  ;;  %v860_v29 = vmul.f32 %v851_v26, %v851_v26  ;;  %v863_v37 = vsub.f32 %v838_v5, %v851_v26 }
 0x148   :  { %v1315_v33 = vpop.eup %1314 }
 0x149   :  { %v861_v30 = vsub.f32 %v859_v28, %v860_v29  ;;  %v981_v35 = vmul.f32 %v1315_v33, %v978_v34 }
 0x14b   :  { %v862_v31 = vmax.f32 %v861_v30, 0.0  ;;  %v988_v40 = vmul.f32 %v1091_v36, %v981_v35 }
 0x14d   :  { %v864_v32 = vadd.f32 1e-05, %v862_v31  ;;  %v995_v45 = vadd.f32 %v1092_v42, %v988_v40 }
 0x14f   :  { %1316 = vrsqrt.f32 %v864_v32 }
 0x159   :  { %v1317_v38 = vpop.eup %1316 }
 0x15a   :  { %v866_v41 = vmul.f32 %v1317_v38, %v863_v37 }
 0x15c   :  { %v873_v44 = vmul.f32 %v1084_v39, %v866_v41 }
 0x15e   :  { %v880_v46 = vadd.f32 %v1085_v43, %v873_v44 }
 0x160   :  { %v996_v47 = vadd.f32 %v995_v45, %v880_v46 }
 0x162   :  { %v997_v48 = vmax.f32 %v996_v47, 0.0 }
 0x164   :  { %998 = vst [vmem:[%s1634_s8] sm:$0xff] %v997_v48 }

// kernel: _lambda_.35
= control target key start
LH: loop header
LB: loop body
LE: loop exit
PB: predicated region body
PF: predicated region fallthrough
CT: control target
= control target key end

     0   :  { %vm1161_vm0 = vmmov 0   ;;  %s1427_s1 = inlined_call_operand.vmem [shape: bf16[1152,128], index: 1, kind: input, shape index: {}]   ;;  %s1428_s0 = inlined_call_operand.vmem [shape: bf16[8,1152], index: 0, kind: input, shape index: {}]   ;;  %s1429_s2 = inlined_call_operand.vmem [shape: f32[1,128], index: 2, kind: input, shape index: {}]   ;;  %s1430_s3 = inlined_call_operand.vmem [shape: f32[1,128], index: 3, kind: input, shape index: {}]   ;;  %s1431_s4 = inlined_call_operand.vmem [shape: f32[8,128], index: 4, kind: output, shape index: {}]  }
   0x1   :  { %v1077_v0 = vld [vmem:[%s1427_s1 + $0x40] sm:$0xff]   ;;  %v1081_v4 = vld [vmem:[%s1427_s1 + $0x48] sm:$0xff]   ;;  %v1085_v8 = vld [vmem:[%s1427_s1 + $0x50] sm:$0xff]  }
   0x2   :  { %v1078_v1 = vld [vmem:[%s1427_s1 + $0xc0] sm:$0xff]   ;;  %958 = vmatprep.subr.bf16.mxu0 %v1077_v0  ;;  %v1082_v5 = vld [vmem:[%s1427_s1 + $0xc8] sm:$0xff]   ;;  %v1086_v9 = vld [vmem:[%s1427_s1 + $0xd0] sm:$0xff]  }
   0x3   :  { %v1079_v2 = vld [vmem:[%s1427_s1] sm:$0xff]   ;;  %980 = vmatprep.subr.bf16.mxu1 %v1078_v1  ;;  %v1083_v6 = vld [vmem:[%s1427_s1 + $0x8] sm:$0xff]   ;;  %v1087_v10 = vld [vmem:[%s1427_s1 + $0x10] sm:$0xff]  }
   0x4   :  { %v1080_v3 = vld [vmem:[%s1427_s1 + $0x80] sm:$0xff]   ;;  %959 = vmatpush3.bf16.msra.mxu0 %v1079_v2  ;;  %v1084_v7 = vld [vmem:[%s1427_s1 + $0x88] sm:$0xff]   ;;  %v1088_v11 = vld [vmem:[%s1427_s1 + $0x90] sm:$0xff]  }
   0x5   :  { %981 = vmatpush3.bf16.msra.mxu1 %v1080_v3  ;;  %960 = vmatprep.subr.bf16.mxu0 %v1081_v4  ;;  %v1089_v12 = vld [vmem:[%s1427_s1 + $0x58] sm:$0xff]   ;;  %v1093_v16 = vld [vmem:[%s1427_s1 + $0x60] sm:$0xff]   ;;  %v1097_v20 = vld [vmem:[%s1427_s1 + $0x68] sm:$0xff]  }
   0x6   :  { %982 = vmatprep.subr.bf16.mxu1 %v1082_v5  ;;  %v1090_v13 = vld [vmem:[%s1427_s1 + $0xd8] sm:$0xff]   ;;  %v1094_v17 = vld [vmem:[%s1427_s1 + $0xe0] sm:$0xff]   ;;  %v1098_v21 = vld [vmem:[%s1427_s1 + $0xe8] sm:$0xff]  }
   0x7   :  { %v1091_v14 = vld [vmem:[%s1427_s1 + $0x18] sm:$0xff]   ;;  %v1095_v18 = vld [vmem:[%s1427_s1 + $0x20] sm:$0xff]   ;;  %v1099_v22 = vld [vmem:[%s1427_s1 + $0x28] sm:$0xff]  }
   0x8   :  { %961 = vmatpush3.bf16.msra.mxu0 %v1083_v6  ;;  %v1092_v15 = vld [vmem:[%s1427_s1 + $0x98] sm:$0xff]   ;;  %v1096_v19 = vld [vmem:[%s1427_s1 + $0xa0] sm:$0xff]   ;;  %v1100_v23 = vld [vmem:[%s1427_s1 + $0xa8] sm:$0xff]  }
   0x9   :  { %983 = vmatpush3.bf16.msra.mxu1 %v1084_v7  ;;  %962 = vmatprep.subr.bf16.mxu0 %v1085_v8  ;;  %v1101_v24 = vld [vmem:[%s1427_s1 + $0x70] sm:$0xff]   ;;  %v1105_v28 = vld [vmem:[%s1427_s1 + $0x78] sm:$0xff]   ;;  %v18_v32 = vld [vmem:[%s1428_s0] sm:$0xff] }
   0xa   :  { %984 = vmatprep.subr.bf16.mxu1 %v1086_v9  ;;  %v1102_v25 = vld [vmem:[%s1427_s1 + $0xf0] sm:$0xff]   ;;  %v1106_v29 = vld [vmem:[%s1427_s1 + $0xf8] sm:$0xff]   ;;  %v19_v33 = vld [vmem:[%s1428_s0 + $0x8] sm:$0xff]  ;;  %v875_v34 = vcombine.low %v18_v32, %v18_v32  ;;  %v876_v35 = vcombine.high %v18_v32, %v18_v32 }
   0xb   :  { %v1103_v26 = vld [vmem:[%s1427_s1 + $0x30] sm:$0xff]   ;;  %v1107_v30 = vld [vmem:[%s1427_s1 + $0x38] sm:$0xff]   ;;  %v877_v36 = vcombine.low %v19_v33, %v19_v33  ;;  %v878_v37 = vcombine.high %v19_v33, %v19_v33  ;;  %v1113_v38 = vld [vmem:[%s1427_s1 + $0x140] sm:$0xff]  }
   0xc   :  { %963 = vmatpush3.bf16.msra.mxu0 %v1087_v10  ;;  %v1104_v27 = vld [vmem:[%s1427_s1 + $0xb0] sm:$0xff]   ;;  %v1108_v31 = vld [vmem:[%s1427_s1 + $0xb8] sm:$0xff]   ;;  %v1114_v39 = vld [vmem:[%s1427_s1 + $0x100] sm:$0xff]   ;;  %663 = vmatprep.mubr.bf16.mxu0 %v876_v35 }
   0xd   :  { %985 = vmatpush3.bf16.msra.mxu1 %v1088_v11  ;;  %964 = vmatprep.subr.bf16.mxu0 %v1089_v12  ;;  %v1115_v40 = vld [vmem:[%s1427_s1 + $0x1c0] sm:$0xff]   ;;  %v1117_v42 = vld [vmem:[%s1427_s1 + $0x148] sm:$0xff]   ;;  %v1121_v46 = vld [vmem:[%s1427_s1 + $0x150] sm:$0xff]  }
   0xe   :  { %986 = vmatprep.subr.bf16.mxu1 %v1090_v13  ;;  %703 = vmatprep.mubr.bf16.mxu1 %v878_v37  ;;  %v1116_v41 = vld [vmem:[%s1427_s1 + $0x180] sm:$0xff]   ;;  %v1118_v43 = vld [vmem:[%s1427_s1 + $0x108] sm:$0xff]   ;;  %v1122_v47 = vld [vmem:[%s1427_s1 + $0x110] sm:$0xff]   ;;  %v1160_v13 = vmov 0.0  }
   0xf   :  { %v1119_v44 = vld [vmem:[%s1427_s1 + $0x1c8] sm:$0xff]   ;;  %v1123_v48 = vld [vmem:[%s1427_s1 + $0x1d0] sm:$0xff]   ;;  %v1125_v50 = vld [vmem:[%s1427_s1 + $0x158] sm:$0xff]  }
  0x10   :  { %965 = vmatpush3.bf16.msra.mxu0 %v1091_v14  ;;  %v1120_v45 = vld [vmem:[%s1427_s1 + $0x188] sm:$0xff]   ;;  %v1124_v49 = vld [vmem:[%s1427_s1 + $0x190] sm:$0xff]   ;;  %v1126_v51 = vld [vmem:[%s1427_s1 + $0x118] sm:$0xff]  }
  0x11   :  { %987 = vmatpush3.bf16.msra.mxu1 %v1092_v15  ;;  %966 = vmatprep.subr.bf16.mxu0 %v1093_v16  ;;  %v1127_v52 = vld [vmem:[%s1427_s1 + $0x1d8] sm:$0xff]   ;;  %v1129_v54 = vld [vmem:[%s1427_s1 + $0x160] sm:$0xff]   ;;  %v1133_v58 = vld [vmem:[%s1427_s1 + $0x168] sm:$0xff]  }
  0x12   :  { %988 = vmatprep.subr.bf16.mxu1 %v1094_v17  ;;  %v1128_v53 = vld [vmem:[%s1427_s1 + $0x198] sm:$0xff]   ;;  %v1130_v55 = vld [vmem:[%s1427_s1 + $0x120] sm:$0xff]   ;;  %v1134_v59 = vld [vmem:[%s1427_s1 + $0x128] sm:$0xff]  }
  0x13   :  { %v1131_v56 = vld [vmem:[%s1427_s1 + $0x1e0] sm:$0xff]   ;;  %v1135_v60 = vld [vmem:[%s1427_s1 + $0x1e8] sm:$0xff]   ;;  %v1137_v62 = vld [vmem:[%s1427_s1 + $0x170] sm:$0xff]  }
  0x14   :  { %967 = vmatpush3.bf16.msra.mxu0 %v1095_v18  ;;  %v1132_v57 = vld [vmem:[%s1427_s1 + $0x1a0] sm:$0xff]   ;;  %v1136_v61 = vld [vmem:[%s1427_s1 + $0x1a8] sm:$0xff]   ;;  %v1138_v63 = vld [vmem:[%s1427_s1 + $0x130] sm:$0xff]  }
  0x15   :  { %989 = vmatpush3.bf16.msra.mxu1 %v1096_v19  ;;  %968 = vmatprep.subr.bf16.mxu0 %v1097_v20  ;;  %v1139_v0 = vld [vmem:[%s1427_s1 + $0x1f0] sm:$0xff]   ;;  %v1141_v2 = vld [vmem:[%s1427_s1 + $0x178] sm:$0xff]   ;;  %v1149_v12 = vld [vmem:[%s1427_s1 + $0x200] sm:$0xff]  }
  0x16   :  { %990 = vmatprep.subr.bf16.mxu1 %v1098_v21  ;;  %v1140_v1 = vld [vmem:[%s1427_s1 + $0x1b0] sm:$0xff]   ;;  %v1142_v3 = vld [vmem:[%s1427_s1 + $0x138] sm:$0xff]   ;;  %v1150_v14 = vld [vmem:[%s1427_s1 + $0x208] sm:$0xff]  }
  0x17   :  { %v1143_v4 = vld [vmem:[%s1427_s1 + $0x1f8] sm:$0xff]   ;;  %v20_v5 = vld [vmem:[%s1428_s0 + $0x10] sm:$0xff]  ;;  %v1153_v17 = vld [vmem:[%s1427_s1 + $0x220] sm:$0xff]  }
  0x18   :  { %969 = vmatpush3.bf16.msra.mxu0 %v1099_v22  ;;  %v880_v6 = vcombine.high %v20_v5, %v20_v5  ;;  %v1146_v7 = vld [vmem:[%s1427_s1 + $0x1b8] sm:$0xff]   ;;  %v879_v8 = vcombine.low %v20_v5, %v20_v5  ;;  %v1151_v15 = vld [vmem:[%s1427_s1 + $0x210] sm:$0xff]   ;;  %v1154_v18 = vld [vmem:[%s1427_s1 + $0x228] sm:$0xff]  }
  0x19   :  { %991 = vmatpush3.bf16.msra.mxu1 %v1100_v23  ;;  %970 = vmatprep.subr.bf16.mxu0 %v1101_v24  ;;  %v21_v9 = vld [vmem:[%s1428_s0 + $0x18] sm:$0xff]  ;;  %v1155_v19 = vld [vmem:[%s1427_s1 + $0x230] sm:$0xff]   ;;  %v1157_v21 = vld [vmem:[%s1428_s0 + $0x20] ss:$0 sps:$4 sm:$0xff]  }
  0x1a   :  { %992 = vmatprep.subr.bf16.mxu1 %v1102_v25  ;;  %v881_v10 = vcombine.low %v21_v9, %v21_v9  ;;  %v882_v11 = vcombine.high %v21_v9, %v21_v9  ;;  %v1152_v16 = vld [vmem:[%s1427_s1 + $0x218] sm:$0xff]   ;;  %v957_v9 = vld [vmem:[%s1430_s3] ss:$0 sm:$0xff] }
  0x1b   :  { %v1156_v20 = vld [vmem:[%s1427_s1 + $0x238] sm:$0xff]  }
  0x1c   :  { %971 = vmatpush3.bf16.msra.mxu0 %v1103_v26 }
  0x1d   :  { %993 = vmatpush3.bf16.msra.mxu1 %v1104_v27  ;;  %972 = vmatprep.subr.bf16.mxu0 %v1105_v28 }
  0x1e   :  { %994 = vmatprep.subr.bf16.mxu1 %v1106_v29 }
  0x20   :  { %973 = vmatpush3.bf16.msra.mxu0 %v1107_v30 }
  0x21   :  { %995 = vmatpush3.bf16.msra.mxu1 %v1108_v31  ;;  %1002 = vmatprep.subr.bf16.mxu0 %v1113_v38 }
  0x22   :  { %1024 = vmatprep.subr.bf16.mxu1 %v1115_v40 }
  0x23   :  { %664 = vmatmul.mubr.bf16.vlgmr.msra.gmra.mrb[0].mxu0 %v875_v34 }
  0x24   :  { %704 = vmatmul.mubr.bf16.vlgmr.msra.gmra.mrb[0].mxu1 %v877_v36  ;;  %1003 = vmatpush3.bf16.msra.mxu0 %v1114_v39 }
  0x25   :  { %1025 = vmatpush3.bf16.msra.mxu1 %v1116_v41  ;;  %1004 = vmatprep.subr.bf16.mxu0 %v1117_v42 }
  0x26   :  { %1026 = vmatprep.subr.bf16.mxu1 %v1119_v44  ;;  %743 = vmatprep.mubr.bf16.mxu0 %v880_v6 }
  0x27   :  { %783 = vmatprep.mubr.bf16.mxu1 %v882_v11 }
  0x28   :  { %1005 = vmatpush3.bf16.msra.mxu0 %v1118_v43 }
  0x29   :  { %1027 = vmatpush3.bf16.msra.mxu1 %v1120_v45  ;;  %1006 = vmatprep.subr.bf16.mxu0 %v1121_v46 }
  0x2a   :  { %1028 = vmatprep.subr.bf16.mxu1 %v1123_v48 }
  0x2c   :  { %1007 = vmatpush3.bf16.msra.mxu0 %v1122_v47 }
  0x2d   :  { %1029 = vmatpush3.bf16.msra.mxu1 %v1124_v49  ;;  %1008 = vmatprep.subr.bf16.mxu0 %v1125_v50 }
  0x2e   :  { %1030 = vmatprep.subr.bf16.mxu1 %v1127_v52 }
  0x30   :  { %1009 = vmatpush3.bf16.msra.mxu0 %v1126_v51 }
  0x31   :  { %1031 = vmatpush3.bf16.msra.mxu1 %v1128_v53  ;;  %1010 = vmatprep.subr.bf16.mxu0 %v1129_v54 }
  0x32   :  { %1032 = vmatprep.subr.bf16.mxu1 %v1131_v56 }
  0x34   :  { %1011 = vmatpush3.bf16.msra.mxu0 %v1130_v55 }
  0x35   :  { %1033 = vmatpush3.bf16.msra.mxu1 %v1132_v57  ;;  %1012 = vmatprep.subr.bf16.mxu0 %v1133_v58 }
  0x36   :  { %1034 = vmatprep.subr.bf16.mxu1 %v1135_v60 }
  0x38   :  { %1013 = vmatpush3.bf16.msra.mxu0 %v1134_v59 }
  0x39   :  { %1035 = vmatpush3.bf16.msra.mxu1 %v1136_v61  ;;  %1014 = vmatprep.subr.bf16.mxu0 %v1137_v62 }
  0x3a   :  { %1036 = vmatprep.subr.bf16.mxu1 %v1139_v0 }
  0x3c   :  { %1015 = vmatpush3.bf16.msra.mxu0 %v1138_v63 }
  0x3d   :  { %1037 = vmatpush3.bf16.msra.mxu1 %v1140_v1  ;;  %1016 = vmatprep.subr.bf16.mxu0 %v1141_v2 }
  0x3e   :  { %1038 = vmatprep.subr.bf16.mxu1 %v1143_v4 }
  0x40   :  { %1017 = vmatpush3.bf16.msra.mxu0 %v1142_v3 }
  0x41   :  { %1039 = vmatpush3.bf16.msra.mxu1 %v1146_v7  ;;  %1055 = vmatprep.subr.bf16.mxu0 %v1160_v13  ;;  %v956_v7 = vld [vmem:[%s1429_s2] ss:$0 sm:$0xff] }
  0x43   :  { %744 = vmatmul.mubr.bf16.vlgmr.msra.gmra.mrb[4].mxu0 %v879_v8 }
  0x44   :  { %1056 = vmatpush3.bf16.msra.mxu0 %v1149_v12  ;;  %784 = vmatmul.mubr.bf16.vlgmr.msra.gmra.mrb[4].mxu1 %v881_v10 }
  0x45   :  { %1057 = vmatprep.subr.bf16.mxu0 %v1160_v13  ;;  %1071 = vmatprep.mubr.msk.bf16.mxu0 %vm1161_vm0, %v1160_v13 }
  0x48   :  { %1058 = vmatpush3.bf16.msra.mxu0 %v1150_v14 }
  0x49   :  { %1059 = vmatprep.subr.bf16.mxu0 %v1160_v13 }
  0x4c   :  { %1060 = vmatpush3.bf16.msra.mxu0 %v1151_v15 }
  0x4d   :  { %1061 = vmatprep.subr.bf16.mxu0 %v1160_v13 }
  0x50   :  { %1062 = vmatpush3.bf16.msra.mxu0 %v1152_v16 }
  0x51   :  { %1063 = vmatprep.subr.bf16.mxu0 %v1160_v13 }
  0x54   :  { %1064 = vmatpush3.bf16.msra.mxu0 %v1153_v17 }
  0x55   :  { %1065 = vmatprep.subr.bf16.mxu0 %v1160_v13 }
  0x58   :  { %1066 = vmatpush3.bf16.msra.mxu0 %v1154_v18 }
  0x59   :  { %1067 = vmatprep.subr.bf16.mxu0 %v1160_v13 }
  0x5c   :  { %1068 = vmatpush3.bf16.msra.mxu0 %v1155_v19 }
  0x5d   :  { %1069 = vmatprep.subr.bf16.mxu0 %v1160_v13 }
  0x60   :  { %1070 = vmatpush3.bf16.msra.mxu0 %v1156_v20 }
  0x63   :  { %1072 = vmatmul.mubr.bf16.vlgmr.msra.gmra.mrb[8].mxu0 %v1157_v21 }
  0xf6   :  { %v974_v22 = vpop.f32.mrb[0].mxu0 }
  0xf7   :  { %v996_v23 = vpop.f32.mrb[0].mxu1  ;;  %v975_v24 = vpop.f32.mrb[1].mxu0 }
  0xf8   :  { %v997_v25 = vpop.f32.mrb[1].mxu1  ;;  %v976_v26 = vadd.f32 %v975_v24, %v974_v22  ;;  %v977_v28 = vpop.f32.mrb[2].mxu0 }
  0xf9   :  { %v998_v27 = vadd.f32 %v997_v25, %v996_v23  ;;  %v999_v29 = vpop.f32.mrb[2].mxu1  ;;  %v978_v30 = vpop.f32.mrb[3].mxu0 }
  0xfa   :  { %v1000_v31 = vpop.f32.mrb[3].mxu1 }
  0xfb   :  { %v706_v32 = vadd.f32 %v998_v27, %v976_v26 }
 0x116   :  { %v1018_v33 = vpop.f32.mrb[4].mxu0 }
 0x117   :  { %v1019_v34 = vpop.f32.mrb[5].mxu0  ;;  %v1040_v35 = vpop.f32.mrb[4].mxu1 }
 0x118   :  { %v1020_v36 = vadd.f32 %v1019_v34, %v1018_v33  ;;  %v1021_v37 = vpop.f32.mrb[6].mxu0  ;;  %v1041_v38 = vpop.f32.mrb[5].mxu1 }
 0x119   :  { %v1022_v39 = vpop.f32.mrb[7].mxu0  ;;  %v1042_v40 = vadd.f32 %v1041_v38, %v1040_v35  ;;  %v1043_v41 = vpop.f32.mrb[6].mxu1 }
 0x11a   :  { %v746_v42 = vadd.f32 %v1020_v36, %v706_v32  ;;  %v1044_v43 = vpop.f32.mrb[7].mxu1 }
 0x11c   :  { %v786_v44 = vadd.f32 %v1042_v40, %v746_v42 }
 0x136   :  { %v825_v45 = vpop.f32.mrb[8].mxu0 }
 0x137   :  { %v826_v46 = vadd.f32 %v825_v45, %v786_v44  ;;  %v1073_v47 = vpop.f32.mrb[9].mxu0 }
 0x138   :  { %v828_v48 = vpop.f32.mrb[10].mxu0 }
 0x139   :  { %v833_v49 = vrot.slane %v826_v46, 4  ;;  %v840_v50 = vmul.f32 %v826_v46, %v826_v46  ;;  %v1074_v51 = vpop.f32.mrb[11].mxu0 }
 0x13b   :  { %v834_v52 = vadd.f32 %v833_v49, %v826_v46  ;;  %v841_v53 = vrot.slane %v840_v50, 4 }
 0x13d   :  { %v835_v54 = vrot.slane %v834_v52, 2  ;;  %v842_v55 = vadd.f32 %v841_v53, %v840_v50 }
 0x13f   :  { %v836_v56 = vadd.f32 %v835_v54, %v834_v52  ;;  %v843_v57 = vrot.slane %v842_v55, 2 }
 0x141   :  { %v837_v58 = vrot.slane %v836_v56, 1  ;;  %v844_v59 = vadd.f32 %v843_v57, %v842_v55 }
 0x143   :  { %v838_v60 = vadd.f32 %v837_v58, %v836_v56  ;;  %v845_v61 = vrot.slane %v844_v59, 1 }
 0x145   :  { %v839_v62 = vmul.f32 0.125, %v838_v60  ;;  %v846_v63 = vadd.f32 %v845_v61, %v844_v59 }
 0x147   :  { %v847_v0 = vmul.f32 0.125, %v846_v63  ;;  %v848_v1 = vmul.f32 %v839_v62, %v839_v62  ;;  %v851_v5 = vsub.f32 %v826_v46, %v839_v62 }
 0x149   :  { %v849_v2 = vsub.f32 %v847_v0, %v848_v1 }
 0x14b   :  { %v850_v3 = vmax.f32 %v849_v2, 0.0 }
 0x14d   :  { %v852_v4 = vadd.f32 1e-05, %v850_v3 }
 0x14f   :  { %1158 = vrsqrt.f32 %v852_v4 }
 0x159   :  { %v1159_v6 = vpop.eup %1158 }
 0x15a   :  { %v854_v8 = vmul.f32 %v1159_v6, %v851_v5 }
 0x15c   :  { %v861_v10 = vmul.f32 %v956_v7, %v854_v8 }
 0x15e   :  { %v868_v11 = vadd.f32 %v957_v9, %v861_v10 }
 0x160   :  { %v869_v12 = vmax.f32 %v868_v11, 0.0 }
 0x162   :  { %870 = vst [vmem:[%s1431_s4] sm:$0xff] %v869_v12 }

// kernel: _lambda_.39
= control target key start
LH: loop header
LB: loop body
LE: loop exit
PB: predicated region body
PF: predicated region fallthrough
CT: control target
= control target key end

     0   :  { %vm11_vm0 = vcmask 1043456   ;;  %s103_s0 = inlined_call_operand.vmem [shape: f32[2,4,128], index: 0, kind: input, shape index: {}]   ;;  %s104_s1 = inlined_call_operand.hbm [shape: f32[2,128], index: 1, kind: output, shape index: {}]  }
   0x1   :  { %v9_v0 = vld [vmem:[%s103_s0] sm:$0xf]  ;;  %v10_v1 = vld [vmem:[%s103_s0 + $0x4] sm:$0xf] }
   0x2   :  { %v12_v2 = vsel %vm11_vm0, %v9_v0, 0.0  ;;  %v19_v3 = vsel %vm11_vm0, %v10_v1, 0.0 }
   0x3   :  { %6 = vsyncpa [#allocation3], 0  ;;  %v13_v4 = vrot.slane %v12_v2, 4  ;;  %v20_v5 = vrot.slane %v19_v3, 4  ;;  %s74_s10 = smov [#allocation2]   ;;  %vm31_vm1 = vcmask 1041409  }
   0x4   :  { %s41_s11 = sshll.u32 %s74_s10, 4  ;;  %s42_s11 = int_to_ptr.vmem [resolvable:$true] %s41_s11 }
   0x5   :  { %v14_v6 = vadd.f32 %v13_v4, %v12_v2  ;;  %v21_v7 = vadd.f32 %v20_v5, %v19_v3  ;;  %s50_s0 = scalar_lea.vmem %s42_s11, 32  ;;  %p55_p1 = scmp.lt.s32.totalorder %s42_s11, %s42_s11 }
   0x6   :  { %p51_p0 = scmp.ne.s32.totalorder %s42_s11, %s50_s0  ;;  %p56_p2 = scmp.lt.s32.totalorder %s50_s0, %s50_s0 }
   0x7   :  { %v15_v8 = vrot.slane %v14_v6, 2  ;;  %v22_v9 = vrot.slane %v21_v7, 2 }
   0x8   :  { %p57_p3 = por %p56_p2, %p55_p1 }
   0x9   :  { %v16_v10 = vadd.f32 %v15_v8, %v14_v6  ;;  %v23_v11 = vadd.f32 %v22_v9, %v21_v7 }
   0xa   :  { %p58_p4 = pnand %p57_p3, %p51_p0 }
   0xb   :  { %v17_v12 = vrot.slane %v16_v10, 1  ;;  %v24_v13 = vrot.slane %v23_v11, 1 }
   0xd   :  { %v18_v14 = vadd.f32 %v17_v12, %v16_v10  ;;  %v25_v15 = vadd.f32 %v24_v13, %v23_v11 }
   0xf   :  { %v27_v16 = vmul.f32 0.25, %v18_v14  ;;  %v28_v17 = vmul.f32 0.25, %v25_v15 }
  0x11   :  { %v32_v18 = vsel %vm31_vm1, %v28_v17, %v27_v16 }
  0x12   :  { %34 = vst [vmem:[#allocation2] sm:$0x3] %v32_v18 }
  0x13   :  { %61 = shalt.err (!%p58_p4)
}
  0x14   :  { %s62_s14 = scalar_lea.hbm %s104_s1, 32 }
  0x15   :  { %p63_p5 = scmp.ne.s32.totalorder %s104_s1, %s62_s14  ;;  %p66_p6 = scmp.lt.u32.totalorder %s62_s14, %s104_s1 }
  0x17   :  { %p68_p7 = pnand %p66_p6, %p63_p5 }
  0x19   :  { %71 = shalt.err (!%p68_p7)
}
  0x1a   :  { %44 = dma.vmem_to_hbm [thread:$0]  %s42_s11, 32, %s104_s1, [#allocation3]  }
  0x1b   :  { %72 = dma.done.wait [#allocation3], 32  }
  0x1c   :  { %73 = vsyncadd [#allocation3], 4294967264 }
  0x1d   :  { %48 = vsyncpa [#allocation3], 1 }

// kernel: _lambda_.36
= control target key start
LH: loop header
LB: loop body
LE: loop exit
PB: predicated region body
PF: predicated region fallthrough
CT: control target
= control target key end

     0   :  { %vm1166_vm0 = vmmov 0   ;;  %s1440_s1 = inlined_call_operand.vmem [shape: bf16[1152,128], index: 1, kind: input, shape index: {}]   ;;  %s1441_s0 = inlined_call_operand.vmem [shape: bf16[8,1152], index: 0, kind: input, shape index: {}]   ;;  %s1442_s2 = inlined_call_operand.vmem [shape: f32[1,128], index: 2, kind: input, shape index: {}]   ;;  %s1443_s3 = inlined_call_operand.vmem [shape: f32[1,128], index: 3, kind: input, shape index: {}]   ;;  %s1444_s4 = inlined_call_operand.vmem [shape: f32[8,128], index: 4, kind: input, shape index: {}]   ;;  %s1445_s5 = inlined_call_operand.vmem [shape: f32[8,128], index: 5, kind: output, shape index: {}]  }
   0x1   :  { %v1082_v0 = vld [vmem:[%s1440_s1 + $0x40] sm:$0xff]   ;;  %v1086_v4 = vld [vmem:[%s1440_s1 + $0x48] sm:$0xff]   ;;  %v1090_v8 = vld [vmem:[%s1440_s1 + $0x50] sm:$0xff]  }
   0x2   :  { %v1083_v1 = vld [vmem:[%s1440_s1 + $0xc0] sm:$0xff]   ;;  %963 = vmatprep.subr.bf16.mxu0 %v1082_v0  ;;  %v1087_v5 = vld [vmem:[%s1440_s1 + $0xc8] sm:$0xff]   ;;  %v1091_v9 = vld [vmem:[%s1440_s1 + $0xd0] sm:$0xff]  }
   0x3   :  { %v1084_v2 = vld [vmem:[%s1440_s1] sm:$0xff]   ;;  %985 = vmatprep.subr.bf16.mxu1 %v1083_v1  ;;  %v1088_v6 = vld [vmem:[%s1440_s1 + $0x8] sm:$0xff]   ;;  %v1092_v10 = vld [vmem:[%s1440_s1 + $0x10] sm:$0xff]  }
   0x4   :  { %v1085_v3 = vld [vmem:[%s1440_s1 + $0x80] sm:$0xff]   ;;  %964 = vmatpush3.bf16.msra.mxu0 %v1084_v2  ;;  %v1089_v7 = vld [vmem:[%s1440_s1 + $0x88] sm:$0xff]   ;;  %v1093_v11 = vld [vmem:[%s1440_s1 + $0x90] sm:$0xff]  }
   0x5   :  { %986 = vmatpush3.bf16.msra.mxu1 %v1085_v3  ;;  %965 = vmatprep.subr.bf16.mxu0 %v1086_v4  ;;  %v1094_v12 = vld [vmem:[%s1440_s1 + $0x58] sm:$0xff]   ;;  %v1098_v16 = vld [vmem:[%s1440_s1 + $0x60] sm:$0xff]   ;;  %v1102_v20 = vld [vmem:[%s1440_s1 + $0x68] sm:$0xff]  }
   0x6   :  { %987 = vmatprep.subr.bf16.mxu1 %v1087_v5  ;;  %v1095_v13 = vld [vmem:[%s1440_s1 + $0xd8] sm:$0xff]   ;;  %v1099_v17 = vld [vmem:[%s1440_s1 + $0xe0] sm:$0xff]   ;;  %v1103_v21 = vld [vmem:[%s1440_s1 + $0xe8] sm:$0xff]  }
   0x7   :  { %v1096_v14 = vld [vmem:[%s1440_s1 + $0x18] sm:$0xff]   ;;  %v1100_v18 = vld [vmem:[%s1440_s1 + $0x20] sm:$0xff]   ;;  %v1104_v22 = vld [vmem:[%s1440_s1 + $0x28] sm:$0xff]  }
   0x8   :  { %966 = vmatpush3.bf16.msra.mxu0 %v1088_v6  ;;  %v1097_v15 = vld [vmem:[%s1440_s1 + $0x98] sm:$0xff]   ;;  %v1101_v19 = vld [vmem:[%s1440_s1 + $0xa0] sm:$0xff]   ;;  %v1105_v23 = vld [vmem:[%s1440_s1 + $0xa8] sm:$0xff]  }
   0x9   :  { %988 = vmatpush3.bf16.msra.mxu1 %v1089_v7  ;;  %967 = vmatprep.subr.bf16.mxu0 %v1090_v8  ;;  %v1106_v24 = vld [vmem:[%s1440_s1 + $0x70] sm:$0xff]   ;;  %v1110_v28 = vld [vmem:[%s1440_s1 + $0x78] sm:$0xff]   ;;  %v21_v32 = vld [vmem:[%s1441_s0] sm:$0xff] }
   0xa   :  { %989 = vmatprep.subr.bf16.mxu1 %v1091_v9  ;;  %v1107_v25 = vld [vmem:[%s1440_s1 + $0xf0] sm:$0xff]   ;;  %v1111_v29 = vld [vmem:[%s1440_s1 + $0xf8] sm:$0xff]   ;;  %v22_v33 = vld [vmem:[%s1441_s0 + $0x8] sm:$0xff]  ;;  %v880_v34 = vcombine.low %v21_v32, %v21_v32  ;;  %v881_v35 = vcombine.high %v21_v32, %v21_v32 }
   0xb   :  { %v1108_v26 = vld [vmem:[%s1440_s1 + $0x30] sm:$0xff]   ;;  %v1112_v30 = vld [vmem:[%s1440_s1 + $0x38] sm:$0xff]   ;;  %v882_v36 = vcombine.low %v22_v33, %v22_v33  ;;  %v883_v37 = vcombine.high %v22_v33, %v22_v33  ;;  %v1118_v38 = vld [vmem:[%s1440_s1 + $0x140] sm:$0xff]  }
   0xc   :  { %968 = vmatpush3.bf16.msra.mxu0 %v1092_v10  ;;  %v1109_v27 = vld [vmem:[%s1440_s1 + $0xb0] sm:$0xff]   ;;  %v1113_v31 = vld [vmem:[%s1440_s1 + $0xb8] sm:$0xff]   ;;  %v1119_v39 = vld [vmem:[%s1440_s1 + $0x100] sm:$0xff]   ;;  %666 = vmatprep.mubr.bf16.mxu0 %v881_v35 }
   0xd   :  { %990 = vmatpush3.bf16.msra.mxu1 %v1093_v11  ;;  %969 = vmatprep.subr.bf16.mxu0 %v1094_v12  ;;  %v1120_v40 = vld [vmem:[%s1440_s1 + $0x1c0] sm:$0xff]   ;;  %v1122_v42 = vld [vmem:[%s1440_s1 + $0x148] sm:$0xff]   ;;  %v1126_v46 = vld [vmem:[%s1440_s1 + $0x150] sm:$0xff]  }
   0xe   :  { %991 = vmatprep.subr.bf16.mxu1 %v1095_v13  ;;  %706 = vmatprep.mubr.bf16.mxu1 %v883_v37  ;;  %v1121_v41 = vld [vmem:[%s1440_s1 + $0x180] sm:$0xff]   ;;  %v1123_v43 = vld [vmem:[%s1440_s1 + $0x108] sm:$0xff]   ;;  %v1127_v47 = vld [vmem:[%s1440_s1 + $0x110] sm:$0xff]   ;;  %v1165_v13 = vmov 0.0  }
   0xf   :  { %v1124_v44 = vld [vmem:[%s1440_s1 + $0x1c8] sm:$0xff]   ;;  %v1128_v48 = vld [vmem:[%s1440_s1 + $0x1d0] sm:$0xff]   ;;  %v1130_v50 = vld [vmem:[%s1440_s1 + $0x158] sm:$0xff]  }
  0x10   :  { %970 = vmatpush3.bf16.msra.mxu0 %v1096_v14  ;;  %v1125_v45 = vld [vmem:[%s1440_s1 + $0x188] sm:$0xff]   ;;  %v1129_v49 = vld [vmem:[%s1440_s1 + $0x190] sm:$0xff]   ;;  %v1131_v51 = vld [vmem:[%s1440_s1 + $0x118] sm:$0xff]  }
  0x11   :  { %992 = vmatpush3.bf16.msra.mxu1 %v1097_v15  ;;  %971 = vmatprep.subr.bf16.mxu0 %v1098_v16  ;;  %v1132_v52 = vld [vmem:[%s1440_s1 + $0x1d8] sm:$0xff]   ;;  %v1134_v54 = vld [vmem:[%s1440_s1 + $0x160] sm:$0xff]   ;;  %v1138_v58 = vld [vmem:[%s1440_s1 + $0x168] sm:$0xff]  }
  0x12   :  { %993 = vmatprep.subr.bf16.mxu1 %v1099_v17  ;;  %v1133_v53 = vld [vmem:[%s1440_s1 + $0x198] sm:$0xff]   ;;  %v1135_v55 = vld [vmem:[%s1440_s1 + $0x120] sm:$0xff]   ;;  %v1139_v59 = vld [vmem:[%s1440_s1 + $0x128] sm:$0xff]  }
  0x13   :  { %v1136_v56 = vld [vmem:[%s1440_s1 + $0x1e0] sm:$0xff]   ;;  %v1140_v60 = vld [vmem:[%s1440_s1 + $0x1e8] sm:$0xff]   ;;  %v1142_v62 = vld [vmem:[%s1440_s1 + $0x170] sm:$0xff]  }
  0x14   :  { %972 = vmatpush3.bf16.msra.mxu0 %v1100_v18  ;;  %v1137_v57 = vld [vmem:[%s1440_s1 + $0x1a0] sm:$0xff]   ;;  %v1141_v61 = vld [vmem:[%s1440_s1 + $0x1a8] sm:$0xff]   ;;  %v1143_v63 = vld [vmem:[%s1440_s1 + $0x130] sm:$0xff]  }
  0x15   :  { %994 = vmatpush3.bf16.msra.mxu1 %v1101_v19  ;;  %973 = vmatprep.subr.bf16.mxu0 %v1102_v20  ;;  %v1144_v0 = vld [vmem:[%s1440_s1 + $0x1f0] sm:$0xff]   ;;  %v1146_v2 = vld [vmem:[%s1440_s1 + $0x178] sm:$0xff]   ;;  %v1154_v12 = vld [vmem:[%s1440_s1 + $0x200] sm:$0xff]  }
  0x16   :  { %995 = vmatprep.subr.bf16.mxu1 %v1103_v21  ;;  %v1145_v1 = vld [vmem:[%s1440_s1 + $0x1b0] sm:$0xff]   ;;  %v1147_v3 = vld [vmem:[%s1440_s1 + $0x138] sm:$0xff]   ;;  %v1155_v14 = vld [vmem:[%s1440_s1 + $0x208] sm:$0xff]  }
  0x17   :  { %v1148_v4 = vld [vmem:[%s1440_s1 + $0x1f8] sm:$0xff]   ;;  %v23_v5 = vld [vmem:[%s1441_s0 + $0x10] sm:$0xff]  ;;  %v1158_v17 = vld [vmem:[%s1440_s1 + $0x220] sm:$0xff]  }
  0x18   :  { %974 = vmatpush3.bf16.msra.mxu0 %v1104_v22  ;;  %v885_v6 = vcombine.high %v23_v5, %v23_v5  ;;  %v1151_v7 = vld [vmem:[%s1440_s1 + $0x1b8] sm:$0xff]   ;;  %v884_v8 = vcombine.low %v23_v5, %v23_v5  ;;  %v1156_v15 = vld [vmem:[%s1440_s1 + $0x210] sm:$0xff]   ;;  %v1159_v18 = vld [vmem:[%s1440_s1 + $0x228] sm:$0xff]  }
  0x19   :  { %996 = vmatpush3.bf16.msra.mxu1 %v1105_v23  ;;  %975 = vmatprep.subr.bf16.mxu0 %v1106_v24  ;;  %v24_v9 = vld [vmem:[%s1441_s0 + $0x18] sm:$0xff]  ;;  %v1160_v19 = vld [vmem:[%s1440_s1 + $0x230] sm:$0xff]   ;;  %v1162_v21 = vld [vmem:[%s1441_s0 + $0x20] ss:$0 sps:$4 sm:$0xff]  }
  0x1a   :  { %997 = vmatprep.subr.bf16.mxu1 %v1107_v25  ;;  %v886_v10 = vcombine.low %v24_v9, %v24_v9  ;;  %v887_v11 = vcombine.high %v24_v9, %v24_v9  ;;  %v1157_v16 = vld [vmem:[%s1440_s1 + $0x218] sm:$0xff]   ;;  %v962_v9 = vld [vmem:[%s1443_s3] ss:$0 sm:$0xff] }
  0x1b   :  { %v1161_v20 = vld [vmem:[%s1440_s1 + $0x238] sm:$0xff]  }
  0x1c   :  { %976 = vmatpush3.bf16.msra.mxu0 %v1108_v26 }
  0x1d   :  { %998 = vmatpush3.bf16.msra.mxu1 %v1109_v27  ;;  %977 = vmatprep.subr.bf16.mxu0 %v1110_v28 }
  0x1e   :  { %999 = vmatprep.subr.bf16.mxu1 %v1111_v29 }
  0x20   :  { %978 = vmatpush3.bf16.msra.mxu0 %v1112_v30 }
  0x21   :  { %1000 = vmatpush3.bf16.msra.mxu1 %v1113_v31  ;;  %1007 = vmatprep.subr.bf16.mxu0 %v1118_v38 }
  0x22   :  { %1029 = vmatprep.subr.bf16.mxu1 %v1120_v40 }
  0x23   :  { %667 = vmatmul.mubr.bf16.vlgmr.msra.gmra.mrb[0].mxu0 %v880_v34 }
  0x24   :  { %707 = vmatmul.mubr.bf16.vlgmr.msra.gmra.mrb[0].mxu1 %v882_v36  ;;  %1008 = vmatpush3.bf16.msra.mxu0 %v1119_v39 }
  0x25   :  { %1030 = vmatpush3.bf16.msra.mxu1 %v1121_v41  ;;  %1009 = vmatprep.subr.bf16.mxu0 %v1122_v42 }
  0x26   :  { %1031 = vmatprep.subr.bf16.mxu1 %v1124_v44  ;;  %746 = vmatprep.mubr.bf16.mxu0 %v885_v6 }
  0x27   :  { %786 = vmatprep.mubr.bf16.mxu1 %v887_v11  ;;  %v872_v11 = vld [vmem:[%s1444_s4] sm:$0xff] }
  0x28   :  { %1010 = vmatpush3.bf16.msra.mxu0 %v1123_v43 }
  0x29   :  { %1032 = vmatpush3.bf16.msra.mxu1 %v1125_v45  ;;  %1011 = vmatprep.subr.bf16.mxu0 %v1126_v46 }
  0x2a   :  { %1033 = vmatprep.subr.bf16.mxu1 %v1128_v48 }
  0x2c   :  { %1012 = vmatpush3.bf16.msra.mxu0 %v1127_v47 }
  0x2d   :  { %1034 = vmatpush3.bf16.msra.mxu1 %v1129_v49  ;;  %1013 = vmatprep.subr.bf16.mxu0 %v1130_v50 }
  0x2e   :  { %1035 = vmatprep.subr.bf16.mxu1 %v1132_v52 }
  0x30   :  { %1014 = vmatpush3.bf16.msra.mxu0 %v1131_v51 }
  0x31   :  { %1036 = vmatpush3.bf16.msra.mxu1 %v1133_v53  ;;  %1015 = vmatprep.subr.bf16.mxu0 %v1134_v54 }
  0x32   :  { %1037 = vmatprep.subr.bf16.mxu1 %v1136_v56 }
  0x34   :  { %1016 = vmatpush3.bf16.msra.mxu0 %v1135_v55 }
  0x35   :  { %1038 = vmatpush3.bf16.msra.mxu1 %v1137_v57  ;;  %1017 = vmatprep.subr.bf16.mxu0 %v1138_v58 }
  0x36   :  { %1039 = vmatprep.subr.bf16.mxu1 %v1140_v60 }
  0x38   :  { %1018 = vmatpush3.bf16.msra.mxu0 %v1139_v59 }
  0x39   :  { %1040 = vmatpush3.bf16.msra.mxu1 %v1141_v61  ;;  %1019 = vmatprep.subr.bf16.mxu0 %v1142_v62 }
  0x3a   :  { %1041 = vmatprep.subr.bf16.mxu1 %v1144_v0 }
  0x3c   :  { %1020 = vmatpush3.bf16.msra.mxu0 %v1143_v63 }
  0x3d   :  { %1042 = vmatpush3.bf16.msra.mxu1 %v1145_v1  ;;  %1021 = vmatprep.subr.bf16.mxu0 %v1146_v2 }
  0x3e   :  { %1043 = vmatprep.subr.bf16.mxu1 %v1148_v4 }
  0x40   :  { %1022 = vmatpush3.bf16.msra.mxu0 %v1147_v3 }
  0x41   :  { %1044 = vmatpush3.bf16.msra.mxu1 %v1151_v7  ;;  %1060 = vmatprep.subr.bf16.mxu0 %v1165_v13  ;;  %v961_v7 = vld [vmem:[%s1442_s2] ss:$0 sm:$0xff] }
  0x43   :  { %747 = vmatmul.mubr.bf16.vlgmr.msra.gmra.mrb[4].mxu0 %v884_v8 }
  0x44   :  { %1061 = vmatpush3.bf16.msra.mxu0 %v1154_v12  ;;  %787 = vmatmul.mubr.bf16.vlgmr.msra.gmra.mrb[4].mxu1 %v886_v10 }
  0x45   :  { %1062 = vmatprep.subr.bf16.mxu0 %v1165_v13  ;;  %1076 = vmatprep.mubr.msk.bf16.mxu0 %vm1166_vm0, %v1165_v13 }
  0x48   :  { %1063 = vmatpush3.bf16.msra.mxu0 %v1155_v14 }
  0x49   :  { %1064 = vmatprep.subr.bf16.mxu0 %v1165_v13 }
  0x4c   :  { %1065 = vmatpush3.bf16.msra.mxu0 %v1156_v15 }
  0x4d   :  { %1066 = vmatprep.subr.bf16.mxu0 %v1165_v13 }
  0x50   :  { %1067 = vmatpush3.bf16.msra.mxu0 %v1157_v16 }
  0x51   :  { %1068 = vmatprep.subr.bf16.mxu0 %v1165_v13 }
  0x54   :  { %1069 = vmatpush3.bf16.msra.mxu0 %v1158_v17 }
  0x55   :  { %1070 = vmatprep.subr.bf16.mxu0 %v1165_v13 }
  0x58   :  { %1071 = vmatpush3.bf16.msra.mxu0 %v1159_v18 }
  0x59   :  { %1072 = vmatprep.subr.bf16.mxu0 %v1165_v13 }
  0x5c   :  { %1073 = vmatpush3.bf16.msra.mxu0 %v1160_v19 }
  0x5d   :  { %1074 = vmatprep.subr.bf16.mxu0 %v1165_v13 }
  0x60   :  { %1075 = vmatpush3.bf16.msra.mxu0 %v1161_v20 }
  0x63   :  { %1077 = vmatmul.mubr.bf16.vlgmr.msra.gmra.mrb[8].mxu0 %v1162_v21 }
  0xf6   :  { %v979_v22 = vpop.f32.mrb[0].mxu0 }
  0xf7   :  { %v1001_v23 = vpop.f32.mrb[0].mxu1  ;;  %v980_v24 = vpop.f32.mrb[1].mxu0 }
  0xf8   :  { %v1002_v25 = vpop.f32.mrb[1].mxu1  ;;  %v981_v26 = vadd.f32 %v980_v24, %v979_v22  ;;  %v982_v28 = vpop.f32.mrb[2].mxu0 }
  0xf9   :  { %v1003_v27 = vadd.f32 %v1002_v25, %v1001_v23  ;;  %v1004_v29 = vpop.f32.mrb[2].mxu1  ;;  %v983_v30 = vpop.f32.mrb[3].mxu0 }
  0xfa   :  { %v1005_v31 = vpop.f32.mrb[3].mxu1 }
  0xfb   :  { %v709_v32 = vadd.f32 %v1003_v27, %v981_v26 }
 0x116   :  { %v1023_v33 = vpop.f32.mrb[4].mxu0 }
 0x117   :  { %v1024_v34 = vpop.f32.mrb[5].mxu0  ;;  %v1045_v35 = vpop.f32.mrb[4].mxu1 }
 0x118   :  { %v1025_v36 = vadd.f32 %v1024_v34, %v1023_v33  ;;  %v1026_v37 = vpop.f32.mrb[6].mxu0  ;;  %v1046_v38 = vpop.f32.mrb[5].mxu1 }
 0x119   :  { %v1027_v39 = vpop.f32.mrb[7].mxu0  ;;  %v1047_v40 = vadd.f32 %v1046_v38, %v1045_v35  ;;  %v1048_v41 = vpop.f32.mrb[6].mxu1 }
 0x11a   :  { %v749_v42 = vadd.f32 %v1025_v36, %v709_v32  ;;  %v1049_v43 = vpop.f32.mrb[7].mxu1 }
 0x11c   :  { %v789_v44 = vadd.f32 %v1047_v40, %v749_v42 }
 0x136   :  { %v828_v45 = vpop.f32.mrb[8].mxu0 }
 0x137   :  { %v829_v46 = vadd.f32 %v828_v45, %v789_v44  ;;  %v1078_v47 = vpop.f32.mrb[9].mxu0 }
 0x138   :  { %v831_v48 = vpop.f32.mrb[10].mxu0 }
 0x139   :  { %v836_v49 = vrot.slane %v829_v46, 4  ;;  %v843_v50 = vmul.f32 %v829_v46, %v829_v46  ;;  %v1079_v51 = vpop.f32.mrb[11].mxu0 }
 0x13b   :  { %v837_v52 = vadd.f32 %v836_v49, %v829_v46  ;;  %v844_v53 = vrot.slane %v843_v50, 4 }
 0x13d   :  { %v838_v54 = vrot.slane %v837_v52, 2  ;;  %v845_v55 = vadd.f32 %v844_v53, %v843_v50 }
 0x13f   :  { %v839_v56 = vadd.f32 %v838_v54, %v837_v52  ;;  %v846_v57 = vrot.slane %v845_v55, 2 }
 0x141   :  { %v840_v58 = vrot.slane %v839_v56, 1  ;;  %v847_v59 = vadd.f32 %v846_v57, %v845_v55 }
 0x143   :  { %v841_v60 = vadd.f32 %v840_v58, %v839_v56  ;;  %v848_v61 = vrot.slane %v847_v59, 1 }
 0x145   :  { %v842_v62 = vmul.f32 0.125, %v841_v60  ;;  %v849_v63 = vadd.f32 %v848_v61, %v847_v59 }
 0x147   :  { %v850_v0 = vmul.f32 0.125, %v849_v63  ;;  %v851_v1 = vmul.f32 %v842_v62, %v842_v62  ;;  %v854_v5 = vsub.f32 %v829_v46, %v842_v62 }
 0x149   :  { %v852_v2 = vsub.f32 %v850_v0, %v851_v1 }
 0x14b   :  { %v853_v3 = vmax.f32 %v852_v2, 0.0 }
 0x14d   :  { %v855_v4 = vadd.f32 1e-05, %v853_v3 }
 0x14f   :  { %1163 = vrsqrt.f32 %v855_v4 }
 0x159   :  { %v1164_v6 = vpop.eup %1163 }
 0x15a   :  { %v857_v8 = vmul.f32 %v1164_v6, %v854_v5 }
 0x15c   :  { %v864_v10 = vmul.f32 %v961_v7, %v857_v8 }
 0x15e   :  { %v871_v12 = vadd.f32 %v962_v9, %v864_v10 }
 0x160   :  { %v873_v13 = vadd.f32 %v872_v11, %v871_v12 }
 0x162   :  { %v874_v14 = vmax.f32 %v873_v13, 0.0 }
 0x164   :  { %875 = vst [vmem:[%s1445_s5] sm:$0xff] %v874_v14 }

</bundles_post_ra>
